<compile_context>
chip_gen: v6e
topology: v6e:2x2x1
jax: 0.10.0
libtpu: 0.0.40
codegen_flags: <defaults>
</compile_context>

<pallas_src>
import jax
import jax.numpy as jnp
from jax.experimental import pallas as pl
from jax.experimental.pallas import tpu as pltpu

_PAD = 2             # halo width of the padded working buffer (5x5x5 -> pad 2)
_LEAKY_SLOPE = 0.01  # F.leaky_relu default negative_slope
_RES_SCALE = 0.1     # self.scale in the PyTorch module
_BN_EPS = 1e-5
_NUM_TAPS = 125      # single merged 5x5x5 stencil


def _round_up(a, b):
    return ((a + b - 1) // b) * b


# ----------------------------------------------------------------------------
# The fused kernel: one (batch, D-slab) block, fully register/VMEM resident.
# ----------------------------------------------------------------------------
def _make_kernel(wp, td, out_w, num_slabs):
    """wp = padded row stride (W+4); td = D-slab size; out_w = lane-dense width."""

    def kernel(xflat_ref, bias_ref, coef_ref, o_ref):
        # xflat_ref : (1, Dp, FLAT_IN)  zero-padded input, (H,W) flattened with
        #                               row stride wp; full padded volume for
        #                               this batch element (VMEM).
        # bias_ref  : (td, out_w)       per-voxel folded bias field (VMEM).
        # coef_ref  : (128,)  SMEM      125 merged stencil coefficients.
        # o_ref     : (1, td, out_w)    leaky_relu(stencil(x) + bias).
        d0 = 0 if num_slabs == 1 else pl.program_id(1) * td

        # 4 interleaved partial accumulators -> ILP across the 4 VALU slots;
        # they live in vregs (3 vregs each at td=8, out_w=384) and are stored
        # exactly once at the end (no per-tap VMEM read-modify-write).
        accs = [
            bias_ref[...],
            jnp.zeros((td, out_w), jnp.float32),
            jnp.zeros((td, out_w), jnp.float32),
            jnp.zeros((td, out_w), jnp.float32),
        ]

        # Single merged 5x5x5 stencil on the padded, flattened input.  The
        # padded-plane row stride (wp) keeps every tap a plain shifted slice.
        # (Deriving the kw offsets with an XLU lane rotate would cut vld
        #  pressure further; plain shifted loads are kept here for robustness.)
        t = 0
        for kd in range(5):
            for kh in range(5):
                for kw in range(5):
                    base = kh * wp + kw
                    win = xflat_ref[0, pl.ds(d0 + kd, td), pl.ds(base, out_w)]
                    accs[t % 4] = accs[t % 4] + coef_ref[t] * win
                    t += 1

        r = (accs[0] + accs[1]) + (accs[2] + accs[3])
        o_ref[0] = jnp.where(r >= 0, r, _LEAKY_SLOPE * r)   # leaky_relu

    return kernel


# ----------------------------------------------------------------------------
# Host-side folding: everything linear collapses into 125 taps + a bias field.
# ----------------------------------------------------------------------------
def _fold_coefficients(params):
    C = params["branch1x1_w"].shape[0]
    f32 = jnp.float32
    w1 = params["branch1x1_w"].reshape(C).astype(f32)
    b1 = params["branch1x1_b"].astype(f32)
    w21 = params["branch2_1_w"].reshape(()).astype(f32)
    b21 = params["branch2_1_b"].reshape(()).astype(f32)
    w3 = params["branch3x3_w"].reshape(C, 3, 3, 3).astype(f32)
    b3 = params["branch3x3_b"].astype(f32)
    w31 = params["branch3_1_w"].reshape(()).astype(f32)
    b31 = params["branch3_1_b"].reshape(()).astype(f32)
    w5 = params["branch5x5_w"].reshape(C, 5, 5, 5).astype(f32)
    b5 = params["branch5x5_b"].astype(f32)
    wc = params["conv1x1_w"].reshape(3 * C).astype(f32)
    bc = params["conv1x1_b"].reshape(()).astype(f32)
    wca, wcb, wcc = wc[:C], wc[C:2 * C], wc[2 * C:]

    # conv1x1 folded into each branch (plain f32 elementwise sums).
    A1 = jnp.sum(wca * w1)                                        # scalar
    A3 = jnp.sum(wcb[:, None, None, None] * w3, axis=0)           # (3,3,3)
    A5 = jnp.sum(wcc[:, None, None, None] * w5, axis=0)           # (5,5,5)
    B = jnp.sum(wca * b1) + jnp.sum(wcb * b3) + jnp.sum(wcc * b5) + bc

    # Inference-mode BatchNorm folded into scale/shift.
    g = params["bn_gamma"].reshape(()).astype(f32) * jax.lax.rsqrt(
        params["bn_var"].reshape(()).astype(f32) + _BN_EPS)
    bn_shift = params["bn_beta"].reshape(()).astype(f32) \
        - params["bn_mean"].reshape(()).astype(f32) * g
    k = _RES_SCALE * g                                            # 0.1 * BN scale

    # Merge the 3x3x3 taps (offsets coincide with the centre 3^3 of the 5^3
    # grid) and fold w21/w31, conv1x1+BN scale, branch1x1 and the identity
    # residual into a single 125-tap pattern.
    taps = k * w31 * A5
    taps = taps.at[1:4, 1:4, 1:4].add(k * w21 * A3)
    taps = taps.at[2, 2, 2].add(k * A1 + 1.0)                     # x1 + residual x
    return taps, (k, b21, b31, A3, A5, B, bn_shift)


def _bias_field(D, H, W, k, b21, b31, A3, A5, B, bn_shift):
    """Per-voxel bias: b21/b31 leaking through the zero-padded branch convs,
    plus all constant bias/BN terms (exact f32, computed once host-side)."""
    def mask_stencil(taps, pad):
        ks = taps.shape[0]
        m = jnp.pad(jnp.ones((D, H, W), jnp.float32), ((pad, pad),) * 3)
        out = jnp.zeros((D, H, W), jnp.float32)
        for kd in range(ks):
            for kh in range(ks):
                for kw in range(ks):
                    out = out + taps[kd, kh, kw] * m[kd:kd + D, kh:kh + H, kw:kw + W]
        return out

    return (k * (b21 * mask_stencil(A3, 1) + b31 * mask_stencil(A5, 2) + B)
            + _RES_SCALE * bn_shift)


# ----------------------------------------------------------------------------
# pallas_call wrapper.
# ----------------------------------------------------------------------------
def inception_res_block(x, params):
    """x: (N, 1, D, H, W) float32 (NCDHW, single input channel) -> same shape."""
    N, cin, D, H, W = x.shape
    assert cin == 1, "InceptionResBlock operates on a single input channel"
    Dp, Hp, Wp = D + 2 * _PAD, H + 2 * _PAD, W + 2 * _PAD

    taps, bias_terms = _fold_coefficients(params)
    coef = jnp.pad(taps.reshape(_NUM_TAPS), (0, 128 - _NUM_TAPS)).astype(jnp.float32)

    # Lane-dense flattened layouts:
    #   padded plane position (h, w) -> flat index h*Wp + w
    out_w = _round_up(H * Wp, 128)                      # output work width
    flat_in = _round_up(max(Hp * Wp, 4 * Wp + 4 + out_w), 128)

    # Zero-padded input, flattened over (Hp, Wp) and zero-extended so every
    # shifted tap window (max offset 4*Wp+4) stays in bounds.
    xflat = jnp.pad(x[:, 0], ((0, 0), (_PAD, _PAD), (_PAD, _PAD), (_PAD, _PAD)))
    xflat = xflat.reshape(N, Dp, Hp * Wp)
    xflat = jnp.pad(xflat, ((0, 0), (0, 0), (0, flat_in - Hp * Wp)))

    # Bias field embedded in the same (h*Wp + w) layout (garbage lanes unused).
    bf = _bias_field(D, H, W, *bias_terms)                          # (D, H, W)
    bf = jnp.pad(bf, ((0, 0), (0, 0), (0, Wp - W))).reshape(D, H * Wp)
    bf = jnp.pad(bf, ((0, 0), (0, out_w - H * Wp)))                 # (D, out_w)

    # Grid: batch x D-slabs.  When N == 1, split D so v7x's two TensorCores
    # both get a parallel step (slab size kept a multiple of 8 sublanes).
    num_slabs = 2 if (N == 1 and D % 16 == 0) else 1
    td = D // num_slabs

    kernel = _make_kernel(Wp, td, out_w, num_slabs)
    out_work = pl.pallas_call(
        kernel,
        out_shape=jax.ShapeDtypeStruct((N, D, out_w), jnp.float32),
        grid=(N, num_slabs),
        in_specs=[
            pl.BlockSpec((1, Dp, flat_in), lambda n, s: (n, 0, 0)),   # padded x
            pl.BlockSpec((td, out_w), lambda n, s: (s, 0)),           # bias field
            pl.BlockSpec(memory_space=pltpu.MemorySpace.SMEM),        # 125 taps
        ],
        out_specs=pl.BlockSpec((1, td, out_w), lambda n, s: (n, s, 0)),
        compiler_params=pltpu.CompilerParams(
            dimension_semantics=("parallel", "parallel")),
    )(xflat, bf, coef)

    # Layout plumbing back to (N, 1, D, H, W) -- pure XLA slice/reshape.
    out = out_work[:, :, :H * Wp].reshape(N, D, H, Wp)[:, :, :, :W]
    return out[:, None]


# ----------------------------------------------------------------------------
# Pure-XLA reference (mirrors the PyTorch forward literally) for verification.
# ----------------------------------------------------------------------------
def _conv3d(x, w, b, pad):
    out = jax.lax.conv_general_dilated(
        x, w, window_strides=(1, 1, 1), padding=[(pad, pad)] * 3,
        dimension_numbers=("NCDHW", "OIDHW", "NCDHW"),
        precision=jax.lax.Precision.HIGHEST)
    return out + b.reshape(1, -1, 1, 1, 1)


def reference_forward(x, p):
    x1 = _conv3d(x, p["branch1x1_w"], p["branch1x1_b"], 0)
    x2 = _conv3d(_conv3d(x, p["branch2_1_w"], p["branch2_1_b"], 0),
                 p["branch3x3_w"], p["branch3x3_b"], 1)
    x3 = _conv3d(_conv3d(x, p["branch3_1_w"], p["branch3_1_b"], 0),
                 p["branch5x5_w"], p["branch5x5_b"], 2)
    out = jnp.concatenate([x1, x2, x3], axis=1)
    out = _conv3d(out, p["conv1x1_w"], p["conv1x1_b"], 0)
    g = (p["bn_gamma"] * jax.lax.rsqrt(p["bn_var"] + _BN_EPS)).reshape(1, -1, 1, 1, 1)
    out = (out - p["bn_mean"].reshape(1, -1, 1, 1, 1)) * g \
        + p["bn_beta"].reshape(1, -1, 1, 1, 1)
    out = x + _RES_SCALE * out
    return jnp.where(out >= 0, out, _LEAKY_SLOPE * out)


# ----------------------------------------------------------------------------
# Deterministic synthetic parameters (shapes match the PyTorch module).
# ----------------------------------------------------------------------------
def make_params(in_channels, key):
    C = in_channels
    ks = jax.random.split(key, 12)

    def kaiming(k, shape):        # kaiming_normal_, mode='fan_out'
        fan_out = shape[0] * shape[2] * shape[3] * shape[4]
        return ((2.0 / fan_out) ** 0.5) * jax.random.normal(k, shape, jnp.float32)

    def bias(k, n):
        # The PyTorch init zeroes conv biases; small nonzero values are used
        # here so the bias-field / conv-padding handling is actually exercised.
        return 0.05 * jax.random.normal(k, (n,), jnp.float32)

    return {
        "branch1x1_w": kaiming(ks[0], (C, 1, 1, 1, 1)),
        "branch1x1_b": bias(ks[1], C),
        "branch2_1_w": kaiming(ks[2], (1, 1, 1, 1, 1)),
        "branch2_1_b": bias(ks[3], 1),
        "branch3x3_w": kaiming(ks[4], (C, 1, 3, 3, 3)),
        "branch3x3_b": bias(ks[5], C),
        "branch3_1_w": kaiming(ks[6], (1, 1, 1, 1, 1)),
        "branch3_1_b": bias(ks[7], 1),
        "branch5x5_w": kaiming(ks[8], (C, 1, 5, 5, 5)),
        "branch5x5_b": bias(ks[9], C),
        "conv1x1_w": kaiming(ks[10], (1, 3 * C, 1, 1, 1)),
        "conv1x1_b": bias(ks[11], 1),
        "bn_gamma": jnp.array([1.05], jnp.float32),
        "bn_beta": jnp.array([-0.02], jnp.float32),
        "bn_mean": jnp.array([0.03], jnp.float32),
        "bn_var": jnp.array([0.9], jnp.float32),
    }


if __name__ == "__main__":
    in_channels = 4
    N, D, H, W = 2, 8, 16, 16

    root = jax.random.PRNGKey(0)
    pkey, xkey = jax.random.split(root)
    params = make_params(in_channels, pkey)
    x = jax.random.normal(xkey, (N, 1, D, H, W), jnp.float32)

    fwd = jax.jit(lambda inp: inception_res_block(inp, params))
    out = jax.block_until_ready(fwd(x))
    assert out.shape == (N, 1, D, H, W)
    assert bool(jnp.all(jnp.isfinite(out)))

    ref = jax.block_until_ready(
        jax.jit(lambda inp: reference_forward(inp, params))(x))
    max_err = float(jnp.max(jnp.abs(out - ref)))
    assert max_err < 5e-4, f"kernel/reference mismatch: max|diff|={max_err:.3e}"

    print("KERNEL_OK")
</pallas_src>

<mosaic_0001>
module attributes {stable_mosaic.version = 11 : i64} {
  func.func @kernel(%arg0: i32, %arg1: i32, %arg2: memref<1x12x512xf32, #tpu.memory_space<vmem>>, %arg3: memref<8x384xf32, #tpu.memory_space<vmem>>, %arg4: memref<128xf32, #tpu.memory_space<smem>>, %arg5: memref<1x8x384xf32, #tpu.memory_space<vmem>>) attributes {dimension_semantics = [#tpu.dimension_semantics<parallel>, #tpu.dimension_semantics<parallel>], iteration_bounds = array<i64: 2, 1>, scalar_prefetch = 0 : i64, scratch_operands = 0 : i64, tpu.core_type = #tpu.core_type<tc>, window_params = [{transform_indices = @transform_0, window_bounds = array<i64: 1, 12, 512>}, {transform_indices = @transform_1, window_bounds = array<i64: 8, 384>}, {transform_indices = @transform_2, window_bounds = array<i64: 128>}, {transform_indices = @transform_3, window_bounds = array<i64: 1, 8, 384>}]} {
    %c0 = arith.constant 0 : index
    %c0_0 = arith.constant 0 : index
    %0 = vector.load %arg3[%c0, %c0_0] : memref<8x384xf32, #tpu.memory_space<vmem>>, vector<8x384xf32>
    %cst = arith.constant 0.000000e+00 : f32
    %1 = vector.broadcast %cst : f32 to vector<8x384xf32>
    %cst_1 = arith.constant 0.000000e+00 : f32
    %2 = vector.broadcast %cst_1 : f32 to vector<8x384xf32>
    %cst_2 = arith.constant 0.000000e+00 : f32
    %3 = vector.broadcast %cst_2 : f32 to vector<8x384xf32>
    %c0_3 = arith.constant 0 : index
    %c0_4 = arith.constant 0 : index
    %c0_5 = arith.constant 0 : index
    %4 = vector.load %arg2[%c0_3, %c0_4, %c0_5] : memref<1x12x512xf32, #tpu.memory_space<vmem>>, vector<1x8x384xf32>
    %5 = vector.shape_cast %4 : vector<1x8x384xf32> to vector<8x384xf32>
    %c0_6 = arith.constant 0 : index
    %6 = memref.load %arg4[%c0_6] : memref<128xf32, #tpu.memory_space<smem>>
    %7 = vector.broadcast %6 : f32 to vector<8x384xf32>
    %8 = arith.mulf %7, %5 : vector<8x384xf32>
    %9 = arith.addf %0, %8 : vector<8x384xf32>
    %c0_7 = arith.constant 0 : index
    %c0_8 = arith.constant 0 : index
    %c1 = arith.constant 1 : index
    %10 = vector.load %arg2[%c0_7, %c0_8, %c1] : memref<1x12x512xf32, #tpu.memory_space<vmem>>, vector<1x8x384xf32>
    %11 = vector.shape_cast %10 : vector<1x8x384xf32> to vector<8x384xf32>
    %c1_9 = arith.constant 1 : index
    %12 = memref.load %arg4[%c1_9] : memref<128xf32, #tpu.memory_space<smem>>
    %13 = vector.broadcast %12 : f32 to vector<8x384xf32>
    %14 = arith.mulf %13, %11 : vector<8x384xf32>
    %15 = arith.addf %1, %14 : vector<8x384xf32>
    %c0_10 = arith.constant 0 : index
    %c0_11 = arith.constant 0 : index
    %c2 = arith.constant 2 : index
    %16 = vector.load %arg2[%c0_10, %c0_11, %c2] : memref<1x12x512xf32, #tpu.memory_space<vmem>>, vector<1x8x384xf32>
    %17 = vector.shape_cast %16 : vector<1x8x384xf32> to vector<8x384xf32>
    %c2_12 = arith.constant 2 : index
    %18 = memref.load %arg4[%c2_12] : memref<128xf32, #tpu.memory_space<smem>>
    %19 = vector.broadcast %18 : f32 to vector<8x384xf32>
    %20 = arith.mulf %19, %17 : vector<8x384xf32>
    %21 = arith.addf %2, %20 : vector<8x384xf32>
    %c0_13 = arith.constant 0 : index
    %c0_14 = arith.constant 0 : index
    %c3 = arith.constant 3 : index
    %22 = vector.load %arg2[%c0_13, %c0_14, %c3] : memref<1x12x512xf32, #tpu.memory_space<vmem>>, vector<1x8x384xf32>
    %23 = vector.shape_cast %22 : vector<1x8x384xf32> to vector<8x384xf32>
    %c3_15 = arith.constant 3 : index
    %24 = memref.load %arg4[%c3_15] : memref<128xf32, #tpu.memory_space<smem>>
    %25 = vector.broadcast %24 : f32 to vector<8x384xf32>
    %26 = arith.mulf %25, %23 : vector<8x384xf32>
    %27 = arith.addf %3, %26 : vector<8x384xf32>
    %c0_16 = arith.constant 0 : index
    %c0_17 = arith.constant 0 : index
    %c4 = arith.constant 4 : index
    %28 = vector.load %arg2[%c0_16, %c0_17, %c4] : memref<1x12x512xf32, #tpu.memory_space<vmem>>, vector<1x8x384xf32>
    %29 = vector.shape_cast %28 : vector<1x8x384xf32> to vector<8x384xf32>
    %c4_18 = arith.constant 4 : index
    %30 = memref.load %arg4[%c4_18] : memref<128xf32, #tpu.memory_space<smem>>
    %31 = vector.broadcast %30 : f32 to vector<8x384xf32>
    %32 = arith.mulf %31, %29 : vector<8x384xf32>
    %33 = arith.addf %9, %32 : vector<8x384xf32>
    %c0_19 = arith.constant 0 : index
    %c0_20 = arith.constant 0 : index
    %c20 = arith.constant 20 : index
    %34 = vector.load %arg2[%c0_19, %c0_20, %c20] : memref<1x12x512xf32, #tpu.memory_space<vmem>>, vector<1x8x384xf32>
    %35 = vector.shape_cast %34 : vector<1x8x384xf32> to vector<8x384xf32>
    %c5 = arith.constant 5 : index
    %36 = memref.load %arg4[%c5] : memref<128xf32, #tpu.memory_space<smem>>
    %37 = vector.broadcast %36 : f32 to vector<8x384xf32>
    %38 = arith.mulf %37, %35 : vector<8x384xf32>
    %39 = arith.addf %15, %38 : vector<8x384xf32>
    %c0_21 = arith.constant 0 : index
    %c0_22 = arith.constant 0 : index
    %c21 = arith.constant 21 : index
    %40 = vector.load %arg2[%c0_21, %c0_22, %c21] : memref<1x12x512xf32, #tpu.memory_space<vmem>>, vector<1x8x384xf32>
    %41 = vector.shape_cast %40 : vector<1x8x384xf32> to vector<8x384xf32>
    %c6 = arith.constant 6 : index
    %42 = memref.load %arg4[%c6] : memref<128xf32, #tpu.memory_space<smem>>
    %43 = vector.broadcast %42 : f32 to vector<8x384xf32>
    %44 = arith.mulf %43, %41 : vector<8x384xf32>
    %45 = arith.addf %21, %44 : vector<8x384xf32>
    %c0_23 = arith.constant 0 : index
    %c0_24 = arith.constant 0 : index
    %c22 = arith.constant 22 : index
    %46 = vector.load %arg2[%c0_23, %c0_24, %c22] : memref<1x12x512xf32, #tpu.memory_space<vmem>>, vector<1x8x384xf32>
    %47 = vector.shape_cast %46 : vector<1x8x384xf32> to vector<8x384xf32>
    %c7 = arith.constant 7 : index
    %48 = memref.load %arg4[%c7] : memref<128xf32, #tpu.memory_space<smem>>
    %49 = vector.broadcast %48 : f32 to vector<8x384xf32>
    %50 = arith.mulf %49, %47 : vector<8x384xf32>
    %51 = arith.addf %27, %50 : vector<8x384xf32>
    %c0_25 = arith.constant 0 : index
    %c0_26 = arith.constant 0 : index
    %c23 = arith.constant 23 : index
    %52 = vector.load %arg2[%c0_25, %c0_26, %c23] : memref<1x12x512xf32, #tpu.memory_space<vmem>>, vector<1x8x384xf32>
    %53 = vector.shape_cast %52 : vector<1x8x384xf32> to vector<8x384xf32>
    %c8 = arith.constant 8 : index
    %54 = memref.load %arg4[%c8] : memref<128xf32, #tpu.memory_space<smem>>
    %55 = vector.broadcast %54 : f32 to vector<8x384xf32>
    %56 = arith.mulf %55, %53 : vector<8x384xf32>
    %57 = arith.addf %33, %56 : vector<8x384xf32>
    %c0_27 = arith.constant 0 : index
    %c0_28 = arith.constant 0 : index
    %c24 = arith.constant 24 : index
    %58 = vector.load %arg2[%c0_27, %c0_28, %c24] : memref<1x12x512xf32, #tpu.memory_space<vmem>>, vector<1x8x384xf32>
    %59 = vector.shape_cast %58 : vector<1x8x384xf32> to vector<8x384xf32>
    %c9 = arith.constant 9 : index
    %60 = memref.load %arg4[%c9] : memref<128xf32, #tpu.memory_space<smem>>
    %61 = vector.broadcast %60 : f32 to vector<8x384xf32>
    %62 = arith.mulf %61, %59 : vector<8x384xf32>
    %63 = arith.addf %39, %62 : vector<8x384xf32>
    %c0_29 = arith.constant 0 : index
    %c0_30 = arith.constant 0 : index
    %c40 = arith.constant 40 : index
    %64 = vector.load %arg2[%c0_29, %c0_30, %c40] : memref<1x12x512xf32, #tpu.memory_space<vmem>>, vector<1x8x384xf32>
    %65 = vector.shape_cast %64 : vector<1x8x384xf32> to vector<8x384xf32>
    %c10 = arith.constant 10 : index
    %66 = memref.load %arg4[%c10] : memref<128xf32, #tpu.memory_space<smem>>
    %67 = vector.broadcast %66 : f32 to vector<8x384xf32>
    %68 = arith.mulf %67, %65 : vector<8x384xf32>
    %69 = arith.addf %45, %68 : vector<8x384xf32>
    %c0_31 = arith.constant 0 : index
    %c0_32 = arith.constant 0 : index
    %c41 = arith.constant 41 : index
    %70 = vector.load %arg2[%c0_31, %c0_32, %c41] : memref<1x12x512xf32, #tpu.memory_space<vmem>>, vector<1x8x384xf32>
    %71 = vector.shape_cast %70 : vector<1x8x384xf32> to vector<8x384xf32>
    %c11 = arith.constant 11 : index
    %72 = memref.load %arg4[%c11] : memref<128xf32, #tpu.memory_space<smem>>
    %73 = vector.broadcast %72 : f32 to vector<8x384xf32>
    %74 = arith.mulf %73, %71 : vector<8x384xf32>
    %75 = arith.addf %51, %74 : vector<8x384xf32>
    %c0_33 = arith.constant 0 : index
    %c0_34 = arith.constant 0 : index
    %c42 = arith.constant 42 : index
    %76 = vector.load %arg2[%c0_33, %c0_34, %c42] : memref<1x12x512xf32, #tpu.memory_space<vmem>>, vector<1x8x384xf32>
    %77 = vector.shape_cast %76 : vector<1x8x384xf32> to vector<8x384xf32>
    %c12 = arith.constant 12 : index
    %78 = memref.load %arg4[%c12] : memref<128xf32, #tpu.memory_space<smem>>
    %79 = vector.broadcast %78 : f32 to vector<8x384xf32>
    %80 = arith.mulf %79, %77 : vector<8x384xf32>
    %81 = arith.addf %57, %80 : vector<8x384xf32>
    %c0_35 = arith.constant 0 : index
    %c0_36 = arith.constant 0 : index
    %c43 = arith.constant 43 : index
    %82 = vector.load %arg2[%c0_35, %c0_36, %c43] : memref<1x12x512xf32, #tpu.memory_space<vmem>>, vector<1x8x384xf32>
    %83 = vector.shape_cast %82 : vector<1x8x384xf32> to vector<8x384xf32>
    %c13 = arith.constant 13 : index
    %84 = memref.load %arg4[%c13] : memref<128xf32, #tpu.memory_space<smem>>
    %85 = vector.broadcast %84 : f32 to vector<8x384xf32>
    %86 = arith.mulf %85, %83 : vector<8x384xf32>
    %87 = arith.addf %63, %86 : vector<8x384xf32>
    %c0_37 = arith.constant 0 : index
    %c0_38 = arith.constant 0 : index
    %c44 = arith.constant 44 : index
    %88 = vector.load %arg2[%c0_37, %c0_38, %c44] : memref<1x12x512xf32, #tpu.memory_space<vmem>>, vector<1x8x384xf32>
    %89 = vector.shape_cast %88 : vector<1x8x384xf32> to vector<8x384xf32>
    %c14 = arith.constant 14 : index
    %90 = memref.load %arg4[%c14] : memref<128xf32, #tpu.memory_space<smem>>
    %91 = vector.broadcast %90 : f32 to vector<8x384xf32>
    %92 = arith.mulf %91, %89 : vector<8x384xf32>
    %93 = arith.addf %69, %92 : vector<8x384xf32>
    %c0_39 = arith.constant 0 : index
    %c0_40 = arith.constant 0 : index
    %c60 = arith.constant 60 : index
    %94 = vector.load %arg2[%c0_39, %c0_40, %c60] : memref<1x12x512xf32, #tpu.memory_space<vmem>>, vector<1x8x384xf32>
    %95 = vector.shape_cast %94 : vector<1x8x384xf32> to vector<8x384xf32>
    %c15 = arith.constant 15 : index
    %96 = memref.load %arg4[%c15] : memref<128xf32, #tpu.memory_space<smem>>
    %97 = vector.broadcast %96 : f32 to vector<8x384xf32>
    %98 = arith.mulf %97, %95 : vector<8x384xf32>
    %99 = arith.addf %75, %98 : vector<8x384xf32>
    %c0_41 = arith.constant 0 : index
    %c0_42 = arith.constant 0 : index
    %c61 = arith.constant 61 : index
    %100 = vector.load %arg2[%c0_41, %c0_42, %c61] : memref<1x12x512xf32, #tpu.memory_space<vmem>>, vector<1x8x384xf32>
    %101 = vector.shape_cast %100 : vector<1x8x384xf32> to vector<8x384xf32>
    %c16 = arith.constant 16 : index
    %102 = memref.load %arg4[%c16] : memref<128xf32, #tpu.memory_space<smem>>
    %103 = vector.broadcast %102 : f32 to vector<8x384xf32>
    %104 = arith.mulf %103, %101 : vector<8x384xf32>
    %105 = arith.addf %81, %104 : vector<8x384xf32>
    %c0_43 = arith.constant 0 : index
    %c0_44 = arith.constant 0 : index
    %c62 = arith.constant 62 : index
    %106 = vector.load %arg2[%c0_43, %c0_44, %c62] : memref<1x12x512xf32, #tpu.memory_space<vmem>>, vector<1x8x384xf32>
    %107 = vector.shape_cast %106 : vector<1x8x384xf32> to vector<8x384xf32>
    %c17 = arith.constant 17 : index
    %108 = memref.load %arg4[%c17] : memref<128xf32, #tpu.memory_space<smem>>
    %109 = vector.broadcast %108 : f32 to vector<8x384xf32>
    %110 = arith.mulf %109, %107 : vector<8x384xf32>
    %111 = arith.addf %87, %110 : vector<8x384xf32>
    %c0_45 = arith.constant 0 : index
    %c0_46 = arith.constant 0 : index
    %c63 = arith.constant 63 : index
    %112 = vector.load %arg2[%c0_45, %c0_46, %c63] : memref<1x12x512xf32, #tpu.memory_space<vmem>>, vector<1x8x384xf32>
    %113 = vector.shape_cast %112 : vector<1x8x384xf32> to vector<8x384xf32>
    %c18 = arith.constant 18 : index
    %114 = memref.load %arg4[%c18] : memref<128xf32, #tpu.memory_space<smem>>
    %115 = vector.broadcast %114 : f32 to vector<8x384xf32>
    %116 = arith.mulf %115, %113 : vector<8x384xf32>
    %117 = arith.addf %93, %116 : vector<8x384xf32>
    %c0_47 = arith.constant 0 : index
    %c0_48 = arith.constant 0 : index
    %c64 = arith.constant 64 : index
    %118 = vector.load %arg2[%c0_47, %c0_48, %c64] : memref<1x12x512xf32, #tpu.memory_space<vmem>>, vector<1x8x384xf32>
    %119 = vector.shape_cast %118 : vector<1x8x384xf32> to vector<8x384xf32>
    %c19 = arith.constant 19 : index
    %120 = memref.load %arg4[%c19] : memref<128xf32, #tpu.memory_space<smem>>
    %121 = vector.broadcast %120 : f32 to vector<8x384xf32>
    %122 = arith.mulf %121, %119 : vector<8x384xf32>
    %123 = arith.addf %99, %122 : vector<8x384xf32>
    %c0_49 = arith.constant 0 : index
    %c0_50 = arith.constant 0 : index
    %c80 = arith.constant 80 : index
    %124 = vector.load %arg2[%c0_49, %c0_50, %c80] : memref<1x12x512xf32, #tpu.memory_space<vmem>>, vector<1x8x384xf32>
    %125 = vector.shape_cast %124 : vector<1x8x384xf32> to vector<8x384xf32>
    %c20_51 = arith.constant 20 : index
    %126 = memref.load %arg4[%c20_51] : memref<128xf32, #tpu.memory_space<smem>>
    %127 = vector.broadcast %126 : f32 to vector<8x384xf32>
    %128 = arith.mulf %127, %125 : vector<8x384xf32>
    %129 = arith.addf %105, %128 : vector<8x384xf32>
    %c0_52 = arith.constant 0 : index
    %c0_53 = arith.constant 0 : index
    %c81 = arith.constant 81 : index
    %130 = vector.load %arg2[%c0_52, %c0_53, %c81] : memref<1x12x512xf32, #tpu.memory_space<vmem>>, vector<1x8x384xf32>
    %131 = vector.shape_cast %130 : vector<1x8x384xf32> to vector<8x384xf32>
    %c21_54 = arith.constant 21 : index
    %132 = memref.load %arg4[%c21_54] : memref<128xf32, #tpu.memory_space<smem>>
    %133 = vector.broadcast %132 : f32 to vector<8x384xf32>
    %134 = arith.mulf %133, %131 : vector<8x384xf32>
    %135 = arith.addf %111, %134 : vector<8x384xf32>
    %c0_55 = arith.constant 0 : index
    %c0_56 = arith.constant 0 : index
    %c82 = arith.constant 82 : index
    %136 = vector.load %arg2[%c0_55, %c0_56, %c82] : memref<1x12x512xf32, #tpu.memory_space<vmem>>, vector<1x8x384xf32>
    %137 = vector.shape_cast %136 : vector<1x8x384xf32> to vector<8x384xf32>
    %c22_57 = arith.constant 22 : index
    %138 = memref.load %arg4[%c22_57] : memref<128xf32, #tpu.memory_space<smem>>
    %139 = vector.broadcast %138 : f32 to vector<8x384xf32>
    %140 = arith.mulf %139, %137 : vector<8x384xf32>
    %141 = arith.addf %117, %140 : vector<8x384xf32>
    %c0_58 = arith.constant 0 : index
    %c0_59 = arith.constant 0 : index
    %c83 = arith.constant 83 : index
    %142 = vector.load %arg2[%c0_58, %c0_59, %c83] : memref<1x12x512xf32, #tpu.memory_space<vmem>>, vector<1x8x384xf32>
    %143 = vector.shape_cast %142 : vector<1x8x384xf32> to vector<8x384xf32>
    %c23_60 = arith.constant 23 : index
    %144 = memref.load %arg4[%c23_60] : memref<128xf32, #tpu.memory_space<smem>>
    %145 = vector.broadcast %144 : f32 to vector<8x384xf32>
    %146 = arith.mulf %145, %143 : vector<8x384xf32>
    %147 = arith.addf %123, %146 : vector<8x384xf32>
    %c0_61 = arith.constant 0 : index
    %c0_62 = arith.constant 0 : index
    %c84 = arith.constant 84 : index
    %148 = vector.load %arg2[%c0_61, %c0_62, %c84] : memref<1x12x512xf32, #tpu.memory_space<vmem>>, vector<1x8x384xf32>
    %149 = vector.shape_cast %148 : vector<1x8x384xf32> to vector<8x384xf32>
    %c24_63 = arith.constant 24 : index
    %150 = memref.load %arg4[%c24_63] : memref<128xf32, #tpu.memory_space<smem>>
    %151 = vector.broadcast %150 : f32 to vector<8x384xf32>
    %152 = arith.mulf %151, %149 : vector<8x384xf32>
    %153 = arith.addf %129, %152 : vector<8x384xf32>
    %c0_64 = arith.constant 0 : index
    %c1_65 = arith.constant 1 : index
    %c0_66 = arith.constant 0 : index
    %154 = vector.load %arg2[%c0_64, %c1_65, %c0_66] : memref<1x12x512xf32, #tpu.memory_space<vmem>>, vector<1x8x384xf32>
    %155 = vector.shape_cast %154 : vector<1x8x384xf32> to vector<8x384xf32>
    %c25 = arith.constant 25 : index
    %156 = memref.load %arg4[%c25] : memref<128xf32, #tpu.memory_space<smem>>
    %157 = vector.broadcast %156 : f32 to vector<8x384xf32>
    %158 = arith.mulf %157, %155 : vector<8x384xf32>
    %159 = arith.addf %135, %158 : vector<8x384xf32>
    %c0_67 = arith.constant 0 : index
    %c1_68 = arith.constant 1 : index
    %c1_69 = arith.constant 1 : index
    %160 = vector.load %arg2[%c0_67, %c1_68, %c1_69] : memref<1x12x512xf32, #tpu.memory_space<vmem>>, vector<1x8x384xf32>
    %161 = vector.shape_cast %160 : vector<1x8x384xf32> to vector<8x384xf32>
    %c26 = arith.constant 26 : index
    %162 = memref.load %arg4[%c26] : memref<128xf32, #tpu.memory_space<smem>>
    %163 = vector.broadcast %162 : f32 to vector<8x384xf32>
    %164 = arith.mulf %163, %161 : vector<8x384xf32>
    %165 = arith.addf %141, %164 : vector<8x384xf32>
    %c0_70 = arith.constant 0 : index
    %c1_71 = arith.constant 1 : index
    %c2_72 = arith.constant 2 : index
    %166 = vector.load %arg2[%c0_70, %c1_71, %c2_72] : memref<1x12x512xf32, #tpu.memory_space<vmem>>, vector<1x8x384xf32>
    %167 = vector.shape_cast %166 : vector<1x8x384xf32> to vector<8x384xf32>
    %c27 = arith.constant 27 : index
    %168 = memref.load %arg4[%c27] : memref<128xf32, #tpu.memory_space<smem>>
    %169 = vector.broadcast %168 : f32 to vector<8x384xf32>
    %170 = arith.mulf %169, %167 : vector<8x384xf32>
    %171 = arith.addf %147, %170 : vector<8x384xf32>
    %c0_73 = arith.constant 0 : index
    %c1_74 = arith.constant 1 : index
    %c3_75 = arith.constant 3 : index
    %172 = vector.load %arg2[%c0_73, %c1_74, %c3_75] : memref<1x12x512xf32, #tpu.memory_space<vmem>>, vector<1x8x384xf32>
    %173 = vector.shape_cast %172 : vector<1x8x384xf32> to vector<8x384xf32>
    %c28 = arith.constant 28 : index
    %174 = memref.load %arg4[%c28] : memref<128xf32, #tpu.memory_space<smem>>
    %175 = vector.broadcast %174 : f32 to vector<8x384xf32>
    %176 = arith.mulf %175, %173 : vector<8x384xf32>
    %177 = arith.addf %153, %176 : vector<8x384xf32>
    %c0_76 = arith.constant 0 : index
    %c1_77 = arith.constant 1 : index
    %c4_78 = arith.constant 4 : index
    %178 = vector.load %arg2[%c0_76, %c1_77, %c4_78] : memref<1x12x512xf32, #tpu.memory_space<vmem>>, vector<1x8x384xf32>
    %179 = vector.shape_cast %178 : vector<1x8x384xf32> to vector<8x384xf32>
    %c29 = arith.constant 29 : index
    %180 = memref.load %arg4[%c29] : memref<128xf32, #tpu.memory_space<smem>>
    %181 = vector.broadcast %180 : f32 to vector<8x384xf32>
    %182 = arith.mulf %181, %179 : vector<8x384xf32>
    %183 = arith.addf %159, %182 : vector<8x384xf32>
    %c0_79 = arith.constant 0 : index
    %c1_80 = arith.constant 1 : index
    %c20_81 = arith.constant 20 : index
    %184 = vector.load %arg2[%c0_79, %c1_80, %c20_81] : memref<1x12x512xf32, #tpu.memory_space<vmem>>, vector<1x8x384xf32>
    %185 = vector.shape_cast %184 : vector<1x8x384xf32> to vector<8x384xf32>
    %c30 = arith.constant 30 : index
    %186 = memref.load %arg4[%c30] : memref<128xf32, #tpu.memory_space<smem>>
    %187 = vector.broadcast %186 : f32 to vector<8x384xf32>
    %188 = arith.mulf %187, %185 : vector<8x384xf32>
    %189 = arith.addf %165, %188 : vector<8x384xf32>
    %c0_82 = arith.constant 0 : index
    %c1_83 = arith.constant 1 : index
    %c21_84 = arith.constant 21 : index
    %190 = vector.load %arg2[%c0_82, %c1_83, %c21_84] : memref<1x12x512xf32, #tpu.memory_space<vmem>>, vector<1x8x384xf32>
    %191 = vector.shape_cast %190 : vector<1x8x384xf32> to vector<8x384xf32>
    %c31 = arith.constant 31 : index
    %192 = memref.load %arg4[%c31] : memref<128xf32, #tpu.memory_space<smem>>
    %193 = vector.broadcast %192 : f32 to vector<8x384xf32>
    %194 = arith.mulf %193, %191 : vector<8x384xf32>
    %195 = arith.addf %171, %194 : vector<8x384xf32>
    %c0_85 = arith.constant 0 : index
    %c1_86 = arith.constant 1 : index
    %c22_87 = arith.constant 22 : index
    %196 = vector.load %arg2[%c0_85, %c1_86, %c22_87] : memref<1x12x512xf32, #tpu.memory_space<vmem>>, vector<1x8x384xf32>
    %197 = vector.shape_cast %196 : vector<1x8x384xf32> to vector<8x384xf32>
    %c32 = arith.constant 32 : index
    %198 = memref.load %arg4[%c32] : memref<128xf32, #tpu.memory_space<smem>>
    %199 = vector.broadcast %198 : f32 to vector<8x384xf32>
    %200 = arith.mulf %199, %197 : vector<8x384xf32>
    %201 = arith.addf %177, %200 : vector<8x384xf32>
    %c0_88 = arith.constant 0 : index
    %c1_89 = arith.constant 1 : index
    %c23_90 = arith.constant 23 : index
    %202 = vector.load %arg2[%c0_88, %c1_89, %c23_90] : memref<1x12x512xf32, #tpu.memory_space<vmem>>, vector<1x8x384xf32>
    %203 = vector.shape_cast %202 : vector<1x8x384xf32> to vector<8x384xf32>
    %c33 = arith.constant 33 : index
    %204 = memref.load %arg4[%c33] : memref<128xf32, #tpu.memory_space<smem>>
    %205 = vector.broadcast %204 : f32 to vector<8x384xf32>
    %206 = arith.mulf %205, %203 : vector<8x384xf32>
    %207 = arith.addf %183, %206 : vector<8x384xf32>
    %c0_91 = arith.constant 0 : index
    %c1_92 = arith.constant 1 : index
    %c24_93 = arith.constant 24 : index
    %208 = vector.load %arg2[%c0_91, %c1_92, %c24_93] : memref<1x12x512xf32, #tpu.memory_space<vmem>>, vector<1x8x384xf32>
    %209 = vector.shape_cast %208 : vector<1x8x384xf32> to vector<8x384xf32>
    %c34 = arith.constant 34 : index
    %210 = memref.load %arg4[%c34] : memref<128xf32, #tpu.memory_space<smem>>
    %211 = vector.broadcast %210 : f32 to vector<8x384xf32>
    %212 = arith.mulf %211, %209 : vector<8x384xf32>
    %213 = arith.addf %189, %212 : vector<8x384xf32>
    %c0_94 = arith.constant 0 : index
    %c1_95 = arith.constant 1 : index
    %c40_96 = arith.constant 40 : index
    %214 = vector.load %arg2[%c0_94, %c1_95, %c40_96] : memref<1x12x512xf32, #tpu.memory_space<vmem>>, vector<1x8x384xf32>
    %215 = vector.shape_cast %214 : vector<1x8x384xf32> to vector<8x384xf32>
    %c35 = arith.constant 35 : index
    %216 = memref.load %arg4[%c35] : memref<128xf32, #tpu.memory_space<smem>>
    %217 = vector.broadcast %216 : f32 to vector<8x384xf32>
    %218 = arith.mulf %217, %215 : vector<8x384xf32>
    %219 = arith.addf %195, %218 : vector<8x384xf32>
    %c0_97 = arith.constant 0 : index
    %c1_98 = arith.constant 1 : index
    %c41_99 = arith.constant 41 : index
    %220 = vector.load %arg2[%c0_97, %c1_98, %c41_99] : memref<1x12x512xf32, #tpu.memory_space<vmem>>, vector<1x8x384xf32>
    %221 = vector.shape_cast %220 : vector<1x8x384xf32> to vector<8x384xf32>
    %c36 = arith.constant 36 : index
    %222 = memref.load %arg4[%c36] : memref<128xf32, #tpu.memory_space<smem>>
    %223 = vector.broadcast %222 : f32 to vector<8x384xf32>
    %224 = arith.mulf %223, %221 : vector<8x384xf32>
    %225 = arith.addf %201, %224 : vector<8x384xf32>
    %c0_100 = arith.constant 0 : index
    %c1_101 = arith.constant 1 : index
    %c42_102 = arith.constant 42 : index
    %226 = vector.load %arg2[%c0_100, %c1_101, %c42_102] : memref<1x12x512xf32, #tpu.memory_space<vmem>>, vector<1x8x384xf32>
    %227 = vector.shape_cast %226 : vector<1x8x384xf32> to vector<8x384xf32>
    %c37 = arith.constant 37 : index
    %228 = memref.load %arg4[%c37] : memref<128xf32, #tpu.memory_space<smem>>
    %229 = vector.broadcast %228 : f32 to vector<8x384xf32>
    %230 = arith.mulf %229, %227 : vector<8x384xf32>
    %231 = arith.addf %207, %230 : vector<8x384xf32>
    %c0_103 = arith.constant 0 : index
    %c1_104 = arith.constant 1 : index
    %c43_105 = arith.constant 43 : index
    %232 = vector.load %arg2[%c0_103, %c1_104, %c43_105] : memref<1x12x512xf32, #tpu.memory_space<vmem>>, vector<1x8x384xf32>
    %233 = vector.shape_cast %232 : vector<1x8x384xf32> to vector<8x384xf32>
    %c38 = arith.constant 38 : index
    %234 = memref.load %arg4[%c38] : memref<128xf32, #tpu.memory_space<smem>>
    %235 = vector.broadcast %234 : f32 to vector<8x384xf32>
    %236 = arith.mulf %235, %233 : vector<8x384xf32>
    %237 = arith.addf %213, %236 : vector<8x384xf32>
    %c0_106 = arith.constant 0 : index
    %c1_107 = arith.constant 1 : index
    %c44_108 = arith.constant 44 : index
    %238 = vector.load %arg2[%c0_106, %c1_107, %c44_108] : memref<1x12x512xf32, #tpu.memory_space<vmem>>, vector<1x8x384xf32>
    %239 = vector.shape_cast %238 : vector<1x8x384xf32> to vector<8x384xf32>
    %c39 = arith.constant 39 : index
    %240 = memref.load %arg4[%c39] : memref<128xf32, #tpu.memory_space<smem>>
    %241 = vector.broadcast %240 : f32 to vector<8x384xf32>
    %242 = arith.mulf %241, %239 : vector<8x384xf32>
    %243 = arith.addf %219, %242 : vector<8x384xf32>
    %c0_109 = arith.constant 0 : index
    %c1_110 = arith.constant 1 : index
    %c60_111 = arith.constant 60 : index
    %244 = vector.load %arg2[%c0_109, %c1_110, %c60_111] : memref<1x12x512xf32, #tpu.memory_space<vmem>>, vector<1x8x384xf32>
    %245 = vector.shape_cast %244 : vector<1x8x384xf32> to vector<8x384xf32>
    %c40_112 = arith.constant 40 : index
    %246 = memref.load %arg4[%c40_112] : memref<128xf32, #tpu.memory_space<smem>>
    %247 = vector.broadcast %246 : f32 to vector<8x384xf32>
    %248 = arith.mulf %247, %245 : vector<8x384xf32>
    %249 = arith.addf %225, %248 : vector<8x384xf32>
    %c0_113 = arith.constant 0 : index
    %c1_114 = arith.constant 1 : index
    %c61_115 = arith.constant 61 : index
    %250 = vector.load %arg2[%c0_113, %c1_114, %c61_115] : memref<1x12x512xf32, #tpu.memory_space<vmem>>, vector<1x8x384xf32>
    %251 = vector.shape_cast %250 : vector<1x8x384xf32> to vector<8x384xf32>
    %c41_116 = arith.constant 41 : index
    %252 = memref.load %arg4[%c41_116] : memref<128xf32, #tpu.memory_space<smem>>
    %253 = vector.broadcast %252 : f32 to vector<8x384xf32>
    %254 = arith.mulf %253, %251 : vector<8x384xf32>
    %255 = arith.addf %231, %254 : vector<8x384xf32>
    %c0_117 = arith.constant 0 : index
    %c1_118 = arith.constant 1 : index
    %c62_119 = arith.constant 62 : index
    %256 = vector.load %arg2[%c0_117, %c1_118, %c62_119] : memref<1x12x512xf32, #tpu.memory_space<vmem>>, vector<1x8x384xf32>
    %257 = vector.shape_cast %256 : vector<1x8x384xf32> to vector<8x384xf32>
    %c42_120 = arith.constant 42 : index
    %258 = memref.load %arg4[%c42_120] : memref<128xf32, #tpu.memory_space<smem>>
    %259 = vector.broadcast %258 : f32 to vector<8x384xf32>
    %260 = arith.mulf %259, %257 : vector<8x384xf32>
    %261 = arith.addf %237, %260 : vector<8x384xf32>
    %c0_121 = arith.constant 0 : index
    %c1_122 = arith.constant 1 : index
    %c63_123 = arith.constant 63 : index
    %262 = vector.load %arg2[%c0_121, %c1_122, %c63_123] : memref<1x12x512xf32, #tpu.memory_space<vmem>>, vector<1x8x384xf32>
    %263 = vector.shape_cast %262 : vector<1x8x384xf32> to vector<8x384xf32>
    %c43_124 = arith.constant 43 : index
    %264 = memref.load %arg4[%c43_124] : memref<128xf32, #tpu.memory_space<smem>>
    %265 = vector.broadcast %264 : f32 to vector<8x384xf32>
    %266 = arith.mulf %265, %263 : vector<8x384xf32>
    %267 = arith.addf %243, %266 : vector<8x384xf32>
    %c0_125 = arith.constant 0 : index
    %c1_126 = arith.constant 1 : index
    %c64_127 = arith.constant 64 : index
    %268 = vector.load %arg2[%c0_125, %c1_126, %c64_127] : memref<1x12x512xf32, #tpu.memory_space<vmem>>, vector<1x8x384xf32>
    %269 = vector.shape_cast %268 : vector<1x8x384xf32> to vector<8x384xf32>
    %c44_128 = arith.constant 44 : index
    %270 = memref.load %arg4[%c44_128] : memref<128xf32, #tpu.memory_space<smem>>
    %271 = vector.broadcast %270 : f32 to vector<8x384xf32>
    %272 = arith.mulf %271, %269 : vector<8x384xf32>
    %273 = arith.addf %249, %272 : vector<8x384xf32>
    %c0_129 = arith.constant 0 : index
    %c1_130 = arith.constant 1 : index
    %c80_131 = arith.constant 80 : index
    %274 = vector.load %arg2[%c0_129, %c1_130, %c80_131] : memref<1x12x512xf32, #tpu.memory_space<vmem>>, vector<1x8x384xf32>
    %275 = vector.shape_cast %274 : vector<1x8x384xf32> to vector<8x384xf32>
    %c45 = arith.constant 45 : index
    %276 = memref.load %arg4[%c45] : memref<128xf32, #tpu.memory_space<smem>>
    %277 = vector.broadcast %276 : f32 to vector<8x384xf32>
    %278 = arith.mulf %277, %275 : vector<8x384xf32>
    %279 = arith.addf %255, %278 : vector<8x384xf32>
    %c0_132 = arith.constant 0 : index
    %c1_133 = arith.constant 1 : index
    %c81_134 = arith.constant 81 : index
    %280 = vector.load %arg2[%c0_132, %c1_133, %c81_134] : memref<1x12x512xf32, #tpu.memory_space<vmem>>, vector<1x8x384xf32>
    %281 = vector.shape_cast %280 : vector<1x8x384xf32> to vector<8x384xf32>
    %c46 = arith.constant 46 : index
    %282 = memref.load %arg4[%c46] : memref<128xf32, #tpu.memory_space<smem>>
    %283 = vector.broadcast %282 : f32 to vector<8x384xf32>
    %284 = arith.mulf %283, %281 : vector<8x384xf32>
    %285 = arith.addf %261, %284 : vector<8x384xf32>
    %c0_135 = arith.constant 0 : index
    %c1_136 = arith.constant 1 : index
    %c82_137 = arith.constant 82 : index
    %286 = vector.load %arg2[%c0_135, %c1_136, %c82_137] : memref<1x12x512xf32, #tpu.memory_space<vmem>>, vector<1x8x384xf32>
    %287 = vector.shape_cast %286 : vector<1x8x384xf32> to vector<8x384xf32>
    %c47 = arith.constant 47 : index
    %288 = memref.load %arg4[%c47] : memref<128xf32, #tpu.memory_space<smem>>
    %289 = vector.broadcast %288 : f32 to vector<8x384xf32>
    %290 = arith.mulf %289, %287 : vector<8x384xf32>
    %291 = arith.addf %267, %290 : vector<8x384xf32>
    %c0_138 = arith.constant 0 : index
    %c1_139 = arith.constant 1 : index
    %c83_140 = arith.constant 83 : index
    %292 = vector.load %arg2[%c0_138, %c1_139, %c83_140] : memref<1x12x512xf32, #tpu.memory_space<vmem>>, vector<1x8x384xf32>
    %293 = vector.shape_cast %292 : vector<1x8x384xf32> to vector<8x384xf32>
    %c48 = arith.constant 48 : index
    %294 = memref.load %arg4[%c48] : memref<128xf32, #tpu.memory_space<smem>>
    %295 = vector.broadcast %294 : f32 to vector<8x384xf32>
    %296 = arith.mulf %295, %293 : vector<8x384xf32>
    %297 = arith.addf %273, %296 : vector<8x384xf32>
    %c0_141 = arith.constant 0 : index
    %c1_142 = arith.constant 1 : index
    %c84_143 = arith.constant 84 : index
    %298 = vector.load %arg2[%c0_141, %c1_142, %c84_143] : memref<1x12x512xf32, #tpu.memory_space<vmem>>, vector<1x8x384xf32>
    %299 = vector.shape_cast %298 : vector<1x8x384xf32> to vector<8x384xf32>
    %c49 = arith.constant 49 : index
    %300 = memref.load %arg4[%c49] : memref<128xf32, #tpu.memory_space<smem>>
    %301 = vector.broadcast %300 : f32 to vector<8x384xf32>
    %302 = arith.mulf %301, %299 : vector<8x384xf32>
    %303 = arith.addf %279, %302 : vector<8x384xf32>
    %c0_144 = arith.constant 0 : index
    %c2_145 = arith.constant 2 : index
    %c0_146 = arith.constant 0 : index
    %304 = vector.load %arg2[%c0_144, %c2_145, %c0_146] : memref<1x12x512xf32, #tpu.memory_space<vmem>>, vector<1x8x384xf32>
    %305 = vector.shape_cast %304 : vector<1x8x384xf32> to vector<8x384xf32>
    %c50 = arith.constant 50 : index
    %306 = memref.load %arg4[%c50] : memref<128xf32, #tpu.memory_space<smem>>
    %307 = vector.broadcast %306 : f32 to vector<8x384xf32>
    %308 = arith.mulf %307, %305 : vector<8x384xf32>
    %309 = arith.addf %285, %308 : vector<8x384xf32>
    %c0_147 = arith.constant 0 : index
    %c2_148 = arith.constant 2 : index
    %c1_149 = arith.constant 1 : index
    %310 = vector.load %arg2[%c0_147, %c2_148, %c1_149] : memref<1x12x512xf32, #tpu.memory_space<vmem>>, vector<1x8x384xf32>
    %311 = vector.shape_cast %310 : vector<1x8x384xf32> to vector<8x384xf32>
    %c51 = arith.constant 51 : index
    %312 = memref.load %arg4[%c51] : memref<128xf32, #tpu.memory_space<smem>>
    %313 = vector.broadcast %312 : f32 to vector<8x384xf32>
    %314 = arith.mulf %313, %311 : vector<8x384xf32>
    %315 = arith.addf %291, %314 : vector<8x384xf32>
    %c0_150 = arith.constant 0 : index
    %c2_151 = arith.constant 2 : index
    %c2_152 = arith.constant 2 : index
    %316 = vector.load %arg2[%c0_150, %c2_151, %c2_152] : memref<1x12x512xf32, #tpu.memory_space<vmem>>, vector<1x8x384xf32>
    %317 = vector.shape_cast %316 : vector<1x8x384xf32> to vector<8x384xf32>
    %c52 = arith.constant 52 : index
    %318 = memref.load %arg4[%c52] : memref<128xf32, #tpu.memory_space<smem>>
    %319 = vector.broadcast %318 : f32 to vector<8x384xf32>
    %320 = arith.mulf %319, %317 : vector<8x384xf32>
    %321 = arith.addf %297, %320 : vector<8x384xf32>
    %c0_153 = arith.constant 0 : index
    %c2_154 = arith.constant 2 : index
    %c3_155 = arith.constant 3 : index
    %322 = vector.load %arg2[%c0_153, %c2_154, %c3_155] : memref<1x12x512xf32, #tpu.memory_space<vmem>>, vector<1x8x384xf32>
    %323 = vector.shape_cast %322 : vector<1x8x384xf32> to vector<8x384xf32>
    %c53 = arith.constant 53 : index
    %324 = memref.load %arg4[%c53] : memref<128xf32, #tpu.memory_space<smem>>
    %325 = vector.broadcast %324 : f32 to vector<8x384xf32>
    %326 = arith.mulf %325, %323 : vector<8x384xf32>
    %327 = arith.addf %303, %326 : vector<8x384xf32>
    %c0_156 = arith.constant 0 : index
    %c2_157 = arith.constant 2 : index
    %c4_158 = arith.constant 4 : index
    %328 = vector.load %arg2[%c0_156, %c2_157, %c4_158] : memref<1x12x512xf32, #tpu.memory_space<vmem>>, vector<1x8x384xf32>
    %329 = vector.shape_cast %328 : vector<1x8x384xf32> to vector<8x384xf32>
    %c54 = arith.constant 54 : index
    %330 = memref.load %arg4[%c54] : memref<128xf32, #tpu.memory_space<smem>>
    %331 = vector.broadcast %330 : f32 to vector<8x384xf32>
    %332 = arith.mulf %331, %329 : vector<8x384xf32>
    %333 = arith.addf %309, %332 : vector<8x384xf32>
    %c0_159 = arith.constant 0 : index
    %c2_160 = arith.constant 2 : index
    %c20_161 = arith.constant 20 : index
    %334 = vector.load %arg2[%c0_159, %c2_160, %c20_161] : memref<1x12x512xf32, #tpu.memory_space<vmem>>, vector<1x8x384xf32>
    %335 = vector.shape_cast %334 : vector<1x8x384xf32> to vector<8x384xf32>
    %c55 = arith.constant 55 : index
    %336 = memref.load %arg4[%c55] : memref<128xf32, #tpu.memory_space<smem>>
    %337 = vector.broadcast %336 : f32 to vector<8x384xf32>
    %338 = arith.mulf %337, %335 : vector<8x384xf32>
    %339 = arith.addf %315, %338 : vector<8x384xf32>
    %c0_162 = arith.constant 0 : index
    %c2_163 = arith.constant 2 : index
    %c21_164 = arith.constant 21 : index
    %340 = vector.load %arg2[%c0_162, %c2_163, %c21_164] : memref<1x12x512xf32, #tpu.memory_space<vmem>>, vector<1x8x384xf32>
    %341 = vector.shape_cast %340 : vector<1x8x384xf32> to vector<8x384xf32>
    %c56 = arith.constant 56 : index
    %342 = memref.load %arg4[%c56] : memref<128xf32, #tpu.memory_space<smem>>
    %343 = vector.broadcast %342 : f32 to vector<8x384xf32>
    %344 = arith.mulf %343, %341 : vector<8x384xf32>
    %345 = arith.addf %321, %344 : vector<8x384xf32>
    %c0_165 = arith.constant 0 : index
    %c2_166 = arith.constant 2 : index
    %c22_167 = arith.constant 22 : index
    %346 = vector.load %arg2[%c0_165, %c2_166, %c22_167] : memref<1x12x512xf32, #tpu.memory_space<vmem>>, vector<1x8x384xf32>
    %347 = vector.shape_cast %346 : vector<1x8x384xf32> to vector<8x384xf32>
    %c57 = arith.constant 57 : index
    %348 = memref.load %arg4[%c57] : memref<128xf32, #tpu.memory_space<smem>>
    %349 = vector.broadcast %348 : f32 to vector<8x384xf32>
    %350 = arith.mulf %349, %347 : vector<8x384xf32>
    %351 = arith.addf %327, %350 : vector<8x384xf32>
    %c0_168 = arith.constant 0 : index
    %c2_169 = arith.constant 2 : index
    %c23_170 = arith.constant 23 : index
    %352 = vector.load %arg2[%c0_168, %c2_169, %c23_170] : memref<1x12x512xf32, #tpu.memory_space<vmem>>, vector<1x8x384xf32>
    %353 = vector.shape_cast %352 : vector<1x8x384xf32> to vector<8x384xf32>
    %c58 = arith.constant 58 : index
    %354 = memref.load %arg4[%c58] : memref<128xf32, #tpu.memory_space<smem>>
    %355 = vector.broadcast %354 : f32 to vector<8x384xf32>
    %356 = arith.mulf %355, %353 : vector<8x384xf32>
    %357 = arith.addf %333, %356 : vector<8x384xf32>
    %c0_171 = arith.constant 0 : index
    %c2_172 = arith.constant 2 : index
    %c24_173 = arith.constant 24 : index
    %358 = vector.load %arg2[%c0_171, %c2_172, %c24_173] : memref<1x12x512xf32, #tpu.memory_space<vmem>>, vector<1x8x384xf32>
    %359 = vector.shape_cast %358 : vector<1x8x384xf32> to vector<8x384xf32>
    %c59 = arith.constant 59 : index
    %360 = memref.load %arg4[%c59] : memref<128xf32, #tpu.memory_space<smem>>
    %361 = vector.broadcast %360 : f32 to vector<8x384xf32>
    %362 = arith.mulf %361, %359 : vector<8x384xf32>
    %363 = arith.addf %339, %362 : vector<8x384xf32>
    %c0_174 = arith.constant 0 : index
    %c2_175 = arith.constant 2 : index
    %c40_176 = arith.constant 40 : index
    %364 = vector.load %arg2[%c0_174, %c2_175, %c40_176] : memref<1x12x512xf32, #tpu.memory_space<vmem>>, vector<1x8x384xf32>
    %365 = vector.shape_cast %364 : vector<1x8x384xf32> to vector<8x384xf32>
    %c60_177 = arith.constant 60 : index
    %366 = memref.load %arg4[%c60_177] : memref<128xf32, #tpu.memory_space<smem>>
    %367 = vector.broadcast %366 : f32 to vector<8x384xf32>
    %368 = arith.mulf %367, %365 : vector<8x384xf32>
    %369 = arith.addf %345, %368 : vector<8x384xf32>
    %c0_178 = arith.constant 0 : index
    %c2_179 = arith.constant 2 : index
    %c41_180 = arith.constant 41 : index
    %370 = vector.load %arg2[%c0_178, %c2_179, %c41_180] : memref<1x12x512xf32, #tpu.memory_space<vmem>>, vector<1x8x384xf32>
    %371 = vector.shape_cast %370 : vector<1x8x384xf32> to vector<8x384xf32>
    %c61_181 = arith.constant 61 : index
    %372 = memref.load %arg4[%c61_181] : memref<128xf32, #tpu.memory_space<smem>>
    %373 = vector.broadcast %372 : f32 to vector<8x384xf32>
    %374 = arith.mulf %373, %371 : vector<8x384xf32>
    %375 = arith.addf %351, %374 : vector<8x384xf32>
    %c0_182 = arith.constant 0 : index
    %c2_183 = arith.constant 2 : index
    %c42_184 = arith.constant 42 : index
    %376 = vector.load %arg2[%c0_182, %c2_183, %c42_184] : memref<1x12x512xf32, #tpu.memory_space<vmem>>, vector<1x8x384xf32>
    %377 = vector.shape_cast %376 : vector<1x8x384xf32> to vector<8x384xf32>
    %c62_185 = arith.constant 62 : index
    %378 = memref.load %arg4[%c62_185] : memref<128xf32, #tpu.memory_space<smem>>
    %379 = vector.broadcast %378 : f32 to vector<8x384xf32>
    %380 = arith.mulf %379, %377 : vector<8x384xf32>
    %381 = arith.addf %357, %380 : vector<8x384xf32>
    %c0_186 = arith.constant 0 : index
    %c2_187 = arith.constant 2 : index
    %c43_188 = arith.constant 43 : index
    %382 = vector.load %arg2[%c0_186, %c2_187, %c43_188] : memref<1x12x512xf32, #tpu.memory_space<vmem>>, vector<1x8x384xf32>
    %383 = vector.shape_cast %382 : vector<1x8x384xf32> to vector<8x384xf32>
    %c63_189 = arith.constant 63 : index
    %384 = memref.load %arg4[%c63_189] : memref<128xf32, #tpu.memory_space<smem>>
    %385 = vector.broadcast %384 : f32 to vector<8x384xf32>
    %386 = arith.mulf %385, %383 : vector<8x384xf32>
    %387 = arith.addf %363, %386 : vector<8x384xf32>
    %c0_190 = arith.constant 0 : index
    %c2_191 = arith.constant 2 : index
    %c44_192 = arith.constant 44 : index
    %388 = vector.load %arg2[%c0_190, %c2_191, %c44_192] : memref<1x12x512xf32, #tpu.memory_space<vmem>>, vector<1x8x384xf32>
    %389 = vector.shape_cast %388 : vector<1x8x384xf32> to vector<8x384xf32>
    %c64_193 = arith.constant 64 : index
    %390 = memref.load %arg4[%c64_193] : memref<128xf32, #tpu.memory_space<smem>>
    %391 = vector.broadcast %390 : f32 to vector<8x384xf32>
    %392 = arith.mulf %391, %389 : vector<8x384xf32>
    %393 = arith.addf %369, %392 : vector<8x384xf32>
    %c0_194 = arith.constant 0 : index
    %c2_195 = arith.constant 2 : index
    %c60_196 = arith.constant 60 : index
    %394 = vector.load %arg2[%c0_194, %c2_195, %c60_196] : memref<1x12x512xf32, #tpu.memory_space<vmem>>, vector<1x8x384xf32>
    %395 = vector.shape_cast %394 : vector<1x8x384xf32> to vector<8x384xf32>
    %c65 = arith.constant 65 : index
    %396 = memref.load %arg4[%c65] : memref<128xf32, #tpu.memory_space<smem>>
    %397 = vector.broadcast %396 : f32 to vector<8x384xf32>
    %398 = arith.mulf %397, %395 : vector<8x384xf32>
    %399 = arith.addf %375, %398 : vector<8x384xf32>
    %c0_197 = arith.constant 0 : index
    %c2_198 = arith.constant 2 : index
    %c61_199 = arith.constant 61 : index
    %400 = vector.load %arg2[%c0_197, %c2_198, %c61_199] : memref<1x12x512xf32, #tpu.memory_space<vmem>>, vector<1x8x384xf32>
    %401 = vector.shape_cast %400 : vector<1x8x384xf32> to vector<8x384xf32>
    %c66 = arith.constant 66 : index
    %402 = memref.load %arg4[%c66] : memref<128xf32, #tpu.memory_space<smem>>
    %403 = vector.broadcast %402 : f32 to vector<8x384xf32>
    %404 = arith.mulf %403, %401 : vector<8x384xf32>
    %405 = arith.addf %381, %404 : vector<8x384xf32>
    %c0_200 = arith.constant 0 : index
    %c2_201 = arith.constant 2 : index
    %c62_202 = arith.constant 62 : index
    %406 = vector.load %arg2[%c0_200, %c2_201, %c62_202] : memref<1x12x512xf32, #tpu.memory_space<vmem>>, vector<1x8x384xf32>
    %407 = vector.shape_cast %406 : vector<1x8x384xf32> to vector<8x384xf32>
    %c67 = arith.constant 67 : index
    %408 = memref.load %arg4[%c67] : memref<128xf32, #tpu.memory_space<smem>>
    %409 = vector.broadcast %408 : f32 to vector<8x384xf32>
    %410 = arith.mulf %409, %407 : vector<8x384xf32>
    %411 = arith.addf %387, %410 : vector<8x384xf32>
    %c0_203 = arith.constant 0 : index
    %c2_204 = arith.constant 2 : index
    %c63_205 = arith.constant 63 : index
    %412 = vector.load %arg2[%c0_203, %c2_204, %c63_205] : memref<1x12x512xf32, #tpu.memory_space<vmem>>, vector<1x8x384xf32>
    %413 = vector.shape_cast %412 : vector<1x8x384xf32> to vector<8x384xf32>
    %c68 = arith.constant 68 : index
    %414 = memref.load %arg4[%c68] : memref<128xf32, #tpu.memory_space<smem>>
    %415 = vector.broadcast %414 : f32 to vector<8x384xf32>
    %416 = arith.mulf %415, %413 : vector<8x384xf32>
    %417 = arith.addf %393, %416 : vector<8x384xf32>
    %c0_206 = arith.constant 0 : index
    %c2_207 = arith.constant 2 : index
    %c64_208 = arith.constant 64 : index
    %418 = vector.load %arg2[%c0_206, %c2_207, %c64_208] : memref<1x12x512xf32, #tpu.memory_space<vmem>>, vector<1x8x384xf32>
    %419 = vector.shape_cast %418 : vector<1x8x384xf32> to vector<8x384xf32>
    %c69 = arith.constant 69 : index
    %420 = memref.load %arg4[%c69] : memref<128xf32, #tpu.memory_space<smem>>
    %421 = vector.broadcast %420 : f32 to vector<8x384xf32>
    %422 = arith.mulf %421, %419 : vector<8x384xf32>
    %423 = arith.addf %399, %422 : vector<8x384xf32>
    %c0_209 = arith.constant 0 : index
    %c2_210 = arith.constant 2 : index
    %c80_211 = arith.constant 80 : index
    %424 = vector.load %arg2[%c0_209, %c2_210, %c80_211] : memref<1x12x512xf32, #tpu.memory_space<vmem>>, vector<1x8x384xf32>
    %425 = vector.shape_cast %424 : vector<1x8x384xf32> to vector<8x384xf32>
    %c70 = arith.constant 70 : index
    %426 = memref.load %arg4[%c70] : memref<128xf32, #tpu.memory_space<smem>>
    %427 = vector.broadcast %426 : f32 to vector<8x384xf32>
    %428 = arith.mulf %427, %425 : vector<8x384xf32>
    %429 = arith.addf %405, %428 : vector<8x384xf32>
    %c0_212 = arith.constant 0 : index
    %c2_213 = arith.constant 2 : index
    %c81_214 = arith.constant 81 : index
    %430 = vector.load %arg2[%c0_212, %c2_213, %c81_214] : memref<1x12x512xf32, #tpu.memory_space<vmem>>, vector<1x8x384xf32>
    %431 = vector.shape_cast %430 : vector<1x8x384xf32> to vector<8x384xf32>
    %c71 = arith.constant 71 : index
    %432 = memref.load %arg4[%c71] : memref<128xf32, #tpu.memory_space<smem>>
    %433 = vector.broadcast %432 : f32 to vector<8x384xf32>
    %434 = arith.mulf %433, %431 : vector<8x384xf32>
    %435 = arith.addf %411, %434 : vector<8x384xf32>
    %c0_215 = arith.constant 0 : index
    %c2_216 = arith.constant 2 : index
    %c82_217 = arith.constant 82 : index
    %436 = vector.load %arg2[%c0_215, %c2_216, %c82_217] : memref<1x12x512xf32, #tpu.memory_space<vmem>>, vector<1x8x384xf32>
    %437 = vector.shape_cast %436 : vector<1x8x384xf32> to vector<8x384xf32>
    %c72 = arith.constant 72 : index
    %438 = memref.load %arg4[%c72] : memref<128xf32, #tpu.memory_space<smem>>
    %439 = vector.broadcast %438 : f32 to vector<8x384xf32>
    %440 = arith.mulf %439, %437 : vector<8x384xf32>
    %441 = arith.addf %417, %440 : vector<8x384xf32>
    %c0_218 = arith.constant 0 : index
    %c2_219 = arith.constant 2 : index
    %c83_220 = arith.constant 83 : index
    %442 = vector.load %arg2[%c0_218, %c2_219, %c83_220] : memref<1x12x512xf32, #tpu.memory_space<vmem>>, vector<1x8x384xf32>
    %443 = vector.shape_cast %442 : vector<1x8x384xf32> to vector<8x384xf32>
    %c73 = arith.constant 73 : index
    %444 = memref.load %arg4[%c73] : memref<128xf32, #tpu.memory_space<smem>>
    %445 = vector.broadcast %444 : f32 to vector<8x384xf32>
    %446 = arith.mulf %445, %443 : vector<8x384xf32>
    %447 = arith.addf %423, %446 : vector<8x384xf32>
    %c0_221 = arith.constant 0 : index
    %c2_222 = arith.constant 2 : index
    %c84_223 = arith.constant 84 : index
    %448 = vector.load %arg2[%c0_221, %c2_222, %c84_223] : memref<1x12x512xf32, #tpu.memory_space<vmem>>, vector<1x8x384xf32>
    %449 = vector.shape_cast %448 : vector<1x8x384xf32> to vector<8x384xf32>
    %c74 = arith.constant 74 : index
    %450 = memref.load %arg4[%c74] : memref<128xf32, #tpu.memory_space<smem>>
    %451 = vector.broadcast %450 : f32 to vector<8x384xf32>
    %452 = arith.mulf %451, %449 : vector<8x384xf32>
    %453 = arith.addf %429, %452 : vector<8x384xf32>
    %c0_224 = arith.constant 0 : index
    %c3_225 = arith.constant 3 : index
    %c0_226 = arith.constant 0 : index
    %454 = vector.load %arg2[%c0_224, %c3_225, %c0_226] : memref<1x12x512xf32, #tpu.memory_space<vmem>>, vector<1x8x384xf32>
    %455 = vector.shape_cast %454 : vector<1x8x384xf32> to vector<8x384xf32>
    %c75 = arith.constant 75 : index
    %456 = memref.load %arg4[%c75] : memref<128xf32, #tpu.memory_space<smem>>
    %457 = vector.broadcast %456 : f32 to vector<8x384xf32>
    %458 = arith.mulf %457, %455 : vector<8x384xf32>
    %459 = arith.addf %435, %458 : vector<8x384xf32>
    %c0_227 = arith.constant 0 : index
    %c3_228 = arith.constant 3 : index
    %c1_229 = arith.constant 1 : index
    %460 = vector.load %arg2[%c0_227, %c3_228, %c1_229] : memref<1x12x512xf32, #tpu.memory_space<vmem>>, vector<1x8x384xf32>
    %461 = vector.shape_cast %460 : vector<1x8x384xf32> to vector<8x384xf32>
    %c76 = arith.constant 76 : index
    %462 = memref.load %arg4[%c76] : memref<128xf32, #tpu.memory_space<smem>>
    %463 = vector.broadcast %462 : f32 to vector<8x384xf32>
    %464 = arith.mulf %463, %461 : vector<8x384xf32>
    %465 = arith.addf %441, %464 : vector<8x384xf32>
    %c0_230 = arith.constant 0 : index
    %c3_231 = arith.constant 3 : index
    %c2_232 = arith.constant 2 : index
    %466 = vector.load %arg2[%c0_230, %c3_231, %c2_232] : memref<1x12x512xf32, #tpu.memory_space<vmem>>, vector<1x8x384xf32>
    %467 = vector.shape_cast %466 : vector<1x8x384xf32> to vector<8x384xf32>
    %c77 = arith.constant 77 : index
    %468 = memref.load %arg4[%c77] : memref<128xf32, #tpu.memory_space<smem>>
    %469 = vector.broadcast %468 : f32 to vector<8x384xf32>
    %470 = arith.mulf %469, %467 : vector<8x384xf32>
    %471 = arith.addf %447, %470 : vector<8x384xf32>
    %c0_233 = arith.constant 0 : index
    %c3_234 = arith.constant 3 : index
    %c3_235 = arith.constant 3 : index
    %472 = vector.load %arg2[%c0_233, %c3_234, %c3_235] : memref<1x12x512xf32, #tpu.memory_space<vmem>>, vector<1x8x384xf32>
    %473 = vector.shape_cast %472 : vector<1x8x384xf32> to vector<8x384xf32>
    %c78 = arith.constant 78 : index
    %474 = memref.load %arg4[%c78] : memref<128xf32, #tpu.memory_space<smem>>
    %475 = vector.broadcast %474 : f32 to vector<8x384xf32>
    %476 = arith.mulf %475, %473 : vector<8x384xf32>
    %477 = arith.addf %453, %476 : vector<8x384xf32>
    %c0_236 = arith.constant 0 : index
    %c3_237 = arith.constant 3 : index
    %c4_238 = arith.constant 4 : index
    %478 = vector.load %arg2[%c0_236, %c3_237, %c4_238] : memref<1x12x512xf32, #tpu.memory_space<vmem>>, vector<1x8x384xf32>
    %479 = vector.shape_cast %478 : vector<1x8x384xf32> to vector<8x384xf32>
    %c79 = arith.constant 79 : index
    %480 = memref.load %arg4[%c79] : memref<128xf32, #tpu.memory_space<smem>>
    %481 = vector.broadcast %480 : f32 to vector<8x384xf32>
    %482 = arith.mulf %481, %479 : vector<8x384xf32>
    %483 = arith.addf %459, %482 : vector<8x384xf32>
    %c0_239 = arith.constant 0 : index
    %c3_240 = arith.constant 3 : index
    %c20_241 = arith.constant 20 : index
    %484 = vector.load %arg2[%c0_239, %c3_240, %c20_241] : memref<1x12x512xf32, #tpu.memory_space<vmem>>, vector<1x8x384xf32>
    %485 = vector.shape_cast %484 : vector<1x8x384xf32> to vector<8x384xf32>
    %c80_242 = arith.constant 80 : index
    %486 = memref.load %arg4[%c80_242] : memref<128xf32, #tpu.memory_space<smem>>
    %487 = vector.broadcast %486 : f32 to vector<8x384xf32>
    %488 = arith.mulf %487, %485 : vector<8x384xf32>
    %489 = arith.addf %465, %488 : vector<8x384xf32>
    %c0_243 = arith.constant 0 : index
    %c3_244 = arith.constant 3 : index
    %c21_245 = arith.constant 21 : index
    %490 = vector.load %arg2[%c0_243, %c3_244, %c21_245] : memref<1x12x512xf32, #tpu.memory_space<vmem>>, vector<1x8x384xf32>
    %491 = vector.shape_cast %490 : vector<1x8x384xf32> to vector<8x384xf32>
    %c81_246 = arith.constant 81 : index
    %492 = memref.load %arg4[%c81_246] : memref<128xf32, #tpu.memory_space<smem>>
    %493 = vector.broadcast %492 : f32 to vector<8x384xf32>
    %494 = arith.mulf %493, %491 : vector<8x384xf32>
    %495 = arith.addf %471, %494 : vector<8x384xf32>
    %c0_247 = arith.constant 0 : index
    %c3_248 = arith.constant 3 : index
    %c22_249 = arith.constant 22 : index
    %496 = vector.load %arg2[%c0_247, %c3_248, %c22_249] : memref<1x12x512xf32, #tpu.memory_space<vmem>>, vector<1x8x384xf32>
    %497 = vector.shape_cast %496 : vector<1x8x384xf32> to vector<8x384xf32>
    %c82_250 = arith.constant 82 : index
    %498 = memref.load %arg4[%c82_250] : memref<128xf32, #tpu.memory_space<smem>>
    %499 = vector.broadcast %498 : f32 to vector<8x384xf32>
    %500 = arith.mulf %499, %497 : vector<8x384xf32>
    %501 = arith.addf %477, %500 : vector<8x384xf32>
    %c0_251 = arith.constant 0 : index
    %c3_252 = arith.constant 3 : index
    %c23_253 = arith.constant 23 : index
    %502 = vector.load %arg2[%c0_251, %c3_252, %c23_253] : memref<1x12x512xf32, #tpu.memory_space<vmem>>, vector<1x8x384xf32>
    %503 = vector.shape_cast %502 : vector<1x8x384xf32> to vector<8x384xf32>
    %c83_254 = arith.constant 83 : index
    %504 = memref.load %arg4[%c83_254] : memref<128xf32, #tpu.memory_space<smem>>
    %505 = vector.broadcast %504 : f32 to vector<8x384xf32>
    %506 = arith.mulf %505, %503 : vector<8x384xf32>
    %507 = arith.addf %483, %506 : vector<8x384xf32>
    %c0_255 = arith.constant 0 : index
    %c3_256 = arith.constant 3 : index
    %c24_257 = arith.constant 24 : index
    %508 = vector.load %arg2[%c0_255, %c3_256, %c24_257] : memref<1x12x512xf32, #tpu.memory_space<vmem>>, vector<1x8x384xf32>
    %509 = vector.shape_cast %508 : vector<1x8x384xf32> to vector<8x384xf32>
    %c84_258 = arith.constant 84 : index
    %510 = memref.load %arg4[%c84_258] : memref<128xf32, #tpu.memory_space<smem>>
    %511 = vector.broadcast %510 : f32 to vector<8x384xf32>
    %512 = arith.mulf %511, %509 : vector<8x384xf32>
    %513 = arith.addf %489, %512 : vector<8x384xf32>
    %c0_259 = arith.constant 0 : index
    %c3_260 = arith.constant 3 : index
    %c40_261 = arith.constant 40 : index
    %514 = vector.load %arg2[%c0_259, %c3_260, %c40_261] : memref<1x12x512xf32, #tpu.memory_space<vmem>>, vector<1x8x384xf32>
    %515 = vector.shape_cast %514 : vector<1x8x384xf32> to vector<8x384xf32>
    %c85 = arith.constant 85 : index
    %516 = memref.load %arg4[%c85] : memref<128xf32, #tpu.memory_space<smem>>
    %517 = vector.broadcast %516 : f32 to vector<8x384xf32>
    %518 = arith.mulf %517, %515 : vector<8x384xf32>
    %519 = arith.addf %495, %518 : vector<8x384xf32>
    %c0_262 = arith.constant 0 : index
    %c3_263 = arith.constant 3 : index
    %c41_264 = arith.constant 41 : index
    %520 = vector.load %arg2[%c0_262, %c3_263, %c41_264] : memref<1x12x512xf32, #tpu.memory_space<vmem>>, vector<1x8x384xf32>
    %521 = vector.shape_cast %520 : vector<1x8x384xf32> to vector<8x384xf32>
    %c86 = arith.constant 86 : index
    %522 = memref.load %arg4[%c86] : memref<128xf32, #tpu.memory_space<smem>>
    %523 = vector.broadcast %522 : f32 to vector<8x384xf32>
    %524 = arith.mulf %523, %521 : vector<8x384xf32>
    %525 = arith.addf %501, %524 : vector<8x384xf32>
    %c0_265 = arith.constant 0 : index
    %c3_266 = arith.constant 3 : index
    %c42_267 = arith.constant 42 : index
    %526 = vector.load %arg2[%c0_265, %c3_266, %c42_267] : memref<1x12x512xf32, #tpu.memory_space<vmem>>, vector<1x8x384xf32>
    %527 = vector.shape_cast %526 : vector<1x8x384xf32> to vector<8x384xf32>
    %c87 = arith.constant 87 : index
    %528 = memref.load %arg4[%c87] : memref<128xf32, #tpu.memory_space<smem>>
    %529 = vector.broadcast %528 : f32 to vector<8x384xf32>
    %530 = arith.mulf %529, %527 : vector<8x384xf32>
    %531 = arith.addf %507, %530 : vector<8x384xf32>
    %c0_268 = arith.constant 0 : index
    %c3_269 = arith.constant 3 : index
    %c43_270 = arith.constant 43 : index
    %532 = vector.load %arg2[%c0_268, %c3_269, %c43_270] : memref<1x12x512xf32, #tpu.memory_space<vmem>>, vector<1x8x384xf32>
    %533 = vector.shape_cast %532 : vector<1x8x384xf32> to vector<8x384xf32>
    %c88 = arith.constant 88 : index
    %534 = memref.load %arg4[%c88] : memref<128xf32, #tpu.memory_space<smem>>
    %535 = vector.broadcast %534 : f32 to vector<8x384xf32>
    %536 = arith.mulf %535, %533 : vector<8x384xf32>
    %537 = arith.addf %513, %536 : vector<8x384xf32>
    %c0_271 = arith.constant 0 : index
    %c3_272 = arith.constant 3 : index
    %c44_273 = arith.constant 44 : index
    %538 = vector.load %arg2[%c0_271, %c3_272, %c44_273] : memref<1x12x512xf32, #tpu.memory_space<vmem>>, vector<1x8x384xf32>
    %539 = vector.shape_cast %538 : vector<1x8x384xf32> to vector<8x384xf32>
    %c89 = arith.constant 89 : index
    %540 = memref.load %arg4[%c89] : memref<128xf32, #tpu.memory_space<smem>>
    %541 = vector.broadcast %540 : f32 to vector<8x384xf32>
    %542 = arith.mulf %541, %539 : vector<8x384xf32>
    %543 = arith.addf %519, %542 : vector<8x384xf32>
    %c0_274 = arith.constant 0 : index
    %c3_275 = arith.constant 3 : index
    %c60_276 = arith.constant 60 : index
    %544 = vector.load %arg2[%c0_274, %c3_275, %c60_276] : memref<1x12x512xf32, #tpu.memory_space<vmem>>, vector<1x8x384xf32>
    %545 = vector.shape_cast %544 : vector<1x8x384xf32> to vector<8x384xf32>
    %c90 = arith.constant 90 : index
    %546 = memref.load %arg4[%c90] : memref<128xf32, #tpu.memory_space<smem>>
    %547 = vector.broadcast %546 : f32 to vector<8x384xf32>
    %548 = arith.mulf %547, %545 : vector<8x384xf32>
    %549 = arith.addf %525, %548 : vector<8x384xf32>
    %c0_277 = arith.constant 0 : index
    %c3_278 = arith.constant 3 : index
    %c61_279 = arith.constant 61 : index
    %550 = vector.load %arg2[%c0_277, %c3_278, %c61_279] : memref<1x12x512xf32, #tpu.memory_space<vmem>>, vector<1x8x384xf32>
    %551 = vector.shape_cast %550 : vector<1x8x384xf32> to vector<8x384xf32>
    %c91 = arith.constant 91 : index
    %552 = memref.load %arg4[%c91] : memref<128xf32, #tpu.memory_space<smem>>
    %553 = vector.broadcast %552 : f32 to vector<8x384xf32>
    %554 = arith.mulf %553, %551 : vector<8x384xf32>
    %555 = arith.addf %531, %554 : vector<8x384xf32>
    %c0_280 = arith.constant 0 : index
    %c3_281 = arith.constant 3 : index
    %c62_282 = arith.constant 62 : index
    %556 = vector.load %arg2[%c0_280, %c3_281, %c62_282] : memref<1x12x512xf32, #tpu.memory_space<vmem>>, vector<1x8x384xf32>
    %557 = vector.shape_cast %556 : vector<1x8x384xf32> to vector<8x384xf32>
    %c92 = arith.constant 92 : index
    %558 = memref.load %arg4[%c92] : memref<128xf32, #tpu.memory_space<smem>>
    %559 = vector.broadcast %558 : f32 to vector<8x384xf32>
    %560 = arith.mulf %559, %557 : vector<8x384xf32>
    %561 = arith.addf %537, %560 : vector<8x384xf32>
    %c0_283 = arith.constant 0 : index
    %c3_284 = arith.constant 3 : index
    %c63_285 = arith.constant 63 : index
    %562 = vector.load %arg2[%c0_283, %c3_284, %c63_285] : memref<1x12x512xf32, #tpu.memory_space<vmem>>, vector<1x8x384xf32>
    %563 = vector.shape_cast %562 : vector<1x8x384xf32> to vector<8x384xf32>
    %c93 = arith.constant 93 : index
    %564 = memref.load %arg4[%c93] : memref<128xf32, #tpu.memory_space<smem>>
    %565 = vector.broadcast %564 : f32 to vector<8x384xf32>
    %566 = arith.mulf %565, %563 : vector<8x384xf32>
    %567 = arith.addf %543, %566 : vector<8x384xf32>
    %c0_286 = arith.constant 0 : index
    %c3_287 = arith.constant 3 : index
    %c64_288 = arith.constant 64 : index
    %568 = vector.load %arg2[%c0_286, %c3_287, %c64_288] : memref<1x12x512xf32, #tpu.memory_space<vmem>>, vector<1x8x384xf32>
    %569 = vector.shape_cast %568 : vector<1x8x384xf32> to vector<8x384xf32>
    %c94 = arith.constant 94 : index
    %570 = memref.load %arg4[%c94] : memref<128xf32, #tpu.memory_space<smem>>
    %571 = vector.broadcast %570 : f32 to vector<8x384xf32>
    %572 = arith.mulf %571, %569 : vector<8x384xf32>
    %573 = arith.addf %549, %572 : vector<8x384xf32>
    %c0_289 = arith.constant 0 : index
    %c3_290 = arith.constant 3 : index
    %c80_291 = arith.constant 80 : index
    %574 = vector.load %arg2[%c0_289, %c3_290, %c80_291] : memref<1x12x512xf32, #tpu.memory_space<vmem>>, vector<1x8x384xf32>
    %575 = vector.shape_cast %574 : vector<1x8x384xf32> to vector<8x384xf32>
    %c95 = arith.constant 95 : index
    %576 = memref.load %arg4[%c95] : memref<128xf32, #tpu.memory_space<smem>>
    %577 = vector.broadcast %576 : f32 to vector<8x384xf32>
    %578 = arith.mulf %577, %575 : vector<8x384xf32>
    %579 = arith.addf %555, %578 : vector<8x384xf32>
    %c0_292 = arith.constant 0 : index
    %c3_293 = arith.constant 3 : index
    %c81_294 = arith.constant 81 : index
    %580 = vector.load %arg2[%c0_292, %c3_293, %c81_294] : memref<1x12x512xf32, #tpu.memory_space<vmem>>, vector<1x8x384xf32>
    %581 = vector.shape_cast %580 : vector<1x8x384xf32> to vector<8x384xf32>
    %c96 = arith.constant 96 : index
    %582 = memref.load %arg4[%c96] : memref<128xf32, #tpu.memory_space<smem>>
    %583 = vector.broadcast %582 : f32 to vector<8x384xf32>
    %584 = arith.mulf %583, %581 : vector<8x384xf32>
    %585 = arith.addf %561, %584 : vector<8x384xf32>
    %c0_295 = arith.constant 0 : index
    %c3_296 = arith.constant 3 : index
    %c82_297 = arith.constant 82 : index
    %586 = vector.load %arg2[%c0_295, %c3_296, %c82_297] : memref<1x12x512xf32, #tpu.memory_space<vmem>>, vector<1x8x384xf32>
    %587 = vector.shape_cast %586 : vector<1x8x384xf32> to vector<8x384xf32>
    %c97 = arith.constant 97 : index
    %588 = memref.load %arg4[%c97] : memref<128xf32, #tpu.memory_space<smem>>
    %589 = vector.broadcast %588 : f32 to vector<8x384xf32>
    %590 = arith.mulf %589, %587 : vector<8x384xf32>
    %591 = arith.addf %567, %590 : vector<8x384xf32>
    %c0_298 = arith.constant 0 : index
    %c3_299 = arith.constant 3 : index
    %c83_300 = arith.constant 83 : index
    %592 = vector.load %arg2[%c0_298, %c3_299, %c83_300] : memref<1x12x512xf32, #tpu.memory_space<vmem>>, vector<1x8x384xf32>
    %593 = vector.shape_cast %592 : vector<1x8x384xf32> to vector<8x384xf32>
    %c98 = arith.constant 98 : index
    %594 = memref.load %arg4[%c98] : memref<128xf32, #tpu.memory_space<smem>>
    %595 = vector.broadcast %594 : f32 to vector<8x384xf32>
    %596 = arith.mulf %595, %593 : vector<8x384xf32>
    %597 = arith.addf %573, %596 : vector<8x384xf32>
    %c0_301 = arith.constant 0 : index
    %c3_302 = arith.constant 3 : index
    %c84_303 = arith.constant 84 : index
    %598 = vector.load %arg2[%c0_301, %c3_302, %c84_303] : memref<1x12x512xf32, #tpu.memory_space<vmem>>, vector<1x8x384xf32>
    %599 = vector.shape_cast %598 : vector<1x8x384xf32> to vector<8x384xf32>
    %c99 = arith.constant 99 : index
    %600 = memref.load %arg4[%c99] : memref<128xf32, #tpu.memory_space<smem>>
    %601 = vector.broadcast %600 : f32 to vector<8x384xf32>
    %602 = arith.mulf %601, %599 : vector<8x384xf32>
    %603 = arith.addf %579, %602 : vector<8x384xf32>
    %c0_304 = arith.constant 0 : index
    %c4_305 = arith.constant 4 : index
    %c0_306 = arith.constant 0 : index
    %604 = vector.load %arg2[%c0_304, %c4_305, %c0_306] : memref<1x12x512xf32, #tpu.memory_space<vmem>>, vector<1x8x384xf32>
    %605 = vector.shape_cast %604 : vector<1x8x384xf32> to vector<8x384xf32>
    %c100 = arith.constant 100 : index
    %606 = memref.load %arg4[%c100] : memref<128xf32, #tpu.memory_space<smem>>
    %607 = vector.broadcast %606 : f32 to vector<8x384xf32>
    %608 = arith.mulf %607, %605 : vector<8x384xf32>
    %609 = arith.addf %585, %608 : vector<8x384xf32>
    %c0_307 = arith.constant 0 : index
    %c4_308 = arith.constant 4 : index
    %c1_309 = arith.constant 1 : index
    %610 = vector.load %arg2[%c0_307, %c4_308, %c1_309] : memref<1x12x512xf32, #tpu.memory_space<vmem>>, vector<1x8x384xf32>
    %611 = vector.shape_cast %610 : vector<1x8x384xf32> to vector<8x384xf32>
    %c101 = arith.constant 101 : index
    %612 = memref.load %arg4[%c101] : memref<128xf32, #tpu.memory_space<smem>>
    %613 = vector.broadcast %612 : f32 to vector<8x384xf32>
    %614 = arith.mulf %613, %611 : vector<8x384xf32>
    %615 = arith.addf %591, %614 : vector<8x384xf32>
    %c0_310 = arith.constant 0 : index
    %c4_311 = arith.constant 4 : index
    %c2_312 = arith.constant 2 : index
    %616 = vector.load %arg2[%c0_310, %c4_311, %c2_312] : memref<1x12x512xf32, #tpu.memory_space<vmem>>, vector<1x8x384xf32>
    %617 = vector.shape_cast %616 : vector<1x8x384xf32> to vector<8x384xf32>
    %c102 = arith.constant 102 : index
    %618 = memref.load %arg4[%c102] : memref<128xf32, #tpu.memory_space<smem>>
    %619 = vector.broadcast %618 : f32 to vector<8x384xf32>
    %620 = arith.mulf %619, %617 : vector<8x384xf32>
    %621 = arith.addf %597, %620 : vector<8x384xf32>
    %c0_313 = arith.constant 0 : index
    %c4_314 = arith.constant 4 : index
    %c3_315 = arith.constant 3 : index
    %622 = vector.load %arg2[%c0_313, %c4_314, %c3_315] : memref<1x12x512xf32, #tpu.memory_space<vmem>>, vector<1x8x384xf32>
    %623 = vector.shape_cast %622 : vector<1x8x384xf32> to vector<8x384xf32>
    %c103 = arith.constant 103 : index
    %624 = memref.load %arg4[%c103] : memref<128xf32, #tpu.memory_space<smem>>
    %625 = vector.broadcast %624 : f32 to vector<8x384xf32>
    %626 = arith.mulf %625, %623 : vector<8x384xf32>
    %627 = arith.addf %603, %626 : vector<8x384xf32>
    %c0_316 = arith.constant 0 : index
    %c4_317 = arith.constant 4 : index
    %c4_318 = arith.constant 4 : index
    %628 = vector.load %arg2[%c0_316, %c4_317, %c4_318] : memref<1x12x512xf32, #tpu.memory_space<vmem>>, vector<1x8x384xf32>
    %629 = vector.shape_cast %628 : vector<1x8x384xf32> to vector<8x384xf32>
    %c104 = arith.constant 104 : index
    %630 = memref.load %arg4[%c104] : memref<128xf32, #tpu.memory_space<smem>>
    %631 = vector.broadcast %630 : f32 to vector<8x384xf32>
    %632 = arith.mulf %631, %629 : vector<8x384xf32>
    %633 = arith.addf %609, %632 : vector<8x384xf32>
    %c0_319 = arith.constant 0 : index
    %c4_320 = arith.constant 4 : index
    %c20_321 = arith.constant 20 : index
    %634 = vector.load %arg2[%c0_319, %c4_320, %c20_321] : memref<1x12x512xf32, #tpu.memory_space<vmem>>, vector<1x8x384xf32>
    %635 = vector.shape_cast %634 : vector<1x8x384xf32> to vector<8x384xf32>
    %c105 = arith.constant 105 : index
    %636 = memref.load %arg4[%c105] : memref<128xf32, #tpu.memory_space<smem>>
    %637 = vector.broadcast %636 : f32 to vector<8x384xf32>
    %638 = arith.mulf %637, %635 : vector<8x384xf32>
    %639 = arith.addf %615, %638 : vector<8x384xf32>
    %c0_322 = arith.constant 0 : index
    %c4_323 = arith.constant 4 : index
    %c21_324 = arith.constant 21 : index
    %640 = vector.load %arg2[%c0_322, %c4_323, %c21_324] : memref<1x12x512xf32, #tpu.memory_space<vmem>>, vector<1x8x384xf32>
    %641 = vector.shape_cast %640 : vector<1x8x384xf32> to vector<8x384xf32>
    %c106 = arith.constant 106 : index
    %642 = memref.load %arg4[%c106] : memref<128xf32, #tpu.memory_space<smem>>
    %643 = vector.broadcast %642 : f32 to vector<8x384xf32>
    %644 = arith.mulf %643, %641 : vector<8x384xf32>
    %645 = arith.addf %621, %644 : vector<8x384xf32>
    %c0_325 = arith.constant 0 : index
    %c4_326 = arith.constant 4 : index
    %c22_327 = arith.constant 22 : index
    %646 = vector.load %arg2[%c0_325, %c4_326, %c22_327] : memref<1x12x512xf32, #tpu.memory_space<vmem>>, vector<1x8x384xf32>
    %647 = vector.shape_cast %646 : vector<1x8x384xf32> to vector<8x384xf32>
    %c107 = arith.constant 107 : index
    %648 = memref.load %arg4[%c107] : memref<128xf32, #tpu.memory_space<smem>>
    %649 = vector.broadcast %648 : f32 to vector<8x384xf32>
    %650 = arith.mulf %649, %647 : vector<8x384xf32>
    %651 = arith.addf %627, %650 : vector<8x384xf32>
    %c0_328 = arith.constant 0 : index
    %c4_329 = arith.constant 4 : index
    %c23_330 = arith.constant 23 : index
    %652 = vector.load %arg2[%c0_328, %c4_329, %c23_330] : memref<1x12x512xf32, #tpu.memory_space<vmem>>, vector<1x8x384xf32>
    %653 = vector.shape_cast %652 : vector<1x8x384xf32> to vector<8x384xf32>
    %c108 = arith.constant 108 : index
    %654 = memref.load %arg4[%c108] : memref<128xf32, #tpu.memory_space<smem>>
    %655 = vector.broadcast %654 : f32 to vector<8x384xf32>
    %656 = arith.mulf %655, %653 : vector<8x384xf32>
    %657 = arith.addf %633, %656 : vector<8x384xf32>
    %c0_331 = arith.constant 0 : index
    %c4_332 = arith.constant 4 : index
    %c24_333 = arith.constant 24 : index
    %658 = vector.load %arg2[%c0_331, %c4_332, %c24_333] : memref<1x12x512xf32, #tpu.memory_space<vmem>>, vector<1x8x384xf32>
    %659 = vector.shape_cast %658 : vector<1x8x384xf32> to vector<8x384xf32>
    %c109 = arith.constant 109 : index
    %660 = memref.load %arg4[%c109] : memref<128xf32, #tpu.memory_space<smem>>
    %661 = vector.broadcast %660 : f32 to vector<8x384xf32>
    %662 = arith.mulf %661, %659 : vector<8x384xf32>
    %663 = arith.addf %639, %662 : vector<8x384xf32>
    %c0_334 = arith.constant 0 : index
    %c4_335 = arith.constant 4 : index
    %c40_336 = arith.constant 40 : index
    %664 = vector.load %arg2[%c0_334, %c4_335, %c40_336] : memref<1x12x512xf32, #tpu.memory_space<vmem>>, vector<1x8x384xf32>
    %665 = vector.shape_cast %664 : vector<1x8x384xf32> to vector<8x384xf32>
    %c110 = arith.constant 110 : index
    %666 = memref.load %arg4[%c110] : memref<128xf32, #tpu.memory_space<smem>>
    %667 = vector.broadcast %666 : f32 to vector<8x384xf32>
    %668 = arith.mulf %667, %665 : vector<8x384xf32>
    %669 = arith.addf %645, %668 : vector<8x384xf32>
    %c0_337 = arith.constant 0 : index
    %c4_338 = arith.constant 4 : index
    %c41_339 = arith.constant 41 : index
    %670 = vector.load %arg2[%c0_337, %c4_338, %c41_339] : memref<1x12x512xf32, #tpu.memory_space<vmem>>, vector<1x8x384xf32>
    %671 = vector.shape_cast %670 : vector<1x8x384xf32> to vector<8x384xf32>
    %c111 = arith.constant 111 : index
    %672 = memref.load %arg4[%c111] : memref<128xf32, #tpu.memory_space<smem>>
    %673 = vector.broadcast %672 : f32 to vector<8x384xf32>
    %674 = arith.mulf %673, %671 : vector<8x384xf32>
    %675 = arith.addf %651, %674 : vector<8x384xf32>
    %c0_340 = arith.constant 0 : index
    %c4_341 = arith.constant 4 : index
    %c42_342 = arith.constant 42 : index
    %676 = vector.load %arg2[%c0_340, %c4_341, %c42_342] : memref<1x12x512xf32, #tpu.memory_space<vmem>>, vector<1x8x384xf32>
    %677 = vector.shape_cast %676 : vector<1x8x384xf32> to vector<8x384xf32>
    %c112 = arith.constant 112 : index
    %678 = memref.load %arg4[%c112] : memref<128xf32, #tpu.memory_space<smem>>
    %679 = vector.broadcast %678 : f32 to vector<8x384xf32>
    %680 = arith.mulf %679, %677 : vector<8x384xf32>
    %681 = arith.addf %657, %680 : vector<8x384xf32>
    %c0_343 = arith.constant 0 : index
    %c4_344 = arith.constant 4 : index
    %c43_345 = arith.constant 43 : index
    %682 = vector.load %arg2[%c0_343, %c4_344, %c43_345] : memref<1x12x512xf32, #tpu.memory_space<vmem>>, vector<1x8x384xf32>
    %683 = vector.shape_cast %682 : vector<1x8x384xf32> to vector<8x384xf32>
    %c113 = arith.constant 113 : index
    %684 = memref.load %arg4[%c113] : memref<128xf32, #tpu.memory_space<smem>>
    %685 = vector.broadcast %684 : f32 to vector<8x384xf32>
    %686 = arith.mulf %685, %683 : vector<8x384xf32>
    %687 = arith.addf %663, %686 : vector<8x384xf32>
    %c0_346 = arith.constant 0 : index
    %c4_347 = arith.constant 4 : index
    %c44_348 = arith.constant 44 : index
    %688 = vector.load %arg2[%c0_346, %c4_347, %c44_348] : memref<1x12x512xf32, #tpu.memory_space<vmem>>, vector<1x8x384xf32>
    %689 = vector.shape_cast %688 : vector<1x8x384xf32> to vector<8x384xf32>
    %c114 = arith.constant 114 : index
    %690 = memref.load %arg4[%c114] : memref<128xf32, #tpu.memory_space<smem>>
    %691 = vector.broadcast %690 : f32 to vector<8x384xf32>
    %692 = arith.mulf %691, %689 : vector<8x384xf32>
    %693 = arith.addf %669, %692 : vector<8x384xf32>
    %c0_349 = arith.constant 0 : index
    %c4_350 = arith.constant 4 : index
    %c60_351 = arith.constant 60 : index
    %694 = vector.load %arg2[%c0_349, %c4_350, %c60_351] : memref<1x12x512xf32, #tpu.memory_space<vmem>>, vector<1x8x384xf32>
    %695 = vector.shape_cast %694 : vector<1x8x384xf32> to vector<8x384xf32>
    %c115 = arith.constant 115 : index
    %696 = memref.load %arg4[%c115] : memref<128xf32, #tpu.memory_space<smem>>
    %697 = vector.broadcast %696 : f32 to vector<8x384xf32>
    %698 = arith.mulf %697, %695 : vector<8x384xf32>
    %699 = arith.addf %675, %698 : vector<8x384xf32>
    %c0_352 = arith.constant 0 : index
    %c4_353 = arith.constant 4 : index
    %c61_354 = arith.constant 61 : index
    %700 = vector.load %arg2[%c0_352, %c4_353, %c61_354] : memref<1x12x512xf32, #tpu.memory_space<vmem>>, vector<1x8x384xf32>
    %701 = vector.shape_cast %700 : vector<1x8x384xf32> to vector<8x384xf32>
    %c116 = arith.constant 116 : index
    %702 = memref.load %arg4[%c116] : memref<128xf32, #tpu.memory_space<smem>>
    %703 = vector.broadcast %702 : f32 to vector<8x384xf32>
    %704 = arith.mulf %703, %701 : vector<8x384xf32>
    %705 = arith.addf %681, %704 : vector<8x384xf32>
    %c0_355 = arith.constant 0 : index
    %c4_356 = arith.constant 4 : index
    %c62_357 = arith.constant 62 : index
    %706 = vector.load %arg2[%c0_355, %c4_356, %c62_357] : memref<1x12x512xf32, #tpu.memory_space<vmem>>, vector<1x8x384xf32>
    %707 = vector.shape_cast %706 : vector<1x8x384xf32> to vector<8x384xf32>
    %c117 = arith.constant 117 : index
    %708 = memref.load %arg4[%c117] : memref<128xf32, #tpu.memory_space<smem>>
    %709 = vector.broadcast %708 : f32 to vector<8x384xf32>
    %710 = arith.mulf %709, %707 : vector<8x384xf32>
    %711 = arith.addf %687, %710 : vector<8x384xf32>
    %c0_358 = arith.constant 0 : index
    %c4_359 = arith.constant 4 : index
    %c63_360 = arith.constant 63 : index
    %712 = vector.load %arg2[%c0_358, %c4_359, %c63_360] : memref<1x12x512xf32, #tpu.memory_space<vmem>>, vector<1x8x384xf32>
    %713 = vector.shape_cast %712 : vector<1x8x384xf32> to vector<8x384xf32>
    %c118 = arith.constant 118 : index
    %714 = memref.load %arg4[%c118] : memref<128xf32, #tpu.memory_space<smem>>
    %715 = vector.broadcast %714 : f32 to vector<8x384xf32>
    %716 = arith.mulf %715, %713 : vector<8x384xf32>
    %717 = arith.addf %693, %716 : vector<8x384xf32>
    %c0_361 = arith.constant 0 : index
    %c4_362 = arith.constant 4 : index
    %c64_363 = arith.constant 64 : index
    %718 = vector.load %arg2[%c0_361, %c4_362, %c64_363] : memref<1x12x512xf32, #tpu.memory_space<vmem>>, vector<1x8x384xf32>
    %719 = vector.shape_cast %718 : vector<1x8x384xf32> to vector<8x384xf32>
    %c119 = arith.constant 119 : index
    %720 = memref.load %arg4[%c119] : memref<128xf32, #tpu.memory_space<smem>>
    %721 = vector.broadcast %720 : f32 to vector<8x384xf32>
    %722 = arith.mulf %721, %719 : vector<8x384xf32>
    %723 = arith.addf %699, %722 : vector<8x384xf32>
    %c0_364 = arith.constant 0 : index
    %c4_365 = arith.constant 4 : index
    %c80_366 = arith.constant 80 : index
    %724 = vector.load %arg2[%c0_364, %c4_365, %c80_366] : memref<1x12x512xf32, #tpu.memory_space<vmem>>, vector<1x8x384xf32>
    %725 = vector.shape_cast %724 : vector<1x8x384xf32> to vector<8x384xf32>
    %c120 = arith.constant 120 : index
    %726 = memref.load %arg4[%c120] : memref<128xf32, #tpu.memory_space<smem>>
    %727 = vector.broadcast %726 : f32 to vector<8x384xf32>
    %728 = arith.mulf %727, %725 : vector<8x384xf32>
    %729 = arith.addf %705, %728 : vector<8x384xf32>
    %c0_367 = arith.constant 0 : index
    %c4_368 = arith.constant 4 : index
    %c81_369 = arith.constant 81 : index
    %730 = vector.load %arg2[%c0_367, %c4_368, %c81_369] : memref<1x12x512xf32, #tpu.memory_space<vmem>>, vector<1x8x384xf32>
    %731 = vector.shape_cast %730 : vector<1x8x384xf32> to vector<8x384xf32>
    %c121 = arith.constant 121 : index
    %732 = memref.load %arg4[%c121] : memref<128xf32, #tpu.memory_space<smem>>
    %733 = vector.broadcast %732 : f32 to vector<8x384xf32>
    %734 = arith.mulf %733, %731 : vector<8x384xf32>
    %735 = arith.addf %711, %734 : vector<8x384xf32>
    %c0_370 = arith.constant 0 : index
    %c4_371 = arith.constant 4 : index
    %c82_372 = arith.constant 82 : index
    %736 = vector.load %arg2[%c0_370, %c4_371, %c82_372] : memref<1x12x512xf32, #tpu.memory_space<vmem>>, vector<1x8x384xf32>
    %737 = vector.shape_cast %736 : vector<1x8x384xf32> to vector<8x384xf32>
    %c122 = arith.constant 122 : index
    %738 = memref.load %arg4[%c122] : memref<128xf32, #tpu.memory_space<smem>>
    %739 = vector.broadcast %738 : f32 to vector<8x384xf32>
    %740 = arith.mulf %739, %737 : vector<8x384xf32>
    %741 = arith.addf %717, %740 : vector<8x384xf32>
    %c0_373 = arith.constant 0 : index
    %c4_374 = arith.constant 4 : index
    %c83_375 = arith.constant 83 : index
    %742 = vector.load %arg2[%c0_373, %c4_374, %c83_375] : memref<1x12x512xf32, #tpu.memory_space<vmem>>, vector<1x8x384xf32>
    %743 = vector.shape_cast %742 : vector<1x8x384xf32> to vector<8x384xf32>
    %c123 = arith.constant 123 : index
    %744 = memref.load %arg4[%c123] : memref<128xf32, #tpu.memory_space<smem>>
    %745 = vector.broadcast %744 : f32 to vector<8x384xf32>
    %746 = arith.mulf %745, %743 : vector<8x384xf32>
    %747 = arith.addf %723, %746 : vector<8x384xf32>
    %c0_376 = arith.constant 0 : index
    %c4_377 = arith.constant 4 : index
    %c84_378 = arith.constant 84 : index
    %748 = vector.load %arg2[%c0_376, %c4_377, %c84_378] : memref<1x12x512xf32, #tpu.memory_space<vmem>>, vector<1x8x384xf32>
    %749 = vector.shape_cast %748 : vector<1x8x384xf32> to vector<8x384xf32>
    %c124 = arith.constant 124 : index
    %750 = memref.load %arg4[%c124] : memref<128xf32, #tpu.memory_space<smem>>
    %751 = vector.broadcast %750 : f32 to vector<8x384xf32>
    %752 = arith.mulf %751, %749 : vector<8x384xf32>
    %753 = arith.addf %729, %752 : vector<8x384xf32>
    %754 = arith.addf %753, %735 : vector<8x384xf32>
    %755 = arith.addf %741, %747 : vector<8x384xf32>
    %756 = arith.addf %754, %755 : vector<8x384xf32>
    %cst_379 = arith.constant 0.000000e+00 : f32
    %757 = vector.broadcast %cst_379 : f32 to vector<8x384xf32>
    %758 = arith.cmpf oge, %756, %757 : vector<8x384xf32>
    %cst_380 = arith.constant 0.00999999977 : f32
    %759 = vector.broadcast %cst_380 : f32 to vector<8x384xf32>
    %760 = arith.mulf %759, %756 : vector<8x384xf32>
    %761 = arith.select %758, %756, %760 : vector<8x384xi1>, vector<8x384xf32>
    %c0_381 = arith.constant 0 : index
    %c0_382 = arith.constant 0 : index
    %c0_383 = arith.constant 0 : index
    %762 = vector.load %arg5[%c0_381, %c0_382, %c0_383] : memref<1x8x384xf32, #tpu.memory_space<vmem>>, vector<1x8x384xf32>
    %763 = vector.shape_cast %762 : vector<1x8x384xf32> to vector<8x384xf32>
    %764 = vector.shape_cast %761 : vector<8x384xf32> to vector<1x8x384xf32>
    tpu.vector_store %arg5[%c0_381, %c0_382, %c0_383], %764 {strides = array<i32>} : memref<1x8x384xf32, #tpu.memory_space<vmem>>, vector<1x8x384xf32>,
    return
  }
  func.func @transform_0(%arg0: i32, %arg1: i32) -> (i32, i32, i32) {
    %c0_i32 = arith.constant 0 : i32
    %c0_i32_0 = arith.constant 0 : i32
    %c0_i32_1 = arith.constant 0 : i32
    return %arg0, %c0_i32, %c0_i32_0 : i32, i32, i32
  }
  func.func @transform_1(%arg0: i32, %arg1: i32) -> (i32, i32) {
    %c0_i32 = arith.constant 0 : i32
    %c0_i32_0 = arith.constant 0 : i32
    return %arg1, %c0_i32 : i32, i32
  }
  func.func @transform_2(%arg0: i32, %arg1: i32) -> i32 {
    %c0_i32 = arith.constant 0 : i32
    %c0_i32_0 = arith.constant 0 : i32
    return %c0_i32 : i32
  }
  func.func @transform_3(%arg0: i32, %arg1: i32) -> (i32, i32, i32) {
    %c0_i32 = arith.constant 0 : i32
    %c0_i32_0 = arith.constant 0 : i32
    return %arg0, %arg1, %c0_i32 : i32, i32, i32
  }
}

</mosaic_0001>

<bundles_post_ra>
// kernel: _lambda_.1
= control target key start
LH: loop header
LB: loop body
LE: loop exit
PB: predicated region body
PF: predicated region fallthrough
CT: control target
= control target key end

     0   :  { %8 = vsyncpa [#allocation3], 0  ;;  %s6289_s12 = smov 0   ;;  %s6291_s13 = smov 0   ;;  %s10938_s0 = inlined_call_operand.vmem [shape: f32[2,12,512], index: 0, kind: input, shape index: {}]   ;;  %s10939_s1 = inlined_call_operand.vmem [shape: f32[8,384], index: 1, kind: input, shape index: {}]   ;;  %s10940_s2 = inlined_call_operand.vmem [shape: f32[128], index: 2, kind: input, shape index: {}]   ;;  %s10941_s3 = inlined_call_operand.vmem [shape: f32[2,8,384], index: 3, kind: output, shape index: {}]  }
   0x1   :  { %s6293_s14 = smov 0  }
   0x2 LB: > { %s5928_s15 = sadd.s32 4294967295, %s6227_s14   ;;  %s26_s16 = sadd.s32 1, %s6223_s13  ;;  %s6227_s14 = sphi %s6293_s14, %s14_s14   ;;  %s6223_s13 = sphi %s6291_s13, %s11526_s13   ;;  %s6219_s12 = sphi %s6289_s12, %s11525_s12  }
   0x3   : > { %p28_p0 = scmp.ge.s32.totalorder %s26_s16, 2  ;;  %p5930_p1 = scmp.ge.s32.totalorder %s6227_s14, 1 }
   0x4   : > { %p132_p2 = scmp.lt.s32.totalorder %s6227_s14, 3  ;;  %p6314_p4 = scmp.eq.s32.totalorder %s5928_s15, 0 }
   0x5   : > { %s11528_s16 = smov (%p28_p0, %s26_s16), 0  ;;  %s153_s21 = sshll.u32 %s10940_s2, 4  ;;  %s154_s21 = int_to_ptr.vmem [resolvable:$true] %s153_s21 }
   0x6   : > { %p6310_p3 = pnand %p5930_p1, %p132_p2  ;;  %s6186_s22 = scalar_lea.vmem %s154_s21, 16 }
   0x7   : > { %p6187_p7 = scmp.ne.s32.totalorder %s154_s21, %s6186_s22  ;;  %p6194_p11 = scmp.lt.s32.totalorder %s154_s21, %s154_s21 }
   0x8   : > { %p6071_p5 = pneg %p6310_p3  ;;  %p6195_p12 = scmp.lt.s32.totalorder %s6186_s22, %s6186_s22 }
   0xa   : > { %p6072_p6 = pnand %p6314_p4, %p6071_p5  ;;  %p6196_p13 = por %p6195_p12, %p6194_p11 }
   0xc   : > { %p6188_p8 = pneg %p6072_p6 }
   0xe   : > { %p6189_p9 = pnand %p6188_p8, %p6187_p7 }
  0x10   : > { %p6190_p10 = pneg %p6189_p9 }
  0x12   : > { %p6197_p0 = pnand %p6196_p13, %p6190_p10 }
  0x14   : > { %6200 = shalt.err (!%p6197_p0)
}
  0x15   : > { %s6229_s23 = smov [#allocation2]   ;;  %174 = sbr.rel (%p6310_p3) target bundleno = 1200 (0x4b0), region = 32 }
  0x16   : > { %6074 = dma.vmem_to_smem (!%p6072_p6), %s154_s21, 16, %s6229_s23, [#allocation3]  }
  0x1a   : > { %6214 = dma.done.wait (%p6314_p4), [#allocation3], 16  }
  0x1b   : > { %6216 = vsyncadd (%p6314_p4), [#allocation3], 4294967280 }
  0x1c   : > { %180 = sfence }
  0x1d   : > { %p208_p1 = scmp.lt.s32.totalorder %s6219_s12, 1  ;;  %s5942_s24 = sld [smem:[#allocation2 + $0x4]]  ;;  %vm901_vm0 = vcmask 1046528   ;;  %vm11022_vm1 = vcmask 1014784   ;;  %vm11035_vm2 = vcmask 891904   ;;  %vm11021_vm3 = vcmask 859136  }
  0x1e   : > { %s5943_s25 = sld [smem:[#allocation2 + $0x5]]  ;;  %s6230_s30 = smov 124   ;;  %vm466_vm4 = vcmask 736256   ;;  %vm11014_vm5 = vcmask 703488   ;;  %vm11057_vm6 = vcmask 547840   ;;  %vm11053_vm7 = vcmask 392192  }
  0x1f   : > { %s11530_s12 = smov (!%p208_p1, %s6219_s12), 1  ;;  %s5944_s4 = sld [smem:[#allocation2 + $0x6]]  ;;  %vm917_vm8 = vcmask 7168   ;;  %vm11008_vm9 = vcmask 359424   ;;  %vm1072_vm10 = vcmask 1022976   ;;  %vm1169_vm11 = vcmask 900096  }
  0x20   : > { %s6065_s26 = sshll.u32 %s11530_s12, 6  ;;  %s6231_s5 = smov 109   ;;  %vm1268_vm12 = vcmask 867328   ;;  %vm2129_vm13 = vcmask 1045504   ;;  %vm1464_vm14 = vcmask 711680   ;;  %vm1659_vm15 = vcmask 556032  }
  0x21   : > { %s6339_s29 = scalar_lea.vmem %s10938_s0, %s6065_s26  ;;  %s5945_s6 = sld [smem:[#allocation2 + $0x7]] }
  0x22   : > { %v6342_v0 = vld [vmem:[%s6339_s29 + $0x10] sm:$0xff]  ;;  %v6345_v2 = vld [vmem:[%s6339_s29] sm:$0xff]  ;;  %v6348_v3 = vld [vmem:[%s6339_s29 + $0x18] sm:$0xff]  ;;  %s5946_s7 = sld [smem:[#allocation2 + $0x8]]  ;;  %s6232_s9 = smov 105  }
  0x23   : > { %v276_v1 = vstv %s5942_s24  ;;  %v6353_v6 = vld [vmem:[%s6339_s29 + $0x8] sm:$0xff]  ;;  %s5947_s8 = sld [smem:[#allocation2 + $0x9]]  ;;  %s6233_s15 = smov 90  }
  0x24   : > { %v279_v4 = vmul.f32 %v276_v1, %v6342_v0  ;;  %v277_v5 = vmul.f32 %v276_v1, %v6345_v2  ;;  %v280_v7 = vmul.f32 %v276_v1, %v6348_v3  ;;  %v278_v8 = vmul.f32 %v276_v1, %v6353_v6  ;;  %s5948_s10 = sld [smem:[#allocation2 + $0xa]]  ;;  %s6234_s19 = smov 86  }
  0x25   : > { %v304_v9 = vstv %s5943_s25  ;;  %v334_v14 = vstv %s5944_s4  ;;  %s5949_s11 = sld [smem:[#allocation2 + $0xb]]  ;;  %s6235_s23 = smov 71  }
  0x26   : > { %289 = vrot.lane.b32.xlu1 %v279_v4, %s6230_s30  ;;  %285 = vrot.lane.b32.xlu0 %v277_v5, %s6230_s30  ;;  %v306_v10 = vmul.f32 %v304_v9, %v6353_v6  ;;  %v305_v11 = vmul.f32 %v304_v9, %v6345_v2  ;;  %v308_v12 = vmul.f32 %v304_v9, %v6348_v3  ;;  %s5950_s17 = sld [smem:[#allocation2 + $0xc]]  ;;  %s6236_s25 = smov 67  }
  0x27   : > { %v307_v13 = vmul.f32 %v304_v9, %v6342_v0  ;;  %v336_v15 = vmul.f32 %v334_v14, %v6353_v6  ;;  %v335_v16 = vmul.f32 %v334_v14, %v6345_v2  ;;  %v338_v17 = vmul.f32 %v334_v14, %v6348_v3  ;;  %s5951_s18 = sld [smem:[#allocation2 + $0xd]] }
  0x28   : > { %v337_v18 = vmul.f32 %v334_v14, %v6342_v0  ;;  %v363_v19 = vstv %s5945_s6  ;;  %v392_v24 = vstv %s5946_s7  ;;  %s5952_s20 = sld [smem:[#allocation2 + $0xe]]  ;;  %s6237_s6 = smov 48  }
  0x29   : > { %v365_v20 = vmul.f32 %v363_v19, %v6353_v6  ;;  %v364_v21 = vmul.f32 %v363_v19, %v6345_v2  ;;  %v367_v22 = vmul.f32 %v363_v19, %v6348_v3  ;;  %v366_v23 = vmul.f32 %v363_v19, %v6342_v0  ;;  %s5953_s21 = sld [smem:[#allocation2 + $0xf]] }
  0x2a   : > { %291 = vrot.lane.b32.xlu1 %v280_v7, %s6230_s30  ;;  %287 = vrot.lane.b32.xlu0 %v278_v8, %s6230_s30  ;;  %v394_v25 = vmul.f32 %v392_v24, %v6353_v6  ;;  %v393_v26 = vmul.f32 %v392_v24, %v6345_v2  ;;  %v396_v27 = vmul.f32 %v392_v24, %v6348_v3  ;;  %v420_v29 = vstv %s5947_s8  ;;  %s5954_s22 = sld [smem:[#allocation2 + $0x10]] }
  0x2b   : > { %v395_v28 = vmul.f32 %v392_v24, %v6342_v0  ;;  %v422_v30 = vmul.f32 %v420_v29, %v6353_v6  ;;  %v421_v31 = vmul.f32 %v420_v29, %v6345_v2  ;;  %v424_v32 = vmul.f32 %v420_v29, %v6348_v3  ;;  %s5955_s24 = sld [smem:[#allocation2 + $0x11]] }
  0x2c   : > { %v423_v33 = vmul.f32 %v420_v29, %v6342_v0  ;;  %v449_v34 = vstv %s5948_s10  ;;  %v479_v39 = vstv %s5949_s11  ;;  %v508_v44 = vstv %s5950_s17  ;;  %s5956_s26 = sld [smem:[#allocation2 + $0x12]] }
  0x2d   : > { %v451_v35 = vmul.f32 %v449_v34, %v6353_v6  ;;  %v450_v36 = vmul.f32 %v449_v34, %v6345_v2  ;;  %v453_v37 = vmul.f32 %v449_v34, %v6348_v3  ;;  %v452_v38 = vmul.f32 %v449_v34, %v6342_v0  ;;  %s5957_s27 = sld [smem:[#allocation2 + $0x13]] }
  0x2e   : > { %315 = vrot.lane.b32.xlu1 %v306_v10, %s6231_s5  ;;  %313 = vrot.lane.b32.xlu0 %v305_v11, %s6231_s5  ;;  %v481_v40 = vmul.f32 %v479_v39, %v6353_v6  ;;  %v480_v41 = vmul.f32 %v479_v39, %v6345_v2  ;;  %v483_v42 = vmul.f32 %v479_v39, %v6348_v3  ;;  %v536_v49 = vstv %s5951_s18  ;;  %s5958_s28 = sld [smem:[#allocation2 + $0x14]] }
  0x2f   : > { %v482_v43 = vmul.f32 %v479_v39, %v6342_v0  ;;  %v510_v45 = vmul.f32 %v508_v44, %v6353_v6  ;;  %v509_v46 = vmul.f32 %v508_v44, %v6345_v2  ;;  %v512_v47 = vmul.f32 %v508_v44, %v6348_v3  ;;  %s5959_s4 = sld [smem:[#allocation2 + $0x15]] }
  0x30   : > { %v511_v48 = vmul.f32 %v508_v44, %v6342_v0  ;;  %v538_v50 = vmul.f32 %v536_v49, %v6353_v6  ;;  %v537_v51 = vmul.f32 %v536_v49, %v6345_v2  ;;  %v540_v52 = vmul.f32 %v536_v49, %v6348_v3  ;;  %s5960_s7 = sld [smem:[#allocation2 + $0x16]] }
  0x31   : > { %v539_v53 = vmul.f32 %v536_v49, %v6342_v0  ;;  %v565_v54 = vstv %s5952_s20  ;;  %v594_v59 = vstv %s5953_s21  ;;  %v624_v1 = vstv %s5954_s22  ;;  %s5961_s8 = sld [smem:[#allocation2 + $0x17]]  ;;  %s6238_s20 = smov 44  }
  0x32   : > { %319 = vrot.lane.b32.xlu1 %v308_v12, %s6231_s5  ;;  %317 = vrot.lane.b32.xlu0 %v307_v13, %s6231_s5  ;;  %v567_v55 = vmul.f32 %v565_v54, %v6353_v6  ;;  %v566_v56 = vmul.f32 %v565_v54, %v6345_v2  ;;  %v569_v57 = vmul.f32 %v565_v54, %v6348_v3  ;;  %v652_v9 = vstv %s5955_s24  ;;  %s5962_s10 = sld [smem:[#allocation2 + $0x18]]  ;;  %s6239_s22 = smov 1  }
  0x33   : > { %v568_v58 = vmul.f32 %v565_v54, %v6342_v0  ;;  %v596_v60 = vmul.f32 %v594_v59, %v6353_v6  ;;  %v595_v61 = vmul.f32 %v594_v59, %v6345_v2  ;;  %v598_v62 = vmul.f32 %v594_v59, %v6348_v3  ;;  %s5963_s11 = sld [smem:[#allocation2 + $0x19]] }
  0x34   : > { %v597_v63 = vmul.f32 %v594_v59, %v6342_v0  ;;  %v626_v4 = vmul.f32 %v624_v1, %v6353_v6  ;;  %v625_v5 = vmul.f32 %v624_v1, %v6345_v2  ;;  %v628_v7 = vmul.f32 %v624_v1, %v6348_v3  ;;  %s5964_s17 = sld [smem:[#allocation2 + $0x1a]] }
  0x35   : > { %v627_v8 = vmul.f32 %v624_v1, %v6342_v0  ;;  %v654_v10 = vmul.f32 %v652_v9, %v6353_v6  ;;  %v653_v11 = vmul.f32 %v652_v9, %v6345_v2  ;;  %v656_v12 = vmul.f32 %v652_v9, %v6348_v3  ;;  %s6571_s18 = sld [smem:[#allocation2 + $0x1b]] }
  0x36   : > { %345 = vrot.lane.b32.xlu1 %v336_v15, %s6231_s5  ;;  %343 = vrot.lane.b32.xlu0 %v335_v16, %s6231_s5  ;;  %v655_v13 = vmul.f32 %v652_v9, %v6342_v0  ;;  %v681_v14 = vstv %s5956_s26  ;;  %v710_v19 = vstv %s5957_s27  ;;  %s6618_s21 = sld [smem:[#allocation2 + $0x1c]]  ;;  %s6240_s27 = smov 125  }
  0x37   : > { %v683_v15 = vmul.f32 %v681_v14, %v6353_v6  ;;  %v682_v16 = vmul.f32 %v681_v14, %v6345_v2  ;;  %v884_v9 = vld [vmem:[%s6339_s29 + $0x20] sm:$0x1]  ;;  %s5967_s24 = sld [smem:[#allocation2 + $0x1d]] }
  0x38   : > { %s5968_s26 = sld [smem:[#allocation2 + $0x1e]] }
  0x3a   : > { %349 = vrot.lane.b32.xlu1 %v338_v17, %s6231_s5  ;;  %347 = vrot.lane.b32.xlu0 %v337_v18, %s6231_s5  ;;  %v685_v17 = vmul.f32 %v681_v14, %v6348_v3  ;;  %v684_v18 = vmul.f32 %v681_v14, %v6342_v0 }
  0x3e   : > { %374 = vrot.lane.b32.xlu1 %v365_v20, %s6231_s5  ;;  %372 = vrot.lane.b32.xlu0 %v364_v21, %s6231_s5 }
  0x42   : > { %378 = vrot.lane.b32.xlu1 %v367_v22, %s6231_s5  ;;  %376 = vrot.lane.b32.xlu0 %v366_v23, %s6231_s5  ;;  %v712_v22 = vmul.f32 %v710_v19, %v6353_v6  ;;  %v711_v23 = vmul.f32 %v710_v19, %v6345_v2 }
  0x46   : > { %403 = vrot.lane.b32.xlu1 %v394_v25, %s6232_s9  ;;  %401 = vrot.lane.b32.xlu0 %v393_v26, %s6232_s9  ;;  %v714_v26 = vmul.f32 %v710_v19, %v6348_v3 }
  0x4a   : > { %407 = vrot.lane.b32.xlu1 %v396_v27, %s6232_s9  ;;  %405 = vrot.lane.b32.xlu0 %v395_v28, %s6232_s9  ;;  %v713_v27 = vmul.f32 %v710_v19, %v6342_v0  ;;  %v739_v28 = vstv %s5958_s28  ;;  %s5969_s28 = sld [smem:[#allocation2 + $0x1f]] }
  0x4e   : > { %431 = vrot.lane.b32.xlu1 %v422_v30, %s6232_s9  ;;  %429 = vrot.lane.b32.xlu0 %v421_v31, %s6232_s9  ;;  %v741_v31 = vmul.f32 %v739_v28, %v6353_v6 }
  0x52   : > { %435 = vrot.lane.b32.xlu1 %v424_v32, %s6232_s9  ;;  %433 = vrot.lane.b32.xlu0 %v423_v33, %s6232_s9  ;;  %v740_v32 = vmul.f32 %v739_v28, %v6345_v2 }
  0x56   : > { %460 = vrot.lane.b32.xlu1 %v451_v35, %s6233_s15  ;;  %458 = vrot.lane.b32.xlu0 %v450_v36, %s6233_s15  ;;  %v743_v35 = vmul.f32 %v739_v28, %v6348_v3  ;;  %v742_v36 = vmul.f32 %v739_v28, %v6342_v0 }
  0x5a   : > { %464 = vrot.lane.b32.xlu1 %v453_v37, %s6233_s15  ;;  %462 = vrot.lane.b32.xlu0 %v452_v38, %s6233_s15  ;;  %v767_v37 = vstv %s5959_s4  ;;  %s5970_s4 = sld [smem:[#allocation2 + $0x20]] }
  0x5b   : > { %v771_v44 = vmul.f32 %v767_v37, %v6348_v3 }
  0x5e   : > { %490 = vrot.lane.b32.xlu1 %v481_v40, %s6233_s15  ;;  %488 = vrot.lane.b32.xlu0 %v480_v41, %s6233_s15  ;;  %v769_v40 = vmul.f32 %v767_v37, %v6353_v6  ;;  %v768_v41 = vmul.f32 %v767_v37, %v6345_v2 }
  0x62   : > { %494 = vrot.lane.b32.xlu1 %v483_v42, %s6233_s15  ;;  %492 = vrot.lane.b32.xlu0 %v482_v43, %s6233_s15 }
  0x66   : > { %519 = vrot.lane.b32.xlu1 %v510_v45, %s6234_s19  ;;  %517 = vrot.lane.b32.xlu0 %v509_v46, %s6234_s19  ;;  %v770_v45 = vmul.f32 %v767_v37, %v6342_v0  ;;  %v796_v46 = vstv %s5960_s7  ;;  %s6241_s7 = smov 110  }
  0x67   : > { %v798_v49 = vmul.f32 %v796_v46, %v6353_v6  ;;  %v799_v54 = vmul.f32 %v796_v46, %v6342_v0 }
  0x6a   : > { %523 = vrot.lane.b32.xlu1 %v512_v47, %s6234_s19  ;;  %521 = vrot.lane.b32.xlu0 %v511_v48, %s6234_s19 }
  0x6e   : > { %547 = vrot.lane.b32.xlu1 %v538_v50, %s6234_s19  ;;  %545 = vrot.lane.b32.xlu0 %v537_v51, %s6234_s19  ;;  %v797_v50 = vmul.f32 %v796_v46, %v6345_v2 }
  0x72   : > { %551 = vrot.lane.b32.xlu1 %v540_v52, %s6234_s19  ;;  %549 = vrot.lane.b32.xlu0 %v539_v53, %s6234_s19  ;;  %v800_v53 = vmul.f32 %v796_v46, %v6348_v3  ;;  %v6591_v46 = vld [vmem:[%s6339_s29 + $0x30] sm:$0x1] }
  0x76   : > { %576 = vrot.lane.b32.xlu1 %v567_v55, %s6234_s19  ;;  %574 = vrot.lane.b32.xlu0 %v566_v56, %s6234_s19  ;;  %v825_v55 = vstv %s5961_s8  ;;  %s6737_s8 = sld [smem:[#allocation2 + $0x21]] }
  0x77   : > { %v826_v59 = vmul.f32 %v825_v55, %v6345_v2  ;;  %v828_v1 = vmul.f32 %v825_v55, %v6342_v0 }
  0x7a   : > { %580 = vrot.lane.b32.xlu1 %v569_v57, %s6234_s19  ;;  %578 = vrot.lane.b32.xlu0 %v568_v58, %s6234_s19  ;;  %v827_v58 = vmul.f32 %v825_v55, %v6353_v6 }
  0x7e   : > { %605 = vrot.lane.b32.xlu1 %v596_v60, %s6235_s23  ;;  %603 = vrot.lane.b32.xlu0 %v595_v61, %s6235_s23 }
  0x82   : > { %609 = vrot.lane.b32.xlu1 %v598_v62, %s6235_s23  ;;  %607 = vrot.lane.b32.xlu0 %v597_v63, %s6235_s23  ;;  %v854_v62 = vstv %s5962_s10  ;;  %v829_v63 = vmul.f32 %v825_v55, %v6348_v3  ;;  %s6751_s10 = sld [smem:[#allocation2]] }
  0x83   : > { %v857_v28 = vmul.f32 %v854_v62, %v6342_v0  ;;  %v6584_v0 = vld [vmem:[%s6339_s29 + $0x10] sm:$0xfe] }
  0x86   : > { %635 = vrot.lane.b32.xlu1 %v626_v4, %s6236_s25  ;;  %633 = vrot.lane.b32.xlu0 %v625_v5, %s6236_s25  ;;  %v882_v4 = vld [vmem:[%s6339_s29 + $0x8] sm:$0xfe]  ;;  %v888_v5 = vstv %s5963_s11  ;;  %s5972_s11 = sld [smem:[#allocation2 + $0x22]] }
  0x87   : > { %v890_v14 = vmul.f32 %v888_v5, %v882_v4 }
  0x89   : > { %v905_v37 = vrot.slane %v890_v14, 1 }
  0x8a   : > { %639 = vrot.lane.b32.xlu1 %v628_v7, %s6236_s25  ;;  %637 = vrot.lane.b32.xlu0 %v627_v8, %s6236_s25  ;;  %v885_v7 = vld [vmem:[%s6339_s29 + $0x28] sm:$0x1]  ;;  %v881_v8 = vld [vmem:[%s6339_s29] sm:$0xfe] }
  0x8b   : > { %v889_v19 = vmul.f32 %v888_v5, %v881_v8  ;;  %v6609_v8 = vld [vmem:[%s6339_s29 + $0x18] sm:$0xfe] }
  0x8e   : > { %663 = vrot.lane.b32.xlu1 %v654_v10, %s6236_s25  ;;  %661 = vrot.lane.b32.xlu0 %v653_v11, %s6236_s25 }
  0x92   : > { %667 = vrot.lane.b32.xlu1 %v656_v12, %s6236_s25  ;;  %665 = vrot.lane.b32.xlu0 %v655_v13, %s6236_s25  ;;  %v856_v12 = vmul.f32 %v854_v62, %v6353_v6  ;;  %v855_v13 = vmul.f32 %v854_v62, %v6345_v2 }
  0x96   : > { %692 = vrot.lane.b32.xlu1 %v683_v15, %s6236_s25  ;;  %690 = vrot.lane.b32.xlu0 %v682_v16, %s6236_s25  ;;  %v6562_v15 = vld [vmem:[%s6339_s29] sm:$0xfe]  ;;  %v6565_v16 = vld [vmem:[%s6339_s29 + $0x20] sm:$0x1] }
  0x98   : > { %v6471_v20 = vpop.permute.xlu1 %289  ;;  %v6473_v21 = vpop.permute.xlu0 %285 }
  0x9a   : > { %696 = vrot.lane.b32.xlu1 %v685_v17, %s6236_s25  ;;  %694 = vrot.lane.b32.xlu0 %v684_v18, %s6236_s25  ;;  %v937_v17 = vstv %s5964_s17  ;;  %v893_v18 = vmul.f32 %v888_v5, %v885_v7  ;;  %s6778_s17 = sld [smem:[#allocation2 + $0x23]] }
  0x9b   : > { %v944_v4 = vmul.f32 %v937_v17, %v6591_v46 }
  0x9c   : > { %v6479_v24 = vpop.permute.xlu1 %291  ;;  %v6481_v25 = vpop.permute.xlu0 %287 }
  0x9e   : > { %721 = vrot.lane.b32.xlu1 %v712_v22, %s6236_s25  ;;  %719 = vrot.lane.b32.xlu0 %v711_v23, %s6236_s25  ;;  %v892_v22 = vmul.f32 %v888_v5, %v884_v9  ;;  %v883_v23 = vld [vmem:[%s6339_s29 + $0x10] sm:$0xfe]  ;;  %v6612_v9 = vld [vmem:[%s6339_s29 + $0x38] sm:$0x1] }
  0xa0   : > { %v6487_v29 = vpop.permute.xlu1 %315  ;;  %v6489_v30 = vpop.permute.xlu0 %313 }
  0xa1   : > { %11083 = vst [vmem:[#allocation5_spill] sm:$0xff] %v6487_v29  ;;  %11084 = vst [vmem:[#allocation6_spill] sm:$0xff] %v6489_v30 }
  0xa2   : > { %725 = vrot.lane.b32.xlu1 %v714_v26, %s6236_s25  ;;  %723 = vrot.lane.b32.xlu0 %v713_v27, %s6236_s25  ;;  %v886_v26 = vld [vmem:[%s6339_s29 + $0x30] sm:$0x1]  ;;  %v858_v27 = vmul.f32 %v854_v62, %v6348_v3  ;;  %v903_v3 = vrot.slane %v892_v22, 1 }
  0xa4   : > { %v6495_v33 = vpop.permute.xlu1 %319  ;;  %v6497_v34 = vpop.permute.xlu0 %317 }
  0xa5   : > { %11085 = vst [vmem:[#allocation7_spill] sm:$0xff] %v6495_v33 }
  0xa6   : > { %750 = vrot.lane.b32.xlu1 %v741_v31, %s6237_s6  ;;  %748 = vrot.lane.b32.xlu0 %v740_v32, %s6237_s6  ;;  %v938_v31 = vmul.f32 %v937_v17, %v6562_v15  ;;  %v942_v32 = vmul.f32 %v937_v17, %v6565_v16 }
  0xa8   : > { %v6503_v38 = vpop.permute.xlu1 %345  ;;  %v6505_v39 = vpop.permute.xlu0 %343 }
  0xaa   : > { %754 = vrot.lane.b32.xlu1 %v743_v35, %s6237_s6  ;;  %752 = vrot.lane.b32.xlu0 %v742_v36, %s6237_s6  ;;  %v891_v35 = vmul.f32 %v888_v5, %v883_v23  ;;  %v894_v36 = vmul.f32 %v888_v5, %v886_v26  ;;  %v941_v23 = vmul.f32 %v937_v17, %v6609_v8 }
  0xab   : > { %v945_v26 = vmul.f32 %v937_v17, %v6612_v9 }
  0xac   : > { %v6511_v42 = vpop.permute.xlu1 %349  ;;  %v6513_v43 = vpop.permute.xlu0 %347  ;;  %v908_v55 = vrot.slane %v891_v35, 1 }
  0xae   : > { %778 = vrot.lane.b32.xlu1 %v769_v40, %s6237_s6  ;;  %776 = vrot.lane.b32.xlu0 %v768_v41, %s6237_s6  ;;  %v906_v40 = vrot.slane %v893_v18, 1  ;;  %v902_v41 = vrot.slane %v889_v19, 1 }
  0xb0   : > { %v6519_v47 = vpop.permute.xlu1 %374  ;;  %v6521_v48 = vpop.permute.xlu0 %372  ;;  %v904_v62 = vsel %vm901_vm0, %v902_v41, %v903_v3 }
  0xb1   : > { %11086 = vst [vmem:[#allocation8_spill] sm:$0xff] %v6519_v47  ;;  %11087 = vst [vmem:[#allocation9_spill] sm:$0xff] %v6521_v48 }
  0xb2   : > { %782 = vrot.lane.b32.xlu1 %v771_v44, %s6237_s6  ;;  %780 = vrot.lane.b32.xlu0 %v770_v45, %s6237_s6 }
  0xb4   : > { %v6527_v51 = vpop.permute.xlu1 %378  ;;  %v6529_v52 = vpop.permute.xlu0 %376 }
  0xb5   : > { %11088 = vst [vmem:[#allocation10_spill] sm:$0xff] %v6527_v51  ;;  %11089 = vst [vmem:[#allocation11_spill] sm:$0xff] %v6529_v52 }
  0xb6   : > { %807 = vrot.lane.b32.xlu1 %v798_v49, %s6237_s6  ;;  %805 = vrot.lane.b32.xlu0 %v797_v50, %s6237_s6  ;;  %v6594_v49 = vld [vmem:[%s6339_s29 + $0x8] sm:$0xfe]  ;;  %v6597_v50 = vld [vmem:[%s6339_s29 + $0x28] sm:$0x1] }
  0xb7   : > { %v939_v5 = vmul.f32 %v937_v17, %v6594_v49  ;;  %v943_v7 = vmul.f32 %v937_v17, %v6597_v50 }
  0xb8   : > { %v6535_v56 = vpop.permute.xlu1 %403  ;;  %v6537_v57 = vpop.permute.xlu0 %401 }
  0xba   : > { %811 = vrot.lane.b32.xlu1 %v800_v53, %s6237_s6  ;;  %809 = vrot.lane.b32.xlu0 %v799_v54, %s6237_s6  ;;  %v954_v53 = vrot.slane %v938_v31, 1  ;;  %v955_v54 = vrot.slane %v942_v32, 1  ;;  %v957_v31 = vrot.slane %v939_v5, 1  ;;  %v958_v32 = vrot.slane %v943_v7, 1 }
  0xbc   : > { %v6543_v60 = vpop.permute.xlu1 %407  ;;  %v6545_v61 = vpop.permute.xlu0 %405  ;;  %v956_v14 = vsel %vm901_vm0, %v954_v53, %v955_v54  ;;  %v963_v54 = vrot.slane %v941_v23, 1 }
  0xbe   : > { %836 = vrot.lane.b32.xlu1 %v827_v58, %s6237_s6  ;;  %834 = vrot.lane.b32.xlu0 %v826_v59, %s6237_s6  ;;  %v909_v58 = vrot.slane %v894_v36, 1  ;;  %v907_v59 = vsel %vm901_vm0, %v905_v37, %v906_v40 }
  0xc0   : > { %v6555_v10 = vpop.permute.xlu1 %431  ;;  %v6557_v11 = vpop.permute.xlu0 %429  ;;  %v910_v18 = vsel %vm901_vm0, %v908_v55, %v909_v58  ;;  %v964_v55 = vrot.slane %v945_v26, 1 }
  0xc1   : > { %11090 = vst [vmem:[#allocation12_spill] sm:$0xff] %v6557_v11 }
  0xc2   : > { %840 = vrot.lane.b32.xlu1 %v829_v63, %s6237_s6  ;;  %838 = vrot.lane.b32.xlu0 %v828_v1, %s6237_s6  ;;  %v986_v63 = vstv %s6571_s18  ;;  %v940_v1 = vmul.f32 %v937_v17, %v6584_v0  ;;  %s6787_s18 = sld [smem:[#allocation2 + $0x1]] }
  0xc3   : > { %v987_v19 = vmul.f32 %v986_v63, %v6562_v15  ;;  %v991_v22 = vmul.f32 %v986_v63, %v6565_v16  ;;  %v989_v37 = vmul.f32 %v986_v63, %v6584_v0  ;;  %v993_v40 = vmul.f32 %v986_v63, %v6591_v46 }
  0xc4   : > { %v6573_v6 = vpop.permute.xlu1 %435  ;;  %v6575_v2 = vpop.permute.xlu0 %433  ;;  %v988_v41 = vmul.f32 %v986_v63, %v6594_v49  ;;  %v992_v3 = vmul.f32 %v986_v63, %v6597_v50  ;;  %v990_v26 = vmul.f32 %v986_v63, %v6609_v8 }
  0xc5   : > { %11091 = vst [vmem:[#allocation13_spill] sm:$0xff] %v6573_v6  ;;  %v1003_v17 = vrot.slane %v987_v19, 1  ;;  %v1004_v53 = vrot.slane %v991_v22, 1  ;;  %v1009_v5 = vrot.slane %v989_v37, 1  ;;  %v1010_v7 = vrot.slane %v993_v40, 1 }
  0xc6   : > { %865 = vrot.lane.b32.xlu1 %v856_v12, %s6238_s20  ;;  %863 = vrot.lane.b32.xlu0 %v855_v13, %s6238_s20  ;;  %v965_v19 = vsel %vm901_vm0, %v963_v54, %v964_v55  ;;  %v1012_v55 = vrot.slane %v990_v26, 1 }
  0xc8   : > { %v6586_v44 = vpop.permute.xlu1 %460  ;;  %v6588_v45 = vpop.permute.xlu0 %458 }
  0xca   : > { %869 = vrot.lane.b32.xlu1 %v858_v27, %s6238_s20  ;;  %867 = vrot.lane.b32.xlu0 %v857_v28, %s6238_s20  ;;  %v960_v27 = vrot.slane %v940_v1, 1  ;;  %v961_v28 = vrot.slane %v944_v4, 1  ;;  %v1035_v4 = vstv %s6618_s21  ;;  %s6242_s21 = smov 106  }
  0xcb   : > { %v1036_v22 = vmul.f32 %v1035_v4, %v6562_v15  ;;  %v1040_v23 = vmul.f32 %v1035_v4, %v6565_v16  ;;  %v1038_v40 = vmul.f32 %v1035_v4, %v6584_v0 }
  0xcc   : > { %v6614_v12 = vpop.permute.xlu1 %464  ;;  %v6616_v13 = vpop.permute.xlu0 %462  ;;  %v962_v58 = vsel %vm901_vm0, %v960_v27, %v961_v28  ;;  %v994_v27 = vmul.f32 %v986_v63, %v6612_v9  ;;  %v1041_v63 = vmul.f32 %v1035_v4, %v6597_v50 }
  0xcd   : > { %11092 = vst [vmem:[#allocation14_spill] sm:$0xff] %v6614_v12  ;;  %11093 = vst [vmem:[#allocation15_spill] sm:$0xff] %v6616_v13  ;;  %v1053_v54 = vrot.slane %v1040_v23, 1 }
  0xce   : > { %913 = vrot.lane.b32.xlu1 %v907_v59, %s6239_s22  ;;  %911 = vrot.lane.b32.xlu0 %v904_v62, %s6239_s22  ;;  %v959_v59 = vsel %vm901_vm0, %v957_v31, %v958_v32  ;;  %v1011_v32 = vsel %vm901_vm0, %v1009_v5, %v1010_v7  ;;  %v1056_v26 = vrot.slane %v1041_v63, 1 }
  0xd0   : > { %v6628_v35 = vpop.permute.xlu1 %490  ;;  %v6630_v36 = vpop.permute.xlu0 %488 }
  0xd1   : > { %11094 = vst [vmem:[#allocation16_spill] sm:$0xff] %v6628_v35  ;;  %11095 = vst [vmem:[#allocation17_spill] sm:$0xff] %v6630_v36  ;;  %v1006_v36 = vrot.slane %v988_v41, 1  ;;  %v1042_v41 = vmul.f32 %v1035_v4, %v6591_v46 }
  0xd2   : > { %966 = vrot.lane.b32.xlu1 %v956_v14, %s6239_s22  ;;  %915 = vrot.lane.b32.xlu0 %v910_v18, %s6239_s22  ;;  %v1007_v14 = vrot.slane %v992_v3, 1  ;;  %v1005_v18 = vsel %vm901_vm0, %v1003_v17, %v1004_v53  ;;  %v1037_v3 = vmul.f32 %v1035_v4, %v6594_v49  ;;  %v1083_v17 = vstv %s5967_s24  ;;  %s7043_s24 = sld [smem:[#allocation2 + $0x29]] }
  0xd3   : > { %v1052_v53 = vrot.slane %v1036_v22, 1  ;;  %v1084_v5 = vmul.f32 %v1083_v17, %v6562_v15  ;;  %v1088_v7 = vmul.f32 %v1083_v17, %v6565_v16  ;;  %v1059_v22 = vrot.slane %v1042_v41, 1 }
  0xd4   : > { %v6640_v62 = vpop.permute.xlu1 %494  ;;  %v6642_v1 = vpop.permute.xlu0 %492  ;;  %v1008_v37 = vsel %vm901_vm0, %v1006_v36, %v1007_v14  ;;  %v1039_v14 = vmul.f32 %v1035_v4, %v6609_v8  ;;  %v1055_v23 = vrot.slane %v1037_v3, 1  ;;  %v1086_v41 = vmul.f32 %v1083_v17, %v6584_v0 }
  0xd5   : > { %11096 = vst [vmem:[#allocation18_spill] sm:$0xff] %v6640_v62  ;;  %11097 = vst [vmem:[#allocation19_spill] sm:$0xff] %v6642_v1  ;;  %v1100_v51 = vrot.slane %v1084_v5, 1  ;;  %v1101_v52 = vrot.slane %v1088_v7, 1  ;;  %v1090_v3 = vmul.f32 %v1083_v17, %v6591_v46  ;;  %v1085_v63 = vmul.f32 %v1083_v17, %v6594_v49 }
  0xd6   : > { %970 = vrot.lane.b32.xlu1 %v962_v58, %s6239_s22  ;;  %968 = vrot.lane.b32.xlu0 %v959_v59, %s6239_s22  ;;  %v1013_v58 = vrot.slane %v994_v27, 1  ;;  %v1054_v27 = vsel %vm901_vm0, %v1052_v53, %v1053_v54  ;;  %v1061_v48 = vrot.slane %v1039_v14, 1  ;;  %v1089_v53 = vmul.f32 %v1083_v17, %v6597_v50 }
  0xd7   : > { %v1087_v14 = vmul.f32 %v1083_v17, %v6609_v8 }
  0xd8   : > { %v6653_v28 = vpop.permute.xlu1 %519  ;;  %v6655_v31 = vpop.permute.xlu0 %517  ;;  %v1014_v62 = vsel %vm901_vm0, %v1012_v55, %v1013_v58 }
  0xd9   : > { %11098 = vst [vmem:[#allocation20_spill] sm:$0xff] %v6653_v28  ;;  %11099 = vst [vmem:[#allocation21_spill] sm:$0xff] %v6655_v31 }
  0xda   : > { %1015 = vrot.lane.b32.xlu1 %v1005_v18, %s6239_s22  ;;  %972 = vrot.lane.b32.xlu0 %v965_v19, %s6239_s22  ;;  %v1043_v18 = vmul.f32 %v1035_v4, %v6612_v9  ;;  %v1058_v19 = vrot.slane %v1038_v40, 1  ;;  %v1132_v40 = vstv %s5968_s26  ;;  %s7121_s26 = sld [smem:[#allocation2 + $0x2a]] }
  0xdb   : > { %v1133_v5 = vmul.f32 %v1132_v40, %v6562_v15  ;;  %v1137_v7 = vmul.f32 %v1132_v40, %v6565_v16 }
  0xdc   : > { %v6665_v59 = vpop.permute.xlu1 %523  ;;  %v6667_v36 = vpop.permute.xlu0 %521  ;;  %v1062_v4 = vrot.slane %v1043_v18, 1  ;;  %v1091_v18 = vmul.f32 %v1083_v17, %v6612_v9 }
  0xdd   : > { %11100 = vst [vmem:[#allocation22_spill] sm:$0xff] %v6665_v59  ;;  %11101 = vst [vmem:[#allocation23_spill] sm:$0xff] %v6667_v36 }
  0xde   : > { %1019 = vrot.lane.b32.xlu1 %v1011_v32, %s6239_s22  ;;  %1017 = vrot.lane.b32.xlu0 %v1008_v37, %s6239_s22  ;;  %v1060_v32 = vsel %vm901_vm0, %v1058_v19, %v1059_v22  ;;  %v1057_v37 = vsel %vm901_vm0, %v1055_v23, %v1056_v26  ;;  %v1063_v58 = vsel %vm901_vm0, %v1061_v48, %v1062_v4  ;;  %v1106_v19 = vrot.slane %v1086_v41, 1 }
  0xdf   : > { %v1107_v22 = vrot.slane %v1090_v3, 1  ;;  %v1103_v23 = vrot.slane %v1085_v63, 1  ;;  %v1104_v26 = vrot.slane %v1089_v53, 1  ;;  %v1149_v48 = vrot.slane %v1133_v5, 1 }
  0xe0   : > { %v6677_v1 = vpop.permute.xlu1 %547  ;;  %v6679_v35 = vpop.permute.xlu0 %545  ;;  %v1139_v4 = vmul.f32 %v1132_v40, %v6591_v46  ;;  %v1110_v17 = vrot.slane %v1091_v18, 1  ;;  %v1182_v41 = vstv %s5969_s28  ;;  %v1134_v53 = vmul.f32 %v1132_v40, %v6594_v49  ;;  %s6245_s28 = smov 68  }
  0xe1   : > { %11102 = vst [vmem:[#allocation24_spill] sm:$0xff] %v6677_v1  ;;  %11103 = vst [vmem:[#allocation25_spill] sm:$0xff] %v6679_v35  ;;  %v1108_v3 = vsel %vm901_vm0, %v1106_v19, %v1107_v22  ;;  %v1105_v63 = vsel %vm901_vm0, %v1103_v23, %v1104_v26  ;;  %v1138_v5 = vmul.f32 %v1132_v40, %v6597_v50 }
  0xe2   : > { %1064 = vrot.lane.b32.xlu1 %v1054_v27, %s6240_s27  ;;  %1021 = vrot.lane.b32.xlu0 %v1014_v62, %s6239_s22  ;;  %v1102_v62 = vsel %vm901_vm0, %v1100_v51, %v1101_v52  ;;  %v1135_v52 = vmul.f32 %v1132_v40, %v6584_v0  ;;  %v1156_v11 = vrot.slane %v1139_v4, 1  ;;  %v1152_v19 = vrot.slane %v1134_v53, 1  ;;  %s6795_s22 = sld [smem:[#allocation2 + $0x2]] }
  0xe3   : > { %v1153_v22 = vrot.slane %v1138_v5, 1  ;;  %v1136_v23 = vmul.f32 %v1132_v40, %v6609_v8  ;;  %v1140_v26 = vmul.f32 %v1132_v40, %v6612_v9  ;;  %v1188_v40 = vmul.f32 %v1182_v41, %v6597_v50 }
  0xe4   : > { %v6689_v54 = vpop.permute.xlu1 %551  ;;  %v6691_v55 = vpop.permute.xlu0 %549 }
  0xe5   : > { %11104 = vst [vmem:[#allocation26_spill] sm:$0xff] %v6689_v54  ;;  %11105 = vst [vmem:[#allocation27_spill] sm:$0xff] %v6691_v55  ;;  %v1159_v53 = vrot.slane %v1140_v26, 1  ;;  %v1186_v26 = vmul.f32 %v1182_v41, %v6609_v8 }
  0xe6   : > { %1068 = vrot.lane.b32.xlu1 %v1060_v32, %s6240_s27  ;;  %1066 = vrot.lane.b32.xlu0 %v1057_v37, %s6240_s27  ;;  %v1150_v32 = vrot.slane %v1137_v7, 1  ;;  %v1109_v37 = vrot.slane %v1087_v14, 1  ;;  %v1187_v7 = vmul.f32 %v1182_v41, %v6565_v16 }
  0xe8   : > { %v6701_v27 = vpop.permute.xlu1 %576  ;;  %v6703_v51 = vpop.permute.xlu0 %574  ;;  %v1151_v14 = vsel %vm901_vm0, %v1149_v48, %v1150_v32  ;;  %v1111_v18 = vsel %vm901_vm0, %v1109_v37, %v1110_v17  ;;  %v1189_v48 = vmul.f32 %v1182_v41, %v6591_v46  ;;  %v1184_v32 = vmul.f32 %v1182_v41, %v6594_v49 }
  0xe9   : > { %11106 = vst [vmem:[#allocation28_spill] sm:$0xff] %v6701_v27  ;;  %11107 = vst [vmem:[#allocation29_spill] sm:$0xff] %v6703_v51  ;;  %v1154_v37 = vsel %vm901_vm0, %v1152_v19, %v1153_v22  ;;  %v1158_v17 = vrot.slane %v1136_v23, 1 }
  0xea   : > { %1112 = vrot.lane.b32.xlu1 %v1102_v62, %s6240_s27  ;;  %1070 = vrot.lane.b32.xlu0 %v1063_v58, %s6240_s27  ;;  %v1155_v62 = vrot.slane %v1135_v52, 1  ;;  %v1183_v58 = vmul.f32 %v1182_v41, %v6562_v15 }
  0xeb   : > { %v1160_v22 = vsel %vm901_vm0, %v1158_v17, %v1159_v53  ;;  %v1208_v53 = vrot.slane %v1186_v26, 1  ;;  %v234_v26 = vstv %s6751_s10  ;;  %s6857_s10 = sld [smem:[#allocation2 + $0x25]] }
  0xec   : > { %v6713_v47 = vpop.permute.xlu1 %580  ;;  %v6715_v35 = vpop.permute.xlu0 %578  ;;  %v1157_v30 = vsel %vm901_vm0, %v1155_v62, %v1156_v11  ;;  %v1199_v51 = vrot.slane %v1183_v58, 1  ;;  %v1231_v11 = vstv %s5970_s4  ;;  %s6831_s4 = sld [smem:[#allocation2 + $0x24]] }
  0xed   : > { %11108 = vst [vmem:[#allocation30_spill] sm:$0xff] %v6713_v47  ;;  %11109 = vst [vmem:[#allocation31_spill] sm:$0xff] %v6715_v35  ;;  %v1232_v19 = vmul.f32 %v1231_v11, %v6562_v15  ;;  %v1236_v23 = vmul.f32 %v1231_v11, %v6565_v16  ;;  %v6815_v35 = vstv %s6778_s17  ;;  %s6944_s17 = sld [smem:[#allocation2 + $0x27]] }
  0xee   : > { %1116 = vrot.lane.b32.xlu1 %v1108_v3, %s6240_s27  ;;  %1114 = vrot.lane.b32.xlu0 %v1105_v63, %s6240_s27  ;;  %v1200_v3 = vrot.slane %v1187_v7, 1  ;;  %v1185_v63 = vmul.f32 %v1182_v41, %v6584_v0 }
  0xef   : > { %v1249_v17 = vrot.slane %v1236_v23, 1 }
  0xf0   : > { %v6725_v52 = vpop.permute.xlu1 %605  ;;  %v6727_v4 = vpop.permute.xlu0 %603  ;;  %v1201_v58 = vsel %vm901_vm0, %v1199_v51, %v1200_v3  ;;  %v1205_v7 = vrot.slane %v1185_v63, 1  ;;  %v1234_v3 = vmul.f32 %v1231_v11, %v6584_v0  ;;  %v1238_v63 = vmul.f32 %v1231_v11, %v6591_v46 }
  0xf1   : > { %11110 = vst [vmem:[#allocation32_spill] sm:$0xff] %v6725_v52  ;;  %11111 = vst [vmem:[#allocation33_spill] sm:$0xff] %v6727_v4  ;;  %v1203_v4 = vrot.slane %v1188_v40, 1  ;;  %v1279_v52 = vstv %s6737_s8  ;;  %s7433_s8 = sld [smem:[#allocation2 + $0x2e]] }
  0xf2   : > { %1161 = vrot.lane.b32.xlu1 %v1151_v14, %s6241_s7  ;;  %1118 = vrot.lane.b32.xlu0 %v1111_v18, %s6240_s27  ;;  %v1206_v14 = vrot.slane %v1189_v48, 1  ;;  %v1202_v18 = vrot.slane %v1184_v32, 1  ;;  %v1233_v48 = vmul.f32 %v1231_v11, %v6594_v49  ;;  %v1237_v32 = vmul.f32 %v1231_v11, %v6597_v50  ;;  %s7203_s27 = sld [smem:[#allocation2 + $0x2b]] }
  0xf3   : > { %v1254_v59 = vrot.slane %v1234_v3, 1  ;;  %v1255_v36 = vrot.slane %v1238_v63, 1 }
  0xf4   : > { %v6739_v5 = vpop.permute.xlu1 %609  ;;  %v6741_v62 = vpop.permute.xlu0 %607  ;;  %v1204_v40 = vsel %vm901_vm0, %v1202_v18, %v1203_v4  ;;  %v1251_v31 = vrot.slane %v1233_v48, 1  ;;  %v1280_v4 = vmul.f32 %v1279_v52, %v6562_v15  ;;  %v1235_v18 = vmul.f32 %v1231_v11, %v6609_v8 }
  0xf5   : > { %11112 = vst [vmem:[#allocation34_spill] sm:$0xff] %v6739_v5  ;;  %11113 = vst [vmem:[#allocation35_spill] sm:$0xff] %v6741_v62  ;;  %v1190_v5 = vmul.f32 %v1182_v41, %v6612_v9  ;;  %v1207_v41 = vsel %vm901_vm0, %v1205_v7, %v1206_v14  ;;  %v1284_v7 = vmul.f32 %v1279_v52, %v6565_v16  ;;  %v1328_v48 = vstv %s5972_s11  ;;  %s6932_s11 = sld [smem:[#allocation2 + $0x26]] }
  0xf6   : > { %1165 = vrot.lane.b32.xlu1 %v1157_v30, %s6241_s7  ;;  %1163 = vrot.lane.b32.xlu0 %v1154_v37, %s6241_s7  ;;  %v1248_v37 = vrot.slane %v1232_v19, 1  ;;  %v1239_v19 = vmul.f32 %v1231_v11, %v6612_v9  ;;  %v1256_v3 = vsel %vm901_vm0, %v1254_v59, %v1255_v36  ;;  %v1296_v11 = vrot.slane %v1280_v4, 1 }
  0xf7   : > { %v1209_v62 = vrot.slane %v1190_v5, 1  ;;  %v1285_v36 = vmul.f32 %v1279_v52, %v6597_v50  ;;  %v1283_v4 = vmul.f32 %v1279_v52, %v6609_v8 }
  0xf8   : > { %v6753_v51 = vpop.permute.xlu1 %635  ;;  %v6755_v30 = vpop.permute.xlu0 %633  ;;  %v1250_v5 = vsel %vm901_vm0, %v1248_v37, %v1249_v17  ;;  %v1258_v59 = vrot.slane %v1239_v19, 1 }
  0xf9   : > { %11114 = vst [vmem:[#allocation36_spill] sm:$0xff] %v6753_v51  ;;  %11115 = vst [vmem:[#allocation37_spill] sm:$0xff] %v6755_v30  ;;  %v1210_v14 = vsel %vm901_vm0, %v1208_v53, %v1209_v62  ;;  %v1297_v62 = vrot.slane %v1284_v7, 1  ;;  %v1329_v53 = vmul.f32 %v1328_v48, %v6562_v15  ;;  %v6805_v7 = vld [vmem:[%s6339_s29 + $0x10] sm:$0xff]  ;;  %v1300_v27 = vrot.slane %v1285_v36, 1 }
  0xfa   : > { %1211 = vrot.lane.b32.xlu1 %v1201_v58, %s6241_s7  ;;  %1167 = vrot.lane.b32.xlu0 %v1160_v22, %s6241_s7  ;;  %v1252_v58 = vrot.slane %v1237_v32, 1  ;;  %v1282_v32 = vmul.f32 %v1279_v52, %v6584_v0  ;;  %v1334_v36 = vmul.f32 %v1328_v48, %v6597_v50 }
  0xfc   : > { %v6766_v30 = vpop.permute.xlu1 %639  ;;  %v6768_v51 = vpop.permute.xlu0 %637  ;;  %v1253_v63 = vsel %vm901_vm0, %v1251_v31, %v1252_v58  ;;  %v1281_v31 = vmul.f32 %v1279_v52, %v6594_v49  ;;  %v1333_v58 = vmul.f32 %v1328_v48, %v6565_v16 }
  0xfd   : > { %11116 = vst [vmem:[#allocation38_spill] sm:$0xff] %v6766_v30  ;;  %11117 = vst [vmem:[#allocation39_spill] sm:$0xff] %v6768_v51  ;;  %v1302_v30 = vrot.slane %v1282_v32, 1 }
  0xfe   : > { %1215 = vrot.lane.b32.xlu1 %v1207_v41, %s6241_s7  ;;  %1213 = vrot.lane.b32.xlu0 %v1204_v40, %s6241_s7  ;;  %v1286_v41 = vmul.f32 %v1279_v52, %v6591_v46  ;;  %v1257_v40 = vrot.slane %v1235_v18, 1  ;;  %v6142_v18 = vld [vmem:[%s6339_s29] sm:$0xff]  ;;  %v1299_v47 = vrot.slane %v1281_v31, 1 }
  0xff   : > { %v235_v19 = vmul.f32 %v6142_v18, %v234_v26 }
 0x100   : > { %v6780_v22 = vpop.permute.xlu1 %663  ;;  %v6782_v23 = vpop.permute.xlu0 %661  ;;  %v1303_v51 = vrot.slane %v1286_v41, 1  ;;  %v1259_v28 = vsel %vm901_vm0, %v1257_v40, %v1258_v59  ;;  %v1331_v41 = vmul.f32 %v1328_v48, %v6584_v0  ;;  %v1330_v40 = vmul.f32 %v1328_v48, %v6594_v49 }
 0x101   : > { %11118 = vst [vmem:[#allocation40_spill] sm:$0xff] %v6780_v22  ;;  %11119 = vst [vmem:[#allocation41_spill] sm:$0xff] %v6782_v23  ;;  %v1298_v23 = vsel %vm901_vm0, %v1296_v11, %v1297_v62  ;;  %v1346_v22 = vrot.slane %v1333_v58, 1  ;;  %v229_v11 = vld [vmem:[%s10939_s1 + $0x10] sm:$0xff]  ;;  %v227_v62 = vld [vmem:[%s10939_s1] sm:$0xff]  ;;  %v6834_v59 = vstv %s6787_s18  ;;  %v1301_v58 = vsel %vm901_vm0, %v1299_v47, %v1300_v27  ;;  %s6243_s18 = smov 91  }
 0x102   : > { %1260 = vrot.lane.b32.xlu1 %v1250_v5, %s6242_s21  ;;  %1217 = vrot.lane.b32.xlu0 %v1210_v14, %s6241_s7  ;;  %v237_v5 = vmul.f32 %v6805_v7, %v234_v26  ;;  %v1287_v14 = vmul.f32 %v1279_v52, %v6612_v9  ;;  %11124 = vst [vmem:[#allocation46_spill] sm:$0xff] %v6834_v59  ;;  %v228_v47 = vld [vmem:[%s10939_s1 + $0x8] sm:$0xff]  ;;  %v1351_v13 = vrot.slane %v1331_v41, 1  ;;  %v1348_v55 = vrot.slane %v1330_v40, 1  ;;  %s7385_s7 = sld [smem:[#allocation2 + $0x2d]] }
 0x103   : > { %v1304_v31 = vsel %vm901_vm0, %v1302_v30, %v1303_v51 }
 0x104   : > { %v6797_v37 = vpop.permute.xlu1 %667  ;;  %v6799_v17 = vpop.permute.xlu0 %665  ;;  %v1306_v32 = vrot.slane %v1287_v14, 1  ;;  %v1332_v14 = vmul.f32 %v1328_v48, %v6609_v8 }
 0x105   : > { %11120 = vst [vmem:[#allocation42_spill] sm:$0xff] %v6797_v37  ;;  %11121 = vst [vmem:[#allocation43_spill] sm:$0xff] %v6799_v17  ;;  %v6143_v37 = vld [vmem:[%s6339_s29 + $0x8] sm:$0xff]  ;;  %v256_v17 = vstv %s6795_s22  ;;  %s7029_s22 = sld [smem:[#allocation2 + $0x28]] }
 0x106   : > { %1264 = vrot.lane.b32.xlu1 %v1256_v3, %s6242_s21  ;;  %1262 = vrot.lane.b32.xlu0 %v1253_v63, %s6242_s21  ;;  %v236_v54 = vmul.f32 %v6143_v37, %v234_v26  ;;  %v1345_v3 = vrot.slane %v1329_v53, 1  ;;  %v1305_v63 = vrot.slane %v1283_v4, 1  ;;  %v1335_v26 = vmul.f32 %v1328_v48, %v6591_v46 }
 0x107   : > { %v1378_v53 = vmul.f32 %v6815_v35, %v6562_v15  ;;  %v1382_v4 = vmul.f32 %v6815_v35, %v6565_v16  ;;  %v6870_v41 = vmul.f32 %v6143_v37, %v6834_v59  ;;  %v6876_v40 = vmul.f32 %v6142_v18, %v256_v17 }
 0x108   : > { %v6818_v52 = vpop.permute.xlu1 %692  ;;  %v6820_v12 = vpop.permute.xlu0 %690  ;;  %v1347_v30 = vsel %vm901_vm0, %v1345_v3, %v1346_v22  ;;  %v1307_v27 = vsel %vm901_vm0, %v1305_v63, %v1306_v32  ;;  %v1352_v1 = vrot.slane %v1335_v26, 1  ;;  %v1380_v22 = vmul.f32 %v6815_v35, %v6584_v0 }
 0x109   : > { %11122 = vst [vmem:[#allocation44_spill] sm:$0xff] %v6818_v52  ;;  %11123 = vst [vmem:[#allocation45_spill] sm:$0xff] %v6820_v12  ;;  %v1336_v12 = vmul.f32 %v1328_v48, %v6612_v9  ;;  %v240_v52 = vadd.f32 %v237_v5, %v229_v11  ;;  %v1349_v48 = vrot.slane %v1334_v36, 1  ;;  %v1394_v5 = vrot.slane %v1378_v53, 1 }
 0x10a   : > { %1308 = vrot.lane.b32.xlu1 %v1298_v23, %s6242_s21  ;;  %1266 = vrot.lane.b32.xlu0 %v1259_v28, %s6242_s21  ;;  %v238_v23 = vadd.f32 %v235_v19, %v227_v62  ;;  %v1384_v19 = vmul.f32 %v6815_v35, %v6591_v46  ;;  %v1395_v3 = vrot.slane %v1382_v4, 1  ;;  %v1354_v63 = vrot.slane %v1332_v14, 1 }
 0x10b   : > { %v1355_v11 = vrot.slane %v1336_v12, 1  ;;  %v1379_v62 = vmul.f32 %v6815_v35, %v6594_v49  ;;  %v6867_v32 = vadd.f32 %v236_v54, %v228_v47  ;;  %v6874_v26 = vmul.f32 %v6805_v7, %v6834_v59  ;;  %v6144_v12 = vld [vmem:[%s6339_s29 + $0x18] sm:$0xff] }
 0x10c   : > { %v6848_v28 = vpop.permute.xlu1 %696  ;;  %v6850_v51 = vpop.permute.xlu0 %694  ;;  %v6883_v53 = vmul.f32 %v6144_v12, %v256_v17  ;;  %v6888_v54 = vmul.f32 %v6805_v7, %v256_v17  ;;  %v1427_v4 = vstv %s6831_s4  ;;  %v1353_v18 = vsel %vm901_vm0, %v1351_v13, %v1352_v1  ;;  %s7325_s4 = sld [smem:[#allocation2 + $0x2c]] }
 0x10d   : > { %v1400_v14 = vrot.slane %v1380_v22, 1  ;;  %v1401_v47 = vrot.slane %v1384_v19, 1  ;;  %v1350_v12 = vsel %vm901_vm0, %v1348_v55, %v1349_v48  ;;  %v1397_v7 = vrot.slane %v1379_v62, 1 }
 0x10e   : > { %1312 = vrot.lane.b32.xlu1 %v1304_v31, %s6242_s21  ;;  %1310 = vrot.lane.b32.xlu0 %v1301_v58, %s6242_s21  ;;  %v6885_v58 = vmul.f32 %v6143_v37, %v256_v17  ;;  %v1396_v37 = vsel %vm901_vm0, %v1394_v5, %v1395_v3  ;;  %v1356_v17 = vsel %vm901_vm0, %v1354_v63, %v1355_v11  ;;  %v6919_v19 = vstv %s6857_s10  ;;  %s6246_s10 = smov 64  }
 0x10f   : > { %v294_v13 = vsel %vm11022_vm1, %v6473_v21, %v6481_v25  ;;  %v295_v1 = vsel %vm11022_vm1, %v6481_v25, %v6471_v20  ;;  %v1428_v48 = vmul.f32 %v1427_v4, %v6562_v15  ;;  %v1432_v5 = vmul.f32 %v1427_v4, %v6565_v16 }
 0x110   : > { %v6878_v31 = vpop.permute.xlu1 %721  ;;  %v6880_v36 = vpop.permute.xlu0 %719  ;;  %v1381_v22 = vmul.f32 %v6815_v35, %v6609_v8  ;;  %v1430_v25 = vmul.f32 %v1427_v4, %v6584_v0  ;;  %v1434_v3 = vmul.f32 %v1427_v4, %v6591_v46  ;;  %v6928_v11 = vadd.f32 %v294_v13, %v238_v23 }
 0x111   : > { %11125 = vst [vmem:[#allocation47_spill] sm:$0xff] %v6878_v31  ;;  %11126 = vst [vmem:[#allocation48_spill] sm:$0xff] %v6880_v36  ;;  %v1383_v36 = vmul.f32 %v6815_v35, %v6597_v50  ;;  %v1429_v62 = vmul.f32 %v1427_v4, %v6594_v49  ;;  %v1435_v23 = vmul.f32 %v1427_v4, %v6612_v9 }
 0x112   : > { %1357 = vrot.lane.b32.xlu1 %v1347_v30, %s6242_s21  ;;  %1314 = vrot.lane.b32.xlu0 %v1307_v27, %s6242_s21  ;;  %v296_v30 = vsel %vm11022_vm1, %v6471_v20, %v6479_v24  ;;  %v1385_v24 = vmul.f32 %v6815_v35, %v6612_v9  ;;  %v1402_v20 = vsel %vm901_vm0, %v1400_v14, %v1401_v47  ;;  %v1444_v47 = vrot.slane %v1428_v48, 1 }
 0x113   : > { %v1398_v21 = vrot.slane %v1383_v36, 1  ;;  %v6926_v63 = vadd.f32 %v296_v30, %v240_v52  ;;  %v1433_v35 = vmul.f32 %v1427_v4, %v6597_v50  ;;  %v1476_v36 = vmul.f32 %v6919_v19, %v6562_v15 }
 0x114   : > { %v6908_v27 = vpop.permute.xlu1 %725  ;;  %v6910_v55 = vpop.permute.xlu0 %723  ;;  %v1480_v14 = vmul.f32 %v6919_v19, %v6565_v16  ;;  %v1431_v52 = vmul.f32 %v1427_v4, %v6609_v8  ;;  %v1445_v30 = vrot.slane %v1432_v5, 1  ;;  %v1403_v13 = vrot.slane %v1381_v22, 1 }
 0x115   : > { %11127 = vst [vmem:[#allocation49_spill] sm:$0xff] %v6908_v27  ;;  %11128 = vst [vmem:[#allocation50_spill] sm:$0xff] %v6910_v55  ;;  %v1404_v55 = vrot.slane %v1385_v24, 1  ;;  %v323_v27 = vsel %vm11035_vm2, %v6487_v29, %v6497_v34  ;;  %v1399_v31 = vsel %vm901_vm0, %v1397_v7, %v1398_v21  ;;  %v1450_v59 = vrot.slane %v1430_v25, 1 }
 0x116   : > { %1361 = vrot.lane.b32.xlu1 %v1353_v18, %s6242_s21  ;;  %1359 = vrot.lane.b32.xlu0 %v1350_v12, %s6242_s21  ;;  %v324_v4 = vsel %vm11035_vm2, %v6497_v34, %v6495_v33  ;;  %v351_v48 = vsel %vm11035_vm2, %v6505_v39, %v6503_v38  ;;  %v1447_v5 = vrot.slane %v1429_v62, 1  ;;  %v1448_v22 = vrot.slane %v1433_v35, 1 }
 0x117   : > { %v1453_v7 = vrot.slane %v1431_v52, 1  ;;  %v1454_v21 = vrot.slane %v1435_v23, 1  ;;  %v6963_v25 = vadd.f32 %v295_v1, %v6867_v32  ;;  %v1446_v34 = vsel %vm901_vm0, %v1444_v47, %v1445_v30 }
 0x118   : > { %v6934_v18 = vpop.permute.xlu1 %750  ;;  %v6936_v12 = vpop.permute.xlu0 %748  ;;  %v6969_v39 = vmul.f32 %v6919_v19, %v6584_v0  ;;  %v6972_v62 = vadd.f32 %v323_v27, %v6870_v41  ;;  %v6975_v35 = vadd.f32 %v324_v4, %v6874_v26  ;;  %v1482_v32 = vmul.f32 %v6919_v19, %v6591_v46 }
 0x119   : > { %11129 = vst [vmem:[#allocation51_spill] sm:$0xff] %v6936_v12  ;;  %v1451_v12 = vrot.slane %v1434_v3, 1  ;;  %v1405_v3 = vsel %vm901_vm0, %v1403_v13, %v1404_v55  ;;  %v6982_v1 = vadd.f32 %v351_v48, %v6876_v40  ;;  %v1449_v41 = vsel %vm901_vm0, %v1447_v5, %v1448_v22 }
 0x11a   : > { %1406 = vrot.lane.b32.xlu1 %v1396_v37, %s6243_s18  ;;  %1363 = vrot.lane.b32.xlu0 %v1356_v17, %s6242_s21  ;;  %v1492_v37 = vrot.slane %v1476_v36, 1  ;;  %v1493_v17 = vrot.slane %v1480_v14, 1  ;;  %v1524_v27 = vstv %s6932_s11  ;;  %v1455_v14 = vsel %vm901_vm0, %v1453_v7, %v1454_v21  ;;  %s6244_s21 = smov 87   ;;  %s7478_s11 = sld [smem:[#allocation2 + $0x2f]] }
 0x11b   : > { %11131 = vst [vmem:[#allocation53_spill] sm:$0xff] %v6982_v1  ;;  %v1452_v55 = vsel %vm901_vm0, %v1450_v59, %v1451_v12  ;;  %v1481_v40 = vmul.f32 %v6919_v19, %v6597_v50  ;;  %v6999_v59 = vadd.f32 %v6511_v42, %v6883_v53  ;;  %v352_v12 = vsel %vm11035_vm2, %v6503_v38, %v6513_v43 }
 0x11c   : > { %v6958_v24 = vpop.permute.xlu1 %754  ;;  %v6960_v29 = vpop.permute.xlu0 %752  ;;  %v1498_v52 = vrot.slane %v6969_v39, 1  ;;  %v7006_v23 = vstv %s6944_s17  ;;  %v353_v47 = vsel %vm11035_vm2, %v6513_v43, %v6511_v42  ;;  %v1499_v30 = vrot.slane %v1482_v32, 1  ;;  %s6247_s17 = smov 49  }
 0x11d   : > { %11130 = vst [vmem:[#allocation52_spill] sm:$0xff] %v6958_v24  ;;  %v1525_v53 = vmul.f32 %v1524_v27, %v6562_v15  ;;  %v1529_v13 = vmul.f32 %v1524_v27, %v6565_v16  ;;  %v1479_v38 = vmul.f32 %v6919_v19, %v6609_v8  ;;  %v1483_v4 = vmul.f32 %v6919_v19, %v6612_v9 }
 0x11e   : > { %1410 = vrot.lane.b32.xlu1 %v1402_v20, %s6243_s18  ;;  %1408 = vrot.lane.b32.xlu0 %v1399_v31, %s6243_s18  ;;  %v1494_v20 = vsel %vm901_vm0, %v1492_v37, %v1493_v17  ;;  %v1477_v31 = vmul.f32 %v6919_v19, %v6594_v49  ;;  %v1527_v48 = vmul.f32 %v1524_v27, %v6584_v0  ;;  %v1496_v32 = vrot.slane %v1481_v40, 1 }
 0x11f   : > { %v1531_v42 = vmul.f32 %v1524_v27, %v6591_v46  ;;  %v1526_v37 = vmul.f32 %v1524_v27, %v6594_v49  ;;  %v1530_v17 = vmul.f32 %v1524_v27, %v6597_v50  ;;  %v1574_v7 = vmul.f32 %v7006_v23, %v6562_v15 }
 0x120   : > { %v6987_v36 = vpop.permute.xlu1 %778  ;;  %v6989_v26 = vpop.permute.xlu0 %776  ;;  %v1495_v22 = vrot.slane %v1477_v31, 1  ;;  %v7032_v19 = vadd.f32 %v352_v12, %v6885_v58  ;;  %v1578_v21 = vmul.f32 %v7006_v23, %v6565_v16  ;;  %v7039_v39 = vadd.f32 %v353_v47, %v6888_v54 }
 0x121   : > { %11132 = vst [vmem:[#allocation54_spill] sm:$0xff] %v6989_v26  ;;  %v1541_v31 = vrot.slane %v1525_v53, 1  ;;  %v1542_v33 = vrot.slane %v1529_v13, 1  ;;  %v1501_v58 = vrot.slane %v1479_v38, 1  ;;  %v1502_v12 = vrot.slane %v1483_v4, 1 }
 0x122   : > { %1456 = vrot.lane.b32.xlu1 %v1446_v34, %s6244_s21  ;;  %1412 = vrot.lane.b32.xlu0 %v1405_v3, %s6243_s18  ;;  %v1528_v34 = vmul.f32 %v1524_v27, %v6609_v8  ;;  %v1532_v3 = vmul.f32 %v1524_v27, %v6612_v9  ;;  %v1547_v26 = vrot.slane %v1527_v48, 1  ;;  %v1548_v1 = vrot.slane %v1531_v42, 1  ;;  %s7523_s18 = sld [smem:[#allocation2 + $0x30]] }
 0x123   : > { %v410_v27 = vsel %vm11021_vm3, %v6537_v57, %v6535_v56  ;;  %v1545_v47 = vrot.slane %v1530_v17, 1  ;;  %v1591_v40 = vrot.slane %v1578_v21, 1  ;;  %v1576_v38 = vmul.f32 %v7006_v23, %v6584_v0 }
 0x124   : > { %v7021_v43 = vpop.permute.xlu1 %782  ;;  %v7023_v5 = vpop.permute.xlu0 %780  ;;  %v1550_v53 = vrot.slane %v1528_v34, 1  ;;  %v1551_v13 = vrot.slane %v1532_v3, 1  ;;  %v1500_v57 = vsel %vm901_vm0, %v1498_v52, %v1499_v30  ;;  %v1580_v4 = vmul.f32 %v7006_v23, %v6591_v46 }
 0x125   : > { %11133 = vst [vmem:[#allocation55_spill] sm:$0xff] %v7021_v43  ;;  %v1575_v48 = vmul.f32 %v7006_v23, %v6594_v49  ;;  %v1497_v42 = vsel %vm901_vm0, %v1495_v22, %v1496_v32  ;;  %v1503_v17 = vsel %vm901_vm0, %v1501_v58, %v1502_v12  ;;  %v1579_v21 = vmul.f32 %v7006_v23, %v6597_v50 }
 0x126   : > { %1460 = vrot.lane.b32.xlu1 %v1452_v55, %s6244_s21  ;;  %1458 = vrot.lane.b32.xlu0 %v1449_v41, %s6244_s21  ;;  %v1544_v55 = vrot.slane %v1526_v37, 1  ;;  %v1590_v41 = vrot.slane %v1574_v7, 1  ;;  %v1543_v37 = vsel %vm901_vm0, %v1541_v31, %v1542_v33  ;;  %v1549_v7 = vsel %vm901_vm0, %v1547_v26, %v1548_v1 }
 0x127   : > { %v1622_v22 = vstv %s7029_s22  ;;  %v411_v33 = vsel %vm11021_vm3, %v6535_v56, %v6545_v61  ;;  %v1596_v26 = vrot.slane %v1576_v38, 1  ;;  %v412_v34 = vsel %vm11021_vm3, %v6545_v61, %v6543_v60  ;;  %s7574_s22 = sld [smem:[#allocation2 + $0x32]] }
 0x128   : > { %v7048_v24 = vpop.permute.xlu1 %807  ;;  %v7050_v54 = vpop.permute.xlu0 %805  ;;  %v1546_v30 = vsel %vm901_vm0, %v1544_v55, %v1545_v47  ;;  %v7080_v1 = vsel %vm901_vm0, %v1590_v41, %v1591_v40  ;;  %v1597_v3 = vrot.slane %v1580_v4, 1  ;;  %v1593_v32 = vrot.slane %v1575_v48, 1 }
 0x129   : > { %v7091_v31 = vstv %s7043_s24  ;;  %v1623_v56 = vmul.f32 %v1622_v22, %v6562_v15  ;;  %v1627_v58 = vmul.f32 %v1622_v22, %v6565_v16  ;;  %v1577_v12 = vmul.f32 %v7006_v23, %v6609_v8  ;;  %s6248_s24 = smov 45  }
 0x12a   : > { %1504 = vrot.lane.b32.xlu1 %v1494_v20, %s6244_s21  ;;  %1462 = vrot.lane.b32.xlu0 %v1455_v14, %s6244_s21  ;;  %v7066_v20 = vadd.f32 %v410_v27, %v6928_v11  ;;  %v7083_v11 = vsel %vm901_vm0, %v1550_v53, %v1551_v13  ;;  %v1581_v27 = vmul.f32 %v7006_v23, %v6612_v9  ;;  %v1594_v47 = vrot.slane %v1579_v21, 1 }
 0x12b   : > { %v7100_v60 = vadd.f32 %v411_v33, %v6963_v25  ;;  %v1625_v41 = vmul.f32 %v1622_v22, %v6584_v0  ;;  %v1629_v40 = vmul.f32 %v1622_v22, %v6591_v46  ;;  %v7109_v53 = vadd.f32 %v412_v34, %v6926_v63 }
 0x12c   : > { %v7068_v14 = vpop.permute.xlu1 %811  ;;  %v7070_v52 = vpop.permute.xlu0 %809  ;;  %v1624_v13 = vmul.f32 %v1622_v22, %v6594_v49  ;;  %v1628_v23 = vmul.f32 %v1622_v22, %v6597_v50  ;;  %v1671_v25 = vmul.f32 %v7091_v31, %v6562_v15  ;;  %v1675_v38 = vmul.f32 %v7091_v31, %v6565_v16 }
 0x12d   : > { %v1630_v63 = vmul.f32 %v1622_v22, %v6612_v9  ;;  %v1639_v4 = vrot.slane %v1623_v56, 1  ;;  %v1640_v48 = vrot.slane %v1627_v58, 1  ;;  %v1599_v49 = vrot.slane %v1577_v12, 1 }
 0x12e   : > { %1508 = vrot.lane.b32.xlu1 %v1500_v57, %s6244_s21  ;;  %1506 = vrot.lane.b32.xlu0 %v1497_v42, %s6244_s21  ;;  %v1626_v57 = vmul.f32 %v1622_v22, %v6609_v8  ;;  %v1600_v42 = vrot.slane %v1581_v27, 1  ;;  %v1645_v21 = vrot.slane %v1625_v41, 1  ;;  %v1646_v16 = vrot.slane %v1629_v40, 1  ;;  %v7154_v41 = vld [vmem:[%s6339_s29 + $0x8] sm:$0xfe] }
 0x12f   : > { %v438_v8 = vsel %vm11021_vm3, %v6555_v10, %v6575_v2  ;;  %v439_v9 = vsel %vm11021_vm3, %v6575_v2, %v6573_v6  ;;  %v1642_v22 = vrot.slane %v1624_v13, 1  ;;  %v1643_v33 = vrot.slane %v1628_v23, 1  ;;  %v7159_v13 = vld [vmem:[%s6339_s29 + $0x28] sm:$0x1]  ;;  %v11155_v6 = vld [vmem:[#allocation23_spill] sm:$0xff] }
 0x130   : > { %v7102_v61 = vpop.permute.xlu1 %836  ;;  %v7104_v55 = vpop.permute.xlu0 %834  ;;  %v1688_v34 = vrot.slane %v1675_v38, 1  ;;  %v7138_v56 = vsel %vm901_vm0, %v1639_v4, %v1640_v48  ;;  %v7141_v58 = vsel %vm901_vm0, %v1599_v49, %v1600_v42  ;;  %v1673_v2 = vmul.f32 %v7091_v31, %v6584_v0  ;;  %v11141_v48 = vld [vmem:[#allocation43_spill] sm:$0xff]  ;;  %v11142_v49 = vld [vmem:[#allocation40_spill] sm:$0xff] }
 0x131   : > { %11134 = vst [vmem:[#allocation56_spill] sm:$0xff] %v7102_v61  ;;  %11135 = vst [vmem:[#allocation57_spill] sm:$0xff] %v7104_v55  ;;  %v1677_v12 = vmul.f32 %v7091_v31, %v6591_v46  ;;  %v1672_v40 = vmul.f32 %v7154_v41, %v7091_v31  ;;  %v1676_v0 = vmul.f32 %v7159_v13, %v7091_v31  ;;  %v11148_v55 = vld [vmem:[#allocation30_spill] sm:$0xff]  ;;  %v7286_v61 = vstv %s7203_s27  ;;  %s7639_s27 = sld [smem:[#allocation2 + $0x34]] }
 0x132   : > { %1553 = vrot.lane.b32.xlu1 %v1543_v37, %s6244_s21  ;;  %1510 = vrot.lane.b32.xlu0 %v1503_v17, %s6244_s21  ;;  %v1598_v37 = vsel %vm901_vm0, %v1596_v26, %v1597_v3  ;;  %v1595_v17 = vsel %vm901_vm0, %v1593_v32, %v1594_v47  ;;  %v1687_v26 = vrot.slane %v1671_v25, 1  ;;  %v1648_v3 = vrot.slane %v1626_v57, 1  ;;  %v11140_v57 = vld [vmem:[#allocation15_spill] sm:$0xff] }
 0x133   : > { %v1649_v32 = vrot.slane %v1630_v63, 1  ;;  %v7166_v46 = vsel %vm466_vm4, %v6588_v45, %v6586_v44  ;;  %v7172_v25 = vsel %vm901_vm0, %v1645_v21, %v1646_v16  ;;  %v7175_v38 = vsel %vm901_vm0, %v1642_v22, %v1643_v33 }
 0x134   : > { %v7123_v50 = vpop.permute.xlu1 %840  ;;  %v7125_v15 = vpop.permute.xlu0 %838  ;;  %v468_v63 = vsel %vm466_vm4, %v6586_v44, %v11140_v57  ;;  %v7185_v45 = vsel %vm901_vm0, %v1687_v26, %v1688_v34  ;;  %v670_v42 = vsel %vm11057_vm6, %v11142_v49, %v11141_v48  ;;  %v1693_v21 = vrot.slane %v1673_v2, 1 }
 0x135   : > { %11136 = vst [vmem:[#allocation58_spill] sm:$0xff] %v7123_v50  ;;  %11137 = vst [vmem:[#allocation59_spill] sm:$0xff] %v7125_v15  ;;  %v7188_v4 = vsel %vm901_vm0, %v1648_v3, %v1649_v32  ;;  %v1694_v16 = vrot.slane %v1677_v12, 1  ;;  %v7194_v44 = vstv %s7121_s26  ;;  %v1690_v33 = vrot.slane %v1672_v40, 1  ;;  %v11144_v32 = vld [vmem:[#allocation26_spill] sm:$0xff]  ;;  %s7612_s26 = sld [smem:[#allocation2 + $0x33]] }
 0x136   : > { %1557 = vrot.lane.b32.xlu1 %v1549_v7, %s6244_s21  ;;  %1555 = vrot.lane.b32.xlu0 %v1546_v30, %s6244_s21  ;;  %v445_v7 = vadd.f32 %v438_v8, %v6972_v62  ;;  %v446_v30 = vadd.f32 %v439_v9, %v6975_v35  ;;  %v11138_v62 = vld [vmem:[#allocation27_spill] sm:$0xff]  ;;  %v11139_v35 = vld [vmem:[#allocation24_spill] sm:$0xff]  ;;  %v11143_v8 = vld [vmem:[#allocation14_spill] sm:$0xff]  ;;  %v1691_v26 = vrot.slane %v1676_v0, 1  ;;  %v475_v3 = vadd.f32 %v468_v63, %v7032_v19 }
 0x137   : > { %v554_v23 = vsel %vm11014_vm5, %v11139_v35, %v11138_v62  ;;  %v477_v34 = vadd.f32 %v11143_v8, %v6999_v59  ;;  %v555_v2 = vsel %vm11014_vm5, %v11138_v62, %v11144_v32  ;;  %v785_v12 = vsel %vm11053_vm7, %v6987_v36, %v7023_v5  ;;  %v7217_v40 = vld [vmem:[%s6339_s29] sm:$0xfe]  ;;  %v7222_v19 = vld [vmem:[%s6339_s29 + $0x20] sm:$0x1] }
 0x138   : > { %v7149_v27 = vpop.permute.xlu1 %865  ;;  %v7151_v47 = vpop.permute.xlu0 %863  ;;  %v1720_v59 = vmul.f32 %v7217_v40, %v7194_v44  ;;  %v1724_v0 = vmul.f32 %v7222_v19, %v7194_v44  ;;  %vm3033_vm1 = vcmask 531456  }
 0x13a   : > { %1602 = vrot.lane.b32.xlu1 %v7080_v1, %s6244_s21  ;;  %1559 = vrot.lane.b32.xlu0 %v7083_v11, %s6244_s21  ;;  %v469_v1 = vsel %vm466_vm4, %v11140_v57, %v11143_v8  ;;  %v561_v11 = vadd.f32 %v554_v23, %v445_v7  ;;  %v11145_v23 = vld [vmem:[#allocation42_spill] sm:$0xff]  ;;  %v7234_v57 = vld [vmem:[%s6339_s29 + $0x18] sm:$0xfe] }
 0x13b   : > { %v476_v62 = vadd.f32 %v469_v1, %v7039_v39  ;;  %v7238_v63 = vmul.f32 %v7234_v57, %v7091_v31  ;;  %v7243_v39 = vsel %vm901_vm0, %v1690_v33, %v1691_v26  ;;  %v7246_v1 = vld [vmem:[%s6339_s29 + $0x38] sm:$0x1]  ;;  %v786_v33 = vsel %vm11053_vm7, %v7023_v5, %v7021_v43 }
 0x13c   : > { %v7199_v9 = vpop.permute.xlu1 %869  ;;  %v7201_v22 = vpop.permute.xlu0 %867  ;;  %v677_v7 = vadd.f32 %v670_v42, %v561_v11  ;;  %v562_v42 = vadd.f32 %v555_v2, %v446_v30 }
 0x13e   : > { %1606 = vrot.lane.b32.xlu1 %v1598_v37, %s6244_s21  ;;  %1604 = vrot.lane.b32.xlu0 %v1595_v17, %s6244_s21  ;;  %v671_v37 = vsel %vm11057_vm6, %v11141_v48, %v11145_v23  ;;  %v7231_v17 = vsel %vm901_vm0, %v1693_v21, %v1694_v16  ;;  %v792_v8 = vadd.f32 %v785_v12, %v677_v7  ;;  %v11146_v21 = vld [vmem:[#allocation31_spill] sm:$0xff]  ;;  %v11147_v16 = vld [vmem:[#allocation28_spill] sm:$0xff]  ;;  %v1737_v7 = vrot.slane %v1724_v0, 1 }
 0x13f   : > { %v7250_v48 = vmul.f32 %v7246_v1, %v7091_v31  ;;  %v583_v15 = vsel %vm11014_vm5, %v11147_v16, %v11146_v21  ;;  %v584_v30 = vsel %vm11014_vm5, %v11146_v21, %v11148_v55  ;;  %v678_v2 = vadd.f32 %v671_v37, %v562_v42  ;;  %v11149_v21 = vld [vmem:[#allocation44_spill] sm:$0xff] }
 0x140   : > { %v914_v11 = vpop.permute.xlu1 %913  ;;  %v7240_v50 = vpop.permute.xlu0 %911  ;;  %v1736_v31 = vrot.slane %v1720_v59, 1  ;;  %v699_v5 = vsel %vm11057_vm6, %v11149_v21, %v6850_v51  ;;  %v700_v37 = vsel %vm11057_vm6, %v6850_v51, %v6848_v28  ;;  %v1696_v42 = vrot.slane %v7238_v63, 1 }
 0x141   : > { %v918_v26 = vsel %vm917_vm8, %v7240_v50, %v914_v11  ;;  %v793_v59 = vadd.f32 %v786_v33, %v678_v2  ;;  %v814_v51 = vsel %vm11053_vm7, %v7048_v24, %v7070_v52  ;;  %v815_v63 = vsel %vm11053_vm7, %v7070_v52, %v7068_v14 }
 0x142   : > { %v7263_v12 = vadd.f32 %v918_v26, %v792_v8  ;;  %1651 = vrot.lane.b32.xlu1 %v7138_v56, %s6245_s28  ;;  %1608 = vrot.lane.b32.xlu0 %v7141_v58, %s6244_s21  ;;  %v7277_v8 = vld [vmem:[%s6339_s29 + $0x10] sm:$0xfe]  ;;  %v590_v26 = vadd.f32 %v583_v15, %v475_v3  ;;  %v591_v58 = vadd.f32 %v584_v30, %v476_v62  ;;  %v7297_v15 = vld [vmem:[%s6339_s29 + $0x30] sm:$0x1]  ;;  %v1697_v52 = vrot.slane %v7250_v48, 1  ;;  %s7547_s21 = sld [smem:[#allocation2 + $0x31]] }
 0x143   : > { %v1722_v56 = vmul.f32 %v7277_v8, %v7194_v44  ;;  %v1726_v3 = vmul.f32 %v7297_v15, %v7194_v44  ;;  %v1738_v2 = vsel %vm901_vm0, %v1736_v31, %v1737_v7  ;;  %v1723_v7 = vmul.f32 %v7234_v57, %v7194_v44 }
 0x144   : > { %v7281_v43 = vpop.permute.xlu1 %966  ;;  %v7283_v0 = vpop.permute.xlu0 %915  ;;  %v706_v62 = vadd.f32 %v699_v5, %v590_v26  ;;  %v707_v30 = vadd.f32 %v700_v37, %v591_v58  ;;  %v592_v5 = vadd.f32 %v11148_v55, %v477_v34 }
 0x145   : > { %11150 = vst [vmem:[#allocation27_spill] sm:$0xff] %v7283_v0  ;;  %v919_v23 = vsel %vm917_vm8, %v914_v11, %v7283_v0  ;;  %v1721_v11 = vmul.f32 %v7154_v41, %v7194_v44  ;;  %v1725_v0 = vmul.f32 %v7159_v13, %v7194_v44 }
 0x146   : > { %v7301_v33 = vadd.f32 %v919_v23, %v793_v59  ;;  %1655 = vrot.lane.b32.xlu1 %v7172_v25, %s6245_s28  ;;  %1653 = vrot.lane.b32.xlu0 %v7175_v38, %s6245_s28  ;;  %v1769_v23 = vmul.f32 %v7217_v40, %v7286_v61  ;;  %v821_v37 = vadd.f32 %v814_v51, %v706_v62  ;;  %v1743_v62 = vrot.slane %v1726_v3, 1  ;;  %v11153_v3 = vld [vmem:[#allocation21_spill] sm:$0xff] }
 0x147   : > { %v822_v25 = vadd.f32 %v815_v63, %v707_v30  ;;  %v1773_v38 = vmul.f32 %v7222_v19, %v7286_v61  ;;  %v1727_v59 = vmul.f32 %v7246_v1, %v7194_v44  ;;  %v708_v55 = vadd.f32 %v6848_v28, %v592_v5 }
 0x148   : > { %v971_v26 = vpop.permute.xlu1 %970  ;;  %v969_v58 = vpop.permute.xlu0 %968  ;;  %v1742_v63 = vrot.slane %v1722_v56, 1  ;;  %v1739_v30 = vrot.slane %v1721_v11, 1  ;;  %v1771_v44 = vmul.f32 %v7277_v8, %v7286_v61  ;;  %v11152_v56 = vld [vmem:[#allocation20_spill] sm:$0xff]  ;;  %v1785_v32 = vrot.slane %v1769_v23, 1  ;;  %v11156_v23 = vld [vmem:[#allocation22_spill] sm:$0xff] }
 0x149   : > { %v974_v48 = vsel %vm917_vm8, %v7281_v43, %v969_v58  ;;  %v975_v31 = vsel %vm917_vm8, %v969_v58, %v971_v26  ;;  %v1775_v58 = vmul.f32 %v7297_v15, %v7286_v61  ;;  %v823_v28 = vadd.f32 %v7068_v14, %v708_v55 }
 0x14a   : > { %v7328_v34 = vadd.f32 %v974_v48, %v821_v37  ;;  %v7330_v51 = vadd.f32 %v975_v31, %v822_v25  ;;  %1699 = vrot.lane.b32.xlu1 %v7185_v45, %s6245_s28  ;;  %1657 = vrot.lane.b32.xlu0 %v7188_v4, %s6245_s28  ;;  %v1740_v25 = vrot.slane %v1725_v0, 1  ;;  %v1770_v45 = vmul.f32 %v7154_v41, %v7286_v61 }
 0x14b   : > { %v1774_v4 = vmul.f32 %v7159_v13, %v7286_v61  ;;  %v526_v11 = vsel %vm11014_vm5, %v11153_v3, %v11152_v56  ;;  %v1698_v31 = vsel %vm901_vm0, %v1696_v42, %v1697_v52  ;;  %v1786_v0 = vrot.slane %v1773_v38, 1 }
 0x14c   : > { %v7341_v5 = vpop.permute.xlu1 %1015  ;;  %v973_v37 = vpop.permute.xlu0 %972  ;;  %v1745_v55 = vrot.slane %v1723_v7, 1  ;;  %v527_v3 = vsel %vm11014_vm5, %v11152_v56, %v11155_v6  ;;  %v1791_v42 = vrot.slane %v1771_v44, 1  ;;  %v1792_v52 = vrot.slane %v1775_v58, 1  ;;  %v11160_v56 = vld [vmem:[#allocation37_spill] sm:$0xff] }
 0x14d   : > { %11151 = vst [vmem:[#allocation24_spill] sm:$0xff] %v7341_v5  ;;  %v976_v48 = vsel %vm917_vm8, %v971_v26, %v973_v37  ;;  %v1746_v5 = vrot.slane %v1727_v59, 1  ;;  %v1744_v26 = vsel %vm901_vm0, %v1742_v63, %v1743_v62  ;;  %v1788_v38 = vrot.slane %v1770_v45, 1  ;;  %v11161_v62 = vld [vmem:[#allocation39_spill] sm:$0xff] }
 0x14e   : > { %v7352_v14 = vadd.f32 %v976_v48, %v823_v28  ;;  %1703 = vrot.lane.b32.xlu1 %v7231_v17, %s6245_s28  ;;  %1701 = vrot.lane.b32.xlu0 %v7243_v39, %s6245_s28  ;;  %v528_v28 = vsel %vm11014_vm5, %v11155_v6, %v11156_v23  ;;  %v1741_v39 = vsel %vm901_vm0, %v1739_v30, %v1740_v25  ;;  %v1789_v7 = vrot.slane %v1774_v4, 1  ;;  %v11159_v48 = vld [vmem:[#allocation36_spill] sm:$0xff]  ;;  %v11162_v45 = vld [vmem:[#allocation51_spill] sm:$0xff] }
 0x14f   : > { %v532_v59 = vadd.f32 %v526_v11, %v7066_v20  ;;  %v642_v63 = vsel %vm11057_vm6, %v11160_v56, %v11159_v48  ;;  %v643_v44 = vsel %vm11057_vm6, %v11159_v48, %v11161_v62  ;;  %v7378_v58 = vstv %s7325_s4  ;;  %s6249_s4 = smov 2  }
 0x150   : > { %11154 = vst [vmem:[#allocation15_spill] sm:$0xff] %v7352_v14  ;;  %v7365_v17 = vpop.permute.xlu1 %1019  ;;  %v7367_v37 = vpop.permute.xlu0 %1017  ;;  %v533_v6 = vadd.f32 %v527_v3, %v7100_v60  ;;  %v1787_v30 = vsel %vm901_vm0, %v1785_v32, %v1786_v0  ;;  %v1747_v20 = vsel %vm901_vm0, %v1745_v55, %v1746_v5  ;;  %v534_v25 = vadd.f32 %v528_v28, %v7109_v53  ;;  %v11164_v0 = vld [vmem:[#allocation38_spill] sm:$0xff] }
 0x151   : > { %11157 = vst [vmem:[#allocation43_spill] sm:$0xff] %v7365_v17  ;;  %11158 = vst [vmem:[#allocation40_spill] sm:$0xff] %v7367_v37  ;;  %v757_v4 = vsel %vm11053_vm7, %v11162_v45, %v6934_v18  ;;  %v758_v60 = vsel %vm11053_vm7, %v6934_v18, %v6960_v29  ;;  %v648_v11 = vadd.f32 %v642_v63, %v532_v59 }
 0x152   : > { %1748 = vrot.lane.b32.xlu1 %v1738_v2, %s6245_s28  ;;  %1705 = vrot.lane.b32.xlu0 %v1698_v31, %s6245_s28  ;;  %v1793_v2 = vsel %vm901_vm0, %v1791_v42, %v1792_v52  ;;  %v649_v31 = vadd.f32 %v643_v44, %v533_v6  ;;  %v1790_v5 = vsel %vm901_vm0, %v1788_v38, %v1789_v7  ;;  %v11165_v7 = vld [vmem:[#allocation52_spill] sm:$0xff] }
 0x153   : > { %v1818_v53 = vmul.f32 %v7217_v40, %v7378_v58  ;;  %v644_v55 = vsel %vm11057_vm6, %v11161_v62, %v11164_v0  ;;  %v872_v18 = vsel %vm11008_vm9, %v7151_v47, %v7149_v27  ;;  %v873_v42 = vsel %vm11008_vm9, %v7149_v27, %v7201_v22 }
 0x154   : > { %v1065_v3 = vpop.permute.xlu1 %1064  ;;  %v7395_v32 = vpop.permute.xlu0 %1021  ;;  %v1822_v52 = vmul.f32 %v7222_v19, %v7378_v58  ;;  %v763_v23 = vadd.f32 %v757_v4, %v648_v11  ;;  %v764_v28 = vadd.f32 %v758_v60, %v649_v31  ;;  %v1772_v38 = vmul.f32 %v7234_v57, %v7286_v61 }
 0x155   : > { %11163 = vst [vmem:[#allocation14_spill] sm:$0xff] %v7395_v32  ;;  %v759_v47 = vsel %vm11053_vm7, %v6960_v29, %v11165_v7  ;;  %v1776_v27 = vmul.f32 %v7246_v1, %v7286_v61  ;;  %v1820_v59 = vmul.f32 %v7277_v8, %v7378_v58  ;;  %v1824_v48 = vmul.f32 %v7297_v15, %v7378_v58 }
 0x156   : > { %1752 = vrot.lane.b32.xlu1 %v1744_v26, %s6245_s28  ;;  %1750 = vrot.lane.b32.xlu0 %v1741_v39, %s6245_s28  ;;  %v650_v26 = vadd.f32 %v644_v55, %v534_v25  ;;  %v878_v39 = vadd.f32 %v872_v18, %v763_v23  ;;  %v879_v56 = vadd.f32 %v873_v42, %v764_v28  ;;  %v1865_v11 = vstv %s7385_s7  ;;  %s7735_s7 = sld [smem:[#allocation2 + $0x36]] }
 0x157   : > { %v1819_v44 = vmul.f32 %v7154_v41, %v7378_v58  ;;  %v874_v29 = vsel %vm11008_vm9, %v7201_v22, %v7199_v9  ;;  %v1823_v45 = vmul.f32 %v7159_v13, %v7378_v58  ;;  %v1834_v9 = vrot.slane %v1818_v53, 1 }
 0x158   : > { %v1069_v63 = vpop.permute.xlu1 %1068  ;;  %v1067_v62 = vpop.permute.xlu0 %1066  ;;  %v765_v25 = vadd.f32 %v759_v47, %v650_v26  ;;  %v1835_v22 = vrot.slane %v1822_v52, 1  ;;  %v1794_v31 = vrot.slane %v1772_v38, 1  ;;  %v1840_v42 = vrot.slane %v1820_v59, 1  ;;  %v11166_v38 = vld [vmem:[#allocation29_spill] sm:$0xff] }
 0x159   : > { %v1073_v61 = vsel %vm1072_vm10, %v1065_v3, %v1067_v62  ;;  %v1074_v6 = vsel %vm1072_vm10, %v1067_v62, %v1069_v63  ;;  %v1795_v3 = vrot.slane %v1776_v27, 1  ;;  %v1841_v23 = vrot.slane %v1824_v48, 1 }
 0x15a   : > { %v7435_v4 = vadd.f32 %v1073_v61, %v878_v39  ;;  %v7437_v60 = vadd.f32 %v1074_v6, %v879_v56  ;;  %1797 = vrot.lane.b32.xlu1 %v1787_v30, %s6245_s28  ;;  %1754 = vrot.lane.b32.xlu0 %v1747_v20, %s6245_s28  ;;  %v880_v0 = vadd.f32 %v874_v29, %v765_v25  ;;  %v1837_v28 = vrot.slane %v1819_v44, 1  ;;  %v11168_v44 = vld [vmem:[#allocation45_spill] sm:$0xff] }
 0x15b   : > { %v1838_v47 = vrot.slane %v1823_v45, 1  ;;  %v1866_v26 = vmul.f32 %v7217_v40, %v1865_v11  ;;  %v1870_v30 = vmul.f32 %v7222_v19, %v1865_v11  ;;  %v1821_v53 = vmul.f32 %v7234_v57, %v7378_v58 }
 0x15c   : > { %v7442_v55 = vpop.permute.xlu1 %1112  ;;  %v1071_v18 = vpop.permute.xlu0 %1070  ;;  %v1825_v52 = vmul.f32 %v7246_v1, %v7378_v58  ;;  %v582_v27 = vsel %vm11014_vm5, %v11166_v38, %v11147_v16  ;;  %v1836_v59 = vsel %vm901_vm0, %v1834_v9, %v1835_v22  ;;  %v1796_v48 = vsel %vm901_vm0, %v1794_v31, %v1795_v3 }
 0x15d   : > { %v1075_v7 = vsel %vm1072_vm10, %v1069_v63, %v1071_v18  ;;  %v1868_v39 = vmul.f32 %v7277_v8, %v1865_v11  ;;  %v1842_v62 = vsel %vm901_vm0, %v1840_v42, %v1841_v23  ;;  %v1872_v58 = vmul.f32 %v7297_v15, %v1865_v11 }
 0x15e   : > { %v7447_v20 = vadd.f32 %v1075_v7, %v880_v0  ;;  %1801 = vrot.lane.b32.xlu1 %v1793_v2, %s6245_s28  ;;  %1799 = vrot.lane.b32.xlu0 %v1790_v5, %s6245_s28  ;;  %v11167_v2 = vld [vmem:[#allocation53_spill] sm:$0xff]  ;;  %v698_v16 = vsel %vm11057_vm6, %v11168_v44, %v11149_v21  ;;  %v1839_v29 = vsel %vm901_vm0, %v1837_v28, %v1838_v47  ;;  %v1882_v61 = vrot.slane %v1866_v26, 1 }
 0x15f   : > { %v474_v56 = vadd.f32 %v7166_v46, %v11167_v2  ;;  %v7474_v6 = vstv %s7433_s8  ;;  %v1883_v46 = vrot.slane %v1870_v30, 1  ;;  %v1843_v25 = vrot.slane %v1821_v53, 1  ;;  %s6250_s8 = smov 126  }
 0x160   : > { %v7463_v5 = vpop.permute.xlu1 %1116  ;;  %v7465_v63 = vpop.permute.xlu0 %1114  ;;  %v1844_v9 = vrot.slane %v1825_v52, 1  ;;  %v813_v21 = vsel %vm11053_vm7, %v7050_v54, %v7048_v24  ;;  %v1888_v22 = vrot.slane %v1868_v39, 1  ;;  %v1867_v31 = vmul.f32 %v7154_v41, %v1865_v11 }
 0x161   : > { %v589_v45 = vadd.f32 %v582_v27, %v474_v56  ;;  %v1871_v3 = vmul.f32 %v7159_v13, %v1865_v11  ;;  %v1889_v23 = vrot.slane %v1872_v58, 1  ;;  %v1916_v28 = vmul.f32 %v7217_v40, %v7474_v6 }
 0x162   : > { %1846 = vrot.lane.b32.xlu1 %v1836_v59, %s6246_s10  ;;  %1803 = vrot.lane.b32.xlu0 %v1796_v48, %s6245_s28  ;;  %v1920_v7 = vmul.f32 %v7222_v19, %v7474_v6  ;;  %v1869_v47 = vmul.f32 %v7234_v57, %v1865_v11  ;;  %v1873_v24 = vmul.f32 %v7246_v1, %v1865_v11  ;;  %v1885_v53 = vrot.slane %v1867_v31, 1  ;;  %s7701_s28 = sld [smem:[#allocation2 + $0x35]] }
 0x163   : > { %v705_v0 = vadd.f32 %v698_v16, %v589_v45  ;;  %v1884_v26 = vsel %vm901_vm0, %v1882_v61, %v1883_v46  ;;  %v1845_v30 = vsel %vm901_vm0, %v1843_v25, %v1844_v9  ;;  %v1886_v52 = vrot.slane %v1871_v3, 1 }
 0x164   : > { %v1162_v18 = vpop.permute.xlu1 %1161  ;;  %v7485_v42 = vpop.permute.xlu0 %1118  ;;  %v1890_v48 = vsel %vm901_vm0, %v1888_v22, %v1889_v23  ;;  %v1932_v11 = vrot.slane %v1916_v28, 1  ;;  %v1933_v39 = vrot.slane %v1920_v7, 1  ;;  %v1892_v58 = vrot.slane %v1873_v24, 1 }
 0x165   : > { %11169 = vst [vmem:[#allocation31_spill] sm:$0xff] %v7485_v42  ;;  %v820_v54 = vadd.f32 %v813_v21, %v705_v0  ;;  %v1887_v61 = vsel %vm901_vm0, %v1885_v53, %v1886_v52  ;;  %v1922_v45 = vmul.f32 %v7297_v15, %v7474_v6  ;;  %v1917_v46 = vmul.f32 %v7154_v41, %v7474_v6 }
 0x166   : > { %1850 = vrot.lane.b32.xlu1 %v1842_v62, %s6246_s10  ;;  %1848 = vrot.lane.b32.xlu0 %v1839_v29, %s6246_s10  ;;  %v1891_v62 = vrot.slane %v1869_v47, 1  ;;  %v1964_v29 = vstv %s7478_s11  ;;  %v1934_v21 = vsel %vm901_vm0, %v1932_v11, %v1933_v39  ;;  %v1919_v28 = vmul.f32 %v7234_v57, %v7474_v6  ;;  %s7839_s11 = sld [smem:[#allocation2 + $0x38]] }
 0x167   : > { %v981_v38 = vadd.f32 %v7281_v43, %v820_v54  ;;  %v1918_v43 = vmul.f32 %v7277_v8, %v7474_v6  ;;  %v1965_v3 = vmul.f32 %v7217_v40, %v1964_v29  ;;  %v1969_v0 = vmul.f32 %v7222_v19, %v1964_v29 }
 0x168   : > { %v1166_v27 = vpop.permute.xlu1 %1165  ;;  %v1164_v59 = vpop.permute.xlu0 %1163  ;;  %v1893_v31 = vsel %vm901_vm0, %v1891_v62, %v1892_v58  ;;  %v1923_v7 = vmul.f32 %v7246_v1, %v7474_v6  ;;  %v1939_v47 = vrot.slane %v1922_v45, 1  ;;  %v1935_v24 = vrot.slane %v1917_v46, 1 }
 0x169   : > { %v1170_v2 = vsel %vm1169_vm11, %v1162_v18, %v1164_v59  ;;  %v1171_v56 = vsel %vm1169_vm11, %v1164_v59, %v1166_v27  ;;  %v1938_v23 = vrot.slane %v1918_v43, 1  ;;  %v1971_v53 = vmul.f32 %v7297_v15, %v1964_v29 }
 0x16a   : > { %v7501_v44 = vadd.f32 %v1170_v2, %v981_v38  ;;  %v7504_v16 = vadd.f32 %v1171_v56, %v7328_v34  ;;  %1894 = vrot.lane.b32.xlu1 %v1884_v26, %s6247_s17  ;;  %1852 = vrot.lane.b32.xlu0 %v1845_v30, %s6246_s10  ;;  %v1921_v34 = vmul.f32 %v7159_v13, %v7474_v6  ;;  %v1981_v6 = vrot.slane %v1965_v3, 1  ;;  %s7797_s10 = sld [smem:[#allocation2 + $0x37]] }
 0x16b   : > { %v1967_v26 = vmul.f32 %v7277_v8, %v1964_v29  ;;  %v1966_v52 = vmul.f32 %v7154_v41, %v1964_v29  ;;  %v1970_v38 = vmul.f32 %v7159_v13, %v1964_v29  ;;  %v1941_v59 = vrot.slane %v1919_v28, 1 }
 0x16c   : > { %v7518_v25 = vpop.permute.xlu1 %1211  ;;  %v7520_v9 = vpop.permute.xlu0 %1167  ;;  %v1936_v54 = vrot.slane %v1921_v34, 1  ;;  %v1940_v11 = vsel %vm901_vm0, %v1938_v23, %v1939_v47  ;;  %v1988_v58 = vrot.slane %v1971_v53, 1  ;;  %v2013_v45 = vstv %s7523_s18  ;;  %s7887_s18 = sld [smem:[#allocation2 + $0x3a]] }
 0x16d   : > { %11170 = vst [vmem:[#allocation28_spill] sm:$0xff] %v7518_v25  ;;  %11171 = vst [vmem:[#allocation30_spill] sm:$0xff] %v7520_v9  ;;  %v1172_v22 = vsel %vm1169_vm11, %v1166_v27, %v7520_v9  ;;  %v1982_v27 = vrot.slane %v1969_v0, 1  ;;  %v1987_v2 = vrot.slane %v1967_v26, 1  ;;  %v1984_v43 = vrot.slane %v1966_v52, 1 }
 0x16e   : > { %v7531_v18 = vadd.f32 %v1172_v22, %v7330_v51  ;;  %1898 = vrot.lane.b32.xlu1 %v1890_v48, %s6247_s17  ;;  %1896 = vrot.lane.b32.xlu0 %v1887_v61, %s6247_s17  ;;  %v1942_v48 = vrot.slane %v1923_v7, 1  ;;  %v1937_v39 = vsel %vm901_vm0, %v1935_v24, %v1936_v54  ;;  %v1985_v61 = vrot.slane %v1970_v38, 1 }
 0x16f   : > { %v1983_v46 = vsel %vm901_vm0, %v1981_v6, %v1982_v27  ;;  %v2018_v22 = vmul.f32 %v7222_v19, %v2013_v45  ;;  %v1972_v3 = vmul.f32 %v7246_v1, %v1964_v29  ;;  %v1989_v28 = vsel %vm901_vm0, %v1987_v2, %v1988_v58 }
 0x170   : > { %v7540_v30 = vpop.permute.xlu1 %1215  ;;  %v7542_v51 = vpop.permute.xlu0 %1213  ;;  %v1943_v34 = vsel %vm901_vm0, %v1941_v59, %v1942_v48  ;;  %v1986_v7 = vsel %vm901_vm0, %v1984_v43, %v1985_v61  ;;  %v2016_v47 = vmul.f32 %v7277_v8, %v2013_v45  ;;  %v2020_v24 = vmul.f32 %v7297_v15, %v2013_v45 }
 0x171   : > { %11172 = vst [vmem:[#allocation44_spill] sm:$0xff] %v7540_v30  ;;  %11173 = vst [vmem:[#allocation20_spill] sm:$0xff] %v7542_v51  ;;  %v2015_v53 = vmul.f32 %v7154_v41, %v2013_v45  ;;  %v7572_v52 = vstv %s7547_s21  ;;  %v2019_v6 = vmul.f32 %v7159_v13, %v2013_v45  ;;  %v2031_v59 = vrot.slane %v2018_v22, 1  ;;  %s6251_s21 = smov 111  }
 0x172   : > { %1944 = vrot.lane.b32.xlu1 %v1934_v21, %s6247_s17  ;;  %1900 = vrot.lane.b32.xlu0 %v1893_v31, %s6247_s17  ;;  %v2014_v21 = vmul.f32 %v7217_v40, %v2013_v45  ;;  %v1968_v31 = vmul.f32 %v7234_v57, %v1964_v29  ;;  %v2066_v58 = vmul.f32 %v7222_v19, %v7572_v52  ;;  %vm11017_vm9 = vcmask 1031168  }
 0x173   : > { %v2017_v43 = vmul.f32 %v7234_v57, %v2013_v45  ;;  %v2021_v61 = vmul.f32 %v7246_v1, %v2013_v45 }
 0x174   : > { %v1261_v56 = vpop.permute.xlu1 %1260  ;;  %v7553_v62 = vpop.permute.xlu0 %1217  ;;  %v2030_v27 = vrot.slane %v2014_v21, 1  ;;  %v1990_v48 = vrot.slane %v1968_v31, 1  ;;  %v2034_v21 = vrot.slane %v2019_v6, 1  ;;  %v2063_v6 = vmul.f32 %v7154_v41, %v7572_v52 }
 0x175   : > { %11174 = vst [vmem:[#allocation21_spill] sm:$0xff] %v7553_v62 }
 0x176   : > { %1948 = vrot.lane.b32.xlu1 %v1940_v11, %s6247_s17  ;;  %1946 = vrot.lane.b32.xlu0 %v1937_v39, %s6247_s17  ;;  %v1991_v11 = vrot.slane %v1972_v3, 1  ;;  %v2032_v22 = vsel %vm901_vm0, %v2030_v27, %v2031_v59  ;;  %v2067_v27 = vmul.f32 %v7159_v13, %v7572_v52  ;;  %v2111_v59 = vld [vmem:[%s6339_s29 + $0x10] sm:$0xfc]  ;;  %v2065_v13 = vmul.f32 %v7234_v57, %v7572_v52 }
 0x178   : > { %v1265_v0 = vpop.permute.xlu1 %1264  ;;  %v1263_v23 = vpop.permute.xlu0 %1262  ;;  %v1992_v19 = vsel %vm901_vm0, %v1990_v48, %v1991_v11  ;;  %v2114_v48 = vld [vmem:[%s6339_s29 + $0x30] sm:$0x3]  ;;  %v6153_v11 = vld [vmem:[%s6339_s29] sm:$0xff] }
 0x179   : > { %v1269_v54 = vsel %vm1268_vm12, %v1261_v56, %v1263_v23  ;;  %v1270_v26 = vsel %vm1268_vm12, %v1263_v23, %v1265_v0  ;;  %v2036_v56 = vrot.slane %v2016_v47, 1  ;;  %v2040_v23 = vrot.slane %v2021_v61, 1 }
 0x17a   : > { %v7577_v29 = vadd.f32 %v1269_v54, %v7435_v4  ;;  %v7580_v38 = vadd.f32 %v1270_v26, %v7437_v60  ;;  %1993 = vrot.lane.b32.xlu1 %v1983_v46, %s6247_s17  ;;  %1950 = vrot.lane.b32.xlu0 %v1943_v34, %s6247_s17  ;;  %v2062_v4 = vmul.f32 %v7217_v40, %v7572_v52  ;;  %v2037_v34 = vrot.slane %v2020_v24, 1  ;;  %v2112_v54 = vld [vmem:[%s6339_s29 + $0x20] sm:$0x3] }
 0x17b   : > { %v2033_v40 = vrot.slane %v2015_v53, 1  ;;  %v2064_v26 = vmul.f32 %v7277_v8, %v7572_v52  ;;  %v2068_v53 = vmul.f32 %v7297_v15, %v7572_v52 }
 0x17c   : > { %v7585_v39 = vpop.permute.xlu1 %1308  ;;  %v1267_v2 = vpop.permute.xlu0 %1266  ;;  %v2078_v45 = vrot.slane %v2062_v4, 1  ;;  %v2038_v47 = vsel %vm901_vm0, %v2036_v56, %v2037_v34  ;;  %v11176_v4 = vld [vmem:[#allocation5_spill] sm:$0xff] }
 0x17d   : > { %v1271_v60 = vsel %vm1268_vm12, %v1265_v0, %v1267_v2  ;;  %v2079_v0 = vrot.slane %v2066_v58, 1  ;;  %v2035_v24 = vsel %vm901_vm0, %v2033_v40, %v2034_v21  ;;  %v11175_v2 = vld [vmem:[#allocation46_spill] sm:$0xff] }
 0x17e   : > { %v7595_v46 = vadd.f32 %v1271_v60, %v7447_v20  ;;  %1997 = vrot.lane.b32.xlu1 %v1989_v28, %s6247_s17  ;;  %1995 = vrot.lane.b32.xlu0 %v1986_v7, %s6247_s17  ;;  %v2039_v20 = vrot.slane %v2017_v43, 1  ;;  %v2109_v28 = vld [vmem:[%s6339_s29] sm:$0xfc]  ;;  %v2116_v7 = vstv %s7574_s22  ;;  %v247_v56 = vmul.f32 %v6153_v11, %v11175_v2  ;;  %v11177_v60 = vld [vmem:[#allocation6_spill] sm:$0xff]  ;;  %s6252_s22 = smov 107  }
 0x17f   : > { %v322_v8 = vsel %vm11035_vm2, %v11177_v60, %v11176_v4  ;;  %v2117_v15 = vmul.f32 %v2116_v7, %v2109_v28  ;;  %v2080_v61 = vsel %vm901_vm0, %v2078_v45, %v2079_v0  ;;  %v2120_v34 = vmul.f32 %v2116_v7, %v2112_v54  ;;  %v2110_v40 = vld [vmem:[%s6339_s29 + $0x8] sm:$0xfc]  ;;  %v2113_v21 = vld [vmem:[%s6339_s29 + $0x28] sm:$0x3]  ;;  %v7662_v60 = vld [vmem:[%s6339_s29] sm:$0xfc] }
 0x180   : > { %v7601_v31 = vpop.permute.xlu1 %1312  ;;  %v7603_v3 = vpop.permute.xlu0 %1310  ;;  %v2041_v41 = vsel %vm901_vm0, %v2039_v20, %v2040_v23  ;;  %v2122_v45 = vmul.f32 %v2116_v7, %v2114_v48  ;;  %v2084_v0 = vrot.slane %v2064_v26, 1  ;;  %v2085_v20 = vrot.slane %v2068_v53, 1 }
 0x181   : > { %v2081_v23 = vrot.slane %v2063_v6, 1  ;;  %v2082_v28 = vrot.slane %v2067_v27, 1  ;;  %v2121_v11 = vmul.f32 %v2116_v7, %v2113_v21  ;;  %v2131_v53 = vrot.slane %v2120_v34, 2  ;;  %v7653_v27 = vld [vmem:[%s6339_s29 + $0x8] sm:$0xfc] }
 0x182   : > { %2042 = vrot.lane.b32.xlu1 %v2032_v22, %s6248_s24  ;;  %1999 = vrot.lane.b32.xlu0 %v1992_v19, %s6247_s17  ;;  %v2069_v22 = vmul.f32 %v7246_v1, %v7572_v52  ;;  %v2119_v19 = vmul.f32 %v2116_v7, %v2111_v59  ;;  %v329_v1 = vadd.f32 %v322_v8, %v247_v56  ;;  %v11179_v52 = vld [vmem:[#allocation12_spill] sm:$0xff]  ;;  %v2087_v6 = vrot.slane %v2065_v13, 1  ;;  %v7656_v59 = vld [vmem:[%s6339_s29 + $0x28] sm:$0x3]  ;;  %v11180_v13 = vld [vmem:[#allocation25_spill] sm:$0xff]  ;;  %s7864_s17 = sld [smem:[#allocation2 + $0x39]] }
 0x183   : > { %v437_v26 = vsel %vm11021_vm3, %v11179_v52, %v6555_v10  ;;  %v2137_v56 = vrot.slane %v2122_v45, 2  ;;  %v2165_v4 = vstv %s7612_s26  ;;  %v2086_v10 = vsel %vm901_vm0, %v2084_v0, %v2085_v20  ;;  %v7670_v34 = vld [vmem:[%s6339_s29 + $0x18] sm:$0xfc]  ;;  %v7683_v0 = vld [vmem:[%s6339_s29 + $0x10] sm:$0xfc]  ;;  %s7958_s26 = sld [smem:[#allocation2 + $0x3c]] }
 0x184   : > { %v7629_v58 = vpop.permute.xlu1 %1357  ;;  %v7631_v43 = vpop.permute.xlu0 %1314  ;;  %v2088_v48 = vrot.slane %v2069_v22, 1  ;;  %v2083_v8 = vsel %vm901_vm0, %v2081_v23, %v2082_v28  ;;  %v2134_v45 = vrot.slane %v2121_v11, 2  ;;  %v7686_v20 = vld [vmem:[%s6339_s29 + $0x30] sm:$0x3]  ;;  %v2167_v23 = vmul.f32 %v2165_v4, %v7653_v27 }
 0x185   : > { %11178 = vst [vmem:[#allocation23_spill] sm:$0xff] %v7631_v43  ;;  %v2171_v28 = vmul.f32 %v2165_v4, %v7656_v59  ;;  %v2214_v52 = vstv %s7639_s27  ;;  %v2172_v62 = vmul.f32 %v2165_v4, %v7686_v20  ;;  %s5999_s27 = sld [smem:[#allocation2 + $0x3d]]  ;;  %vm2837_vm3 = vcmask 687104  }
 0x186   : > { %2046 = vrot.lane.b32.xlu1 %v2038_v47, %s6248_s24  ;;  %2044 = vrot.lane.b32.xlu0 %v2035_v24, %s6248_s24  ;;  %v2130_v47 = vrot.slane %v2117_v15, 2  ;;  %v2118_v24 = vmul.f32 %v2116_v7, %v2110_v40  ;;  %v2136_v7 = vrot.slane %v2119_v19, 2  ;;  %v7667_v15 = vld [vmem:[%s6339_s29 + $0x20] sm:$0x3]  ;;  %v553_v40 = vsel %vm11014_vm5, %v11180_v13, %v11139_v35 }
 0x187   : > { %v2170_v35 = vmul.f32 %v2165_v4, %v7667_v15  ;;  %v2089_v13 = vsel %vm901_vm0, %v2087_v6, %v2088_v48  ;;  %v2216_v25 = vmul.f32 %v2214_v52, %v7653_v27  ;;  %v2185_v48 = vrot.slane %v2167_v23, 2 }
 0x188   : > { %v7645_v57 = vpop.permute.xlu1 %1361  ;;  %v7647_v54 = vpop.permute.xlu0 %1359  ;;  %v2133_v19 = vrot.slane %v2118_v24, 2  ;;  %v2169_v24 = vmul.f32 %v2165_v4, %v7670_v34  ;;  %v2215_v51 = vmul.f32 %v2214_v52, %v7662_v60  ;;  %v2219_v32 = vmul.f32 %v2214_v52, %v7667_v15 }
 0x189   : > { %v2218_v23 = vmul.f32 %v2214_v52, %v7670_v34  ;;  %vm1902_vm0 = vcmask 400384   ;;  %vm2447_vm5 = vcmask 875520  }
 0x18a   : > { %2090 = vrot.lane.b32.xlu1 %v2080_v61, %s6248_s24  ;;  %2048 = vrot.lane.b32.xlu0 %v2041_v41, %s6248_s24  ;;  %v7673_v61 = vld [vmem:[%s6339_s29 + $0x38] sm:$0x3]  ;;  %v444_v41 = vadd.f32 %v437_v26, %v329_v1  ;;  %v2166_v1 = vmul.f32 %v2165_v4, %v7662_v60  ;;  %v2132_v26 = vsel %vm2129_vm13, %v2130_v47, %v2131_v53 }
 0x18b   : > { %v2173_v11 = vmul.f32 %v2165_v4, %v7673_v61  ;;  %v2220_v47 = vmul.f32 %v2214_v52, %v7656_v59  ;;  %v2138_v53 = vsel %vm2129_vm13, %v2136_v7, %v2137_v56  ;;  %v2135_v6 = vsel %vm2129_vm13, %v2133_v19, %v2134_v45 }
 0x18c   : > { %v7678_v21 = vpop.permute.xlu1 %1406  ;;  %v7680_v22 = vpop.permute.xlu0 %1363  ;;  %v560_v30 = vadd.f32 %v553_v40, %v444_v41  ;;  %v2183_v41 = vrot.slane %v2170_v35, 2  ;;  %v2191_v40 = vrot.slane %v2169_v24, 2  ;;  %v2234_v19 = vrot.slane %v2216_v25, 2  ;;  %v11187_v35 = vld [vmem:[#allocation54_spill] sm:$0xff] }
 0x18d   : > { %11181 = vst [vmem:[#allocation22_spill] sm:$0xff] %v7678_v21  ;;  %11182 = vst [vmem:[#allocation36_spill] sm:$0xff] %v7680_v22  ;;  %v2168_v21 = vmul.f32 %v2165_v4, %v7683_v0  ;;  %v2186_v4 = vrot.slane %v2171_v28, 2  ;;  %v2235_v45 = vrot.slane %v2220_v47, 2  ;;  %v2222_v28 = vmul.f32 %v2214_v52, %v7673_v61 }
 0x18e   : > { %2094 = vrot.lane.b32.xlu1 %v2086_v10, %s6248_s24  ;;  %2092 = vrot.lane.b32.xlu0 %v2083_v8, %s6248_s24  ;;  %v11183_v10 = vld [vmem:[#allocation41_spill] sm:$0xff]  ;;  %v2221_v24 = vmul.f32 %v2214_v52, %v7686_v20 }
 0x18f   : > { %v669_v8 = vsel %vm11057_vm6, %v11183_v10, %v11142_v49  ;;  %v2182_v49 = vrot.slane %v2166_v1, 2  ;;  %v2192_v10 = vrot.slane %v2173_v11, 2  ;;  %v2187_v25 = vsel %vm2129_vm13, %v2185_v48, %v2186_v4 }
 0x190   : > { %v7706_v9 = vpop.permute.xlu1 %1410  ;;  %v7708_v14 = vpop.permute.xlu0 %1408  ;;  %v676_v1 = vadd.f32 %v669_v8, %v560_v30  ;;  %v2232_v8 = vrot.slane %v2219_v32, 2  ;;  %v2241_v17 = vrot.slane %v2222_v28, 2 }
 0x191   : > { %11184 = vst [vmem:[#allocation37_spill] sm:$0xff] %v7706_v9  ;;  %11185 = vst [vmem:[#allocation39_spill] sm:$0xff] %v7708_v14  ;;  %v2188_v9 = vrot.slane %v2168_v21, 2  ;;  %v2189_v14 = vrot.slane %v2172_v62, 2  ;;  %v784_v21 = vsel %vm11053_vm7, %v11187_v35, %v6987_v36  ;;  %v2217_v62 = vmul.f32 %v2214_v52, %v7683_v0 }
 0x192   : > { %2139 = vrot.lane.b32.xlu1 %v2132_v26, %s6249_s4  ;;  %2096 = vrot.lane.b32.xlu0 %v2089_v13, %s6248_s24  ;;  %v2184_v11 = vsel %vm2129_vm13, %v2182_v49, %v2183_v41  ;;  %v2193_v26 = vsel %vm2129_vm13, %v2191_v40, %v2192_v10  ;;  %v2231_v13 = vrot.slane %v2215_v51, 2  ;;  %v2262_v36 = vstv %s7701_s28  ;;  %s7933_s24 = sld [smem:[#allocation2 + $0x3b]] }
 0x193   : > { %v2190_v30 = vsel %vm2129_vm13, %v2188_v9, %v2189_v14  ;;  %v791_v47 = vadd.f32 %v784_v21, %v676_v1  ;;  %v2236_v52 = vsel %vm2129_vm13, %v2234_v19, %v2235_v45  ;;  %v2237_v4 = vrot.slane %v2217_v62, 2  ;;  %s8022_s28 = sld [smem:[#allocation2 + $0x3e]] }
 0x194   : > { %v1457_v7 = vpop.permute.xlu1 %1456  ;;  %v7718_v56 = vpop.permute.xlu0 %1412  ;;  %v2238_v49 = vrot.slane %v2221_v24, 2  ;;  %v7748_v9 = vmul.f32 %v2262_v36, %v7653_v27  ;;  %v1120_v51 = vsel %vm1072_vm10, %v7442_v55, %v7465_v63  ;;  %v1121_v41 = vsel %vm1072_vm10, %v7465_v63, %v7463_v5 }
 0x195   : > { %11186 = vst [vmem:[#allocation51_spill] sm:$0xff] %v7718_v56  ;;  %v924_v40 = vadd.f32 %v7240_v50, %v791_v47  ;;  %v2263_v19 = vmul.f32 %v2262_v36, %v7662_v60  ;;  %v2267_v45 = vmul.f32 %v2262_v36, %v7667_v15  ;;  %v1316_v55 = vsel %vm1268_vm12, %v7585_v39, %v7603_v3 }
 0x196   : > { %2143 = vrot.lane.b32.xlu1 %v2138_v53, %s6249_s4  ;;  %2141 = vrot.lane.b32.xlu0 %v2135_v6, %s6249_s4  ;;  %v2240_v53 = vrot.slane %v2218_v23, 2  ;;  %v1317_v63 = vsel %vm1268_vm12, %v7603_v3, %v7601_v31  ;;  %v2239_v50 = vsel %vm2129_vm13, %v2237_v4, %v2238_v49  ;;  %v2282_v39 = vrot.slane %v7748_v9, 2 }
 0x197   : > { %v1127_v28 = vadd.f32 %v1120_v51, %v924_v40  ;;  %v1122_v3 = vsel %vm1072_vm10, %v7463_v5, %v7485_v42  ;;  %v2266_v62 = vmul.f32 %v2262_v36, %v7670_v34  ;;  %v2270_v24 = vmul.f32 %v2262_v36, %v7673_v61 }
 0x198   : > { %v1461_v35 = vpop.permute.xlu1 %1460  ;;  %v1459_v56 = vpop.permute.xlu0 %1458  ;;  %v2269_v47 = vmul.f32 %v2262_v36, %v7686_v20  ;;  %vm1854_vm10 = vcmask 523264  }
 0x199   : > { %v1465_v6 = vsel %vm1464_vm14, %v1457_v7, %v1459_v56  ;;  %v1466_v48 = vsel %vm1464_vm14, %v1459_v56, %v1461_v35  ;;  %v2242_v56 = vsel %vm2129_vm13, %v2240_v53, %v2241_v17  ;;  %v1128_v17 = vadd.f32 %v1121_v41, %v7263_v12 }
 0x19a   : > { %v7740_v14 = vadd.f32 %v1465_v6, %v7577_v29  ;;  %v7743_v32 = vadd.f32 %v1466_v48, %v7580_v38  ;;  %2196 = vrot.lane.b32.xlu1 %v2187_v25, %s6249_s4  ;;  %2194 = vrot.lane.b32.xlu0 %v2184_v11, %s6249_s4  ;;  %v2233_v29 = vsel %vm2129_vm13, %v2231_v13, %v2232_v8  ;;  %v2279_v48 = vrot.slane %v2263_v19, 2 }
 0x19b   : > { %v2268_v38 = vmul.f32 %v2262_v36, %v7656_v59  ;;  %v1323_v25 = vadd.f32 %v1316_v55, %v1127_v28  ;;  %v1324_v12 = vadd.f32 %v1317_v63, %v1128_v17  ;;  %v2265_v13 = vmul.f32 %v2262_v36, %v7683_v0 }
 0x19c   : > { %v1505_v10 = vpop.permute.xlu1 %1504  ;;  %v1463_v7 = vpop.permute.xlu0 %1462  ;;  %v2288_v4 = vrot.slane %v2266_v62, 2  ;;  %v2289_v49 = vrot.slane %v2270_v24, 2 }
 0x19d   : > { %v1467_v23 = vsel %vm1464_vm14, %v1461_v35, %v1463_v7  ;;  %v2283_v21 = vrot.slane %v2268_v38, 2  ;;  %v1129_v35 = vadd.f32 %v1122_v3, %v7301_v33  ;;  %v2285_v19 = vrot.slane %v2265_v13, 2 }
 0x19e   : > { %v7772_v1 = vadd.f32 %v1467_v23, %v7595_v46  ;;  %2200 = vrot.lane.b32.xlu1 %v2193_v26, %s6249_s4  ;;  %2198 = vrot.lane.b32.xlu0 %v2190_v30, %s6249_s4  ;;  %v2311_v26 = vstv %s7735_s7  ;;  %v1318_v30 = vsel %vm1268_vm12, %v7601_v31, %v7631_v43  ;;  %v2280_v31 = vrot.slane %v2267_v45, 2  ;;  %s6253_s4 = smov 88   ;;  %s8043_s7 = sld [smem:[#allocation2 + $0x3f]] }
 0x19f   : > { %v2313_v9 = vmul.f32 %v2311_v26, %v7653_v27  ;;  %v1325_v36 = vadd.f32 %v1318_v30, %v1129_v35  ;;  %v2317_v41 = vmul.f32 %v2311_v26, %v7656_v59  ;;  %v2312_v38 = vmul.f32 %v2311_v26, %v7662_v60 }
 0x1a0   : > { %v1509_v11 = vpop.permute.xlu1 %1508  ;;  %v1507_v46 = vpop.permute.xlu0 %1506  ;;  %v2286_v45 = vrot.slane %v2269_v47, 2  ;;  %v2284_v55 = vsel %vm2129_vm13, %v2282_v39, %v2283_v21  ;;  %v2290_v63 = vsel %vm2129_vm13, %v2288_v4, %v2289_v49  ;;  %v2318_v13 = vmul.f32 %v2311_v26, %v7686_v20 }
 0x1a1   : > { %v1512_v8 = vsel %vm1464_vm14, %v1505_v10, %v1507_v46  ;;  %v1513_v5 = vsel %vm1464_vm14, %v1507_v46, %v1509_v11  ;;  %v2316_v10 = vmul.f32 %v2311_v26, %v7667_v15  ;;  %v2332_v62 = vrot.slane %v2317_v41, 2 }
 0x1a2   : > { %v7791_v53 = vadd.f32 %v1512_v8, %v1323_v25  ;;  %v7793_v6 = vadd.f32 %v1513_v5, %v1324_v12  ;;  %2245 = vrot.lane.b32.xlu1 %v2236_v52, %s6250_s8  ;;  %2243 = vrot.lane.b32.xlu0 %v2233_v29, %s6250_s8  ;;  %v1365_v52 = vsel %vm1268_vm12, %v7629_v58, %v7647_v54  ;;  %v2335_v41 = vrot.slane %v2318_v13, 2 }
 0x1a3   : > { %v1366_v29 = vsel %vm1268_vm12, %v7647_v54, %v7645_v57  ;;  %v2281_v58 = vsel %vm2129_vm13, %v2279_v48, %v2280_v31  ;;  %v2331_v54 = vrot.slane %v2313_v9, 2  ;;  %v1372_v23 = vadd.f32 %v1365_v52, %v7501_v44 }
 0x1a4   : > { %v1554_v51 = vpop.permute.xlu1 %1553  ;;  %v7800_v33 = vpop.permute.xlu0 %1510  ;;  %v1373_v28 = vadd.f32 %v1366_v29, %v7504_v16  ;;  %v2329_v24 = vrot.slane %v2316_v10, 2  ;;  %v2287_v44 = vsel %vm2129_vm13, %v2285_v19, %v2286_v45  ;;  %v2360_v16 = vstv %s7797_s10  ;;  %s8066_s10 = sld [smem:[#allocation2 + $0x40]] }
 0x1a5   : > { %11188 = vst [vmem:[#allocation38_spill] sm:$0xff] %v7800_v33  ;;  %v1514_v40 = vsel %vm1464_vm14, %v1509_v11, %v7800_v33  ;;  %v2315_v11 = vmul.f32 %v2311_v26, %v7670_v34  ;;  %v2314_v46 = vmul.f32 %v2311_v26, %v7683_v0  ;;  %v2333_v47 = vsel %vm2129_vm13, %v2331_v54, %v2332_v62 }
 0x1a6   : > { %v7813_v7 = vadd.f32 %v1514_v40, %v1325_v36  ;;  %2249 = vrot.lane.b32.xlu1 %v2242_v56, %s6250_s8  ;;  %2247 = vrot.lane.b32.xlu0 %v2239_v50, %s6250_s8  ;;  %v2328_v56 = vrot.slane %v2312_v38, 2  ;;  %v1367_v50 = vsel %vm1268_vm12, %v7645_v57, %v7680_v22  ;;  %v2319_v57 = vmul.f32 %v2311_v26, %v7673_v61 }
 0x1a7   : > { %v1374_v30 = vadd.f32 %v1367_v50, %v7531_v18  ;;  %v2362_v31 = vmul.f32 %v2360_v16, %v7653_v27  ;;  %v2366_v4 = vmul.f32 %v2360_v16, %v7656_v59  ;;  %v2361_v18 = vmul.f32 %v2360_v16, %v7662_v60 }
 0x1a8   : > { %v1558_v17 = vpop.permute.xlu1 %1557  ;;  %v1556_v3 = vpop.permute.xlu0 %1555  ;;  %v2330_v48 = vsel %vm2129_vm13, %v2328_v56, %v2329_v24  ;;  %v2365_v49 = vmul.f32 %v2360_v16, %v7667_v15  ;;  %v2337_v9 = vrot.slane %v2315_v11, 2  ;;  %v2338_v36 = vrot.slane %v2319_v57, 2 }
 0x1a9   : > { %v1561_v39 = vsel %vm1464_vm14, %v1554_v51, %v1556_v3  ;;  %v1562_v21 = vsel %vm1464_vm14, %v1556_v3, %v1558_v17  ;;  %v2334_v51 = vrot.slane %v2314_v46, 2  ;;  %v2380_v29 = vrot.slane %v2362_v31, 2 }
 0x1aa   : > { %v7827_v25 = vadd.f32 %v1561_v39, %v1372_v23  ;;  %v7829_v12 = vadd.f32 %v1562_v21, %v1373_v28  ;;  %2293 = vrot.lane.b32.xlu1 %v2284_v55, %s6250_s8  ;;  %2291 = vrot.lane.b32.xlu0 %v2281_v58, %s6250_s8  ;;  %v2381_v40 = vrot.slane %v2366_v4, 2  ;;  %v2364_v10 = vmul.f32 %v2360_v16, %v7670_v34 }
 0x1ab   : > { %v2368_v19 = vmul.f32 %v2360_v16, %v7673_v61  ;;  %v2377_v45 = vrot.slane %v2361_v18, 2  ;;  %v2378_v55 = vrot.slane %v2365_v49, 2  ;;  %v2363_v58 = vmul.f32 %v2360_v16, %v7683_v0 }
 0x1ac   : > { %v7842_v8 = vpop.permute.xlu1 %1602  ;;  %v7844_v5 = vpop.permute.xlu0 %1559  ;;  %v2339_v54 = vsel %vm2129_vm13, %v2337_v9, %v2338_v36  ;;  %v2336_v23 = vsel %vm2129_vm13, %v2334_v51, %v2335_v41  ;;  %v2410_v28 = vstv %s7839_s11  ;;  %v2382_v62 = vsel %vm2129_vm13, %v2380_v29, %v2381_v40  ;;  %s8111_s11 = sld [smem:[#allocation2 + $0x41]] }
 0x1ad   : > { %11189 = vst [vmem:[#allocation52_spill] sm:$0xff] %v7842_v8  ;;  %11190 = vst [vmem:[#allocation29_spill] sm:$0xff] %v7844_v5  ;;  %v1563_v35 = vsel %vm1464_vm14, %v1558_v17, %v7844_v5  ;;  %v2386_v56 = vrot.slane %v2364_v10, 2  ;;  %v2387_v50 = vrot.slane %v2368_v19, 2  ;;  %v2379_v39 = vsel %vm2129_vm13, %v2377_v45, %v2378_v55 }
 0x1ae   : > { %v7852_v26 = vadd.f32 %v1563_v35, %v1374_v30  ;;  %2297 = vrot.lane.b32.xlu1 %v2290_v63, %s6250_s8  ;;  %2295 = vrot.lane.b32.xlu0 %v2287_v44, %s6250_s8  ;;  %v2367_v63 = vmul.f32 %v2360_v16, %v7686_v20  ;;  %v2383_v21 = vrot.slane %v2363_v58, 2  ;;  %v2412_v44 = vmul.f32 %v2410_v28, %v7653_v27 }
 0x1af   : > { %v2416_v16 = vmul.f32 %v2410_v28, %v7656_v59  ;;  %v2411_v11 = vmul.f32 %v2410_v28, %v7662_v60  ;;  %v2415_v57 = vmul.f32 %v2410_v28, %v7667_v15  ;;  %v2414_v46 = vmul.f32 %v2410_v28, %v7670_v34 }
 0x1b0   : > { %v7858_v38 = vpop.permute.xlu1 %1606  ;;  %v7860_v52 = vpop.permute.xlu0 %1604  ;;  %v2384_v24 = vrot.slane %v2367_v63, 2  ;;  %v2413_v35 = vmul.f32 %v2410_v28, %v7683_v0  ;;  %v2388_v18 = vsel %vm2129_vm13, %v2386_v56, %v2387_v50  ;;  %v2458_v49 = vstv %s7864_s17  ;;  %s8154_s17 = sld [smem:[#allocation2 + $0x42]] }
 0x1b1   : > { %11191 = vst [vmem:[#allocation53_spill] sm:$0xff] %v7858_v38  ;;  %11192 = vst [vmem:[#allocation45_spill] sm:$0xff] %v7860_v52  ;;  %v2430_v41 = vrot.slane %v2412_v44, 2  ;;  %v2431_v29 = vrot.slane %v2416_v16, 2  ;;  %v2427_v40 = vrot.slane %v2411_v11, 2  ;;  %v2428_v10 = vrot.slane %v2415_v57, 2 }
 0x1b2   : > { %2342 = vrot.lane.b32.xlu1 %v2333_v47, %s6250_s8  ;;  %2340 = vrot.lane.b32.xlu0 %v2330_v48, %s6250_s8  ;;  %v2418_v47 = vmul.f32 %v2410_v28, %v7673_v61  ;;  %v2417_v48 = vmul.f32 %v2410_v28, %v7686_v20  ;;  %v2385_v51 = vsel %vm2129_vm13, %v2383_v21, %v2384_v24  ;;  %v2436_v19 = vrot.slane %v2414_v46, 2 }
 0x1b3   : > { %v2433_v63 = vrot.slane %v2413_v35, 2  ;;  %v2459_v28 = vmul.f32 %v2458_v49, %v7662_v60  ;;  %v2432_v56 = vsel %vm2129_vm13, %v2430_v41, %v2431_v29  ;;  %v2429_v50 = vsel %vm2129_vm13, %v2427_v40, %v2428_v10 }
 0x1b4   : > { %v1652_v17 = vpop.permute.xlu1 %1651  ;;  %v7873_v3 = vpop.permute.xlu0 %1608  ;;  %v2437_v58 = vrot.slane %v2418_v47, 2  ;;  %v2507_v11 = vstv %s7887_s18  ;;  %vm2050_vm12 = vcmask 367616   ;;  %s6254_s18 = smov 84  }
 0x1b5   : > { %11193 = vst [vmem:[#allocation5_spill] sm:$0xff] %v7873_v3  ;;  %v2508_v29 = vmul.f32 %v2507_v11, %v7662_v60  ;;  %v2512_v40 = vmul.f32 %v2507_v11, %v7667_v15 }
 0x1b6   : > { %2346 = vrot.lane.b32.xlu1 %v2339_v54, %s6250_s8  ;;  %2344 = vrot.lane.b32.xlu0 %v2336_v23, %s6250_s8  ;;  %v2434_v54 = vrot.slane %v2417_v48, 2  ;;  %v2464_v23 = vmul.f32 %v2458_v49, %v7656_v59  ;;  %v2438_v24 = vsel %vm2129_vm13, %v2436_v19, %v2437_v58  ;;  %v2462_v48 = vmul.f32 %v2458_v49, %v7670_v34 }
 0x1b8   : > { %v1656_v13 = vpop.permute.xlu1 %1655  ;;  %v1654_v30 = vpop.permute.xlu0 %1653  ;;  %v2435_v44 = vsel %vm2129_vm13, %v2433_v63, %v2434_v54  ;;  %v2479_v46 = vrot.slane %v2464_v23, 2 }
 0x1b9   : > { %v1660_v31 = vsel %vm1659_vm15, %v1652_v17, %v1654_v30  ;;  %v1661_v4 = vsel %vm1659_vm15, %v1654_v30, %v1656_v13 }
 0x1ba   : > { %v7894_v9 = vadd.f32 %v1660_v31, %v7740_v14  ;;  %v7897_v36 = vadd.f32 %v1661_v4, %v7743_v32  ;;  %2391 = vrot.lane.b32.xlu1 %v2382_v62, %s6251_s21  ;;  %2389 = vrot.lane.b32.xlu0 %v2379_v39, %s6251_s21  ;;  %v2460_v14 = vmul.f32 %v2458_v49, %v7653_v27 }
 0x1bb   : > { %v2463_v62 = vmul.f32 %v2458_v49, %v7667_v15  ;;  %v2466_v31 = vmul.f32 %v2458_v49, %v7673_v61  ;;  %v2461_v4 = vmul.f32 %v2458_v49, %v7683_v0 }
 0x1bc   : > { %v1700_v45 = vpop.permute.xlu1 %1699  ;;  %v1658_v55 = vpop.permute.xlu0 %1657  ;;  %v2478_v16 = vrot.slane %v2460_v14, 2 }
 0x1bd   : > { %v1662_v32 = vsel %vm1659_vm15, %v1656_v13, %v1658_v55  ;;  %v2475_v13 = vrot.slane %v2459_v28, 2  ;;  %v2476_v35 = vrot.slane %v2463_v62, 2  ;;  %v2484_v55 = vrot.slane %v2462_v48, 2 }
 0x1be   : > { %v7905_v17 = vadd.f32 %v1662_v32, %v7772_v1  ;;  %2395 = vrot.lane.b32.xlu1 %v2388_v18, %s6251_s21  ;;  %2393 = vrot.lane.b32.xlu0 %v2385_v51, %s6251_s21  ;;  %v2465_v18 = vmul.f32 %v2458_v49, %v7686_v20  ;;  %v2480_v49 = vsel %vm2129_vm13, %v2478_v16, %v2479_v46  ;;  %v2485_v58 = vrot.slane %v2466_v31, 2  ;;  %s8198_s21 = sld [smem:[#allocation2 + $0x43]] }
 0x1bf   : > { %v2481_v63 = vrot.slane %v2461_v4, 2  ;;  %v2524_v62 = vrot.slane %v2508_v29, 2 }
 0x1c0   : > { %v1704_v39 = vpop.permute.xlu1 %1703  ;;  %v1702_v21 = vpop.permute.xlu0 %1701  ;;  %v2482_v54 = vrot.slane %v2465_v18, 2 }
 0x1c1   : > { %v1707_v57 = vsel %vm1659_vm15, %v1700_v45, %v1702_v21  ;;  %v1708_v1 = vsel %vm1659_vm15, %v1702_v21, %v1704_v39  ;;  %v2477_v45 = vsel %vm2129_vm13, %v2475_v13, %v2476_v35  ;;  %v2515_v21 = vmul.f32 %v2507_v11, %v7673_v61 }
 0x1c2   : > { %v7916_v30 = vadd.f32 %v1707_v57, %v7791_v53  ;;  %v7919_v47 = vadd.f32 %v1708_v1, %v7793_v6  ;;  %2441 = vrot.lane.b32.xlu1 %v2432_v56, %s6252_s22  ;;  %2439 = vrot.lane.b32.xlu0 %v2429_v50, %s6252_s22  ;;  %v2509_v53 = vmul.f32 %v2507_v11, %v7653_v27  ;;  %v2525_v56 = vrot.slane %v2512_v40, 2 }
 0x1c3   : > { %v2513_v6 = vmul.f32 %v2507_v11, %v7656_v59  ;;  %v2514_v57 = vmul.f32 %v2507_v11, %v7686_v20  ;;  %v2486_v1 = vsel %vm2129_vm13, %v2484_v55, %v2485_v58  ;;  %v2483_v46 = vsel %vm2129_vm13, %v2481_v63, %v2482_v54 }
 0x1c4   : > { %v1749_v51 = vpop.permute.xlu1 %1748  ;;  %v7928_v41 = vpop.permute.xlu0 %1705  ;;  %v2527_v14 = vrot.slane %v2509_v53, 2  ;;  %v2526_v31 = vsel %vm2129_vm13, %v2524_v62, %v2525_v56  ;;  %v2534_v18 = vrot.slane %v2515_v21, 2 }
 0x1c5   : > { %11194 = vst [vmem:[#allocation6_spill] sm:$0xff] %v7928_v41  ;;  %v1709_v10 = vsel %vm1659_vm15, %v1704_v39, %v7928_v41  ;;  %v2528_v28 = vrot.slane %v2513_v6, 2 }
 0x1c6   : > { %v7938_v19 = vadd.f32 %v1709_v10, %v7813_v7  ;;  %2445 = vrot.lane.b32.xlu1 %v2438_v24, %s6252_s22  ;;  %2443 = vrot.lane.b32.xlu0 %v2435_v44, %s6252_s22  ;;  %v2511_v7 = vmul.f32 %v2507_v11, %v7670_v34  ;;  %v2510_v24 = vmul.f32 %v2507_v11, %v7683_v0 }
 0x1c7   : > { %v2529_v48 = vsel %vm2129_vm13, %v2527_v14, %v2528_v28 }
 0x1c8   : > { %v1753_v32 = vpop.permute.xlu1 %1752  ;;  %v1751_v23 = vpop.permute.xlu0 %1750  ;;  %v2533_v4 = vrot.slane %v2511_v7, 2  ;;  %v2530_v53 = vrot.slane %v2510_v24, 2 }
 0x1c9   : > { %v1756_v50 = vsel %vm1659_vm15, %v1749_v51, %v1751_v23  ;;  %v1757_v39 = vsel %vm1659_vm15, %v1751_v23, %v1753_v32  ;;  %v2531_v51 = vrot.slane %v2514_v57, 2 }
 0x1ca   : > { %v7950_v44 = vadd.f32 %v1756_v50, %v7827_v25  ;;  %v7953_v16 = vadd.f32 %v1757_v39, %v7829_v12  ;;  %2489 = vrot.lane.b32.xlu1 %v2480_v49, %s6252_s22  ;;  %2487 = vrot.lane.b32.xlu0 %v2477_v45, %s6252_s22  ;;  %v2556_v25 = vstv %s7933_s24  ;;  %v2535_v54 = vsel %vm2129_vm13, %v2533_v4, %v2534_v18  ;;  %s6006_s24 = sld [smem:[#allocation2 + $0x44]] }
 0x1cb   : > { %v2558_v6 = vmul.f32 %v2556_v25, %v7653_v27  ;;  %v2562_v29 = vmul.f32 %v2556_v25, %v7656_v59  ;;  %v2557_v40 = vmul.f32 %v2556_v25, %v7662_v60  ;;  %v2561_v10 = vmul.f32 %v2556_v25, %v7667_v15 }
 0x1cc   : > { %v7962_v13 = vpop.permute.xlu1 %1797  ;;  %v7964_v35 = vpop.permute.xlu0 %1754  ;;  %v2560_v45 = vmul.f32 %v2556_v25, %v7670_v34  ;;  %v2564_v55 = vmul.f32 %v2556_v25, %v7673_v61  ;;  %v2559_v58 = vmul.f32 %v2556_v25, %v7683_v0  ;;  %v2563_v63 = vmul.f32 %v2556_v25, %v7686_v20 }
 0x1cd   : > { %11195 = vst [vmem:[#allocation12_spill] sm:$0xff] %v7962_v13  ;;  %11196 = vst [vmem:[#allocation25_spill] sm:$0xff] %v7964_v35  ;;  %v1758_v12 = vsel %vm1659_vm15, %v1753_v32, %v7964_v35  ;;  %v2532_v14 = vsel %vm2129_vm13, %v2530_v53, %v2531_v51  ;;  %v2605_v32 = vstv %s7958_s26  ;;  %v2576_v23 = vrot.slane %v2558_v6, 2  ;;  %s8262_s26 = sld [smem:[#allocation2 + $0x45]] }
 0x1ce   : > { %v7972_v11 = vadd.f32 %v1758_v12, %v7852_v26  ;;  %2493 = vrot.lane.b32.xlu1 %v2486_v1, %s6252_s22  ;;  %2491 = vrot.lane.b32.xlu0 %v2483_v46, %s6252_s22  ;;  %v2577_v28 = vrot.slane %v2562_v29, 2  ;;  %v2573_v62 = vrot.slane %v2557_v40, 2  ;;  %v2574_v56 = vrot.slane %v2561_v10, 2 }
 0x1cf   : > { %v2582_v39 = vrot.slane %v2560_v45, 2  ;;  %v2583_v21 = vrot.slane %v2564_v55, 2  ;;  %v2579_v24 = vrot.slane %v2559_v58, 2  ;;  %v2580_v57 = vrot.slane %v2563_v63, 2 }
 0x1d0   : > { %v7980_v49 = vpop.permute.xlu1 %1801  ;;  %v7982_v26 = vpop.permute.xlu0 %1799  ;;  %v2607_v1 = vmul.f32 %v2605_v32, %v7653_v27  ;;  %v2611_v46 = vmul.f32 %v2605_v32, %v7656_v59  ;;  %v2606_v25 = vmul.f32 %v2605_v32, %v7662_v60  ;;  %v2610_v12 = vmul.f32 %v2605_v32, %v7667_v15 }
 0x1d1   : > { %11197 = vst [vmem:[#allocation41_spill] sm:$0xff] %v7980_v49  ;;  %11198 = vst [vmem:[#allocation54_spill] sm:$0xff] %v7982_v26  ;;  %v2584_v53 = vsel %vm2129_vm13, %v2582_v39, %v2583_v21  ;;  %v2581_v51 = vsel %vm2129_vm13, %v2579_v24, %v2580_v57  ;;  %v2653_v6 = vstv %s5999_s27  ;;  %v2609_v55 = vmul.f32 %v2605_v32, %v7670_v34  ;;  %s6008_s27 = sld [smem:[#allocation2 + $0x46]] }
 0x1d2   : > { %2538 = vrot.lane.b32.xlu1 %v2529_v48, %s6252_s22  ;;  %2536 = vrot.lane.b32.xlu0 %v2526_v31, %s6252_s22  ;;  %v2578_v48 = vsel %vm2129_vm13, %v2576_v23, %v2577_v28  ;;  %v2575_v31 = vsel %vm2129_vm13, %v2573_v62, %v2574_v56  ;;  %v2625_v29 = vrot.slane %v2607_v1, 2  ;;  %v2626_v40 = vrot.slane %v2611_v46, 2 }
 0x1d3   : > { %v2622_v10 = vrot.slane %v2606_v25, 2  ;;  %v2623_v45 = vrot.slane %v2610_v12, 2  ;;  %v2613_v58 = vmul.f32 %v2605_v32, %v7673_v61  ;;  %v2608_v63 = vmul.f32 %v2605_v32, %v7683_v0 }
 0x1d4   : > { %v7993_v7 = vpop.permute.xlu1 %1846  ;;  %v7995_v50 = vpop.permute.xlu0 %1803  ;;  %v2655_v28 = vmul.f32 %v2653_v6, %v7653_v27  ;;  %v2659_v62 = vmul.f32 %v2653_v6, %v7656_v59  ;;  %v2654_v56 = vmul.f32 %v2653_v6, %v7662_v60  ;;  %v2627_v39 = vsel %vm2129_vm13, %v2625_v29, %v2626_v40 }
 0x1d5   : > { %11199 = vst [vmem:[#allocation60_spill] sm:$0xff] %v7995_v50  ;;  %v2658_v21 = vmul.f32 %v2653_v6, %v7667_v15  ;;  %v2631_v24 = vrot.slane %v2609_v55, 2  ;;  %v2632_v57 = vrot.slane %v2613_v58, 2  ;;  %v2628_v1 = vrot.slane %v2608_v63, 2 }
 0x1d6   : > { %2542 = vrot.lane.b32.xlu1 %v2535_v54, %s6252_s22  ;;  %2540 = vrot.lane.b32.xlu0 %v2532_v14, %s6252_s22  ;;  %v2612_v54 = vmul.f32 %v2605_v32, %v7686_v20  ;;  %v2624_v32 = vsel %vm2129_vm13, %v2622_v10, %v2623_v45  ;;  %v2670_v41 = vrot.slane %v2654_v56, 2  ;;  %v2661_v40 = vmul.f32 %v2653_v6, %v7673_v61 }
 0x1d7   : > { %v2656_v10 = vmul.f32 %v2653_v6, %v7683_v0  ;;  %v2671_v58 = vrot.slane %v2658_v21, 2  ;;  %v2660_v63 = vmul.f32 %v2653_v6, %v7686_v20  ;;  %v3044_v49 = vstv %s8262_s26  ;;  %s8572_s26 = sld [smem:[#allocation2 + $0x4e]] }
 0x1d8   : > { %v8005_v4 = vpop.permute.xlu1 %1850  ;;  %v8007_v18 = vpop.permute.xlu0 %1848  ;;  %v2629_v46 = vrot.slane %v2612_v54, 2  ;;  %v2633_v54 = vsel %vm2129_vm13, %v2631_v24, %v2632_v57 }
 0x1d9   : > { %v2676_v24 = vrot.slane %v2656_v10, 2  ;;  %v2677_v57 = vrot.slane %v2660_v63, 2 }
 0x1da   : > { %2587 = vrot.lane.b32.xlu1 %v2578_v48, %s6252_s22  ;;  %2585 = vrot.lane.b32.xlu0 %v2575_v31, %s6252_s22  ;;  %v2673_v48 = vrot.slane %v2655_v28, 2  ;;  %v2674_v31 = vrot.slane %v2659_v62, 2  ;;  %v2702_v62 = vstv %s8022_s28  ;;  %s8304_s28 = sld [smem:[#allocation2 + $0x47]] }
 0x1db   : > { %v2709_v10 = vmul.f32 %v2702_v62, %v7686_v20 }
 0x1dc   : > { %v1895_v14 = vpop.permute.xlu1 %1894  ;;  %v8017_v23 = vpop.permute.xlu0 %1852  ;;  %v2675_v56 = vsel %vm2129_vm13, %v2673_v48, %v2674_v31  ;;  %v2706_v31 = vmul.f32 %v2702_v62, %v7670_v34 }
 0x1de   : > { %2591 = vrot.lane.b32.xlu1 %v2584_v53, %s6252_s22  ;;  %2589 = vrot.lane.b32.xlu0 %v2581_v51, %s6252_s22  ;;  %v2657_v53 = vmul.f32 %v2653_v6, %v7670_v34  ;;  %v2672_v6 = vsel %vm2129_vm13, %v2670_v41, %v2671_v58  ;;  %s6255_s22 = smov 69  }
 0x1e0   : > { %v1899_v25 = vpop.permute.xlu1 %1898  ;;  %v1897_v12 = vpop.permute.xlu0 %1896 }
 0x1e1   : > { %v1903_v51 = vsel %vm1902_vm0, %v1895_v14, %v1897_v12  ;;  %v1904_v29 = vsel %vm1902_vm0, %v1897_v12, %v1899_v25  ;;  %v2630_v14 = vsel %vm2129_vm13, %v2628_v1, %v2629_v46  ;;  %v2704_v1 = vmul.f32 %v2702_v62, %v7653_v27 }
 0x1e2   : > { %v8035_v45 = vadd.f32 %v1903_v51, %v7916_v30  ;;  %v8038_v55 = vadd.f32 %v1904_v29, %v7919_v47  ;;  %2636 = vrot.lane.b32.xlu1 %v2627_v39, %s6253_s4  ;;  %2634 = vrot.lane.b32.xlu0 %v2624_v32, %s6253_s4  ;;  %v2679_v39 = vrot.slane %v2657_v53, 2  ;;  %v2680_v32 = vrot.slane %v2661_v40, 2 }
 0x1e3   : > { %v2708_v46 = vmul.f32 %v2702_v62, %v7656_v59  ;;  %v2707_v12 = vmul.f32 %v2702_v62, %v7667_v15  ;;  %v2710_v53 = vmul.f32 %v2702_v62, %v7673_v61  ;;  %v2705_v51 = vmul.f32 %v2702_v62, %v7683_v0 }
 0x1e4   : > { %v1945_v28 = vpop.permute.xlu1 %1944  ;;  %v8047_v30 = vpop.permute.xlu0 %1900  ;;  %v2681_v40 = vsel %vm2129_vm13, %v2679_v39, %v2680_v32 }
 0x1e5   : > { %11200 = vst [vmem:[#allocation61_spill] sm:$0xff] %v8047_v30  ;;  %v1905_v47 = vsel %vm1902_vm0, %v1899_v25, %v8047_v30  ;;  %v2703_v25 = vmul.f32 %v2702_v62, %v7662_v60  ;;  %v2720_v30 = vrot.slane %v2707_v12, 2  ;;  %v2729_v32 = vrot.slane %v2710_v53, 2 }
 0x1e6   : > { %v8054_v21 = vadd.f32 %v1905_v47, %v7938_v19  ;;  %2640 = vrot.lane.b32.xlu1 %v2633_v54, %s6253_s4  ;;  %2638 = vrot.lane.b32.xlu0 %v2630_v14, %s6253_s4  ;;  %v2678_v54 = vsel %vm2129_vm13, %v2676_v24, %v2677_v57  ;;  %v2751_v14 = vstv %s8043_s7  ;;  %v2723_v47 = vrot.slane %v2708_v46, 2  ;;  %s8315_s7 = sld [smem:[#allocation2 + $0x48]] }
 0x1e7   : > { %v2757_v24 = vmul.f32 %v2751_v14, %v7656_v59  ;;  %v2756_v46 = vmul.f32 %v2751_v14, %v7667_v15  ;;  %v2758_v33 = vmul.f32 %v2751_v14, %v7686_v20 }
 0x1e8   : > { %v1949_v48 = vpop.permute.xlu1 %1948  ;;  %v1947_v19 = vpop.permute.xlu0 %1946 }
 0x1e9   : > { %v1952_v41 = vsel %vm1902_vm0, %v1945_v28, %v1947_v19  ;;  %v1953_v29 = vsel %vm1902_vm0, %v1947_v19, %v1949_v48  ;;  %v2722_v28 = vrot.slane %v2704_v1, 2  ;;  %v2719_v19 = vrot.slane %v2703_v25, 2 }
 0x1ea   : > { %v8073_v58 = vadd.f32 %v1952_v41, %v7950_v44  ;;  %v8076_v63 = vadd.f32 %v1953_v29, %v7953_v16  ;;  %2684 = vrot.lane.b32.xlu1 %v2675_v56, %s6253_s4  ;;  %2682 = vrot.lane.b32.xlu0 %v2672_v6, %s6253_s4  ;;  %v2728_v44 = vrot.slane %v2706_v31, 2  ;;  %v2725_v41 = vrot.slane %v2705_v51, 2 }
 0x1eb   : > { %v2726_v56 = vrot.slane %v2709_v10, 2  ;;  %v2753_v6 = vmul.f32 %v2751_v14, %v7653_v27  ;;  %v2752_v1 = vmul.f32 %v2751_v14, %v7662_v60  ;;  %v2724_v25 = vsel %vm2129_vm13, %v2722_v28, %v2723_v47 }
 0x1ec   : > { %v8082_v39 = vpop.permute.xlu1 %1993  ;;  %v8084_v62 = vpop.permute.xlu0 %1950  ;;  %v2721_v12 = vsel %vm2129_vm13, %v2719_v19, %v2720_v30  ;;  %v2759_v31 = vmul.f32 %v2751_v14, %v7673_v61  ;;  %v2800_v51 = vstv %s8066_s10  ;;  %v2730_v29 = vsel %vm2129_vm13, %v2728_v44, %v2729_v32  ;;  %s8357_s10 = sld [smem:[#allocation2 + $0x49]] }
 0x1ed   : > { %11201 = vst [vmem:[#allocation62_spill] sm:$0xff] %v8082_v39  ;;  %11202 = vst [vmem:[#allocation63_spill] sm:$0xff] %v8084_v62  ;;  %v1954_v16 = vsel %vm1902_vm0, %v1949_v48, %v8084_v62  ;;  %v2755_v48 = vmul.f32 %v2751_v14, %v7670_v34  ;;  %v2771_v10 = vrot.slane %v2753_v6, 2  ;;  %v2772_v30 = vrot.slane %v2757_v24, 2 }
 0x1ee   : > { %v8091_v57 = vadd.f32 %v1954_v16, %v7972_v11  ;;  %2688 = vrot.lane.b32.xlu1 %v2681_v40, %s6253_s4  ;;  %2686 = vrot.lane.b32.xlu0 %v2678_v54, %s6253_s4  ;;  %v2727_v40 = vsel %vm2129_vm13, %v2725_v41, %v2726_v56  ;;  %v2768_v54 = vrot.slane %v2752_v1, 2  ;;  %v2769_v28 = vrot.slane %v2756_v46, 2 }
 0x1ef   : > { %v2754_v47 = vmul.f32 %v2751_v14, %v7683_v0  ;;  %v2777_v19 = vrot.slane %v2755_v48, 2  ;;  %v2778_v16 = vrot.slane %v2759_v31, 2  ;;  %v2802_v44 = vmul.f32 %v2800_v51, %v7653_v27 }
 0x1f0   : > { %v8101_v53 = vpop.permute.xlu1 %1997  ;;  %v8103_v11 = vpop.permute.xlu0 %1995  ;;  %v2806_v56 = vmul.f32 %v2800_v51, %v7656_v59  ;;  %v2801_v6 = vmul.f32 %v2800_v51, %v7662_v60  ;;  %v1855_v24 = vsel %vm1854_vm10, %v7993_v7, %v8007_v18  ;;  %v1856_v1 = vsel %vm1854_vm10, %v8007_v18, %v8005_v4 }
 0x1f1   : > { %11203 = vst [vmem:[#allocation64_spill] sm:$0xff] %v8101_v53  ;;  %11204 = vst [vmem:[#allocation65_spill] sm:$0xff] %v8103_v11  ;;  %v2805_v46 = vmul.f32 %v2800_v51, %v7667_v15  ;;  %v2773_v27 = vsel %vm2129_vm13, %v2771_v10, %v2772_v30  ;;  %v2770_v59 = vsel %vm2129_vm13, %v2768_v54, %v2769_v28  ;;  %v2774_v14 = vrot.slane %v2754_v47, 2 }
 0x1f2   : > { %2733 = vrot.lane.b32.xlu1 %v2724_v25, %s6253_s4  ;;  %2731 = vrot.lane.b32.xlu0 %v2721_v12, %s6253_s4  ;;  %v2779_v60 = vsel %vm2129_vm13, %v2777_v19, %v2778_v16  ;;  %v2775_v25 = vrot.slane %v2758_v33, 2  ;;  %v2820_v7 = vrot.slane %v2802_v44, 2  ;;  %v1861_v12 = vadd.f32 %v1855_v24, %v7894_v9 }
 0x1f3   : > { %v1862_v18 = vadd.f32 %v1856_v1, %v7897_v36  ;;  %v2821_v31 = vrot.slane %v2806_v56, 2  ;;  %v2818_v54 = vrot.slane %v2805_v46, 2  ;;  %v2804_v9 = vmul.f32 %v2800_v51, %v7670_v34  ;;  %v8171_v1 = vld [vmem:[%s6339_s29] sm:$0xfc] }
 0x1f4   : > { %v2043_v32 = vpop.permute.xlu1 %2042  ;;  %v8115_v41 = vpop.permute.xlu0 %1999  ;;  %v2848_v36 = vstv %s8111_s11  ;;  %v2803_v47 = vmul.f32 %v2800_v51, %v7683_v0  ;;  %v2807_v19 = vmul.f32 %v2800_v51, %v7686_v20  ;;  %v8163_v20 = vld [vmem:[%s6339_s29 + $0x28] sm:$0x3]  ;;  %s6257_s11 = smov 50  }
 0x1f5   : > { %11205 = vst [vmem:[#allocation66_spill] sm:$0xff] %v8115_v41  ;;  %v2822_v56 = vsel %vm2129_vm13, %v2820_v7, %v2821_v31  ;;  %v2826_v24 = vrot.slane %v2804_v9, 2  ;;  %v2849_v46 = vmul.f32 %v8171_v1, %v2848_v36 }
 0x1f6   : > { %2737 = vrot.lane.b32.xlu1 %v2730_v29, %s6253_s4  ;;  %2735 = vrot.lane.b32.xlu0 %v2727_v40, %s6253_s4  ;;  %v2817_v29 = vrot.slane %v2801_v6, 2  ;;  %v1857_v40 = vsel %vm1854_vm10, %v8005_v4, %v8017_v23  ;;  %v2776_v4 = vsel %vm2129_vm13, %v2774_v14, %v2775_v25  ;;  %v2808_v23 = vmul.f32 %v2800_v51, %v7673_v61  ;;  %v8159_v61 = vld [vmem:[%s6339_s29 + $0x8] sm:$0xfc] }
 0x1f7   : > { %v1863_v16 = vadd.f32 %v1857_v40, %v7905_v17  ;;  %v2850_v0 = vmul.f32 %v8159_v61, %v2848_v36  ;;  %v2854_v17 = vmul.f32 %v8163_v20, %v2848_v36  ;;  %v2823_v25 = vrot.slane %v2803_v47, 2 }
 0x1f8   : > { %v2047_v15 = vpop.permute.xlu1 %2046  ;;  %v2045_v48 = vpop.permute.xlu0 %2044  ;;  %v2819_v6 = vsel %vm2129_vm13, %v2817_v29, %v2818_v54  ;;  %v2827_v14 = vrot.slane %v2808_v23, 2  ;;  %v2824_v7 = vrot.slane %v2807_v19, 2  ;;  %v8191_v29 = vld [vmem:[%s6339_s29 + $0x10] sm:$0xfc]  ;;  %vm2145_vm10 = vcmask 15360  }
 0x1f9   : > { %v2051_v10 = vsel %vm2050_vm12, %v2043_v32, %v2045_v48  ;;  %v2052_v30 = vsel %vm2050_vm12, %v2045_v48, %v2047_v15  ;;  %v8187_v48 = vld [vmem:[%s6339_s29 + $0x38] sm:$0x3]  ;;  %v2851_v40 = vmul.f32 %v8191_v29, %v2848_v36  ;;  %v2868_v54 = vrot.slane %v2850_v0, 2 }
 0x1fa   : > { %v8138_v33 = vadd.f32 %v2051_v10, %v1861_v12  ;;  %v8140_v28 = vadd.f32 %v2052_v30, %v1862_v18  ;;  %2782 = vrot.lane.b32.xlu1 %v2773_v27, %s6253_s4  ;;  %2780 = vrot.lane.b32.xlu0 %v2770_v59, %s6253_s4  ;;  %v8175_v27 = vld [vmem:[%s6339_s29 + $0x20] sm:$0x3]  ;;  %v8179_v12 = vld [vmem:[%s6339_s29 + $0x18] sm:$0xfc]  ;;  %v2856_v31 = vmul.f32 %v8187_v48, %v2848_v36  ;;  %v2869_v9 = vrot.slane %v2854_v17, 2 }
 0x1fb   : > { %v2853_v59 = vmul.f32 %v8175_v27, %v2848_v36  ;;  %v8195_v10 = vld [vmem:[%s6339_s29 + $0x30] sm:$0x3]  ;;  %v2828_v47 = vsel %vm2129_vm13, %v2826_v24, %v2827_v14  ;;  %v2825_v19 = vsel %vm2129_vm13, %v2823_v25, %v2824_v7  ;;  %v2871_v43 = vrot.slane %v2851_v40, 2 }
 0x1fc   : > { %v8151_v44 = vpop.permute.xlu1 %2090  ;;  %v2049_v32 = vpop.permute.xlu0 %2048  ;;  %v2855_v30 = vmul.f32 %v8195_v10, %v2848_v36 }
 0x1fd   : > { %v2053_v34 = vsel %vm2050_vm12, %v2047_v15, %v2049_v32  ;;  %v2866_v23 = vrot.slane %v2853_v59, 2 }
 0x1fe   : > { %v8166_v51 = vadd.f32 %v2053_v34, %v1863_v16  ;;  %2786 = vrot.lane.b32.xlu1 %v2779_v60, %s6253_s4  ;;  %2784 = vrot.lane.b32.xlu0 %v2776_v4, %s6253_s4  ;;  %v2852_v60 = vmul.f32 %v8179_v12, %v2848_v36  ;;  %v2865_v4 = vrot.slane %v2849_v46, 2  ;;  %v2875_v36 = vrot.slane %v2856_v31, 2  ;;  %s6256_s4 = smov 65  }
 0x1ff   : > { %v2872_v41 = vrot.slane %v2855_v30, 2 }
 0x200   : > { %v8182_v18 = vpop.permute.xlu1 %2094  ;;  %v8184_v15 = vpop.permute.xlu0 %2092  ;;  %v2874_v16 = vrot.slane %v2852_v60, 2  ;;  %v2867_v0 = vsel %vm2129_vm13, %v2865_v4, %v2866_v23 }
 0x201   : > { %v2873_v60 = vsel %vm2129_vm13, %v2871_v43, %v2872_v41  ;;  %v2947_v41 = vstv %s8198_s21  ;;  %s6258_s21 = smov 46  }
 0x202   : > { %2831 = vrot.lane.b32.xlu1 %v2822_v56, %s6254_s18  ;;  %2829 = vrot.lane.b32.xlu0 %v2819_v6, %s6254_s18  ;;  %v2898_v56 = vstv %s8154_s17  ;;  %v2870_v6 = vsel %vm2129_vm13, %v2868_v54, %v2869_v9  ;;  %v2876_v7 = vsel %vm2129_vm13, %v2874_v16, %v2875_v36  ;;  %s8414_s17 = sld [smem:[#allocation2 + $0x4a]] }
 0x203   : > { %v2900_v17 = vmul.f32 %v8159_v61, %v2898_v56  ;;  %v2904_v24 = vmul.f32 %v8163_v20, %v2898_v56  ;;  %v2899_v46 = vmul.f32 %v8171_v1, %v2898_v56  ;;  %v2903_v59 = vmul.f32 %v8175_v27, %v2898_v56 }
 0x204   : > { %v8202_v32 = vpop.permute.xlu1 %2139  ;;  %v8204_v34 = vpop.permute.xlu0 %2096  ;;  %v2902_v31 = vmul.f32 %v8179_v12, %v2898_v56  ;;  %v2906_v54 = vmul.f32 %v8187_v48, %v2898_v56  ;;  %v2901_v9 = vmul.f32 %v8191_v29, %v2898_v56  ;;  %v2905_v43 = vmul.f32 %v8195_v10, %v2898_v56 }
 0x205   : > { %11206 = vst [vmem:[#allocation67_spill] sm:$0xff] %v8204_v34  ;;  %v2915_v16 = vrot.slane %v2899_v46, 2  ;;  %v2916_v36 = vrot.slane %v2903_v59, 2 }
 0x206   : > { %2835 = vrot.lane.b32.xlu1 %v2828_v47, %s6254_s18  ;;  %2833 = vrot.lane.b32.xlu0 %v2825_v19, %s6254_s18  ;;  %v2918_v47 = vrot.slane %v2900_v17, 2  ;;  %v2919_v19 = vrot.slane %v2904_v24, 2  ;;  %v2924_v56 = vrot.slane %v2902_v31, 2  ;;  %v2925_v17 = vrot.slane %v2906_v54, 2  ;;  %s8468_s18 = sld [smem:[#allocation2 + $0x4b]] }
 0x207   : > { %v2921_v24 = vrot.slane %v2901_v9, 2  ;;  %v2922_v46 = vrot.slane %v2905_v43, 2  ;;  %v2996_v31 = vstv %s6006_s24  ;;  %v2951_v54 = vmul.f32 %v8179_v12, %v2947_v41  ;;  %s8529_s24 = sld [smem:[#allocation2 + $0x4d]] }
 0x208   : > { %v8213_v14 = vpop.permute.xlu1 %2143  ;;  %v2142_v25 = vpop.permute.xlu0 %2141  ;;  %v2920_v59 = vsel %vm2129_vm13, %v2918_v47, %v2919_v19  ;;  %v2955_v9 = vmul.f32 %v8187_v48, %v2947_v41  ;;  %v2950_v43 = vmul.f32 %v8191_v29, %v2947_v41  ;;  %v2954_v47 = vmul.f32 %v8195_v10, %v2947_v41 }
 0x209   : > { %11207 = vst [vmem:[#allocation68_spill] sm:$0xff] %v8213_v14  ;;  %v2146_v40 = vsel %vm2145_vm10, %v8202_v32, %v2142_v25  ;;  %v2147_v30 = vsel %vm2145_vm10, %v2142_v25, %v8213_v14 }
 0x20a   : > { %v8225_v4 = vadd.f32 %v2146_v40, %v8076_v63  ;;  %v8228_v23 = vadd.f32 %v2147_v30, %v8091_v57  ;;  %2879 = vrot.lane.b32.xlu1 %v2870_v6, %s6255_s22  ;;  %2877 = vrot.lane.b32.xlu0 %v2867_v0, %s6255_s22  ;;  %v2949_v57 = vmul.f32 %v8159_v61, %v2947_v41 }
 0x20b   : > { %v2953_v40 = vmul.f32 %v8163_v20, %v2947_v41  ;;  %v2948_v6 = vmul.f32 %v8171_v1, %v2947_v41  ;;  %v2952_v0 = vmul.f32 %v8175_v27, %v2947_v41  ;;  %v2917_v30 = vsel %vm2129_vm13, %v2915_v16, %v2916_v36 }
 0x20c   : > { %v8234_v25 = vpop.permute.xlu1 %2196  ;;  %v8236_v63 = vpop.permute.xlu0 %2194  ;;  %v2967_v14 = vrot.slane %v2949_v57, 2  ;;  %v2997_v41 = vmul.f32 %v8171_v1, %v2996_v31 }
 0x20d   : > { %11208 = vst [vmem:[#allocation69_spill] sm:$0xff] %v8234_v25  ;;  %11209 = vst [vmem:[#allocation70_spill] sm:$0xff] %v8236_v63  ;;  %v2968_v62 = vrot.slane %v2953_v40, 2  ;;  %v2964_v53 = vrot.slane %v2948_v6, 2  ;;  %v2965_v39 = vrot.slane %v2952_v0, 2  ;;  %v2998_v40 = vmul.f32 %v8159_v61, %v2996_v31 }
 0x20e   : > { %2883 = vrot.lane.b32.xlu1 %v2876_v7, %s6255_s22  ;;  %2881 = vrot.lane.b32.xlu0 %v2873_v60, %s6255_s22  ;;  %v2926_v7 = vsel %vm2129_vm13, %v2924_v56, %v2925_v17  ;;  %v2923_v60 = vsel %vm2129_vm13, %v2921_v24, %v2922_v46  ;;  %v3002_v6 = vmul.f32 %v8163_v20, %v2996_v31  ;;  %v2973_v56 = vrot.slane %v2951_v54, 2 }
 0x20f   : > { %v2969_v36 = vsel %vm2129_vm13, %v2967_v14, %v2968_v62  ;;  %v2966_v57 = vsel %vm2129_vm13, %v2964_v53, %v2965_v39  ;;  %v3001_v0 = vmul.f32 %v8175_v27, %v2996_v31  ;;  %v2974_v17 = vrot.slane %v2955_v9, 2 }
 0x210   : > { %v8246_v63 = vpop.permute.xlu1 %2200  ;;  %v8248_v25 = vpop.permute.xlu0 %2198  ;;  %v2970_v24 = vrot.slane %v2950_v43, 2  ;;  %v2971_v46 = vrot.slane %v2954_v47, 2  ;;  %v3000_v53 = vmul.f32 %v8179_v12, %v2996_v31  ;;  %v3004_v14 = vmul.f32 %v8187_v48, %v2996_v31 }
 0x211   : > { %11210 = vst [vmem:[#allocation71_spill] sm:$0xff] %v8246_v63  ;;  %11211 = vst [vmem:[#allocation72_spill] sm:$0xff] %v8248_v25  ;;  %v3013_v54 = vrot.slane %v2997_v41, 2  ;;  %v3014_v9 = vrot.slane %v3001_v0, 2  ;;  %v2975_v43 = vsel %vm2129_vm13, %v2973_v56, %v2974_v17  ;;  %v3050_v41 = vmul.f32 %v8163_v20, %v3044_v49 }
 0x212   : > { %2929 = vrot.lane.b32.xlu1 %v2920_v59, %s6255_s22  ;;  %2927 = vrot.lane.b32.xlu0 %v2917_v30, %s6255_s22  ;;  %v2999_v59 = vmul.f32 %v8191_v29, %v2996_v31  ;;  %v3003_v30 = vmul.f32 %v8195_v10, %v2996_v31  ;;  %v2972_v47 = vsel %vm2129_vm13, %v2970_v24, %v2971_v46  ;;  %v3022_v11 = vrot.slane %v3000_v53, 2 }
 0x213   : > { %v3023_v50 = vrot.slane %v3004_v14, 2  ;;  %v3045_v0 = vmul.f32 %v8171_v1, %v3044_v49  ;;  %v3049_v56 = vmul.f32 %v8175_v27, %v3044_v49  ;;  %v3048_v53 = vmul.f32 %v8179_v12, %v3044_v49 }
 0x214   : > { %v8258_v19 = vpop.permute.xlu1 %2245  ;;  %v8260_v16 = vpop.permute.xlu0 %2243  ;;  %v3019_v31 = vrot.slane %v2999_v59, 2  ;;  %v3020_v13 = vrot.slane %v3003_v30, 2  ;;  %v3052_v14 = vmul.f32 %v8187_v48, %v3044_v49  ;;  %v3047_v30 = vmul.f32 %v8191_v29, %v3044_v49 }
 0x215   : > { %v3024_v46 = vsel %vm2129_vm13, %v3022_v11, %v3023_v50  ;;  %v3070_v26 = vrot.slane %v3048_v53, 2  ;;  %v2252_v2 = vsel %vm11017_vm9, %v8260_v16, %v8258_v19 }
 0x216   : > { %2933 = vrot.lane.b32.xlu1 %v2926_v7, %s6255_s22  ;;  %2931 = vrot.lane.b32.xlu0 %v2923_v60, %s6255_s22  ;;  %v3016_v7 = vrot.slane %v2998_v40, 2  ;;  %v3017_v60 = vrot.slane %v3002_v6, 2  ;;  %v3093_v40 = vstv %s6008_s27  ;;  %v3046_v6 = vmul.f32 %v8159_v61, %v3044_v49  ;;  %s6259_s27 = smov 3  }
 0x217   : > { %v3021_v59 = vsel %vm2129_vm13, %v3019_v31, %v3020_v13  ;;  %v3099_v50 = vmul.f32 %v8163_v20, %v3093_v40  ;;  %v3094_v11 = vmul.f32 %v8171_v1, %v3093_v40 }
 0x218   : > { %v8272_v62 = vpop.permute.xlu1 %2249  ;;  %v8274_v39 = vpop.permute.xlu0 %2247  ;;  %v3064_v13 = vrot.slane %v3046_v6, 2 }
 0x219   : > { %v3114_v38 = vrot.slane %v3099_v50, 2  ;;  %v3110_v5 = vrot.slane %v3094_v11, 2 }
 0x21a   : > { %2978 = vrot.lane.b32.xlu1 %v2969_v36, %s6255_s22  ;;  %2976 = vrot.lane.b32.xlu0 %v2966_v57, %s6255_s22  ;;  %v3018_v36 = vsel %vm2129_vm13, %v3016_v7, %v3017_v60  ;;  %v3015_v57 = vsel %vm2129_vm13, %v3013_v54, %v3014_v9  ;;  %v3051_v7 = vmul.f32 %v8195_v10, %v3044_v49  ;;  %v3065_v9 = vrot.slane %v3050_v41, 2 }
 0x21b   : > { %v3095_v60 = vmul.f32 %v8159_v61, %v3093_v40  ;;  %v3098_v54 = vmul.f32 %v8175_v27, %v3093_v40 }
 0x21c   : > { %v8284_v63 = vpop.permute.xlu1 %2293  ;;  %v8286_v25 = vpop.permute.xlu0 %2291  ;;  %v3068_v35 = vrot.slane %v3051_v7, 2  ;;  %v3066_v41 = vsel %vm2129_vm13, %v3064_v13, %v3065_v9  ;;  %v3101_v7 = vmul.f32 %v8187_v48, %v3093_v40 }
 0x21d   : > { %v3113_v3 = vrot.slane %v3095_v60, 2  ;;  %v3111_v6 = vrot.slane %v3098_v54, 2  ;;  %v3096_v60 = vmul.f32 %v8191_v29, %v3093_v40  ;;  %v3100_v54 = vmul.f32 %v8195_v10, %v3093_v40 }
 0x21e   : > { %2982 = vrot.lane.b32.xlu1 %v2975_v43, %s6255_s22  ;;  %2980 = vrot.lane.b32.xlu0 %v2972_v47, %s6255_s22  ;;  %v3061_v43 = vrot.slane %v3045_v0, 2  ;;  %v3062_v47 = vrot.slane %v3049_v56, 2  ;;  %s8505_s22 = sld [smem:[#allocation2 + $0x4c]] }
 0x21f   : > { %v3115_v50 = vsel %vm2129_vm13, %v3113_v3, %v3114_v38  ;;  %v3112_v11 = vsel %vm2129_vm13, %v3110_v5, %v3111_v6  ;;  %v3120_v6 = vrot.slane %v3101_v7, 2 }
 0x220   : > { %v8297_v17 = vpop.permute.xlu1 %2297  ;;  %v8299_v24 = vpop.permute.xlu0 %2295  ;;  %v3063_v0 = vsel %vm2129_vm13, %v3061_v43, %v3062_v47 }
 0x221   : > { %11212 = vst [vmem:[#allocation73_spill] sm:$0xff] %v8297_v17 }
 0x222   : > { %3027 = vrot.lane.b32.xlu1 %v3018_v36, %s6256_s4  ;;  %3025 = vrot.lane.b32.xlu0 %v3015_v57, %s6256_s4  ;;  %v3071_v36 = vrot.slane %v3052_v14, 2  ;;  %v3067_v57 = vrot.slane %v3047_v30, 2  ;;  %v3143_v30 = vstv %s8304_s28  ;;  %s6260_s28 = smov 127  }
 0x223   : > { %v3149_v13 = vmul.f32 %v8163_v20, %v3143_v30  ;;  %v3144_v9 = vmul.f32 %v8171_v1, %v3143_v30  ;;  %v3148_v43 = vmul.f32 %v8175_v27, %v3143_v30  ;;  %v3147_v38 = vmul.f32 %v8179_v12, %v3143_v30 }
 0x224   : > { %v8317_v49 = vpop.permute.xlu1 %2342  ;;  %v8319_v31 = vpop.permute.xlu0 %2340  ;;  %v3072_v14 = vsel %vm2129_vm13, %v3070_v26, %v3071_v36  ;;  %v8341_v26 = vstv %s8315_s7  ;;  %v3151_v5 = vmul.f32 %v8187_v48, %v3143_v30  ;;  %v3146_v3 = vmul.f32 %v8191_v29, %v3143_v30  ;;  %s8652_s7 = sld [smem:[#allocation2 + $0x50]] }
 0x225   : > { %v3193_v8 = vmul.f32 %v8171_v1, %v8341_v26  ;;  %v3164_v7 = vrot.slane %v3149_v13, 2  ;;  %v3161_v52 = vrot.slane %v3148_v43, 2 }
 0x226   : > { %3031 = vrot.lane.b32.xlu1 %v3024_v46, %s6256_s4  ;;  %3029 = vrot.lane.b32.xlu0 %v3021_v59, %s6256_s4  ;;  %v3069_v46 = vsel %vm2129_vm13, %v3067_v57, %v3068_v35  ;;  %v3097_v59 = vmul.f32 %v8179_v12, %v3093_v40  ;;  %v3145_v35 = vmul.f32 %v8159_v61, %v3143_v30 }
 0x227   : > { %v3150_v40 = vmul.f32 %v8195_v10, %v3143_v30  ;;  %v3197_v30 = vmul.f32 %v8175_v27, %v8341_v26 }
 0x228   : > { %v8325_v56 = vpop.permute.xlu1 %2346  ;;  %v8327_v53 = vpop.permute.xlu0 %2344  ;;  %v3119_v57 = vrot.slane %v3097_v59, 2  ;;  %v3163_v59 = vrot.slane %v3145_v35, 2 }
 0x229   : > { %11213 = vst [vmem:[#allocation74_spill] sm:$0xff] %v8325_v56  ;;  %v3167_v37 = vrot.slane %v3150_v40, 2  ;;  %v3210_v43 = vrot.slane %v3197_v30, 2  ;;  %v2258_v40 = vadd.f32 %v2252_v2, %v8138_v33  ;;  %v2098_v33 = vsel %vm2050_vm12, %v8151_v44, %v8184_v15 }
 0x22a   : > { %3075 = vrot.lane.b32.xlu1 %v3066_v41, %s6256_s4  ;;  %3073 = vrot.lane.b32.xlu0 %v3063_v0, %s6256_s4  ;;  %v3116_v41 = vrot.slane %v3096_v60, 2  ;;  %v3194_v0 = vmul.f32 %v8159_v61, %v8341_v26  ;;  %v3160_v60 = vrot.slane %v3144_v9, 2  ;;  %v3209_v9 = vrot.slane %v3193_v8, 2 }
 0x22b   : > { %v2253_v8 = vsel %vm11017_vm9, %v8258_v19, %v8274_v39  ;;  %v3196_v19 = vmul.f32 %v8179_v12, %v8341_v26  ;;  %v3199_v30 = vmul.f32 %v8195_v10, %v8341_v26 }
 0x22c   : > { %v8347_v47 = vpop.permute.xlu1 %2391  ;;  %v8349_v36 = vpop.permute.xlu0 %2389  ;;  %v3212_v35 = vrot.slane %v3194_v0, 2 }
 0x22d   : > { %11214 = vst [vmem:[#allocation75_spill] sm:$0xff] %v8347_v47  ;;  %11215 = vst [vmem:[#allocation76_spill] sm:$0xff] %v8349_v36  ;;  %v3117_v36 = vrot.slane %v3100_v54, 2  ;;  %v3198_v47 = vmul.f32 %v8163_v20, %v8341_v26  ;;  %v3166_v54 = vrot.slane %v3146_v3, 2  ;;  %v3165_v3 = vsel %vm2129_vm13, %v3163_v59, %v3164_v7 }
 0x22e   : > { %3079 = vrot.lane.b32.xlu1 %v3072_v14, %s6256_s4  ;;  %3077 = vrot.lane.b32.xlu0 %v3069_v46, %s6256_s4  ;;  %v3169_v14 = vrot.slane %v3147_v38, 2  ;;  %v3170_v46 = vrot.slane %v3151_v5, 2  ;;  %v3121_v38 = vsel %vm2129_vm13, %v3119_v57, %v3120_v6  ;;  %v8391_v57 = vstv %s8357_s10  ;;  %s8623_s4 = sld [smem:[#allocation2 + $0x4f]] }
 0x22f   : > { %v3213_v13 = vrot.slane %v3198_v47, 2  ;;  %v3118_v5 = vsel %vm2129_vm13, %v3116_v41, %v3117_v36  ;;  %v2254_v47 = vsel %vm11017_vm9, %v8274_v39, %v8272_v62  ;;  %v3195_v62 = vmul.f32 %v8191_v29, %v8341_v26  ;;  %s6019_s10 = sld [smem:[#allocation2 + $0x51]] }
 0x230   : > { %v8367_v22 = vpop.permute.xlu1 %2395  ;;  %v8369_v42 = vpop.permute.xlu0 %2393  ;;  %v2259_v39 = vadd.f32 %v2253_v8, %v8140_v28  ;;  %v2260_v6 = vadd.f32 %v2254_v47, %v8166_v51  ;;  %v3242_v44 = vmul.f32 %v8159_v61, %v8391_v57  ;;  %v2299_v59 = vsel %vm11017_vm9, %v8286_v25, %v8284_v63 }
 0x231   : > { %11216 = vst [vmem:[#allocation77_spill] sm:$0xff] %v8367_v22  ;;  %11217 = vst [vmem:[#allocation78_spill] sm:$0xff] %v8369_v42  ;;  %v3162_v42 = vsel %vm2129_vm13, %v3160_v60, %v3161_v52  ;;  %v3211_v52 = vsel %vm2129_vm13, %v3209_v9, %v3210_v43  ;;  %v3246_v51 = vmul.f32 %v8163_v20, %v8391_v57  ;;  %v3218_v43 = vrot.slane %v3196_v19, 2 }
 0x232   : > { %3124 = vrot.lane.b32.xlu1 %v3115_v50, %s6257_s11  ;;  %3122 = vrot.lane.b32.xlu0 %v3112_v11, %s6257_s11  ;;  %v3171_v50 = vsel %vm2129_vm13, %v3169_v14, %v3170_v46  ;;  %v3168_v11 = vsel %vm2129_vm13, %v3166_v54, %v3167_v37  ;;  %v3214_v37 = vsel %vm2129_vm13, %v3212_v35, %v3213_v13  ;;  %v3260_v47 = vrot.slane %v3242_v44, 2 }
 0x233   : > { %v2105_v60 = vadd.f32 %v2098_v33, %v8035_v45  ;;  %v2099_v25 = vsel %vm2050_vm12, %v8184_v15, %v8182_v18  ;;  %v2100_v46 = vsel %vm2050_vm12, %v8182_v18, %v8204_v34  ;;  %v3241_v54 = vmul.f32 %v8171_v1, %v8391_v57 }
 0x234   : > { %v2442_v16 = vpop.permute.xlu1 %2441  ;;  %v2440_v22 = vpop.permute.xlu0 %2439  ;;  %v3245_v45 = vmul.f32 %v8175_v27, %v8391_v57  ;;  %v2300_v15 = vsel %vm11017_vm9, %v8284_v63, %v8299_v24  ;;  %v2301_v18 = vsel %vm11017_vm9, %v8299_v24, %v8297_v17  ;;  %v3261_v63 = vrot.slane %v3246_v51, 2 }
 0x235   : > { %v2448_v36 = vsel %vm2447_vm5, %v2440_v22, %v2442_v16  ;;  %v3200_v22 = vmul.f32 %v8187_v48, %v8341_v26  ;;  %v2306_v35 = vadd.f32 %v2299_v59, %v2105_v60  ;;  %v3244_v24 = vmul.f32 %v8179_v12, %v8391_v57 }
 0x236   : > { %v8393_v2 = vadd.f32 %v2448_v36, %v2258_v40  ;;  %3128 = vrot.lane.b32.xlu1 %v3121_v38, %s6257_s11  ;;  %3126 = vrot.lane.b32.xlu0 %v3118_v5, %s6257_s11  ;;  %v2106_v40 = vadd.f32 %v2099_v25, %v8038_v55  ;;  %v3257_v36 = vrot.slane %v3241_v54, 2  ;;  %v3258_v33 = vrot.slane %v3245_v45, 2 }
 0x237   : > { %v3219_v38 = vrot.slane %v3200_v22, 2  ;;  %v3262_v60 = vsel %vm2129_vm13, %v3260_v47, %v3261_v63  ;;  %vm2642_vm12 = vcmask 719872  }
 0x238   : > { %v2446_v41 = vpop.permute.xlu1 %2445  ;;  %v2444_v0 = vpop.permute.xlu0 %2443  ;;  %v2307_v19 = vadd.f32 %v2300_v15, %v2106_v40  ;;  %v3259_v25 = vsel %vm2129_vm13, %v3257_v36, %v3258_v33  ;;  %v3337_v33 = vld [vmem:[%s6339_s29] sm:$0xf8] }
 0x239   : > { %v2449_v7 = vsel %vm2447_vm5, %v2442_v16, %v2444_v0  ;;  %v2450_v28 = vsel %vm2447_vm5, %v2444_v0, %v2446_v41  ;;  %v2107_v16 = vadd.f32 %v2100_v46, %v8054_v21  ;;  %v3248_v21 = vmul.f32 %v8187_v48, %v8391_v57 }
 0x23a   : > { %v8424_v14 = vadd.f32 %v2449_v7, %v2259_v39  ;;  %v8426_v26 = vadd.f32 %v2450_v28, %v2260_v6  ;;  %3174 = vrot.lane.b32.xlu1 %v3165_v3, %s6257_s11  ;;  %3172 = vrot.lane.b32.xlu0 %v3162_v42, %s6257_s11  ;;  %v3215_v42 = vrot.slane %v3195_v62, 2  ;;  %v3216_v3 = vrot.slane %v3199_v30, 2 }
 0x23b   : > { %v2308_v22 = vadd.f32 %v2301_v18, %v2107_v16  ;;  %v3289_v39 = vstv %s8414_s17  ;;  %v3243_v41 = vmul.f32 %v8191_v29, %v8391_v57  ;;  %v2152_v0 = vadd.f32 %v8202_v32, %v8073_v58  ;;  %s8740_s17 = sld [smem:[#allocation2 + $0x53]] }
 0x23c   : > { %v2490_v13 = vpop.permute.xlu1 %2489  ;;  %v2488_v9 = vpop.permute.xlu0 %2487  ;;  %v3217_v59 = vsel %vm2129_vm13, %v3215_v42, %v3216_v3  ;;  %v3247_v7 = vmul.f32 %v8195_v10, %v8391_v57  ;;  %v3291_v28 = vmul.f32 %v8159_v61, %v3289_v39  ;;  %v3266_v57 = vrot.slane %v3244_v24, 2  ;;  %v3340_v24 = vld [vmem:[%s6339_s29 + $0x20] sm:$0x7] }
 0x23d   : > { %v2495_v5 = vsel %vm2447_vm5, %v2488_v9, %v2490_v13  ;;  %v3267_v61 = vrot.slane %v3248_v21, 2  ;;  %v3263_v45 = vrot.slane %v3243_v41, 2  ;;  %v3294_v9 = vmul.f32 %v8175_v27, %v3289_v39 }
 0x23e   : > { %v8449_v8 = vadd.f32 %v2495_v5, %v2306_v35  ;;  %3178 = vrot.lane.b32.xlu1 %v3171_v50, %s6257_s11  ;;  %3176 = vrot.lane.b32.xlu0 %v3168_v11, %s6257_s11  ;;  %v2348_v50 = vsel %vm11017_vm9, %v8319_v31, %v8317_v49  ;;  %v3220_v31 = vsel %vm2129_vm13, %v3218_v43, %v3219_v38  ;;  %v3344_v3 = vstv %s8468_s18  ;;  %s8719_s11 = sld [smem:[#allocation2 + $0x52]]  ;;  %s6261_s18 = smov 108  }
 0x23f   : > { %v2355_v51 = vadd.f32 %v2348_v50, %v2152_v0  ;;  %v3295_v35 = vmul.f32 %v8163_v20, %v3289_v39  ;;  %v3293_v18 = vmul.f32 %v8179_v12, %v3289_v39  ;;  %v3297_v5 = vmul.f32 %v8187_v48, %v3289_v39 }
 0x240   : > { %v8455_v62 = vpop.permute.xlu1 %2493  ;;  %v2492_v55 = vpop.permute.xlu0 %2491  ;;  %v3292_v27 = vmul.f32 %v8191_v29, %v3289_v39  ;;  %v3296_v48 = vmul.f32 %v8195_v10, %v3289_v39  ;;  %v3268_v47 = vsel %vm2129_vm13, %v3266_v57, %v3267_v61  ;;  %v3307_v29 = vrot.slane %v3294_v9, 2  ;;  %v8553_v57 = vld [vmem:[%s6339_s29 + $0x30] sm:$0x7]  ;;  %v8556_v61 = vld [vmem:[%s6339_s29 + $0x8] sm:$0xf8] }
 0x241   : > { %11218 = vst [vmem:[#allocation79_spill] sm:$0xff] %v8455_v62  ;;  %v2496_v11 = vsel %vm2447_vm5, %v2490_v13, %v2492_v55  ;;  %v2497_v6 = vsel %vm2447_vm5, %v2492_v55, %v8455_v62  ;;  %v3309_v13 = vrot.slane %v3291_v28, 2  ;;  %v3310_v12 = vrot.slane %v3295_v35, 2 }
 0x242   : > { %v8472_v30 = vadd.f32 %v2496_v11, %v2307_v19  ;;  %v8474_v44 = vadd.f32 %v2497_v6, %v2308_v22  ;;  %3223 = vrot.lane.b32.xlu1 %v3214_v37, %s6258_s21  ;;  %3221 = vrot.lane.b32.xlu0 %v3211_v52, %s6258_s21  ;;  %v2349_v37 = vsel %vm11017_vm9, %v8317_v49, %v8327_v53  ;;  %v3264_v49 = vrot.slane %v3247_v7, 2  ;;  %v8539_v7 = vld [vmem:[%s6339_s29 + $0x20] sm:$0x7] }
 0x243   : > { %v2350_v52 = vsel %vm11017_vm9, %v8327_v53, %v8325_v56  ;;  %v3290_v53 = vmul.f32 %v8171_v1, %v3289_v39  ;;  %v2356_v43 = vadd.f32 %v2349_v37, %v8225_v4  ;;  %v3338_v4 = vld [vmem:[%s6339_s29 + $0x8] sm:$0xf8]  ;;  %v3315_v50 = vrot.slane %v3293_v18, 2  ;;  %v3342_v37 = vld [vmem:[%s6339_s29 + $0x30] sm:$0x7]  ;;  %v11271_v56 = vld [vmem:[#allocation48_spill] sm:$0xff] }
 0x244   : > { %v2539_v58 = vpop.permute.xlu1 %2538  ;;  %v2537_v32 = vpop.permute.xlu0 %2536  ;;  %v2357_v38 = vadd.f32 %v2350_v52, %v8228_v23  ;;  %v3341_v23 = vld [vmem:[%s6339_s29 + $0x28] sm:$0x7]  ;;  %v3265_v63 = vsel %vm2129_vm13, %v3263_v45, %v3264_v49  ;;  %v3346_v55 = vmul.f32 %v3344_v3, %v3338_v4  ;;  %v3316_v11 = vrot.slane %v3297_v5, 2 }
 0x245   : > { %v2544_v46 = vsel %vm2447_vm5, %v2537_v32, %v2539_v58  ;;  %v3306_v36 = vrot.slane %v3290_v53, 2  ;;  %v3349_v21 = vmul.f32 %v3344_v3, %v3341_v23  ;;  %v3312_v10 = vrot.slane %v3292_v27, 2 }
 0x246   : > { %v8492_v54 = vadd.f32 %v2544_v46, %v2355_v51  ;;  %3227 = vrot.lane.b32.xlu1 %v3220_v31, %s6258_s21  ;;  %3225 = vrot.lane.b32.xlu0 %v3217_v59, %s6258_s21  ;;  %v3313_v39 = vrot.slane %v3296_v48, 2  ;;  %v3345_v6 = vmul.f32 %v3344_v3, %v3337_v33  ;;  %v3348_v41 = vmul.f32 %v3344_v3, %v3340_v24  ;;  %v8536_v59 = vld [vmem:[%s6339_s29] sm:$0xf8]  ;;  %v8550_v46 = vld [vmem:[%s6339_s29 + $0x10] sm:$0xf8] }
 0x247   : > { %v3311_v0 = vsel %vm2129_vm13, %v3309_v13, %v3310_v12  ;;  %v3308_v31 = vsel %vm2129_vm13, %v3306_v36, %v3307_v29  ;;  %v3362_v32 = vrot.slane %v3349_v21, 3  ;;  %v3317_v52 = vsel %vm2129_vm13, %v3315_v50, %v3316_v11  ;;  %v8585_v24 = vld [vmem:[%s6339_s29 + $0x38] sm:$0x7] }
 0x248   : > { %v8501_v42 = vpop.permute.xlu1 %2542  ;;  %v2541_v15 = vpop.permute.xlu0 %2540  ;;  %v3314_v45 = vsel %vm2129_vm13, %v3312_v10, %v3313_v39  ;;  %vm3357_vm9 = vcmask 1044480   ;;  %v3358_v35 = vrot.slane %v3345_v6, 3  ;;  %v3359_v49 = vrot.slane %v3348_v41, 3 }
 0x249   : > { %11219 = vst [vmem:[#allocation80_spill] sm:$0xff] %v8501_v42  ;;  %v2545_v20 = vsel %vm2447_vm5, %v2539_v58, %v2541_v15  ;;  %v2546_v1 = vsel %vm2447_vm5, %v2541_v15, %v8501_v42  ;;  %v3361_v58 = vrot.slane %v3346_v55, 3  ;;  %v3441_v23 = vstv %s8529_s24  ;;  %s8853_s24 = sld [smem:[#allocation2 + $0x56]]  ;;  %v11270_v42 = vld [vmem:[#allocation47_spill] sm:$0xff] }
 0x24a   : > { %v8514_v40 = vadd.f32 %v2545_v20, %v2356_v43  ;;  %v8516_v16 = vadd.f32 %v2546_v1, %v2357_v38  ;;  %3271 = vrot.lane.b32.xlu1 %v3262_v60, %s6258_s21  ;;  %3269 = vrot.lane.b32.xlu0 %v3259_v25, %s6258_s21  ;;  %v3393_v60 = vstv %s8505_s22  ;;  %v3339_v25 = vld [vmem:[%s6339_s29 + $0x10] sm:$0xf8]  ;;  %v3350_v43 = vmul.f32 %v3344_v3, %v3342_v37  ;;  %s8832_s22 = sld [smem:[#allocation2 + $0x55]] }
 0x24b   : > { %v3394_v13 = vmul.f32 %v3393_v60, %v8536_v59  ;;  %v3398_v53 = vmul.f32 %v3393_v60, %v8539_v7  ;;  %v3347_v9 = vmul.f32 %v3344_v3, %v3339_v25  ;;  %v8564_v38 = vld [vmem:[%s6339_s29 + $0x28] sm:$0x7]  ;;  %v3396_v5 = vmul.f32 %v3393_v60, %v8550_v46 }
 0x24c   : > { %v8525_v19 = vpop.permute.xlu1 %2587  ;;  %v8527_v22 = vpop.permute.xlu0 %2585  ;;  %v3400_v20 = vmul.f32 %v3393_v60, %v8553_v57  ;;  %v3395_v1 = vmul.f32 %v3393_v60, %v8556_v61  ;;  %v3363_v4 = vsel %vm3357_vm9, %v3361_v58, %v3362_v32  ;;  %v3360_v12 = vsel %vm3357_vm9, %v3358_v35, %v3359_v49 }
 0x24d   : > { %11220 = vst [vmem:[#allocation81_spill] sm:$0xff] %v8525_v19  ;;  %11221 = vst [vmem:[#allocation82_spill] sm:$0xff] %v8527_v22  ;;  %v3399_v48 = vmul.f32 %v3393_v60, %v8564_v38  ;;  %v3411_v36 = vrot.slane %v3398_v53, 3  ;;  %v3364_v29 = vrot.slane %v3347_v9, 3  ;;  %v3365_v33 = vrot.slane %v3350_v43, 3  ;;  %v11269_v22 = vld [vmem:[#allocation42_spill] sm:$0xff] }
 0x24e   : > { %3275 = vrot.lane.b32.xlu1 %v3268_v47, %s6258_s21  ;;  %3273 = vrot.lane.b32.xlu0 %v3265_v63, %s6258_s21  ;;  %v8582_v47 = vld [vmem:[%s6339_s29 + $0x18] sm:$0xf8]  ;;  %v3410_v63 = vrot.slane %v3394_v13, 3  ;;  %v3417_v50 = vrot.slane %v3400_v20, 3  ;;  %v3413_v11 = vrot.slane %v3395_v1, 3  ;;  %v3442_v10 = vmul.f32 %v3441_v23, %v8536_v59 }
 0x24f   : > { %v3446_v41 = vmul.f32 %v3441_v23, %v8539_v7  ;;  %v3414_v32 = vrot.slane %v3399_v48, 3  ;;  %v3401_v25 = vmul.f32 %v3393_v60, %v8585_v24  ;;  %v3443_v20 = vmul.f32 %v3441_v23, %v8556_v61 }
 0x250   : > { %v8541_v28 = vpop.permute.xlu1 %2591  ;;  %v8543_v51 = vpop.permute.xlu0 %2589  ;;  %v3412_v37 = vsel %vm3357_vm9, %v3410_v63, %v3411_v36  ;;  %v3458_v13 = vrot.slane %v3442_v10, 3  ;;  %v3447_v1 = vmul.f32 %v3441_v23, %v8564_v38  ;;  %v3445_v48 = vmul.f32 %v3441_v23, %v8582_v47 }
 0x251   : > { %11222 = vst [vmem:[#allocation83_spill] sm:$0xff] %v8541_v28  ;;  %11223 = vst [vmem:[#allocation84_spill] sm:$0xff] %v8543_v51  ;;  %v3459_v53 = vrot.slane %v3446_v41, 3  ;;  %v3449_v63 = vmul.f32 %v3441_v23, %v8585_v24  ;;  %vm2885_vm13 = vcmask 564224   ;;  %v11263_v28 = vld [vmem:[#allocation33_spill] sm:$0xff] }
 0x252   : > { %3320 = vrot.lane.b32.xlu1 %v3311_v0, %s6258_s21  ;;  %3318 = vrot.lane.b32.xlu0 %v3308_v31, %s6258_s21  ;;  %v3397_v0 = vmul.f32 %v3393_v60, %v8582_v47  ;;  %v3415_v60 = vsel %vm3357_vm9, %v3413_v11, %v3414_v32  ;;  %v3461_v11 = vrot.slane %v3443_v20, 3  ;;  %v3462_v10 = vrot.slane %v3447_v1, 3 }
 0x253   : > { %v3467_v32 = vrot.slane %v3445_v48, 3 }
 0x254   : > { %v2637_v15 = vpop.permute.xlu1 %2636  ;;  %v2635_v18 = vpop.permute.xlu0 %2634  ;;  %v3419_v43 = vrot.slane %v3397_v0, 3 }
 0x255   : > { %v2643_v27 = vsel %vm2642_vm12, %v2635_v18, %v2637_v15  ;;  %v3444_v18 = vmul.f32 %v3441_v23, %v8550_v46 }
 0x256   : > { %v8575_v3 = vadd.f32 %v2643_v27, %v8393_v2  ;;  %3324 = vrot.lane.b32.xlu1 %v3317_v52, %s6258_s21  ;;  %3322 = vrot.lane.b32.xlu0 %v3314_v45, %s6258_s21  ;;  %v3416_v2 = vrot.slane %v3396_v5, 3  ;;  %v3366_v52 = vsel %vm3357_vm9, %v3364_v29, %v3365_v33  ;;  %v3448_v5 = vmul.f32 %v3441_v23, %v8553_v57  ;;  %s8777_s21 = sld [smem:[#allocation2 + $0x54]] }
 0x257   : > { %v3460_v33 = vsel %vm3357_vm9, %v3458_v13, %v3459_v53 }
 0x258   : > { %v2641_v55 = vpop.permute.xlu1 %2640  ;;  %v2639_v21 = vpop.permute.xlu0 %2638  ;;  %v3418_v49 = vsel %vm3357_vm9, %v3416_v2, %v3417_v50  ;;  %v3464_v2 = vrot.slane %v3444_v18, 3  ;;  %v3465_v50 = vrot.slane %v3448_v5, 3 }
 0x259   : > { %v2644_v39 = vsel %vm2642_vm12, %v2637_v15, %v2639_v21  ;;  %v2645_v6 = vsel %vm2642_vm12, %v2639_v21, %v2641_v55  ;;  %v3420_v15 = vrot.slane %v3401_v25, 3 }
 0x25a   : > { %v8593_v31 = vadd.f32 %v2644_v39, %v8424_v14  ;;  %v8596_v58 = vadd.f32 %v2645_v6, %v8426_v26  ;;  %3369 = vrot.lane.b32.xlu1 %v3363_v4, %s6259_s27  ;;  %3367 = vrot.lane.b32.xlu0 %v3360_v12, %s6259_s27  ;;  %v8604_v26 = vstv %s8572_s26  ;;  %s8892_s26 = sld [smem:[#allocation2 + $0x57]] }
 0x25b   : > { %v3491_v4 = vmul.f32 %v8604_v26, %v8536_v59  ;;  %v3495_v12 = vmul.f32 %v8604_v26, %v8539_v7  ;;  %v3421_v23 = vsel %vm3357_vm9, %v3419_v43, %v3420_v15  ;;  %v3493_v25 = vmul.f32 %v8604_v26, %v8550_v46 }
 0x25c   : > { %v2685_v45 = vpop.permute.xlu1 %2684  ;;  %v2683_v35 = vpop.permute.xlu0 %2682  ;;  %v3539_v43 = vstv %s8623_s4  ;;  %s6263_s4 = smov 89  }
 0x25d   : > { %v2690_v14 = vsel %vm2642_vm12, %v2683_v35, %v2685_v45  ;;  %v3507_v41 = vrot.slane %v3491_v4, 3  ;;  %v3508_v0 = vrot.slane %v3495_v12, 3  ;;  %v3496_v35 = vmul.f32 %v8604_v26, %v8564_v38 }
 0x25e   : > { %v8607_v9 = vadd.f32 %v2690_v14, %v8449_v8  ;;  %3422 = vrot.lane.b32.xlu1 %v3412_v37, %s6260_s28  ;;  %3371 = vrot.lane.b32.xlu0 %v3366_v52, %s6259_s27  ;;  %v3497_v37 = vmul.f32 %v8604_v26, %v8553_v57  ;;  %v3463_v14 = vsel %vm3357_vm9, %v3461_v11, %v3462_v10  ;;  %v3513_v5 = vrot.slane %v3493_v25, 3  ;;  %s6262_s27 = smov 104  }
 0x25f   : > { %v3509_v53 = vsel %vm3357_vm9, %v3507_v41, %v3508_v0  ;;  %v3511_v12 = vrot.slane %v3496_v35, 3  ;;  %v3540_v48 = vmul.f32 %v3539_v43, %v8536_v59  ;;  %v3588_v10 = vstv %s8652_s7  ;;  %s8924_s7 = sld [smem:[#allocation2 + $0x58]] }
 0x260   : > { %v8615_v27 = vpop.permute.xlu1 %2688  ;;  %v2687_v8 = vpop.permute.xlu0 %2686  ;;  %v3514_v20 = vrot.slane %v3497_v37, 3  ;;  %v3589_v35 = vmul.f32 %v3588_v10, %v8536_v59 }
 0x261   : > { %11224 = vst [vmem:[#allocation85_spill] sm:$0xff] %v8615_v27  ;;  %v2691_v36 = vsel %vm2642_vm12, %v2685_v45, %v2687_v8  ;;  %v2692_v29 = vsel %vm2642_vm12, %v2687_v8, %v8615_v27  ;;  %v3492_v45 = vmul.f32 %v8604_v26, %v8556_v61 }
 0x262   : > { %v8630_v55 = vadd.f32 %v2691_v36, %v8472_v30  ;;  %v8633_v21 = vadd.f32 %v2692_v29, %v8474_v44  ;;  %3426 = vrot.lane.b32.xlu1 %v3418_v49, %s6260_s28  ;;  %3424 = vrot.lane.b32.xlu0 %v3415_v60, %s6260_s28  ;;  %v3468_v30 = vrot.slane %v3449_v63, 3  ;;  %v3466_v49 = vsel %vm3357_vm9, %v3464_v2, %v3465_v50 }
 0x263   : > { %v3510_v4 = vrot.slane %v3492_v45, 3  ;;  %v3544_v63 = vmul.f32 %v3539_v43, %v8539_v7  ;;  %v3494_v36 = vmul.f32 %v8604_v26, %v8582_v47  ;;  %v3541_v2 = vmul.f32 %v3539_v43, %v8556_v61 }
 0x264   : > { %v2734_v39 = vpop.permute.xlu1 %2733  ;;  %v2732_v6 = vpop.permute.xlu0 %2731  ;;  %v3469_v60 = vsel %vm3357_vm9, %v3467_v32, %v3468_v30  ;;  %v3545_v50 = vmul.f32 %v3539_v43, %v8564_v38  ;;  %v3515_v11 = vsel %vm3357_vm9, %v3513_v5, %v3514_v20  ;;  %v8707_v5 = vstv %s6019_s10  ;;  %s8945_s10 = sld [smem:[#allocation2 + $0x3]] }
 0x265   : > { %v2739_v44 = vsel %vm2642_vm12, %v2732_v6, %v2734_v39  ;;  %v3557_v6 = vrot.slane %v3544_v63, 3  ;;  %v3516_v41 = vrot.slane %v3494_v36, 3  ;;  %v3559_v37 = vrot.slane %v3541_v2, 3 }
 0x266   : > { %v8644_v52 = vadd.f32 %v2739_v44, %v8492_v54  ;;  %3470 = vrot.lane.b32.xlu1 %v3460_v33, %s6260_s28  ;;  %3428 = vrot.lane.b32.xlu0 %v3421_v23, %s6260_s28  ;;  %v3542_v33 = vmul.f32 %v3539_v43, %v8550_v46  ;;  %v3546_v23 = vmul.f32 %v3539_v43, %v8553_v57  ;;  %v3560_v45 = vrot.slane %v3545_v50, 3 }
 0x267   : > { %v3591_v36 = vmul.f32 %v3588_v10, %v8550_v46  ;;  %v3637_v2 = vmul.f32 %v8707_v5, %v8536_v59 }
 0x268   : > { %v8656_v13 = vpop.permute.xlu1 %2737  ;;  %v2736_v54 = vpop.permute.xlu0 %2735  ;;  %v3562_v44 = vrot.slane %v3542_v33, 3  ;;  %v3563_v25 = vrot.slane %v3546_v23, 3  ;;  %v3590_v33 = vmul.f32 %v3588_v10, %v8556_v61  ;;  %v3594_v23 = vmul.f32 %v3588_v10, %v8564_v38 }
 0x269   : > { %11225 = vst [vmem:[#allocation86_spill] sm:$0xff] %v8656_v13  ;;  %v2740_v15 = vsel %vm2642_vm12, %v2734_v39, %v2736_v54  ;;  %v2741_v18 = vsel %vm2642_vm12, %v2736_v54, %v8656_v13  ;;  %v3556_v39 = vrot.slane %v3540_v48, 3  ;;  %v3547_v54 = vmul.f32 %v3539_v43, %v8585_v24  ;;  %v11262_v13 = vld [vmem:[#allocation32_spill] sm:$0xff] }
 0x26a   : > { %v8665_v1 = vadd.f32 %v2740_v15, %v8514_v40  ;;  %v8668_v8 = vadd.f32 %v2741_v18, %v8516_v16  ;;  %3474 = vrot.lane.b32.xlu1 %v3466_v49, %s6260_s28  ;;  %3472 = vrot.lane.b32.xlu0 %v3463_v14, %s6260_s28  ;;  %v3498_v40 = vmul.f32 %v8604_v26, %v8585_v24 }
 0x26b   : > { %v3512_v26 = vsel %vm3357_vm9, %v3510_v4, %v3511_v12  ;;  %v3593_v49 = vmul.f32 %v3588_v10, %v8539_v7  ;;  %v3543_v14 = vmul.f32 %v3539_v43, %v8582_v47  ;;  %v3564_v20 = vsel %vm3357_vm9, %v3562_v44, %v3563_v25 }
 0x26c   : > { %v8678_v29 = vpop.permute.xlu1 %2782  ;;  %v8680_v16 = vpop.permute.xlu0 %2780  ;;  %v3517_v0 = vrot.slane %v3498_v40, 3  ;;  %v3561_v4 = vsel %vm3357_vm9, %v3559_v37, %v3560_v45  ;;  %v3605_v12 = vrot.slane %v3589_v35, 3  ;;  %v3566_v63 = vrot.slane %v3547_v54, 3 }
 0x26d   : > { %11226 = vst [vmem:[#allocation87_spill] sm:$0xff] %v8678_v29  ;;  %11227 = vst [vmem:[#allocation88_spill] sm:$0xff] %v8680_v16  ;;  %v3606_v43 = vrot.slane %v3593_v49, 3  ;;  %v3565_v48 = vrot.slane %v3543_v14, 3  ;;  %v3595_v40 = vmul.f32 %v3588_v10, %v8553_v57  ;;  %v3611_v44 = vrot.slane %v3591_v36, 3 }
 0x26e   : > { %3519 = vrot.lane.b32.xlu1 %v3509_v53, %s6260_s28  ;;  %3476 = vrot.lane.b32.xlu0 %v3469_v60, %s6260_s28  ;;  %v3558_v53 = vsel %vm3357_vm9, %v3556_v39, %v3557_v6  ;;  %v3518_v60 = vsel %vm3357_vm9, %v3516_v41, %v3517_v0  ;;  %v3592_v39 = vmul.f32 %v3588_v10, %v8582_v47  ;;  %v3608_v37 = vrot.slane %v3590_v33, 3 }
 0x26f   : > { %v3596_v6 = vmul.f32 %v3588_v10, %v8585_v24  ;;  %v3607_v41 = vsel %vm3357_vm9, %v3605_v12, %v3606_v43  ;;  %v3567_v0 = vsel %vm3357_vm9, %v3565_v48, %v3566_v63  ;;  %v3612_v25 = vrot.slane %v3595_v40, 3 }
 0x270   : > { %v8691_v32 = vpop.permute.xlu1 %2786  ;;  %v8693_v30 = vpop.permute.xlu0 %2784  ;;  %v3609_v45 = vrot.slane %v3594_v23, 3  ;;  %v3653_v35 = vrot.slane %v3637_v2, 3  ;;  %v3638_v12 = vmul.f32 %v8707_v5, %v8556_v61  ;;  %v3642_v48 = vmul.f32 %v8707_v5, %v8564_v38 }
 0x271   : > { %11228 = vst [vmem:[#allocation89_spill] sm:$0xff] %v8691_v32  ;;  %11229 = vst [vmem:[#allocation90_spill] sm:$0xff] %v8693_v30  ;;  %v3615_v10 = vrot.slane %v3596_v6, 3  ;;  %v3613_v63 = vsel %vm3357_vm9, %v3611_v44, %v3612_v25  ;;  %v3685_v40 = vstv %s8719_s11  ;;  %s8952_s11 = sld [smem:[#allocation2 + $0x59]] }
 0x272   : > { %3523 = vrot.lane.b32.xlu1 %v3515_v11, %s6260_s28  ;;  %3521 = vrot.lane.b32.xlu0 %v3512_v26, %s6260_s28  ;;  %v3641_v26 = vmul.f32 %v8707_v5, %v8539_v7  ;;  %v3610_v36 = vsel %vm3357_vm9, %v3608_v37, %v3609_v45  ;;  %v3657_v37 = vrot.slane %v3642_v48, 3  ;;  %v3686_v45 = vmul.f32 %v3685_v40, %v8536_v59 }
 0x274   : > { %v8703_v15 = vpop.permute.xlu1 %2831  ;;  %v8705_v18 = vpop.permute.xlu0 %2829  ;;  %v3654_v54 = vrot.slane %v3641_v26, 3 }
 0x276   : > { %3568 = vrot.lane.b32.xlu1 %v3558_v53, %s6260_s28  ;;  %3525 = vrot.lane.b32.xlu0 %v3518_v60, %s6260_s28  ;;  %v3614_v53 = vrot.slane %v3592_v39, 3  ;;  %v3639_v60 = vmul.f32 %v8707_v5, %v8550_v46  ;;  %v3655_v2 = vsel %vm3357_vm9, %v3653_v35, %v3654_v54  ;;  %v3690_v35 = vmul.f32 %v3685_v40, %v8539_v7 }
 0x278   : > { %v8721_v50 = vpop.permute.xlu1 %2835  ;;  %v8723_v11 = vpop.permute.xlu0 %2833  ;;  %v3659_v26 = vrot.slane %v3639_v60, 3  ;;  %v3691_v60 = vmul.f32 %v3685_v40, %v8564_v38 }
 0x27a   : > { %3572 = vrot.lane.b32.xlu1 %v3564_v20, %s6260_s28  ;;  %3570 = vrot.lane.b32.xlu0 %v3561_v4, %s6260_s28  ;;  %v3643_v4 = vmul.f32 %v8707_v5, %v8553_v57 }
 0x27c   : > { %v2880_v49 = vpop.permute.xlu1 %2879  ;;  %v2878_v14 = vpop.permute.xlu0 %2877 }
 0x27d   : > { %v2886_v20 = vsel %vm2885_vm13, %v2878_v14, %v2880_v49  ;;  %v3688_v14 = vmul.f32 %v3685_v40, %v8550_v46 }
 0x27e   : > { %v8743_v43 = vadd.f32 %v2886_v20, %v8607_v9  ;;  %3617 = vrot.lane.b32.xlu1 %v3607_v41, %s6261_s18  ;;  %3574 = vrot.lane.b32.xlu0 %v3567_v0, %s6260_s28  ;;  %v3616_v9 = vsel %vm3357_vm9, %v3614_v53, %v3615_v10  ;;  %v3660_v41 = vrot.slane %v3643_v4, 3  ;;  %v3656_v0 = vrot.slane %v3638_v12, 3 }
 0x27f   : > { %v3692_v53 = vmul.f32 %v3685_v40, %v8553_v57  ;;  %v3687_v10 = vmul.f32 %v3685_v40, %v8556_v61  ;;  %v3734_v4 = vstv %s8740_s17  ;;  %s8985_s17 = sld [smem:[#allocation2 + $0x5a]] }
 0x280   : > { %v8752_v33 = vpop.permute.xlu1 %2883  ;;  %v2882_v23 = vpop.permute.xlu0 %2881  ;;  %v3658_v48 = vsel %vm3357_vm9, %v3656_v0, %v3657_v37  ;;  %v3689_v0 = vmul.f32 %v3685_v40, %v8582_v47 }
 0x281   : > { %11230 = vst [vmem:[#allocation91_spill] sm:$0xff] %v8752_v33  ;;  %v2887_v39 = vsel %vm2885_vm13, %v2880_v49, %v2882_v23  ;;  %v2888_v6 = vsel %vm2885_vm13, %v2882_v23, %v8752_v33  ;;  %v3640_v49 = vmul.f32 %v8707_v5, %v8582_v47  ;;  %v3709_v27 = vrot.slane %v3692_v53, 3 }
 0x282   : > { %v8760_v44 = vadd.f32 %v2887_v39, %v8630_v55  ;;  %v8763_v25 = vadd.f32 %v2888_v6, %v8633_v21  ;;  %3621 = vrot.lane.b32.xlu1 %v3613_v63, %s6261_s18  ;;  %3619 = vrot.lane.b32.xlu0 %v3610_v36, %s6261_s18  ;;  %v3644_v55 = vmul.f32 %v8707_v5, %v8585_v24  ;;  %v3702_v63 = vrot.slane %v3686_v45, 3 }
 0x283   : > { %v3661_v5 = vsel %vm3357_vm9, %v3659_v26, %v3660_v41  ;;  %v3703_v36 = vrot.slane %v3690_v35, 3  ;;  %v3662_v23 = vrot.slane %v3640_v49, 3  ;;  %v3708_v6 = vrot.slane %v3688_v14, 3 }
 0x284   : > { %11231 = vst [vmem:[#allocation92_spill] sm:$0xff] %v8763_v25  ;;  %v2930_v21 = vpop.permute.xlu1 %2929  ;;  %v2928_v54 = vpop.permute.xlu0 %2927  ;;  %v3663_v39 = vrot.slane %v3644_v55, 3  ;;  %v3705_v62 = vrot.slane %v3687_v10, 3  ;;  %v3739_v41 = vmul.f32 %v3734_v4, %v8539_v7  ;;  %v3693_v35 = vmul.f32 %v3685_v40, %v8585_v24 }
 0x285   : > { %v2935_v20 = vsel %vm2885_vm13, %v2928_v54, %v2930_v21  ;;  %v3704_v49 = vsel %vm3357_vm9, %v3702_v63, %v3703_v36  ;;  %v3711_v40 = vrot.slane %v3689_v0, 3  ;;  %v3736_v63 = vmul.f32 %v3734_v4, %v8556_v61 }
 0x286   : > { %v8782_v12 = vadd.f32 %v2935_v20, %v8644_v52  ;;  %3665 = vrot.lane.b32.xlu1 %v3655_v2, %s6261_s18  ;;  %3623 = vrot.lane.b32.xlu0 %v3616_v9, %s6261_s18  ;;  %v3706_v52 = vrot.slane %v3691_v60, 3  ;;  %v3735_v2 = vmul.f32 %v3734_v4, %v8536_v59  ;;  %v3664_v55 = vsel %vm3357_vm9, %v3662_v23, %v3663_v39 }
 0x287   : > { %v3752_v60 = vrot.slane %v3739_v41, 3  ;;  %v3712_v20 = vrot.slane %v3693_v35, 3  ;;  %v3740_v36 = vmul.f32 %v3734_v4, %v8564_v38  ;;  %v3754_v0 = vrot.slane %v3736_v63, 3 }
 0x288   : > { %v8788_v33 = vpop.permute.xlu1 %2933  ;;  %v2932_v54 = vpop.permute.xlu0 %2931  ;;  %v3707_v53 = vsel %vm3357_vm9, %v3705_v62, %v3706_v52  ;;  %v3751_v10 = vrot.slane %v3735_v2, 3  ;;  %v2838_v52 = vsel %vm2837_vm3, %v8705_v18, %v8703_v15 }
 0x289   : > { %11232 = vst [vmem:[#allocation93_spill] sm:$0xff] %v8788_v33  ;;  %v2936_v9 = vsel %vm2885_vm13, %v2930_v21, %v2932_v54  ;;  %v2937_v26 = vsel %vm2885_vm13, %v2932_v54, %v8788_v33  ;;  %v3742_v54 = vmul.f32 %v3734_v4, %v8585_v24  ;;  %v3755_v35 = vrot.slane %v3740_v36, 3 }
 0x28a   : > { %v8797_v37 = vadd.f32 %v2936_v9, %v8665_v1  ;;  %v8800_v45 = vadd.f32 %v2937_v26, %v8668_v8  ;;  %3669 = vrot.lane.b32.xlu1 %v3661_v5, %s6261_s18  ;;  %3667 = vrot.lane.b32.xlu0 %v3658_v48, %s6261_s18  ;;  %v8812_v1 = vstv %s8777_s21  ;;  %v3710_v8 = vsel %vm3357_vm9, %v3708_v6, %v3709_v27  ;;  %s9051_s21 = sld [smem:[#allocation2 + $0x5b]] }
 0x28b   : > { %v3737_v5 = vmul.f32 %v3734_v4, %v8550_v46  ;;  %v3741_v48 = vmul.f32 %v3734_v4, %v8553_v57  ;;  %v3784_v27 = vmul.f32 %v8812_v1, %v8536_v59  ;;  %v3788_v62 = vmul.f32 %v8812_v1, %v8539_v7 }
 0x28c   : > { %v8807_v14 = vpop.permute.xlu1 %2978  ;;  %v8809_v21 = vpop.permute.xlu0 %2976  ;;  %v3738_v6 = vmul.f32 %v3734_v4, %v8582_v47  ;;  %v3753_v2 = vsel %vm3357_vm9, %v3751_v10, %v3752_v60  ;;  %v3713_v9 = vsel %vm3357_vm9, %v3711_v40, %v3712_v20  ;;  %v2840_v10 = vsel %vm2837_vm3, %v8723_v11, %v8721_v50 }
 0x28d   : > { %11233 = vst [vmem:[#allocation94_spill] sm:$0xff] %v8807_v14  ;;  %11234 = vst [vmem:[#allocation95_spill] sm:$0xff] %v8809_v21  ;;  %v3757_v26 = vrot.slane %v3737_v5, 3  ;;  %v3758_v41 = vrot.slane %v3741_v48, 3  ;;  %v3800_v4 = vrot.slane %v3784_v27, 3  ;;  %v3789_v50 = vmul.f32 %v8812_v1, %v8564_v38 }
 0x28e   : > { %3714 = vrot.lane.b32.xlu1 %v3704_v49, %s6261_s18  ;;  %3671 = vrot.lane.b32.xlu0 %v3664_v55, %s6261_s18  ;;  %v3801_v49 = vrot.slane %v3788_v62, 3  ;;  %v2844_v55 = vadd.f32 %v2838_v52, %v8575_v3  ;;  %v3760_v18 = vrot.slane %v3738_v6, 3  ;;  %v3790_v3 = vmul.f32 %v8812_v1, %v8553_v57 }
 0x28f   : > { %v2846_v48 = vadd.f32 %v2840_v10, %v8596_v58  ;;  %v3831_v62 = vstv %s8832_s22  ;;  %v3804_v58 = vrot.slane %v3789_v50, 3  ;;  %s9101_s22 = sld [smem:[#allocation2 + $0x5c]] }
 0x290   : > { %v8826_v23 = vpop.permute.xlu1 %2982  ;;  %v8828_v39 = vpop.permute.xlu0 %2980  ;;  %v3802_v20 = vsel %vm3357_vm9, %v3800_v4, %v3801_v49  ;;  %v3837_v10 = vmul.f32 %v3831_v62, %v8564_v38  ;;  %v4126_v29 = vstv %s9051_s21  ;;  %s9444_s21 = sld [smem:[#allocation2 + $0x63]] }
 0x291   : > { %11235 = vst [vmem:[#allocation96_spill] sm:$0xff] %v8826_v23  ;;  %11236 = vst [vmem:[#allocation97_spill] sm:$0xff] %v8828_v39  ;;  %v3761_v39 = vrot.slane %v3742_v54, 3 }
 0x292   : > { %3718 = vrot.lane.b32.xlu1 %v3710_v8, %s6261_s18  ;;  %3716 = vrot.lane.b32.xlu0 %v3707_v53, %s6261_s18  ;;  %v3786_v8 = vmul.f32 %v8812_v1, %v8550_v46  ;;  %v2839_v53 = vsel %vm2837_vm3, %v8703_v15, %v8723_v11  ;;  %v3785_v15 = vmul.f32 %v8812_v1, %v8556_v61  ;;  %vm11026_vm3 = vcmask 408576  }
 0x293   : > { %v3756_v11 = vsel %vm3357_vm9, %v3754_v0, %v3755_v35  ;;  %v2845_v5 = vadd.f32 %v2839_v53, %v8593_v31  ;;  %v3762_v27 = vsel %vm3357_vm9, %v3760_v18, %v3761_v39  ;;  %v3832_v39 = vmul.f32 %v3831_v62, %v8536_v59 }
 0x294   : > { %v3028_v17 = vpop.permute.xlu1 %3027  ;;  %v3026_v34 = vpop.permute.xlu0 %3025  ;;  %v3806_v52 = vrot.slane %v3786_v8, 3  ;;  %v3803_v31 = vrot.slane %v3785_v15, 3  ;;  %v3791_v0 = vmul.f32 %v8812_v1, %v8585_v24  ;;  %v3838_v18 = vmul.f32 %v3831_v62, %v8553_v57 }
 0x295   : > { %v3034_v60 = vsel %vm3033_vm1, %v3026_v34, %v3028_v17  ;;  %v3759_v34 = vsel %vm3357_vm9, %v3757_v26, %v3758_v41  ;;  %v3836_v41 = vmul.f32 %v3831_v62, %v8539_v7  ;;  %v3881_v8 = vstv %s8853_s24  ;;  %s9150_s24 = sld [smem:[#allocation2 + $0x5d]] }
 0x296   : > { %v8855_v40 = vadd.f32 %v3034_v60, %v2844_v55  ;;  %3763 = vrot.lane.b32.xlu1 %v3753_v2, %s6261_s18  ;;  %3720 = vrot.lane.b32.xlu0 %v3713_v9, %s6261_s18  ;;  %v3807_v2 = vrot.slane %v3790_v3, 3  ;;  %v3834_v55 = vmul.f32 %v3831_v62, %v8550_v46  ;;  %v3833_v53 = vmul.f32 %v3831_v62, %v8556_v61 }
 0x297   : > { %v3848_v60 = vrot.slane %v3832_v39, 3  ;;  %v3849_v3 = vrot.slane %v3836_v41, 3  ;;  %v3810_v50 = vrot.slane %v3791_v0, 3 }
 0x298   : > { %v3032_v63 = vpop.permute.xlu1 %3031  ;;  %v3030_v36 = vpop.permute.xlu0 %3029  ;;  %v3808_v49 = vsel %vm3357_vm9, %v3806_v52, %v3807_v2 }
 0x299   : > { %v3035_v6 = vsel %vm3033_vm1, %v3028_v17, %v3030_v36  ;;  %v3036_v54 = vsel %vm3033_vm1, %v3030_v36, %v3032_v63  ;;  %v3787_v17 = vmul.f32 %v8812_v1, %v8582_v47  ;;  %v3805_v1 = vsel %vm3357_vm9, %v3803_v31, %v3804_v58 }
 0x29a   : > { %v8872_v9 = vadd.f32 %v3035_v6, %v2845_v5  ;;  %v8874_v26 = vadd.f32 %v3036_v54, %v2846_v48  ;;  %3767 = vrot.lane.b32.xlu1 %v3759_v34, %s6261_s18  ;;  %3765 = vrot.lane.b32.xlu0 %v3756_v11, %s6261_s18  ;;  %v3882_v5 = vmul.f32 %v3881_v8, %v8536_v59  ;;  %v3854_v48 = vrot.slane %v3834_v55, 3 }
 0x29b   : > { %v3809_v15 = vrot.slane %v3787_v17, 3  ;;  %v3855_v63 = vrot.slane %v3838_v18, 3  ;;  %v3851_v36 = vrot.slane %v3833_v53, 3  ;;  %v3835_v6 = vmul.f32 %v3831_v62, %v8582_v47 }
 0x29c   : > { %v8884_v35 = vpop.permute.xlu1 %3075  ;;  %v8886_v4 = vpop.permute.xlu0 %3073  ;;  %v3839_v54 = vmul.f32 %v3831_v62, %v8585_v24  ;;  %v3850_v52 = vsel %vm3357_vm9, %v3848_v60, %v3849_v3  ;;  %v3898_v39 = vrot.slane %v3882_v5, 3  ;;  %v3884_v53 = vmul.f32 %v3881_v8, %v8550_v46 }
 0x29d   : > { %v3811_v2 = vsel %vm3357_vm9, %v3809_v15, %v3810_v50  ;;  %v3856_v0 = vsel %vm3357_vm9, %v3854_v48, %v3855_v63  ;;  %v3857_v18 = vrot.slane %v3835_v6, 3  ;;  %v3883_v60 = vmul.f32 %v3881_v8, %v8556_v61 }
 0x29e   : > { %3812 = vrot.lane.b32.xlu1 %v3802_v20, %s6262_s27  ;;  %3769 = vrot.lane.b32.xlu0 %v3762_v27, %s6261_s18  ;;  %v3886_v20 = vmul.f32 %v3881_v8, %v8539_v7  ;;  %v3852_v27 = vrot.slane %v3837_v10, 3  ;;  %v3888_v10 = vmul.f32 %v3881_v8, %v8553_v57  ;;  %v3887_v3 = vmul.f32 %v3881_v8, %v8564_v38  ;;  %s6264_s18 = smov 85  }
 0x2a0   : > { %v8899_v34 = vpop.permute.xlu1 %3079  ;;  %v8901_v11 = vpop.permute.xlu0 %3077  ;;  %v3899_v41 = vrot.slane %v3886_v20, 3  ;;  %v3853_v62 = vsel %vm3357_vm9, %v3851_v36, %v3852_v27  ;;  %v3885_v36 = vmul.f32 %v3881_v8, %v8582_v47  ;;  %v3889_v27 = vmul.f32 %v3881_v8, %v8585_v24 }
 0x2a1   : > { %11237 = vst [vmem:[#allocation98_spill] sm:$0xff] %v8899_v34 }
 0x2a2   : > { %3816 = vrot.lane.b32.xlu1 %v3808_v49, %s6262_s27  ;;  %3814 = vrot.lane.b32.xlu0 %v3805_v1, %s6262_s27  ;;  %v3930_v49 = vstv %s8892_s26  ;;  %v3858_v1 = vrot.slane %v3839_v54, 3  ;;  %v3900_v50 = vsel %vm3357_vm9, %v3898_v39, %v3899_v41  ;;  %v3902_v39 = vrot.slane %v3887_v3, 3  ;;  %s6265_s26 = smov 70  }
 0x2a3   : > { %v3931_v5 = vmul.f32 %v3930_v49, %v8536_v59  ;;  %v3935_v20 = vmul.f32 %v3930_v49, %v8539_v7 }
 0x2a4   : > { %v3125_v31 = vpop.permute.xlu1 %3124  ;;  %v3123_v58 = vpop.permute.xlu0 %3122 }
 0x2a5   : > { %v3131_v17 = vsel %vm11026_vm3, %v3123_v58, %v3125_v31  ;;  %v3901_v58 = vrot.slane %v3883_v60, 3  ;;  %v3947_v41 = vrot.slane %v3931_v5, 3  ;;  %v3979_v60 = vstv %s8924_s7  ;;  %s6266_s7 = smov 66  }
 0x2a6   : > { %v8915_v55 = vadd.f32 %v3131_v17, %v8782_v12  ;;  %3860 = vrot.lane.b32.xlu1 %v3850_v52, %s6263_s4  ;;  %3818 = vrot.lane.b32.xlu0 %v3811_v2, %s6262_s27  ;;  %v3859_v52 = vsel %vm3357_vm9, %v3857_v18, %v3858_v1  ;;  %v3904_v2 = vrot.slane %v3884_v53, 3  ;;  %v3907_v17 = vrot.slane %v3885_v36, 3  ;;  %s9175_s27 = sld [smem:[#allocation2 + $0x5e]] }
 0x2a7   : > { %v3932_v18 = vmul.f32 %v3930_v49, %v8556_v61  ;;  %v3936_v1 = vmul.f32 %v3930_v49, %v8564_v38 }
 0x2a8   : > { %11238 = vst [vmem:[#allocation99_spill] sm:$0xff] %v8915_v55  ;;  %v8926_v12 = vpop.permute.xlu1 %3128  ;;  %v3127_v15 = vpop.permute.xlu0 %3126 }
 0x2a9   : > { %11239 = vst [vmem:[#allocation100_spill] sm:$0xff] %v8926_v12  ;;  %v3132_v48 = vsel %vm11026_vm3, %v3125_v31, %v3127_v15  ;;  %v3133_v63 = vsel %vm11026_vm3, %v3127_v15, %v8926_v12  ;;  %v3905_v31 = vrot.slane %v3888_v10, 3  ;;  %v3908_v15 = vrot.slane %v3889_v27, 3 }
 0x2aa   : > { %v8937_v6 = vadd.f32 %v3132_v48, %v8797_v37  ;;  %v8940_v54 = vadd.f32 %v3133_v63, %v8800_v45  ;;  %3864 = vrot.lane.b32.xlu1 %v3856_v0, %s6263_s4  ;;  %3862 = vrot.lane.b32.xlu0 %v3853_v62, %s6263_s4  ;;  %v3948_v45 = vrot.slane %v3935_v20, 3  ;;  %v3933_v0 = vmul.f32 %v3930_v49, %v8550_v46 }
 0x2ab   : > { %v3937_v62 = vmul.f32 %v3930_v49, %v8553_v57  ;;  %v3906_v53 = vsel %vm3357_vm9, %v3904_v2, %v3905_v31  ;;  %v3903_v10 = vsel %vm3357_vm9, %v3901_v58, %v3902_v39  ;;  %vm3229_vm3 = vcmask 375808  }
 0x2ac   : > { %11240 = vst [vmem:[#allocation101_spill] sm:$0xff] %v8937_v6  ;;  %11241 = vst [vmem:[#allocation102_spill] sm:$0xff] %v8940_v54  ;;  %v8947_v8 = vpop.permute.xlu1 %3174  ;;  %v8949_v37 = vpop.permute.xlu0 %3172  ;;  %v3909_v20 = vsel %vm3357_vm9, %v3907_v17, %v3908_v15  ;;  %v3953_v48 = vrot.slane %v3933_v0, 3  ;;  %v3950_v36 = vrot.slane %v3932_v18, 3  ;;  %v3951_v27 = vrot.slane %v3936_v1, 3  ;;  %v11246_v18 = vld [vmem:[#allocation46_spill] sm:$0xff] }
 0x2ad   : > { %11242 = vst [vmem:[#allocation103_spill] sm:$0xff] %v8947_v8  ;;  %11243 = vst [vmem:[#allocation104_spill] sm:$0xff] %v8949_v37  ;;  %v3954_v63 = vrot.slane %v3937_v62, 3  ;;  %v3984_v2 = vmul.f32 %v3979_v60, %v8539_v7  ;;  %v3934_v31 = vmul.f32 %v3930_v49, %v8582_v47  ;;  %v3938_v58 = vmul.f32 %v3930_v49, %v8585_v24  ;;  %v6162_v62 = vld [vmem:[%s6339_s29 + $0x18] sm:$0xff] }
 0x2ae   : > { %3910 = vrot.lane.b32.xlu1 %v3900_v50, %s6263_s4  ;;  %3866 = vrot.lane.b32.xlu0 %v3859_v52, %s6263_s4  ;;  %v3949_v50 = vsel %vm3357_vm9, %v3947_v41, %v3948_v45  ;;  %v3980_v52 = vmul.f32 %v3979_v60, %v8536_v59  ;;  %v3982_v39 = vmul.f32 %v3979_v60, %v8550_v46  ;;  %v8983_v12 = vstv %s8952_s11  ;;  %s9284_s11 = sld [smem:[#allocation2 + $0x61]] }
 0x2af   : > { %v3986_v17 = vmul.f32 %v3979_v60, %v8553_v57  ;;  %v3981_v15 = vmul.f32 %v3979_v60, %v8556_v61  ;;  %v3985_v0 = vmul.f32 %v3979_v60, %v8564_v38  ;;  %v250_v1 = vmul.f32 %v6162_v62, %v11246_v18 }
 0x2b0   : > { %v8962_v3 = vpop.permute.xlu1 %3178  ;;  %v8964_v5 = vpop.permute.xlu0 %3176  ;;  %v3996_v37 = vrot.slane %v3980_v52, 3  ;;  %v3997_v18 = vrot.slane %v3984_v2, 3  ;;  %v3956_v8 = vrot.slane %v3934_v31, 3  ;;  %v3957_v23 = vrot.slane %v3938_v58, 3  ;;  %v6163_v31 = vld [vmem:[%s6339_s29] sm:$0xff] }
 0x2b1   : > { %11244 = vst [vmem:[#allocation105_spill] sm:$0xff] %v8962_v3  ;;  %11245 = vst [vmem:[#allocation106_spill] sm:$0xff] %v8964_v5  ;;  %v3955_v3 = vsel %vm3357_vm9, %v3953_v48, %v3954_v63  ;;  %v3952_v5 = vsel %vm3357_vm9, %v3950_v36, %v3951_v27  ;;  %v4003_v33 = vrot.slane %v3986_v17, 3  ;;  %v3999_v32 = vrot.slane %v3981_v15, 3  ;;  %v6165_v15 = vld [vmem:[%s6339_s29 + $0x10] sm:$0xff] }
 0x2b2   : > { %3914 = vrot.lane.b32.xlu1 %v3906_v53, %s6263_s4  ;;  %3912 = vrot.lane.b32.xlu0 %v3903_v10, %s6263_s4  ;;  %v266_v53 = vstv %s8945_s10  ;;  %v4032_v63 = vmul.f32 %v8983_v12, %v8539_v7  ;;  %v3983_v36 = vmul.f32 %v3979_v60, %v8582_v47  ;;  %v3987_v2 = vmul.f32 %v3979_v60, %v8585_v24  ;;  %s9237_s10 = sld [smem:[#allocation2 + $0x60]] }
 0x2b3   : > { %v3998_v7 = vsel %vm3357_vm9, %v3996_v37, %v3997_v18  ;;  %v3958_v58 = vsel %vm3357_vm9, %v3956_v8, %v3957_v23  ;;  %v9031_v18 = vstv %s8985_s17  ;;  %s9382_s17 = sld [smem:[#allocation2 + $0x62]] }
 0x2b4   : > { %v3224_v41 = vpop.permute.xlu1 %3223  ;;  %v3222_v45 = vpop.permute.xlu0 %3221 }
 0x2b5   : > { %v3230_v10 = vsel %vm3229_vm3, %v3222_v45, %v3224_v41  ;;  %v4002_v45 = vrot.slane %v3982_v39, 3  ;;  %v11247_v39 = vld [vmem:[#allocation8_spill] sm:$0xff] }
 0x2b6   : > { %v8988_v49 = vadd.f32 %v3230_v10, %v8855_v40  ;;  %3959 = vrot.lane.b32.xlu1 %v3949_v50, %s6263_s4  ;;  %3916 = vrot.lane.b32.xlu0 %v3909_v20, %s6263_s4  ;;  %v4000_v40 = vrot.slane %v3985_v0, 3  ;;  %v4028_v50 = vmul.f32 %v8983_v12, %v8536_v59  ;;  %v11249_v0 = vld [vmem:[#allocation11_spill] sm:$0xff] }
 0x2b7   : > { %v381_v60 = vsel %vm11035_vm2, %v11247_v39, %v11249_v0  ;;  %v4004_v8 = vsel %vm3357_vm9, %v4002_v45, %v4003_v33  ;;  %v4034_v33 = vmul.f32 %v8983_v12, %v8553_v57  ;;  %v4033_v45 = vmul.f32 %v8983_v12, %v8564_v38 }
 0x2b8   : > { %v3228_v21 = vpop.permute.xlu1 %3227  ;;  %v3226_v14 = vpop.permute.xlu0 %3225  ;;  %v4001_v37 = vsel %vm3357_vm9, %v3999_v32, %v4000_v40  ;;  %v4029_v32 = vmul.f32 %v8983_v12, %v8556_v61  ;;  %v11251_v40 = vld [vmem:[#allocation7_spill] sm:$0xff]  ;;  %v4031_v38 = vmul.f32 %v8983_v12, %v8582_v47  ;;  %v11254_v47 = vld [vmem:[#allocation17_spill] sm:$0xff] }
 0x2b9   : > { %v3231_v20 = vsel %vm3229_vm3, %v3224_v41, %v3226_v14  ;;  %v3232_v48 = vsel %vm3229_vm3, %v3226_v14, %v3228_v21  ;;  %v267_v14 = vmul.f32 %v6163_v31, %v266_v53  ;;  %v270_v21 = vmul.f32 %v6162_v62, %v266_v53  ;;  %v11250_v62 = vld [vmem:[#allocation10_spill] sm:$0xff] }
 0x2ba   : > { %v9002_v27 = vadd.f32 %v3231_v20, %v8872_v9  ;;  %v9005_v52 = vadd.f32 %v3232_v48, %v8874_v26  ;;  %3963 = vrot.lane.b32.xlu1 %v3955_v3, %s6263_s4  ;;  %3961 = vrot.lane.b32.xlu0 %v3952_v5, %s6263_s4  ;;  %v11248_v9 = vld [vmem:[#allocation9_spill] sm:$0xff]  ;;  %v6164_v26 = vld [vmem:[%s6339_s29 + $0x8] sm:$0xff]  ;;  %v269_v3 = vmul.f32 %v6165_v15, %v266_v53  ;;  %v4045_v20 = vrot.slane %v4032_v63, 3  ;;  %v11253_v15 = vld [vmem:[#allocation16_spill] sm:$0xff] }
 0x2bb   : > { %v380_v41 = vsel %vm11035_vm2, %v11248_v9, %v11247_v39  ;;  %v268_v17 = vmul.f32 %v6164_v26, %v266_v53  ;;  %v382_v23 = vsel %vm11035_vm2, %v11249_v0, %v11250_v62  ;;  %v4044_v53 = vrot.slane %v4028_v50, 3 }
 0x2bc   : > { %v9021_v5 = vpop.permute.xlu1 %3271  ;;  %v9023_v10 = vpop.permute.xlu0 %3269  ;;  %v4005_v48 = vrot.slane %v3983_v36, 3  ;;  %v4006_v31 = vrot.slane %v3987_v2, 3  ;;  %v4030_v39 = vmul.f32 %v8983_v12, %v8550_v46  ;;  %v390_v50 = vadd.f32 %v11250_v62, %v270_v21  ;;  %v9054_v2 = vld [vmem:[%s6339_s29 + $0x20] sm:$0x7] }
 0x2bd   : > { %v4077_v46 = vmul.f32 %v9031_v18, %v8536_v59  ;;  %v388_v57 = vadd.f32 %v381_v60, %v268_v17  ;;  %v4081_v61 = vmul.f32 %v9054_v2, %v9031_v18  ;;  %v4046_v59 = vsel %vm3357_vm9, %v4044_v53, %v4045_v20 }
 0x2be   : > { %4008 = vrot.lane.b32.xlu1 %v3998_v7, %s6264_s18  ;;  %3965 = vrot.lane.b32.xlu0 %v3958_v58, %s6263_s4  ;;  %v332_v7 = vadd.f32 %v11251_v40, %v250_v1  ;;  %v387_v58 = vadd.f32 %v380_v41, %v267_v14  ;;  %v4035_v1 = vmul.f32 %v8983_v12, %v8585_v24  ;;  %v4050_v9 = vrot.slane %v4030_v39, 3  ;;  %v11255_v24 = vld [vmem:[#allocation19_spill] sm:$0xff]  ;;  %v9097_v40 = vld [vmem:[%s6339_s29 + $0x28] sm:$0x7]  ;;  %s9220_s4 = sld [smem:[#allocation2 + $0x5f]] }
 0x2bf   : > { %v389_v14 = vadd.f32 %v382_v23, %v269_v3  ;;  %v4007_v21 = vsel %vm3357_vm9, %v4005_v48, %v4006_v31  ;;  %v4051_v41 = vrot.slane %v4034_v33, 3  ;;  %v4047_v26 = vrot.slane %v4029_v32, 3  ;;  %v11256_v3 = vld [vmem:[#allocation18_spill] sm:$0xff]  ;;  %v9080_v48 = vld [vmem:[%s6339_s29 + $0x10] sm:$0xf8] }
 0x2c0   : > { %v9045_v63 = vpop.permute.xlu1 %3275  ;;  %v9047_v36 = vpop.permute.xlu0 %3273  ;;  %v4048_v17 = vrot.slane %v4033_v45, 3  ;;  %v496_v0 = vsel %vm466_vm4, %v11254_v47, %v11253_v15  ;;  %v497_v12 = vsel %vm466_vm4, %v11253_v15, %v11255_v24  ;;  %v498_v60 = vsel %vm466_vm4, %v11255_v24, %v11256_v3  ;;  %v9087_v39 = vld [vmem:[%s6339_s29 + $0x30] sm:$0x7]  ;;  %v9092_v32 = vld [vmem:[%s6339_s29 + $0x8] sm:$0xf8] }
 0x2c1   : > { %11252 = vst [vmem:[#allocation46_spill] sm:$0xff] %v9045_v63  ;;  %v4053_v53 = vrot.slane %v4031_v38, 3  ;;  %v4054_v20 = vrot.slane %v4035_v1, 3  ;;  %v4079_v31 = vmul.f32 %v9080_v48, %v9031_v18  ;;  %vm611_vm2 = vcmask 580608  }
 0x2c2   : > { %4012 = vrot.lane.b32.xlu1 %v4004_v8, %s6264_s18  ;;  %4010 = vrot.lane.b32.xlu0 %v4001_v37, %s6264_s18  ;;  %v4093_v8 = vrot.slane %v4077_v46, 3  ;;  %v4094_v37 = vrot.slane %v4081_v61, 3  ;;  %v4083_v33 = vmul.f32 %v9087_v39, %v9031_v18  ;;  %v4078_v45 = vmul.f32 %v9092_v32, %v9031_v18  ;;  %v11259_v61 = vld [vmem:[#allocation13_spill] sm:$0xff] }
 0x2c3   : > { %v4082_v46 = vmul.f32 %v9097_v40, %v9031_v18  ;;  %v447_v38 = vadd.f32 %v11259_v61, %v332_v7  ;;  %v503_v1 = vadd.f32 %v496_v0, %v387_v58  ;;  %v506_v15 = vadd.f32 %v11256_v3, %v390_v50  ;;  %v11264_v58 = vld [vmem:[#allocation35_spill] sm:$0xff]  ;;  %v9123_v0 = vld [vmem:[%s6339_s29] sm:$0xf8]  ;;  %v9128_v3 = vld [vmem:[%s6339_s29 + $0x18] sm:$0xf8] }
 0x2c4   : > { %v9075_v62 = vpop.permute.xlu1 %3320  ;;  %v9077_v23 = vpop.permute.xlu0 %3318  ;;  %v504_v47 = vadd.f32 %v497_v12, %v388_v57  ;;  %v505_v24 = vadd.f32 %v498_v60, %v389_v14  ;;  %v612_v7 = vsel %vm611_vm2, %v11263_v28, %v11262_v13  ;;  %v4095_v50 = vsel %vm3357_vm9, %v4093_v8, %v4094_v37  ;;  %v9133_v60 = vld [vmem:[%s6339_s29 + $0x38] sm:$0x7]  ;;  %v11265_v37 = vld [vmem:[#allocation26_spill] sm:$0xff] }
 0x2c5   : > { %11257 = vst [vmem:[#allocation8_spill] sm:$0xff] %v9075_v62  ;;  %11258 = vst [vmem:[#allocation9_spill] sm:$0xff] %v9077_v23  ;;  %v4055_v57 = vsel %vm3357_vm9, %v4053_v53, %v4054_v20  ;;  %v4099_v14 = vrot.slane %v4079_v31, 3  ;;  %v4127_v28 = vmul.f32 %v9123_v0, %v4126_v29  ;;  %v4131_v12 = vmul.f32 %v9054_v2, %v4126_v29  ;;  %v11266_v31 = vld [vmem:[#allocation34_spill] sm:$0xff] }
 0x2c6   : > { %4056 = vrot.lane.b32.xlu1 %v4046_v59, %s6264_s18  ;;  %4014 = vrot.lane.b32.xlu0 %v4007_v21, %s6264_s18  ;;  %v4052_v59 = vsel %vm3357_vm9, %v4050_v9, %v4051_v41  ;;  %v4049_v21 = vsel %vm3357_vm9, %v4047_v26, %v4048_v17  ;;  %v613_v9 = vsel %vm611_vm2, %v11262_v13, %v11264_v58  ;;  %v4100_v41 = vrot.slane %v4083_v33, 3 }
 0x2c7   : > { %v4096_v26 = vrot.slane %v4078_v45, 3  ;;  %v4097_v17 = vrot.slane %v4082_v46, 3  ;;  %v4080_v13 = vmul.f32 %v9128_v3, %v9031_v18  ;;  %v4084_v8 = vmul.f32 %v9133_v60, %v9031_v18 }
 0x2c8   : > { %v9107_v30 = vpop.permute.xlu1 %3324  ;;  %v9109_v16 = vpop.permute.xlu0 %3322  ;;  %v563_v53 = vadd.f32 %v11265_v37, %v447_v38  ;;  %v619_v20 = vadd.f32 %v612_v7, %v503_v1  ;;  %v622_v33 = vadd.f32 %v11266_v31, %v506_v15  ;;  %v4129_v61 = vmul.f32 %v9080_v48, %v4126_v29 }
 0x2c9   : > { %11260 = vst [vmem:[#allocation11_spill] sm:$0xff] %v9107_v30  ;;  %11261 = vst [vmem:[#allocation10_spill] sm:$0xff] %v9109_v16  ;;  %v4128_v18 = vmul.f32 %v9092_v32, %v4126_v29  ;;  %v4132_v38 = vmul.f32 %v9097_v40, %v4126_v29  ;;  %v620_v1 = vadd.f32 %v613_v9, %v504_v47  ;;  %v4175_v37 = vstv %s9101_s22  ;;  %s6268_s22 = smov 47  }
 0x2ca   : > { %4060 = vrot.lane.b32.xlu1 %v4052_v59, %s6264_s18  ;;  %4058 = vrot.lane.b32.xlu0 %v4049_v21, %s6264_s18  ;;  %v614_v59 = vsel %vm611_vm2, %v11264_v58, %v11266_v31  ;;  %v4133_v21 = vmul.f32 %v9087_v39, %v4126_v29  ;;  %v4101_v15 = vsel %vm3357_vm9, %v4099_v14, %v4100_v41  ;;  %v4143_v58 = vrot.slane %v4127_v28, 3 }
 0x2cb   : > { %v4098_v7 = vsel %vm3357_vm9, %v4096_v26, %v4097_v17  ;;  %v4144_v31 = vrot.slane %v4131_v12, 3  ;;  %v621_v51 = vadd.f32 %v614_v59, %v505_v24  ;;  %v679_v19 = vadd.f32 %v11269_v22, %v563_v53 }
 0x2cc   : > { %v9139_v45 = vpop.permute.xlu1 %3369  ;;  %v9141_v46 = vpop.permute.xlu0 %3367  ;;  %v727_v47 = vsel %vm11057_vm6, %v11271_v56, %v11270_v42  ;;  %v4150_v14 = vrot.slane %v4133_v21, 3  ;;  %v4146_v41 = vrot.slane %v4128_v18, 3  ;;  %v4147_v26 = vrot.slane %v4132_v38, 3  ;;  %v11274_v21 = vld [vmem:[#allocation50_spill] sm:$0xff] }
 0x2cd   : > { %11267 = vst [vmem:[#allocation7_spill] sm:$0xff] %v9139_v45  ;;  %11268 = vst [vmem:[#allocation16_spill] sm:$0xff] %v9141_v46  ;;  %v4102_v46 = vrot.slane %v4080_v13, 3  ;;  %v4103_v45 = vrot.slane %v4084_v8, 3  ;;  %v4176_v17 = vmul.f32 %v9123_v0, %v4175_v37  ;;  %v4180_v22 = vmul.f32 %v9054_v2, %v4175_v37 }
 0x2ce   : > { %4105 = vrot.lane.b32.xlu1 %v4095_v50, %s6265_s26  ;;  %4062 = vrot.lane.b32.xlu0 %v4055_v57, %s6264_s18  ;;  %v4149_v57 = vrot.slane %v4129_v61, 3  ;;  %v4130_v24 = vmul.f32 %v9128_v3, %v4126_v29  ;;  %v4134_v56 = vmul.f32 %v9133_v60, %v4126_v29  ;;  %v4145_v28 = vsel %vm3357_vm9, %v4143_v58, %v4144_v31  ;;  %v11273_v61 = vld [vmem:[#allocation49_spill] sm:$0xff]  ;;  %s6267_s18 = smov 51  }
 0x2cf   : > { %v4104_v12 = vsel %vm3357_vm9, %v4102_v46, %v4103_v45  ;;  %v4178_v13 = vmul.f32 %v9080_v48, %v4175_v37  ;;  %v4182_v8 = vmul.f32 %v9087_v39, %v4175_v37  ;;  %v734_v53 = vadd.f32 %v727_v47, %v619_v20  ;;  %v11275_v46 = vld [vmem:[#allocation56_spill] sm:$0xff] }
 0x2d0   : > { %v9161_v9 = vpop.permute.xlu1 %3422  ;;  %v9163_v50 = vpop.permute.xlu0 %3371  ;;  %v9178_v59 = vadd.f32 %v11273_v61, %v622_v33  ;;  %v728_v18 = vsel %vm11057_vm6, %v11270_v42, %v11274_v21  ;;  %v729_v29 = vsel %vm11057_vm6, %v11274_v21, %v11273_v61  ;;  %v4151_v20 = vsel %vm3357_vm9, %v4149_v57, %v4150_v14 }
 0x2d1   : > { %11272 = vst [vmem:[#allocation17_spill] sm:$0xff] %v9163_v50  ;;  %v4148_v33 = vsel %vm3357_vm9, %v4146_v41, %v4147_v26  ;;  %v4223_v58 = vstv %s9150_s24  ;;  %v4192_v42 = vrot.slane %v4176_v17, 3  ;;  %v4193_v31 = vrot.slane %v4180_v22, 3  ;;  %s9506_s24 = sld [smem:[#allocation2 + $0x6b]] }
 0x2d2   : > { %4109 = vrot.lane.b32.xlu1 %v4101_v15, %s6265_s26  ;;  %4107 = vrot.lane.b32.xlu0 %v4098_v7, %s6265_s26  ;;  %v11276_v15 = vld [vmem:[#allocation57_spill] sm:$0xff]  ;;  %v4152_v47 = vrot.slane %v4130_v24, 3  ;;  %v4153_v61 = vrot.slane %v4134_v56, 3  ;;  %v4198_v21 = vrot.slane %v4178_v13, 3  ;;  %v4199_v50 = vrot.slane %v4182_v8, 3  ;;  %v11278_v56 = vld [vmem:[#allocation55_spill] sm:$0xff] }
 0x2d3   : > { %v842_v7 = vsel %vm11053_vm7, %v11276_v15, %v11275_v46  ;;  %v4177_v54 = vmul.f32 %v9092_v32, %v4175_v37  ;;  %v4181_v30 = vmul.f32 %v9097_v40, %v4175_v37  ;;  %v4224_v14 = vmul.f32 %v9123_v0, %v4223_v58  ;;  %v11279_v13 = vld [vmem:[#allocation59_spill] sm:$0xff] }
 0x2d4   : > { %v9186_v38 = vpop.permute.xlu1 %3426  ;;  %v9188_v45 = vpop.permute.xlu0 %3424  ;;  %v4228_v41 = vmul.f32 %v9054_v2, %v4223_v58  ;;  %v4179_v26 = vmul.f32 %v9128_v3, %v4175_v37  ;;  %v4183_v17 = vmul.f32 %v9133_v60, %v4175_v37  ;;  %v735_v22 = vadd.f32 %v728_v18, %v620_v1 }
 0x2d5   : > { %v736_v24 = vadd.f32 %v729_v29, %v621_v51  ;;  %v843_v8 = vsel %vm11053_vm7, %v11275_v46, %v11279_v13  ;;  %v4194_v6 = vsel %vm3357_vm9, %v4192_v42, %v4193_v31  ;;  %v4154_v55 = vsel %vm3357_vm9, %v4152_v47, %v4153_v61 }
 0x2d6   : > { %4155 = vrot.lane.b32.xlu1 %v4145_v28, %s6265_s26  ;;  %4111 = vrot.lane.b32.xlu0 %v4104_v12, %s6265_s26  ;;  %v794_v28 = vadd.f32 %v11278_v56, %v679_v19  ;;  %v849_v12 = vadd.f32 %v842_v7, %v734_v53  ;;  %v4200_v16 = vsel %vm3357_vm9, %v4198_v21, %v4199_v50  ;;  %v4195_v37 = vrot.slane %v4177_v54, 3 }
 0x2d7   : > { %v4196_v1 = vrot.slane %v4181_v30, 3  ;;  %v9218_v51 = vstv %s9175_s27  ;;  %v4240_v18 = vrot.slane %v4224_v14, 3  ;;  %v4241_v29 = vrot.slane %v4228_v41, 3  ;;  %s9640_s27 = sld [smem:[#allocation2 + $0x73]] }
 0x2d8   : > { %v9200_v15 = vpop.permute.xlu1 %3470  ;;  %v9202_v57 = vpop.permute.xlu0 %3428  ;;  %v4201_v46 = vrot.slane %v4179_v26, 3  ;;  %v4202_v7 = vrot.slane %v4183_v17, 3  ;;  %v4225_v50 = vmul.f32 %v9092_v32, %v4223_v58  ;;  %v4229_v30 = vmul.f32 %v9097_v40, %v4223_v58 }
 0x2d9   : > { %11277 = vst [vmem:[#allocation19_spill] sm:$0xff] %v9200_v15  ;;  %v4273_v54 = vmul.f32 %v9123_v0, %v9218_v51  ;;  %v4277_v42 = vmul.f32 %v9054_v2, %v9218_v51  ;;  %v4227_v31 = vmul.f32 %v9128_v3, %v4223_v58  ;;  %v4197_v47 = vsel %vm3357_vm9, %v4195_v37, %v4196_v1 }
 0x2da   : > { %4159 = vrot.lane.b32.xlu1 %v4151_v20, %s6265_s26  ;;  %4157 = vrot.lane.b32.xlu0 %v4148_v33, %s6265_s26  ;;  %v4226_v20 = vmul.f32 %v9080_v48, %v4223_v58  ;;  %v4230_v33 = vmul.f32 %v9087_v39, %v4223_v58  ;;  %v4231_v61 = vmul.f32 %v9133_v60, %v4223_v58  ;;  %v4243_v62 = vrot.slane %v4225_v50, 3 }
 0x2db   : > { %v4275_v21 = vmul.f32 %v9080_v48, %v9218_v51  ;;  %v4242_v17 = vsel %vm3357_vm9, %v4240_v18, %v4241_v29  ;;  %v4274_v58 = vmul.f32 %v9092_v32, %v9218_v51  ;;  %v4278_v56 = vmul.f32 %v9097_v40, %v9218_v51 }
 0x2dc   : > { %v9222_v19 = vpop.permute.xlu1 %3474  ;;  %v9224_v53 = vpop.permute.xlu0 %3472  ;;  %v4203_v37 = vsel %vm3357_vm9, %v4201_v46, %v4202_v7  ;;  %v4246_v1 = vrot.slane %v4226_v20, 3  ;;  %v4247_v23 = vrot.slane %v4230_v33, 3  ;;  %v4249_v18 = vrot.slane %v4227_v31, 3 }
 0x2dd   : > { %11280 = vst [vmem:[#allocation18_spill] sm:$0xff] %v9222_v19  ;;  %v4250_v29 = vrot.slane %v4231_v61, 3  ;;  %v4295_v25 = vrot.slane %v4275_v21, 3  ;;  %v4321_v19 = vstv %s9220_s4  ;;  %v9265_v46 = vadd.f32 %v843_v8, %v735_v22  ;;  %s9684_s4 = sld [smem:[#allocation2 + $0x77]] }
 0x2de   : > { %4204 = vrot.lane.b32.xlu1 %v4194_v6, %s6266_s7  ;;  %4161 = vrot.lane.b32.xlu0 %v4154_v55, %s6265_s26  ;;  %v4279_v55 = vmul.f32 %v9087_v39, %v9218_v51  ;;  %v11281_v6 = vld [vmem:[#allocation58_spill] sm:$0xff]  ;;  %v4292_v20 = vrot.slane %v4274_v58, 3  ;;  %v4293_v33 = vrot.slane %v4278_v56, 3  ;;  %v4248_v22 = vsel %vm3357_vm9, %v4246_v1, %v4247_v23  ;;  %s9598_s26 = sld [smem:[#allocation2 + $0x6f]] }
 0x2df   : > { %v844_v14 = vsel %vm11053_vm7, %v11279_v13, %v11281_v6  ;;  %v4244_v13 = vrot.slane %v4229_v30, 3  ;;  %v9263_v15 = vadd.f32 %v11281_v6, %v9178_v59  ;;  %11285 = vst [vmem:[#allocation35_spill] sm:$0xff] %v9265_v46  ;;  %v11287_v30 = vld [vmem:[#allocation27_spill] sm:$0xff]  ;;  %vm3430_vm7 = vcmask 1039360  }
 0x2e0   : > { %v9248_v41 = vpop.permute.xlu1 %3519  ;;  %v9250_v26 = vpop.permute.xlu0 %3476  ;;  %v4296_v63 = vrot.slane %v4279_v55, 3  ;;  %v9271_v50 = vadd.f32 %v844_v14, %v736_v24  ;;  %v4251_v61 = vsel %vm3357_vm9, %v4249_v18, %v4250_v29  ;;  %v4326_v55 = vmul.f32 %v9054_v2, %v4321_v19 }
 0x2e1   : > { %11282 = vst [vmem:[#allocation13_spill] sm:$0xff] %v9248_v41  ;;  %11283 = vst [vmem:[#allocation32_spill] sm:$0xff] %v9250_v26  ;;  %v4289_v41 = vrot.slane %v4273_v54, 3  ;;  %v4290_v26 = vrot.slane %v4277_v42, 3  ;;  %v9274_v54 = vadd.f32 %v11287_v30, %v794_v28  ;;  %v11289_v42 = vld [vmem:[#allocation24_spill] sm:$0xff]  ;;  %v4245_v24 = vsel %vm3357_vm9, %v4243_v62, %v4244_v13 }
 0x2e2   : > { %4208 = vrot.lane.b32.xlu1 %v4200_v16, %s6266_s7  ;;  %4206 = vrot.lane.b32.xlu0 %v4197_v47, %s6266_s7  ;;  %11284 = vst [vmem:[#allocation33_spill] sm:$0xff] %v9263_v15  ;;  %11286 = vst [vmem:[#allocation26_spill] sm:$0xff] %v9271_v50  ;;  %v9277_v31 = vadd.f32 %v11289_v42, %v849_v12  ;;  %v11291_v47 = vld [vmem:[#allocation40_spill] sm:$0xff]  ;;  %v4322_v28 = vmul.f32 %v9123_v0, %v4321_v19  ;;  %v9292_v12 = vstv %s9237_s10  ;;  %vm3625_vm6 = vcmask 883712   ;;  %s9785_s10 = sld [smem:[#allocation2 + $0x68]] }
 0x2e3   : > { %11288 = vst [vmem:[#allocation34_spill] sm:$0xff] %v9274_v54  ;;  %v9282_v59 = vsel %vm917_vm8, %v11289_v42, %v11291_v47  ;;  %v4291_v8 = vsel %vm3357_vm9, %v4289_v41, %v4290_v26  ;;  %v4297_v21 = vsel %vm3357_vm9, %v4295_v25, %v4296_v63  ;;  %v4294_v23 = vsel %vm3357_vm9, %v4292_v20, %v4293_v33 }
 0x2e4   : > { %v9267_v7 = vpop.permute.xlu1 %3523  ;;  %v9269_v16 = vpop.permute.xlu0 %3521  ;;  %11290 = vst [vmem:[#allocation42_spill] sm:$0xff] %v9277_v31  ;;  %11292 = vst [vmem:[#allocation47_spill] sm:$0xff] %v9282_v59  ;;  %v4276_v62 = vmul.f32 %v9128_v3, %v9218_v51  ;;  %v4324_v41 = vmul.f32 %v9080_v48, %v4321_v19  ;;  %v4328_v26 = vmul.f32 %v9087_v39, %v4321_v19  ;;  %v4338_v56 = vrot.slane %v4322_v28, 3 }
 0x2e5   : > { %v4323_v25 = vmul.f32 %v9092_v32, %v4321_v19  ;;  %v4327_v63 = vmul.f32 %v9097_v40, %v4321_v19  ;;  %v4372_v58 = vmul.f32 %v9123_v0, %v9292_v12  ;;  %v4329_v1 = vmul.f32 %v9133_v60, %v4321_v19 }
 0x2e6   : > { %4252 = vrot.lane.b32.xlu1 %v4242_v17, %s6266_s7  ;;  %4210 = vrot.lane.b32.xlu0 %v4203_v37, %s6266_s7  ;;  %v4280_v17 = vmul.f32 %v9133_v60, %v9218_v51  ;;  %v4376_v37 = vmul.f32 %v9054_v2, %v9292_v12  ;;  %v4325_v51 = vmul.f32 %v9128_v3, %v4321_v19  ;;  %v4339_v42 = vrot.slane %v4326_v55, 3 }
 0x2e7   : > { %v4374_v13 = vmul.f32 %v9080_v48, %v9292_v12  ;;  %v4378_v18 = vmul.f32 %v9087_v39, %v9292_v12  ;;  %v4373_v29 = vmul.f32 %v9092_v32, %v9292_v12  ;;  %v4377_v20 = vmul.f32 %v9097_v40, %v9292_v12 }
 0x2e8   : > { %v9298_v6 = vpop.permute.xlu1 %3568  ;;  %v9300_v14 = vpop.permute.xlu0 %3525  ;;  %v4344_v19 = vrot.slane %v4324_v41, 3  ;;  %v4345_v28 = vrot.slane %v4328_v26, 3  ;;  %v4342_v31 = vrot.slane %v4327_v63, 3  ;;  %v9332_v54 = vstv %s9284_s11  ;;  %s9827_s11 = sld [smem:[#allocation2 + $0x69]] }
 0x2e9   : > { %11293 = vst [vmem:[#allocation48_spill] sm:$0xff] %v9298_v6  ;;  %11294 = vst [vmem:[#allocation49_spill] sm:$0xff] %v9300_v14  ;;  %v4341_v6 = vrot.slane %v4323_v25, 3  ;;  %v4388_v15 = vrot.slane %v4372_v58, 3  ;;  %v4389_v50 = vrot.slane %v4376_v37, 3  ;;  %v4347_v59 = vrot.slane %v4325_v51, 3 }
 0x2ea   : > { %4256 = vrot.lane.b32.xlu1 %v4248_v22, %s6266_s7  ;;  %4254 = vrot.lane.b32.xlu0 %v4245_v24, %s6266_s7  ;;  %v4298_v22 = vrot.slane %v4276_v62, 3  ;;  %v4299_v24 = vrot.slane %v4280_v17, 3  ;;  %v4348_v46 = vrot.slane %v4329_v1, 3  ;;  %v4395_v14 = vrot.slane %v4378_v18, 3  ;;  %v11297_v62 = vld [vmem:[#allocation43_spill] sm:$0xff] }
 0x2eb   : > { %v4392_v55 = vrot.slane %v4377_v20, 3  ;;  %v9339_v17 = vsel %vm917_vm8, %v11291_v47, %v11297_v62  ;;  %v4420_v25 = vmul.f32 %v9123_v0, %v9332_v54  ;;  %v3431_v63 = vsel %vm3430_vm7, %v9161_v9, %v9188_v45 }
 0x2ec   : > { %v9327_v33 = vpop.permute.xlu1 %3572  ;;  %v9329_v30 = vpop.permute.xlu0 %3570  ;;  %v3432_v58 = vsel %vm3430_vm7, %v9188_v45, %v9186_v38  ;;  %v4346_v47 = vsel %vm3357_vm9, %v4344_v19, %v4345_v28  ;;  %v4343_v37 = vsel %vm3357_vm9, %v4341_v6, %v4342_v31  ;;  %v4424_v51 = vmul.f32 %v9054_v2, %v9332_v54  ;;  %v11299_v19 = vld [vmem:[#allocation19_spill] sm:$0xff] }
 0x2ed   : > { %11295 = vst [vmem:[#allocation50_spill] sm:$0xff] %v9327_v33  ;;  %11296 = vst [vmem:[#allocation56_spill] sm:$0xff] %v9329_v30  ;;  %v4394_v33 = vrot.slane %v4374_v13, 3  ;;  %v4391_v30 = vrot.slane %v4373_v29, 3  ;;  %v9364_v9 = vmul.f32 %v9128_v3, %v9292_v12  ;;  %v4349_v45 = vsel %vm3357_vm9, %v4347_v59, %v4348_v46 }
 0x2ee   : > { %4301 = vrot.lane.b32.xlu1 %v4291_v8, %s6266_s7  ;;  %4258 = vrot.lane.b32.xlu0 %v4251_v61, %s6266_s7  ;;  %v4340_v8 = vsel %vm3357_vm9, %v4338_v56, %v4339_v42  ;;  %v4300_v61 = vsel %vm3357_vm9, %v4298_v22, %v4299_v24  ;;  %v9358_v56 = vsel %vm3357_vm9, %v4388_v15, %v4389_v50  ;;  %v4436_v59 = vrot.slane %v4420_v25, 3 }
 0x2ef   : > { %v9368_v1 = vsel %vm3357_vm9, %v4394_v33, %v4395_v14  ;;  %v9371_v31 = vsel %vm3357_vm9, %v4391_v30, %v4392_v55  ;;  %v3081_v15 = vsel %vm3033_vm1, %v8886_v4, %v8884_v35  ;;  %v3437_v50 = vadd.f32 %v3431_v63, %v8988_v49  ;;  %v11300_v55 = vld [vmem:[#allocation18_spill] sm:$0xff] }
 0x2f0   : > { %v3618_v41 = vpop.permute.xlu1 %3617  ;;  %v9341_v26 = vpop.permute.xlu0 %3574  ;;  %v3438_v6 = vadd.f32 %v3432_v58, %v9002_v27  ;;  %v3082_v14 = vsel %vm3033_vm1, %v8884_v35, %v8901_v11  ;;  %v4437_v18 = vrot.slane %v4424_v51, 3  ;;  %v4397_v35 = vrot.slane %v9364_v9, 3  ;;  %v11302_v51 = vld [vmem:[#allocation92_spill] sm:$0xff] }
 0x2f1   : > { %11298 = vst [vmem:[#allocation57_spill] sm:$0xff] %v9341_v26  ;;  %v4422_v29 = vmul.f32 %v9080_v48, %v9332_v54  ;;  %v4426_v20 = vmul.f32 %v9087_v39, %v9332_v54  ;;  %v3088_v33 = vadd.f32 %v3081_v15, %v8743_v43  ;;  %v3089_v30 = vadd.f32 %v3082_v14, %v8760_v44 }
 0x2f2   : > { %4305 = vrot.lane.b32.xlu1 %v4297_v21, %s6266_s7  ;;  %4303 = vrot.lane.b32.xlu0 %v4294_v23, %s6266_s7  ;;  %v9375_v21 = vmul.f32 %v9133_v60, %v9292_v12  ;;  %v3433_v12 = vsel %vm3430_vm7, %v9186_v38, %v9202_v57  ;;  %v3277_v38 = vsel %vm3229_vm3, %v9023_v10, %v9021_v5 }
 0x2f3   : > { %v3278_v57 = vsel %vm3229_vm3, %v9021_v5, %v9047_v36  ;;  %v3439_v42 = vadd.f32 %v3433_v12, %v9005_v52  ;;  %v4421_v10 = vmul.f32 %v9092_v32, %v9332_v54  ;;  %v3083_v5 = vsel %vm3033_vm1, %v8901_v11, %v8899_v34 }
 0x2f4   : > { %v3622_v23 = vpop.permute.xlu1 %3621  ;;  %v3620_v46 = vpop.permute.xlu0 %3619  ;;  %v3478_v28 = vsel %vm3430_vm7, %v11299_v19, %v9224_v53  ;;  %v3479_v43 = vsel %vm3430_vm7, %v9224_v53, %v11300_v55  ;;  %v3284_v52 = vadd.f32 %v3277_v38, %v3088_v33  ;;  %v4398_v11 = vrot.slane %v9375_v21, 3  ;;  %v11305_v38 = vld [vmem:[#allocation9_spill] sm:$0xff] }
 0x2f5   : > { %v3626_v13 = vsel %vm3625_vm6, %v3618_v41, %v3620_v46  ;;  %v3627_v4 = vsel %vm3625_vm6, %v3620_v46, %v3622_v23  ;;  %v3285_v41 = vadd.f32 %v3278_v57, %v3089_v30  ;;  %v4438_v63 = vsel %vm3357_vm9, %v4436_v59, %v4437_v18  ;;  %v11304_v18 = vld [vmem:[#allocation8_spill] sm:$0xff] }
 0x2f6   : > { %v9392_v49 = vadd.f32 %v3626_v13, %v3437_v50  ;;  %v9394_v27 = vadd.f32 %v3627_v4, %v3438_v6  ;;  %4350 = vrot.lane.b32.xlu1 %v4340_v8, %s6267_s18  ;;  %4307 = vrot.lane.b32.xlu0 %v4300_v61, %s6266_s7  ;;  %v11301_v61 = vld [vmem:[#allocation46_spill] sm:$0xff]  ;;  %v4442_v53 = vrot.slane %v4422_v29, 3  ;;  %v4425_v58 = vmul.f32 %v9097_v40, %v9332_v54  ;;  %s9738_s7 = sld [smem:[#allocation2 + $0x7b]] }
 0x2f7   : > { %v3279_v25 = vsel %vm3229_vm3, %v9047_v36, %v11301_v61  ;;  %v3090_v9 = vadd.f32 %v3083_v5, %v11302_v51  ;;  %v3485_v15 = vadd.f32 %v3478_v28, %v3284_v52  ;;  %v3486_v50 = vadd.f32 %v3479_v43, %v3285_v41  ;;  %v11306_v29 = vld [vmem:[#allocation10_spill] sm:$0xff]  ;;  %v11308_v5 = vld [vmem:[#allocation13_spill] sm:$0xff]  ;;  %v11309_v43 = vld [vmem:[#allocation99_spill] sm:$0xff] }
 0x2f8   : > { %v3666_v22 = vpop.permute.xlu1 %3665  ;;  %v3624_v24 = vpop.permute.xlu0 %3623  ;;  %v4443_v59 = vrot.slane %v4426_v20, 3  ;;  %v4439_v4 = vrot.slane %v4421_v10, 3  ;;  %v3326_v57 = vsel %vm3229_vm3, %v11305_v38, %v11304_v18  ;;  %v3327_v20 = vsel %vm3229_vm3, %v11304_v18, %v11306_v29  ;;  %v11310_v52 = vld [vmem:[#allocation101_spill] sm:$0xff]  ;;  %v9650_v61 = vld [vmem:[%s6339_s29 + $0x18] sm:$0xf0] }
 0x2f9   : > { %v3628_v44 = vsel %vm3625_vm6, %v3622_v23, %v3624_v24  ;;  %v9437_v23 = vstv %s9382_s17  ;;  %v3286_v14 = vadd.f32 %v3279_v25, %v3090_v9  ;;  %v4440_v33 = vrot.slane %v4425_v58, 3  ;;  %s9913_s17 = sld [smem:[#allocation2 + $0x6d]] }
 0x2fa   : > { %v9424_v8 = vadd.f32 %v3628_v44, %v3439_v42  ;;  %4354 = vrot.lane.b32.xlu1 %v4346_v47, %s6267_s18  ;;  %4352 = vrot.lane.b32.xlu0 %v4343_v37, %s6267_s18  ;;  %v11303_v37 = vld [vmem:[#allocation32_spill] sm:$0xff]  ;;  %v4469_v30 = vmul.f32 %v9123_v0, %v9437_v23  ;;  %v4423_v10 = vmul.f32 %v9128_v3, %v9332_v54  ;;  %vm1414_vm1 = vcmask 744448  }
 0x2fb   : > { %v3480_v21 = vsel %vm3430_vm7, %v11300_v55, %v11303_v37  ;;  %v3527_v19 = vsel %vm3430_vm7, %v11308_v5, %v9269_v16  ;;  %v3528_v28 = vsel %vm3430_vm7, %v9269_v16, %v9267_v7  ;;  %v3333_v44 = vadd.f32 %v3326_v57, %v11309_v43  ;;  %v11311_v16 = vld [vmem:[#allocation11_spill] sm:$0xff]  ;;  %v11318_v5 = vld [vmem:[#allocation14_spill] sm:$0xff] }
 0x2fc   : > { %v3670_v6 = vpop.permute.xlu1 %3669  ;;  %v3668_v47 = vpop.permute.xlu0 %3667  ;;  %v3487_v42 = vadd.f32 %v3480_v21, %v3286_v14  ;;  %v3334_v41 = vadd.f32 %v3327_v20, %v11310_v52  ;;  %v3328_v25 = vsel %vm3229_vm3, %v11306_v29, %v11311_v16  ;;  %v4444_v58 = vsel %vm3357_vm9, %v4442_v53, %v4443_v59  ;;  %v11313_v53 = vld [vmem:[#allocation102_spill] sm:$0xff] }
 0x2fd   : > { %v3673_v36 = vsel %vm3625_vm6, %v3666_v22, %v3668_v47  ;;  %v3674_v46 = vsel %vm3625_vm6, %v3668_v47, %v3670_v6  ;;  %v4485_v51 = vrot.slane %v4469_v30, 3  ;;  %v3534_v9 = vadd.f32 %v3527_v19, %v3333_v44  ;;  %v11315_v30 = vld [vmem:[#allocation47_spill] sm:$0xff] }
 0x2fe   : > { %v9446_v12 = vadd.f32 %v3673_v36, %v3485_v15  ;;  %v9448_v13 = vadd.f32 %v3674_v46, %v3486_v50  ;;  %4400 = vrot.lane.b32.xlu1 %v9358_v56, %s6268_s22  ;;  %4356 = vrot.lane.b32.xlu0 %v4349_v45, %s6267_s18  ;;  %v4399_v56 = vsel %vm3357_vm9, %v4397_v35, %v4398_v11  ;;  %v4445_v21 = vrot.slane %v4423_v10, 3  ;;  %v11312_v36 = vld [vmem:[#allocation49_spill] sm:$0xff]  ;;  %s9967_s18 = sld [smem:[#allocation2 + $0x6e]] }
 0x2ff   : > { %v4473_v45 = vmul.f32 %v9054_v2, %v9437_v23  ;;  %v4427_v35 = vmul.f32 %v9133_v60, %v9332_v54  ;;  %v4441_v54 = vsel %vm3357_vm9, %v4439_v4, %v4440_v33  ;;  %v3535_v15 = vadd.f32 %v3528_v28, %v3334_v41  ;;  %v11314_v33 = vld [vmem:[#allocation35_spill] sm:$0xff] }
 0x300   : > { %v3715_v22 = vpop.permute.xlu1 %3714  ;;  %v9461_v24 = vpop.permute.xlu0 %3671  ;;  %v9497_v14 = vstv %s9444_s21  ;;  %v3335_v59 = vadd.f32 %v3328_v25, %v11313_v53  ;;  %v4475_v57 = vmul.f32 %v9087_v39, %v9437_v23  ;;  %v4470_v29 = vmul.f32 %v9092_v32, %v9437_v23  ;;  %v11319_v25 = vld [vmem:[#allocation26_spill] sm:$0xff]  ;;  %s10056_s21 = sld [smem:[#allocation2 + $0x72]] }
 0x301   : > { %11307 = vst [vmem:[#allocation55_spill] sm:$0xff] %v9461_v24  ;;  %v3675_v55 = vsel %vm3625_vm6, %v3670_v6, %v9461_v24  ;;  %v4486_v47 = vrot.slane %v4473_v45, 3  ;;  %v4446_v38 = vrot.slane %v4427_v35, 3  ;;  %v4474_v20 = vmul.f32 %v9097_v40, %v9437_v23  ;;  %v11325_v53 = vld [vmem:[#allocation34_spill] sm:$0xff] }
 0x302   : > { %v9480_v11 = vadd.f32 %v3675_v55, %v3487_v42  ;;  %4404 = vrot.lane.b32.xlu1 %v9368_v1, %s6268_s22  ;;  %4402 = vrot.lane.b32.xlu0 %v9371_v31, %s6268_s22  ;;  %v3529_v1 = vsel %vm3430_vm7, %v9267_v7, %v11312_v36  ;;  %v4471_v7 = vmul.f32 %v9080_v48, %v9437_v23  ;;  %v4492_v44 = vrot.slane %v4475_v57, 3  ;;  %v11329_v57 = vld [vmem:[#allocation30_spill] sm:$0xff] }
 0x303   : > { %v3536_v42 = vadd.f32 %v3529_v1, %v3335_v59  ;;  %v4518_v45 = vmul.f32 %v9123_v0, %v9497_v14  ;;  %v4522_v10 = vmul.f32 %v9054_v2, %v9497_v14  ;;  %v1025_v19 = vsel %vm917_vm8, %v11297_v62, %v11318_v5  ;;  %v11326_v59 = vld [vmem:[#allocation31_spill] sm:$0xff] }
 0x304   : > { %v3719_v50 = vpop.permute.xlu1 %3718  ;;  %v3717_v6 = vpop.permute.xlu0 %3716  ;;  %v4472_v55 = vmul.f32 %v9128_v3, %v9437_v23  ;;  %v4476_v35 = vmul.f32 %v9133_v60, %v9437_v23  ;;  %v4487_v2 = vsel %vm3357_vm9, %v4485_v51, %v4486_v47  ;;  %v4447_v0 = vsel %vm3357_vm9, %v4445_v21, %v4446_v38  ;;  %v11321_v23 = vld [vmem:[#allocation28_spill] sm:$0xff] }
 0x305   : > { %v3722_v31 = vsel %vm3625_vm6, %v3715_v22, %v3717_v6  ;;  %v3723_v46 = vsel %vm3625_vm6, %v3717_v6, %v3719_v50  ;;  %v4491_v62 = vrot.slane %v4471_v7, 3  ;;  %v4488_v52 = vrot.slane %v4470_v29, 3  ;;  %v11328_v7 = vld [vmem:[#allocation15_spill] sm:$0xff] }
 0x306   : > { %v9500_v4 = vadd.f32 %v3722_v31, %v3534_v9  ;;  %v9502_v18 = vadd.f32 %v3723_v46, %v3535_v15  ;;  %4448 = vrot.lane.b32.xlu1 %v4438_v63, %s6268_s22  ;;  %4406 = vrot.lane.b32.xlu0 %v4399_v56, %s6268_s22  ;;  %v9518_v63 = vadd.f32 %v11315_v30, %v11314_v33  ;;  %v4489_v41 = vrot.slane %v4474_v20, 3  ;;  %v11320_v15 = vld [vmem:[#allocation20_spill] sm:$0xff]  ;;  %v11324_v31 = vld [vmem:[#allocation33_spill] sm:$0xff] }
 0x307   : > { %v1032_v9 = vadd.f32 %v9339_v17, %v11319_v25  ;;  %v4534_v51 = vrot.slane %v4518_v45, 3  ;;  %v4535_v6 = vrot.slane %v4522_v10, 3  ;;  %v4494_v47 = vrot.slane %v4472_v55, 3  ;;  %v9566_v20 = vld [vmem:[%s6339_s29] sm:$0xf0]  ;;  %v11330_v10 = vld [vmem:[#allocation44_spill] sm:$0xff] }
 0x308   : > { %v9520_v22 = vpop.permute.xlu1 %3763  ;;  %v9522_v56 = vpop.permute.xlu0 %3720  ;;  %v4495_v21 = vrot.slane %v4476_v35, 3  ;;  %v4520_v1 = vmul.f32 %v9080_v48, %v9497_v14  ;;  %v4524_v17 = vmul.f32 %v9087_v39, %v9497_v14  ;;  %v1033_v46 = vadd.f32 %v1025_v19, %v11324_v31  ;;  %v9578_v45 = vld [vmem:[%s6339_s29 + $0x20] sm:$0xf]  ;;  %v11331_v19 = vld [vmem:[#allocation42_spill] sm:$0xff] }
 0x309   : > { %11316 = vst [vmem:[#allocation59_spill] sm:$0xff] %v9520_v22  ;;  %11317 = vst [vmem:[#allocation58_spill] sm:$0xff] %v9522_v56  ;;  %v3724_v28 = vsel %vm3625_vm6, %v3719_v50, %v9522_v56  ;;  %v1219_v50 = vsel %vm1169_vm11, %v11321_v23, %v11320_v15  ;;  %v9559_v38 = vadd.f32 %v11326_v59, %v11325_v53  ;;  %v9569_v48 = vstv %s9506_s24  ;;  %v11332_v55 = vld [vmem:[#allocation21_spill] sm:$0xff]  ;;  %v9607_v23 = vld [vmem:[%s6339_s29 + $0x28] sm:$0xf]  ;;  %s10263_s24 = sld [smem:[#allocation2 + $0x7a]] }
 0x30a   : > { %v9537_v43 = vadd.f32 %v3724_v28, %v3536_v42  ;;  %4452 = vrot.lane.b32.xlu1 %v4444_v58, %s6268_s22  ;;  %4450 = vrot.lane.b32.xlu0 %v4441_v54, %s6268_s22  ;;  %v1180_v29 = vadd.f32 %v11329_v57, %v11328_v7  ;;  %v4493_v39 = vsel %vm3357_vm9, %v4491_v62, %v4492_v44  ;;  %v9596_v62 = vld [vmem:[%s6339_s29 + $0x30] sm:$0xf]  ;;  %vm4585_vm8 = vcmask 1043456   ;;  %v11343_v56 = vld [vmem:[#allocation53_spill] sm:$0xff] }
 0x30b   : > { %11327 = vst [vmem:[#allocation40_spill] sm:$0xff] %v9559_v38  ;;  %v4490_v33 = vsel %vm3357_vm9, %v4488_v52, %v4489_v41  ;;  %v4519_v30 = vmul.f32 %v9092_v32, %v9497_v14  ;;  %v4523_v42 = vmul.f32 %v9097_v40, %v9497_v14  ;;  %v1220_v5 = vsel %vm1169_vm11, %v11320_v15, %v11330_v10  ;;  %v9593_v40 = vld [vmem:[%s6339_s29 + $0x10] sm:$0xf0]  ;;  %v9604_v15 = vld [vmem:[%s6339_s29 + $0x8] sm:$0xf0] }
 0x30c   : > { %v9548_v58 = vpop.permute.xlu1 %3767  ;;  %v9550_v54 = vpop.permute.xlu0 %3765  ;;  %v1226_v28 = vadd.f32 %v1219_v50, %v11331_v19  ;;  %v1221_v35 = vsel %vm1169_vm11, %v11330_v10, %v11332_v55  ;;  %v4496_v44 = vsel %vm3357_vm9, %v4494_v47, %v4495_v21  ;;  %v4540_v52 = vrot.slane %v4520_v1, 3  ;;  %v11334_v57 = vld [vmem:[#allocation39_spill] sm:$0xff] }
 0x30d   : > { %11322 = vst [vmem:[#allocation27_spill] sm:$0xff] %v9548_v58  ;;  %11323 = vst [vmem:[#allocation24_spill] sm:$0xff] %v9550_v54  ;;  %v4541_v41 = vrot.slane %v4524_v17, 3  ;;  %v4870_v25 = vmul.f32 %v9569_v48, %v9566_v20  ;;  %v4874_v50 = vmul.f32 %v9569_v48, %v9578_v45  ;;  %v4537_v47 = vrot.slane %v4519_v30, 3  ;;  %v11336_v30 = vld [vmem:[#allocation37_spill] sm:$0xff] }
 0x30e   : > { %4497 = vrot.lane.b32.xlu1 %v4487_v2, %s6268_s22  ;;  %4454 = vrot.lane.b32.xlu0 %v4447_v0, %s6268_s22  ;;  %v4536_v0 = vsel %vm3357_vm9, %v4534_v51, %v4535_v6  ;;  %v4521_v51 = vmul.f32 %v9128_v3, %v9497_v14  ;;  %v4525_v6 = vmul.f32 %v9133_v60, %v9497_v14  ;;  %v4538_v21 = vrot.slane %v4523_v42, 3 }
 0x30f   : > { %v4872_v1 = vmul.f32 %v9569_v48, %v9593_v40  ;;  %v4876_v17 = vmul.f32 %v9569_v48, %v9596_v62  ;;  %v1227_v31 = vadd.f32 %v1220_v5, %v9518_v63  ;;  %v1229_v53 = vadd.f32 %v11332_v55, %v1033_v46 }
 0x310   : > { %v9587_v2 = vpop.permute.xlu1 %3812  ;;  %v9589_v32 = vpop.permute.xlu0 %3769  ;;  %v4871_v3 = vmul.f32 %v9569_v48, %v9604_v15  ;;  %v4875_v60 = vmul.f32 %v9569_v48, %v9607_v23  ;;  %v9631_v14 = vadd.f32 %v1221_v35, %v1032_v9  ;;  %v1416_v63 = vsel %vm1414_vm1, %v11334_v57, %v11336_v30 }
 0x311   : > { %11333 = vst [vmem:[#allocation43_spill] sm:$0xff] %v9589_v32  ;;  %v4542_v46 = vsel %vm3357_vm9, %v4540_v52, %v4541_v41  ;;  %v4886_v9 = vrot.slane %v4870_v25, 4  ;;  %v4887_v42 = vrot.slane %v4874_v50, 4  ;;  %v4543_v10 = vrot.slane %v4521_v51, 3  ;;  %v11338_v51 = vld [vmem:[#allocation51_spill] sm:$0xff] }
 0x312   : > { %4501 = vrot.lane.b32.xlu1 %v4493_v39, %s6268_s22  ;;  %4499 = vrot.lane.b32.xlu0 %v4490_v33, %s6268_s22  ;;  %v11335_v39 = vld [vmem:[#allocation22_spill] sm:$0xff]  ;;  %v4544_v5 = vrot.slane %v4525_v6, 3  ;;  %v4539_v19 = vsel %vm3357_vm9, %v4537_v47, %v4538_v21  ;;  %v4892_v55 = vrot.slane %v4872_v1, 4  ;;  %v4893_v35 = vrot.slane %v4876_v17, 4  ;;  %v11340_v21 = vld [vmem:[#allocation52_spill] sm:$0xff] }
 0x313   : > { %v1415_v33 = vsel %vm1414_vm1, %v11335_v39, %v11334_v57  ;;  %v11337_v57 = vld [vmem:[#allocation36_spill] sm:$0xff]  ;;  %v4889_v24 = vrot.slane %v4871_v3, 4  ;;  %v5063_v37 = vstv %s9598_s26  ;;  %v9655_v50 = vadd.f32 %v1416_v63, %v1227_v31  ;;  %s10340_s26 = sld [smem:[#allocation2 + $0x64]] }
 0x314   : > { %v9623_v59 = vpop.permute.xlu1 %3816  ;;  %v9625_v7 = vpop.permute.xlu0 %3814  ;;  %v1375_v52 = vadd.f32 %v11337_v57, %v1180_v29  ;;  %v1422_v25 = vadd.f32 %v1415_v33, %v1226_v28  ;;  %v1417_v6 = vsel %vm1414_vm1, %v11336_v30, %v11338_v51  ;;  %v9661_v47 = vadd.f32 %v11338_v51, %v1229_v53  ;;  %v11339_v29 = vld [vmem:[#allocation45_spill] sm:$0xff] }
 0x315   : > { %v1610_v1 = vsel %vm1464_vm14, %v11340_v21, %v11339_v29  ;;  %vm3868_vm11 = vcmask 728064   ;;  %v4888_v28 = vsel %vm4585_vm8, %v4886_v9, %v4887_v42  ;;  %v4545_v17 = vsel %vm3357_vm9, %v4543_v10, %v4544_v5 }
 0x316   : > { %4546 = vrot.lane.b32.xlu1 %v4536_v0, %s6268_s22  ;;  %4503 = vrot.lane.b32.xlu0 %v4496_v44, %s6268_s22  ;;  %v4890_v0 = vrot.slane %v4875_v60, 4  ;;  %v9653_v44 = vld [vmem:[%s6339_s29 + $0x38] sm:$0xf]  ;;  %v5064_v31 = vmul.f32 %v5063_v37, %v9566_v20  ;;  %v5068_v3 = vmul.f32 %v5063_v37, %v9578_v45  ;;  %v4873_v53 = vmul.f32 %v9569_v48, %v9650_v61 }
 0x317   : > { %v4877_v60 = vmul.f32 %v9569_v48, %v9653_v44  ;;  %v4894_v63 = vsel %vm4585_vm8, %v4892_v55, %v4893_v35  ;;  %v5066_v9 = vmul.f32 %v5063_v37, %v9593_v40  ;;  %v5070_v42 = vmul.f32 %v5063_v37, %v9596_v62 }
 0x318   : > { %v3861_v41 = vpop.permute.xlu1 %3860  ;;  %v9646_v39 = vpop.permute.xlu0 %3818  ;;  %v5257_v57 = vstv %s9640_s27  ;;  %v5080_v35 = vrot.slane %v5064_v31, 4  ;;  %vm3820_vm9 = vcmask 850944   ;;  %s10345_s27 = sld [smem:[#allocation2 + $0x67]]  ;;  %vm3373_vm1 = vcmask 23552  }
 0x319   : > { %v4896_v51 = vrot.slane %v4877_v60, 4  ;;  %v5258_v34 = vmul.f32 %v5257_v57, %v9566_v20  ;;  %v5086_v31 = vrot.slane %v5066_v9, 4 }
 0x31a   : > { %4550 = vrot.lane.b32.xlu1 %v4542_v46, %s6268_s22  ;;  %4548 = vrot.lane.b32.xlu0 %v4539_v19, %s6268_s22  ;;  %v4891_v46 = vsel %vm4585_vm8, %v4889_v24, %v4890_v0  ;;  %v5065_v19 = vmul.f32 %v5063_v37, %v9604_v15  ;;  %v5069_v24 = vmul.f32 %v5063_v37, %v9607_v23  ;;  %v4895_v0 = vrot.slane %v4873_v53, 4  ;;  %v11342_v53 = vld [vmem:[#allocation29_spill] sm:$0xff] }
 0x31b   : > { %v9705_v60 = vadd.f32 %v11342_v53, %v1375_v52 }
 0x31c   : > { %v3865_v33 = vpop.permute.xlu1 %3864  ;;  %v3863_v30 = vpop.permute.xlu0 %3862  ;;  %v5083_v38 = vrot.slane %v5065_v19, 4  ;;  %v4897_v52 = vsel %vm4585_vm8, %v4895_v0, %v4896_v51  ;;  %v5263_v0 = vmul.f32 %v5257_v57, %v9607_v23 }
 0x31d   : > { %v3869_v10 = vsel %vm3868_vm11, %v3861_v41, %v3863_v30  ;;  %v3870_v5 = vsel %vm3868_vm11, %v3863_v30, %v3865_v33  ;;  %v5081_v41 = vrot.slane %v5068_v3, 4  ;;  %v5087_v3 = vrot.slane %v5070_v42, 4 }
 0x31e   : > { %v9687_v48 = vadd.f32 %v3869_v10, %v9446_v12  ;;  %v9690_v55 = vadd.f32 %v3870_v5, %v9448_v13  ;;  %4898 = vrot.lane.b32.xlu1 %v4888_v28, %s6231_s5  ;;  %4552 = vrot.lane.b32.xlu0 %v4545_v17, %s6268_s22  ;;  %v5262_v12 = vmul.f32 %v5257_v57, %v9578_v45  ;;  %v5274_v42 = vrot.slane %v5258_v34, 4  ;;  %s10126_s22 = sld [smem:[#allocation2 + $0x76]] }
 0x31f   : > { %v5067_v13 = vmul.f32 %v5063_v37, %v9650_v61  ;;  %v5071_v10 = vmul.f32 %v5063_v37, %v9653_v44  ;;  %v1424_v28 = vadd.f32 %v1417_v6, %v9631_v14  ;;  %v5084_v37 = vrot.slane %v5069_v24, 4 }
 0x320   : > { %v3911_v21 = vpop.permute.xlu1 %3910  ;;  %v9695_v30 = vpop.permute.xlu0 %3866  ;;  %v1611_v14 = vsel %vm1464_vm14, %v11339_v29, %v11343_v56  ;;  %v9715_v6 = vadd.f32 %v1610_v1, %v1422_v25  ;;  %v5088_v24 = vsel %vm4585_vm8, %v5086_v31, %v5087_v3  ;;  %v5260_v1 = vmul.f32 %v5257_v57, %v9593_v40 }
 0x321   : > { %11341 = vst [vmem:[#allocation19_spill] sm:$0xff] %v9695_v30  ;;  %v3871_v17 = vsel %vm3868_vm11, %v3865_v33, %v9695_v30  ;;  %v5082_v33 = vsel %vm4585_vm8, %v5080_v35, %v5081_v41  ;;  %v5090_v53 = vrot.slane %v5071_v10, 4  ;;  %v9723_v30 = vstv %s9684_s4  ;;  %s10448_s4 = sld [smem:[#allocation2 + $0x66]] }
 0x322   : > { %v9708_v5 = vadd.f32 %v3871_v17, %v9480_v11  ;;  %4902 = vrot.lane.b32.xlu1 %v4894_v63, %s6231_s5  ;;  %4900 = vrot.lane.b32.xlu0 %v4891_v46, %s6231_s5  ;;  %v5275_v17 = vrot.slane %v5262_v12, 4  ;;  %v5089_v63 = vrot.slane %v5067_v13, 4  ;;  %v5085_v34 = vsel %vm4585_vm8, %v5083_v38, %v5084_v37 }
 0x323   : > { %v5264_v35 = vmul.f32 %v5257_v57, %v9596_v62  ;;  %v5259_v41 = vmul.f32 %v5257_v57, %v9604_v15  ;;  %v5452_v13 = vmul.f32 %v9723_v30, %v9566_v20  ;;  %v5456_v31 = vmul.f32 %v9723_v30, %v9578_v45 }
 0x324   : > { %v3915_v9 = vpop.permute.xlu1 %3914  ;;  %v3913_v11 = vpop.permute.xlu0 %3912  ;;  %v5276_v38 = vsel %vm4585_vm8, %v5274_v42, %v5275_v17  ;;  %v5091_v12 = vsel %vm4585_vm8, %v5089_v63, %v5090_v53  ;;  %v5261_v3 = vmul.f32 %v5257_v57, %v9650_v61  ;;  %v5278_v17 = vrot.slane %v5263_v0, 4 }
 0x325   : > { %v3918_v46 = vsel %vm3868_vm11, %v3911_v21, %v3913_v11  ;;  %v3919_v19 = vsel %vm3868_vm11, %v3913_v11, %v3915_v9  ;;  %v5281_v11 = vrot.slane %v5264_v35, 4  ;;  %v5277_v42 = vrot.slane %v5259_v41, 4  ;;  %v11349_v35 = vld [vmem:[#allocation25_spill] sm:$0xff] }
 0x326   : > { %v9726_v25 = vadd.f32 %v3918_v46, %v9500_v4  ;;  %v9729_v29 = vadd.f32 %v3919_v19, %v9502_v18  ;;  %5092 = vrot.lane.b32.xlu1 %v5082_v33, %s6233_s15  ;;  %4904 = vrot.lane.b32.xlu0 %v4897_v52, %s6231_s5  ;;  %v11344_v4 = vld [vmem:[#allocation5_spill] sm:$0xff]  ;;  %v5454_v33 = vmul.f32 %v9723_v30, %v9593_v40  ;;  %v5468_v19 = vrot.slane %v5452_v13, 4 }
 0x327   : > { %v1612_v18 = vsel %vm1464_vm14, %v11343_v56, %v11344_v4  ;;  %v5265_v56 = vmul.f32 %v5257_v57, %v9653_v44  ;;  %v5458_v52 = vmul.f32 %v9723_v30, %v9596_v62  ;;  %v9767_v63 = vadd.f32 %v1611_v14, %v9655_v50 }
 0x328   : > { %v9743_v51 = vpop.permute.xlu1 %3959  ;;  %v9745_v21 = vpop.permute.xlu0 %3916  ;;  %v9769_v57 = vadd.f32 %v1612_v18, %v1424_v28  ;;  %v5474_v50 = vrot.slane %v5454_v33, 4  ;;  %v5457_v14 = vmul.f32 %v9723_v30, %v9607_v23  ;;  %v9789_v41 = vadd.f32 %v11349_v35, %v9705_v60 }
 0x329   : > { %11345 = vst [vmem:[#allocation18_spill] sm:$0xff] %v9743_v51  ;;  %11346 = vst [vmem:[#allocation92_spill] sm:$0xff] %v9745_v21  ;;  %v3920_v10 = vsel %vm3868_vm11, %v3915_v9, %v9745_v21  ;;  %v5280_v9 = vrot.slane %v5260_v1, 4  ;;  %v5284_v1 = vrot.slane %v5265_v56, 4  ;;  %v5475_v28 = vrot.slane %v5458_v52, 4 }
 0x32a   : > { %v9758_v37 = vadd.f32 %v3920_v10, %v9537_v43  ;;  %5096 = vrot.lane.b32.xlu1 %v5088_v24, %s6233_s15  ;;  %5094 = vrot.lane.b32.xlu0 %v5085_v34, %s6233_s15  ;;  %v9773_v43 = vadd.f32 %v11344_v4, %v9661_v47  ;;  %v5469_v24 = vrot.slane %v5456_v31, 4  ;;  %v5283_v34 = vrot.slane %v5261_v3, 4  ;;  %v11352_v10 = vld [vmem:[#allocation41_spill] sm:$0xff]  ;;  %v11353_v3 = vld [vmem:[#allocation60_spill] sm:$0xff] }
 0x32b   : > { %v5453_v47 = vmul.f32 %v9723_v30, %v9604_v15  ;;  %v5282_v0 = vsel %vm4585_vm8, %v5280_v9, %v5281_v11  ;;  %v5279_v4 = vsel %vm4585_vm8, %v5277_v42, %v5278_v17  ;;  %v5645_v18 = vstv %s9738_s7  ;;  %s10517_s7 = sld [smem:[#allocation2 + $0x6c]] }
 0x32c   : > { %v9775_v53 = vpop.permute.xlu1 %3963  ;;  %v9777_v46 = vpop.permute.xlu0 %3961  ;;  %v1807_v56 = vsel %vm1659_vm15, %v11352_v10, %v11353_v3  ;;  %vm4016_vm14 = vcmask 695296   ;;  %v3821_v52 = vsel %vm3820_vm9, %v9587_v2, %v9625_v7  ;;  %v3822_v9 = vsel %vm3820_vm9, %v9625_v7, %v9623_v59 }
 0x32d   : > { %11347 = vst [vmem:[#allocation8_spill] sm:$0xff] %v9775_v53  ;;  %11348 = vst [vmem:[#allocation9_spill] sm:$0xff] %v9777_v46  ;;  %v5470_v11 = vsel %vm4585_vm8, %v5468_v19, %v5469_v24  ;;  %v5285_v42 = vsel %vm4585_vm8, %v5283_v34, %v5284_v1  ;;  %v5476_v17 = vsel %vm4585_vm8, %v5474_v50, %v5475_v28  ;;  %v5471_v35 = vrot.slane %v5453_v47, 4 }
 0x32e   : > { %5286 = vrot.lane.b32.xlu1 %v5276_v38, %s6235_s23  ;;  %5098 = vrot.lane.b32.xlu0 %v5091_v12, %s6233_s15  ;;  %v11350_v38 = vld [vmem:[#allocation54_spill] sm:$0xff]  ;;  %v11351_v12 = vld [vmem:[#allocation12_spill] sm:$0xff]  ;;  %v5650_v2 = vmul.f32 %v5645_v18, %v9578_v45  ;;  %v5459_v7 = vmul.f32 %v9723_v30, %v9653_v44  ;;  %v5648_v19 = vmul.f32 %v5645_v18, %v9593_v40 }
 0x32f   : > { %v1805_v13 = vsel %vm1659_vm15, %v11351_v12, %v11350_v38  ;;  %v1806_v31 = vsel %vm1659_vm15, %v11350_v38, %v11352_v10  ;;  %v5472_v38 = vrot.slane %v5457_v14, 4  ;;  %v5646_v12 = vmul.f32 %v5645_v18, %v9566_v20 }
 0x330   : > { %v4009_v33 = vpop.permute.xlu1 %4008  ;;  %v9803_v60 = vpop.permute.xlu0 %3965  ;;  %v5455_v10 = vmul.f32 %v9723_v30, %v9650_v61  ;;  %v3827_v24 = vadd.f32 %v3821_v52, %v9392_v49  ;;  %v3828_v34 = vadd.f32 %v3822_v9, %v9394_v27  ;;  %v5652_v28 = vmul.f32 %v5645_v18, %v9596_v62 }
 0x331   : > { %11354 = vst [vmem:[#allocation10_spill] sm:$0xff] %v9803_v60  ;;  %v5647_v47 = vmul.f32 %v5645_v18, %v9604_v15  ;;  %v3823_v14 = vsel %vm3820_vm9, %v9623_v59, %v9646_v39  ;;  %v5651_v49 = vmul.f32 %v5645_v18, %v9607_v23  ;;  %v5473_v52 = vsel %vm4585_vm8, %v5471_v35, %v5472_v38 }
 0x332   : > { %5290 = vrot.lane.b32.xlu1 %v5282_v0, %s6235_s23  ;;  %5288 = vrot.lane.b32.xlu0 %v5279_v4, %s6235_s23  ;;  %v4724_v9 = vstv %s9785_s10  ;;  %v5662_v21 = vrot.slane %v5646_v12, 4  ;;  %v5663_v60 = vrot.slane %v5650_v2, 4  ;;  %v5477_v59 = vrot.slane %v5455_v10, 4  ;;  %s10590_s10 = sld [smem:[#allocation2 + $0x70]] }
 0x333   : > { %v5478_v39 = vrot.slane %v5459_v7, 4  ;;  %v4729_v35 = vmul.f32 %v4724_v9, %v9578_v45  ;;  %v5653_v12 = vmul.f32 %v5645_v18, %v9653_v44  ;;  %v1812_v2 = vadd.f32 %v1805_v13, %v9715_v6 }
 0x334   : > { %v4013_v1 = vpop.permute.xlu1 %4012  ;;  %v4011_v50 = vpop.permute.xlu0 %4010  ;;  %v5664_v10 = vsel %vm4585_vm8, %v5662_v21, %v5663_v60  ;;  %v9870_v6 = vstv %s9827_s11  ;;  %v4727_v60 = vmul.f32 %v4724_v9, %v9593_v40  ;;  %vm4113_vm15 = vcmask 572416   ;;  %s10615_s11 = sld [smem:[#allocation2 + $0x74]] }
 0x335   : > { %v4017_v30 = vsel %vm4016_vm14, %v4009_v33, %v4011_v50  ;;  %v4018_v0 = vsel %vm4016_vm14, %v4011_v50, %v4013_v1  ;;  %v3829_v33 = vadd.f32 %v3823_v14, %v9424_v8  ;;  %v5649_v8 = vmul.f32 %v5645_v18, %v9650_v61 }
 0x336   : > { %v9835_v4 = vadd.f32 %v4017_v30, %v3827_v24  ;;  %v9837_v27 = vadd.f32 %v4018_v0, %v3828_v34  ;;  %5480 = vrot.lane.b32.xlu1 %v5470_v11, %s6236_s25  ;;  %5292 = vrot.lane.b32.xlu0 %v5285_v42, %s6235_s23  ;;  %v5668_v24 = vrot.slane %v5648_v19, 4  ;;  %v5669_v30 = vrot.slane %v5652_v28, 4  ;;  %v11356_v28 = vld [vmem:[#allocation62_spill] sm:$0xff]  ;;  %s9885_s23 = sld [smem:[#allocation2 + $0x6a]] }
 0x337   : > { %v5665_v34 = vrot.slane %v5647_v47, 4  ;;  %v5666_v11 = vrot.slane %v5651_v49, 4  ;;  %v4725_v42 = vmul.f32 %v4724_v9, %v9566_v20  ;;  %v5479_v7 = vsel %vm4585_vm8, %v5477_v59, %v5478_v39 }
 0x338   : > { %v9844_v50 = vpop.permute.xlu1 %4056  ;;  %v4015_v53 = vpop.permute.xlu0 %4014  ;;  %v1814_v19 = vadd.f32 %v1807_v56, %v9769_v57  ;;  %v5670_v13 = vsel %vm4585_vm8, %v5668_v24, %v5669_v30  ;;  %v5672_v56 = vrot.slane %v5653_v12, 4  ;;  %v4731_v49 = vmul.f32 %v4724_v9, %v9596_v62  ;;  %v11360_v12 = vld [vmem:[#allocation66_spill] sm:$0xff] }
 0x339   : > { %v4019_v0 = vsel %vm4016_vm14, %v4013_v1, %v4015_v53  ;;  %v1813_v53 = vadd.f32 %v1806_v31, %v9767_v63  ;;  %v1815_v1 = vadd.f32 %v11353_v3, %v9773_v43  ;;  %v11357_v63 = vld [vmem:[#allocation64_spill] sm:$0xff]  ;;  %v5667_v57 = vsel %vm4585_vm8, %v5665_v34, %v5666_v11 }
 0x33a   : > { %v9849_v38 = vadd.f32 %v4019_v0, %v3829_v33  ;;  %5484 = vrot.lane.b32.xlu1 %v5476_v17, %s6236_s25  ;;  %5482 = vrot.lane.b32.xlu0 %v5473_v52, %s6236_s25  ;;  %v11355_v17 = vld [vmem:[#allocation65_spill] sm:$0xff]  ;;  %v4741_v31 = vrot.slane %v4725_v42, 4  ;;  %v4742_v43 = vrot.slane %v4729_v35, 4  ;;  %v5671_v3 = vrot.slane %v5649_v8, 4  ;;  %v11358_v33 = vld [vmem:[#allocation63_spill] sm:$0xff] }
 0x33b   : > { %v2001_v47 = vsel %vm1902_vm0, %v11356_v28, %v11355_v17  ;;  %v2002_v21 = vsel %vm1902_vm0, %v11355_v17, %v11357_v63  ;;  %v4726_v52 = vmul.f32 %v4724_v9, %v9604_v15  ;;  %v4730_v59 = vmul.f32 %v4724_v9, %v9607_v23 }
 0x33c   : > { %v9865_v14 = vpop.permute.xlu1 %4060  ;;  %v9867_v18 = vpop.permute.xlu0 %4058  ;;  %v4772_v39 = vmul.f32 %v9870_v6, %v9566_v20  ;;  %v1962_v24 = vadd.f32 %v11358_v33, %v9789_v41  ;;  %v4776_v0 = vmul.f32 %v9870_v6, %v9578_v45  ;;  %v4728_v11 = vmul.f32 %v4724_v9, %v9650_v61 }
 0x33d   : > { %v4732_v42 = vmul.f32 %v4724_v9, %v9653_v44  ;;  %v2008_v35 = vadd.f32 %v2001_v47, %v1812_v2  ;;  %v2009_v8 = vadd.f32 %v2002_v21, %v1813_v53  ;;  %v4743_v41 = vsel %vm4585_vm8, %v4741_v31, %v4742_v43 }
 0x33e   : > { %5674 = vrot.lane.b32.xlu1 %v5664_v10, %s6237_s6  ;;  %5486 = vrot.lane.b32.xlu0 %v5479_v7, %s6236_s25  ;;  %v2003_v10 = vsel %vm1902_vm0, %v11357_v63, %v11360_v12  ;;  %v9899_v7 = vadd.f32 %v11360_v12, %v1815_v1  ;;  %v5673_v17 = vsel %vm4585_vm8, %v5671_v3, %v5672_v56  ;;  %v4747_v28 = vrot.slane %v4727_v60, 4  ;;  %v11364_v12 = vld [vmem:[#allocation72_spill] sm:$0xff] }
 0x33f   : > { %v4748_v9 = vrot.slane %v4731_v49, 4  ;;  %v4744_v2 = vrot.slane %v4726_v52, 4  ;;  %v4745_v53 = vrot.slane %v4730_v59, 4  ;;  %v4788_v47 = vrot.slane %v4772_v39, 4 }
 0x340   : > { %v4106_v30 = vpop.permute.xlu1 %4105  ;;  %v9889_v34 = vpop.permute.xlu0 %4062  ;;  %v4789_v63 = vrot.slane %v4776_v0, 4  ;;  %v4750_v51 = vrot.slane %v4728_v11, 4  ;;  %v4751_v1 = vrot.slane %v4732_v42, 4  ;;  %v4778_v43 = vmul.f32 %v9870_v6, %v9596_v62  ;;  %v11361_v0 = vld [vmem:[#allocation68_spill] sm:$0xff]  ;;  %v11363_v42 = vld [vmem:[#allocation70_spill] sm:$0xff] }
 0x341   : > { %11359 = vst [vmem:[#allocation13_spill] sm:$0xff] %v9889_v34  ;;  %v4773_v3 = vmul.f32 %v9870_v6, %v9604_v15  ;;  %vm2397_vm0 = vcmask 908288   ;;  %v4777_v49 = vmul.f32 %v9870_v6, %v9607_v23  ;;  %v2010_v52 = vadd.f32 %v2003_v10, %v1814_v19 }
 0x342   : > { %5678 = vrot.lane.b32.xlu1 %v5670_v13, %s6237_s6  ;;  %5676 = vrot.lane.b32.xlu0 %v5667_v57, %s6237_s6  ;;  %v4774_v13 = vmul.f32 %v9870_v6, %v9593_v40  ;;  %v4749_v59 = vsel %vm4585_vm8, %v4747_v28, %v4748_v9  ;;  %v4746_v39 = vsel %vm4585_vm8, %v4744_v2, %v4745_v53  ;;  %v4795_v9 = vrot.slane %v4778_v43, 4 }
 0x343   : > { %v2155_v11 = vadd.f32 %v11361_v0, %v1962_v24  ;;  %v4790_v19 = vsel %vm4585_vm8, %v4788_v47, %v4789_v63  ;;  %v4752_v28 = vsel %vm4585_vm8, %v4750_v51, %v4751_v1  ;;  %v4791_v53 = vrot.slane %v4773_v3, 4 }
 0x344   : > { %v4110_v21 = vpop.permute.xlu1 %4109  ;;  %v4108_v33 = vpop.permute.xlu0 %4107  ;;  %v4794_v24 = vrot.slane %v4774_v13, 4  ;;  %v4779_v51 = vmul.f32 %v9870_v6, %v9653_v44  ;;  %v2209_v63 = vadd.f32 %v11363_v42, %v2008_v35  ;;  %v11370_v35 = vld [vmem:[#allocation75_spill] sm:$0xff]  ;;  %vm4358_vm9 = vcmask 416768  }
 0x345   : > { %v4114_v57 = vsel %vm4113_vm15, %v4106_v30, %v4108_v33  ;;  %v4115_v31 = vsel %vm4113_vm15, %v4108_v33, %v4110_v21  ;;  %v4820_v30 = vstv %s9885_s23  ;;  %s10651_s23 = sld [smem:[#allocation2 + $0x78]] }
 0x346   : > { %v9916_v56 = vadd.f32 %v4114_v57, %v9726_v25  ;;  %v9919_v60 = vadd.f32 %v4115_v31, %v9729_v29  ;;  %4753 = vrot.lane.b32.xlu1 %v4743_v41, %s6230_s30  ;;  %5680 = vrot.lane.b32.xlu0 %v5673_v17, %s6237_s6  ;;  %v11362_v25 = vld [vmem:[#allocation69_spill] sm:$0xff]  ;;  %v4792_v57 = vrot.slane %v4777_v49, 4  ;;  %v4821_v31 = vmul.f32 %v4820_v30, %v9566_v20 }
 0x347   : > { %v2202_v29 = vsel %vm2145_vm10, %v11363_v42, %v11362_v25  ;;  %v2203_v41 = vsel %vm2145_vm10, %v11362_v25, %v11364_v12  ;;  %v4825_v47 = vmul.f32 %v4820_v30, %v9578_v45  ;;  %v4827_v43 = vmul.f32 %v4820_v30, %v9596_v62  ;;  %v11371_v42 = vld [vmem:[#allocation76_spill] sm:$0xff] }
 0x348   : > { %v9935_v17 = vpop.permute.xlu1 %4155  ;;  %v9937_v33 = vpop.permute.xlu0 %4111  ;;  %v4822_v3 = vmul.f32 %v4820_v30, %v9604_v15  ;;  %v4826_v49 = vmul.f32 %v4820_v30, %v9607_v23  ;;  %v4965_v25 = vstv %s9913_s17 }
 0x349   : > { %11365 = vst [vmem:[#allocation99_spill] sm:$0xff] %v9935_v17  ;;  %11366 = vst [vmem:[#allocation101_spill] sm:$0xff] %v9937_v33  ;;  %v4116_v10 = vsel %vm4113_vm15, %v4110_v21, %v9937_v33  ;;  %v4775_v21 = vmul.f32 %v9870_v6, %v9650_v61  ;;  %v2211_v6 = vadd.f32 %v2203_v41, %v2010_v52 }
 0x34a   : > { %v9944_v2 = vadd.f32 %v4116_v10, %v9758_v37  ;;  %4757 = vrot.lane.b32.xlu1 %v4749_v59, %s6230_s30  ;;  %4755 = vrot.lane.b32.xlu0 %v4746_v39, %s6230_s30  ;;  %v4823_v37 = vmul.f32 %v4820_v30, %v9593_v40  ;;  %v2210_v59 = vadd.f32 %v2202_v29, %v2009_v8  ;;  %v11369_v39 = vld [vmem:[#allocation71_spill] sm:$0xff]  ;;  %v4837_v29 = vrot.slane %v4821_v31, 4 }
 0x34b   : > { %v2204_v0 = vsel %vm2145_vm10, %v11364_v12, %v11369_v39  ;;  %v2398_v10 = vsel %vm2397_vm0, %v11371_v42, %v11370_v35  ;;  %v4796_v33 = vsel %vm4585_vm8, %v4794_v24, %v4795_v9  ;;  %v4793_v8 = vsel %vm4585_vm8, %v4791_v53, %v4792_v57  ;;  %v11374_v24 = vld [vmem:[#allocation78_spill] sm:$0xff] }
 0x34c   : > { %v9956_v1 = vpop.permute.xlu1 %4159  ;;  %v9958_v13 = vpop.permute.xlu0 %4157  ;;  %v4797_v17 = vrot.slane %v4775_v21, 4  ;;  %v4798_v12 = vrot.slane %v4779_v51, 4  ;;  %v4843_v52 = vrot.slane %v4823_v37, 4  ;;  %v4840_v46 = vrot.slane %v4822_v3, 4 }
 0x34d   : > { %11367 = vst [vmem:[#allocation102_spill] sm:$0xff] %v9956_v1  ;;  %11368 = vst [vmem:[#allocation35_spill] sm:$0xff] %v9958_v13  ;;  %v4838_v1 = vrot.slane %v4825_v47, 4  ;;  %v4844_v13 = vrot.slane %v4827_v43, 4  ;;  %v4841_v32 = vrot.slane %v4826_v49, 4  ;;  %v4966_v42 = vmul.f32 %v4965_v25, %v9566_v20 }
 0x34e   : > { %4800 = vrot.lane.b32.xlu1 %v4790_v19, %s6231_s5  ;;  %4759 = vrot.lane.b32.xlu0 %v4752_v28, %s6230_s30  ;;  %v2212_v19 = vadd.f32 %v2204_v0, %v9899_v7  ;;  %v11373_v28 = vld [vmem:[#allocation74_spill] sm:$0xff]  ;;  %v2399_v9 = vsel %vm2397_vm0, %v11370_v35, %v11374_v24  ;;  %v4970_v53 = vmul.f32 %v4965_v25, %v9578_v45  ;;  %vm4212_vm10 = vcmask 539648   ;;  %v11375_v7 = vld [vmem:[#allocation77_spill] sm:$0xff]  ;;  %s10022_s30 = sld [smem:[#allocation2 + $0x71]] }
 0x34f   : > { %v2358_v58 = vadd.f32 %v11373_v28, %v2155_v11  ;;  %v2405_v57 = vadd.f32 %v2398_v10, %v2209_v63  ;;  %v4824_v31 = vmul.f32 %v4820_v30, %v9650_v61  ;;  %v4828_v47 = vmul.f32 %v4820_v30, %v9653_v44 }
 0x350   : > { %v4205_v41 = vpop.permute.xlu1 %4204  ;;  %v9976_v39 = vpop.permute.xlu0 %4161  ;;  %v2408_v21 = vadd.f32 %v11375_v7, %v2212_v19  ;;  %v2400_v11 = vsel %vm2397_vm0, %v11374_v24, %v11375_v7  ;;  %v4839_v51 = vsel %vm4585_vm8, %v4837_v29, %v4838_v1  ;;  %v4799_v37 = vsel %vm4585_vm8, %v4797_v17, %v4798_v12 }
 0x351   : > { %11372 = vst [vmem:[#allocation47_spill] sm:$0xff] %v9976_v39  ;;  %v2406_v63 = vadd.f32 %v2399_v9, %v2210_v59  ;;  %v4845_v3 = vsel %vm4585_vm8, %v4843_v52, %v4844_v13  ;;  %v4842_v49 = vsel %vm4585_vm8, %v4840_v46, %v4841_v32  ;;  %v4982_v0 = vrot.slane %v4966_v42, 4  ;;  %v11385_v39 = vld [vmem:[#allocation90_spill] sm:$0xff] }
 0x352   : > { %4804 = vrot.lane.b32.xlu1 %v4796_v33, %s6231_s5  ;;  %4802 = vrot.lane.b32.xlu0 %v4793_v8, %s6231_s5  ;;  %v4983_v10 = vrot.slane %v4970_v53, 4  ;;  %v10000_v8 = vstv %s9967_s18  ;;  %v4846_v1 = vrot.slane %v4824_v31, 4  ;;  %v4847_v32 = vrot.slane %v4828_v47, 4 }
 0x353   : > { %v4968_v46 = vmul.f32 %v4965_v25, %v9593_v40  ;;  %v4972_v13 = vmul.f32 %v4965_v25, %v9596_v62  ;;  %v4967_v59 = vmul.f32 %v4965_v25, %v9604_v15  ;;  %v4971_v29 = vmul.f32 %v4965_v25, %v9607_v23 }
 0x354   : > { %v4209_v33 = vpop.permute.xlu1 %4208  ;;  %v4207_v43 = vpop.permute.xlu0 %4206  ;;  %v2407_v12 = vadd.f32 %v2400_v11, %v2211_v6  ;;  %v5015_v9 = vmul.f32 %v10000_v8, %v9566_v20  ;;  %v5019_v31 = vmul.f32 %v10000_v8, %v9578_v45  ;;  %v4969_v6 = vmul.f32 %v4965_v25, %v9650_v61 }
 0x355   : > { %v4213_v30 = vsel %vm4212_vm10, %v4205_v41, %v4207_v43  ;;  %v4214_v35 = vsel %vm4212_vm10, %v4207_v43, %v4209_v33  ;;  %v11377_v41 = vld [vmem:[#allocation81_spill] sm:$0xff]  ;;  %v4984_v7 = vsel %vm4585_vm8, %v4982_v0, %v4983_v10  ;;  %v4848_v11 = vsel %vm4585_vm8, %v4846_v1, %v4847_v32 }
 0x356   : > { %v10003_v19 = vadd.f32 %v4213_v30, %v9835_v4  ;;  %v10006_v17 = vadd.f32 %v4214_v35, %v9837_v27  ;;  %4849 = vrot.lane.b32.xlu1 %v4839_v51, %s6231_s5  ;;  %4806 = vrot.lane.b32.xlu0 %v4799_v37, %s6231_s5  ;;  %v11376_v4 = vld [vmem:[#allocation80_spill] sm:$0xff]  ;;  %v11378_v27 = vld [vmem:[#allocation82_spill] sm:$0xff]  ;;  %v4988_v51 = vrot.slane %v4968_v46, 4  ;;  %v4989_v37 = vrot.slane %v4972_v13, 4 }
 0x357   : > { %v2554_v52 = vadd.f32 %v11376_v4, %v2358_v58  ;;  %v2593_v42 = vsel %vm2447_vm5, %v11378_v27, %v11377_v41  ;;  %v4973_v58 = vmul.f32 %v4965_v25, %v9653_v44  ;;  %v4986_v43 = vrot.slane %v4971_v29, 4  ;;  %v11379_v35 = vld [vmem:[#allocation84_spill] sm:$0xff]  ;;  %v11380_v4 = vld [vmem:[#allocation83_spill] sm:$0xff] }
 0x358   : > { %v10018_v28 = vpop.permute.xlu1 %4252  ;;  %v4211_v24 = vpop.permute.xlu0 %4210  ;;  %v2600_v30 = vadd.f32 %v2593_v42, %v2405_v57  ;;  %v2594_v25 = vsel %vm2447_vm5, %v11377_v41, %v11379_v35  ;;  %v5031_v0 = vrot.slane %v5015_v9, 4  ;;  %v5032_v10 = vrot.slane %v5019_v31, 4  ;;  %v11381_v9 = vld [vmem:[#allocation86_spill] sm:$0xff]  ;;  %v11382_v31 = vld [vmem:[#allocation87_spill] sm:$0xff] }
 0x359   : > { %v4215_v53 = vsel %vm4212_vm10, %v4209_v33, %v4211_v24  ;;  %v4985_v33 = vrot.slane %v4967_v59, 4  ;;  %v4991_v1 = vrot.slane %v4969_v6, 4  ;;  %v4992_v32 = vrot.slane %v4973_v58, 4  ;;  %v11383_v6 = vld [vmem:[#allocation88_spill] sm:$0xff] }
 0x35a   : > { %v10030_v47 = vadd.f32 %v4215_v53, %v9849_v38  ;;  %4853 = vrot.lane.b32.xlu1 %v4845_v3, %s6231_s5  ;;  %4851 = vrot.lane.b32.xlu0 %v4842_v49, %s6231_s5  ;;  %v2595_v38 = vsel %vm2447_vm5, %v11379_v35, %v11380_v4  ;;  %v5017_v46 = vmul.f32 %v10000_v8, %v9593_v40  ;;  %v5159_v35 = vstv %s10022_s30 }
 0x35b   : > { %v5021_v57 = vmul.f32 %v10000_v8, %v9596_v62  ;;  %v5016_v13 = vmul.f32 %v10000_v8, %v9604_v15  ;;  %v5020_v59 = vmul.f32 %v10000_v8, %v9607_v23  ;;  %v2603_v29 = vadd.f32 %v11380_v4, %v2408_v21 }
 0x35c   : > { %v10042_v3 = vpop.permute.xlu1 %4256  ;;  %v10044_v49 = vpop.permute.xlu0 %4254  ;;  %v2601_v41 = vadd.f32 %v2594_v25, %v2406_v63  ;;  %v4990_v27 = vsel %vm4585_vm8, %v4988_v51, %v4989_v37  ;;  %v4987_v42 = vsel %vm4585_vm8, %v4985_v33, %v4986_v43  ;;  %v2602_v24 = vadd.f32 %v2595_v38, %v2407_v12  ;;  %v11386_v63 = vld [vmem:[#allocation89_spill] sm:$0xff] }
 0x35d   : > { %v2749_v53 = vadd.f32 %v11381_v9, %v2554_v52  ;;  %v2788_v58 = vsel %vm2642_vm12, %v11383_v6, %v11382_v31  ;;  %v2789_v21 = vsel %vm2642_vm12, %v11382_v31, %v11385_v39  ;;  %v2790_v51 = vsel %vm2642_vm12, %v11385_v39, %v11386_v63 }
 0x35e   : > { %4994 = vrot.lane.b32.xlu1 %v4984_v7, %s6232_s9  ;;  %4855 = vrot.lane.b32.xlu0 %v4848_v11, %s6231_s5  ;;  %v5033_v12 = vsel %vm4585_vm8, %v5031_v0, %v5032_v10  ;;  %v4993_v52 = vsel %vm4585_vm8, %v4991_v1, %v4992_v32  ;;  %v5037_v37 = vrot.slane %v5017_v46, 4  ;;  %v5038_v33 = vrot.slane %v5021_v57, 4  ;;  %s10093_s5 = sld [smem:[#allocation2 + $0x75]] }
 0x35f   : > { %v5034_v43 = vrot.slane %v5016_v13, 4  ;;  %v5035_v25 = vrot.slane %v5020_v59, 4  ;;  %v5160_v4 = vmul.f32 %v5159_v35, %v9566_v20  ;;  %v5164_v38 = vmul.f32 %v5159_v35, %v9578_v45 }
 0x360   : > { %v10065_v7 = vpop.permute.xlu1 %4301  ;;  %v10067_v11 = vpop.permute.xlu0 %4258  ;;  %v5018_v9 = vmul.f32 %v10000_v8, %v9650_v61  ;;  %v5022_v39 = vmul.f32 %v10000_v8, %v9653_v44  ;;  %v2795_v0 = vadd.f32 %v2788_v58, %v2600_v30  ;;  %v5162_v32 = vmul.f32 %v5159_v35, %v9593_v40  ;;  %v11387_v30 = vld [vmem:[#allocation93_spill] sm:$0xff] }
 0x361   : > { %11384 = vst [vmem:[#allocation14_spill] sm:$0xff] %v10067_v11  ;;  %v5166_v46 = vmul.f32 %v5159_v35, %v9596_v62  ;;  %v5161_v57 = vmul.f32 %v5159_v35, %v9604_v15  ;;  %v2798_v13 = vadd.f32 %v11386_v63, %v2603_v29  ;;  %v2796_v59 = vadd.f32 %v2789_v21, %v2601_v41  ;;  %v11389_v21 = vld [vmem:[#allocation95_spill] sm:$0xff] }
 0x362   : > { %4998 = vrot.lane.b32.xlu1 %v4990_v27, %s6232_s9  ;;  %4996 = vrot.lane.b32.xlu0 %v4987_v42, %s6232_s9  ;;  %v10096_v27 = vadd.f32 %v2790_v51, %v2602_v24  ;;  %v5165_v8 = vmul.f32 %v5159_v35, %v9607_v23  ;;  %v10100_v42 = vadd.f32 %v11387_v30, %v2749_v53  ;;  %v5208_v58 = vstv %s10056_s21  ;;  %v11388_v24 = vld [vmem:[#allocation94_spill] sm:$0xff] }
 0x363   : > { %v5039_v31 = vsel %vm4585_vm8, %v5037_v37, %v5038_v33  ;;  %v5036_v6 = vsel %vm4585_vm8, %v5034_v43, %v5035_v25  ;;  %v5176_v22 = vrot.slane %v5160_v4, 4  ;;  %v5177_v54 = vrot.slane %v5164_v38, 4 }
 0x364   : > { %v10086_v10 = vpop.permute.xlu1 %4305  ;;  %v10088_v1 = vpop.permute.xlu0 %4303  ;;  %v5040_v29 = vrot.slane %v5018_v9, 4  ;;  %v5041_v41 = vrot.slane %v5022_v39, 4  ;;  %v2984_v63 = vsel %vm2885_vm13, %v11389_v21, %v11388_v24  ;;  %v5183_v30 = vrot.slane %v5166_v46, 4 }
 0x365   : > { %v5180_v26 = vrot.slane %v5165_v8, 4  ;;  %v5209_v37 = vmul.f32 %v5208_v58, %v9566_v20  ;;  %v5213_v33 = vmul.f32 %v5208_v58, %v9578_v45  ;;  %v5163_v43 = vmul.f32 %v5159_v35, %v9650_v61  ;;  %v11393_v8 = vld [vmem:[#allocation96_spill] sm:$0xff] }
 0x366   : > { %5043 = vrot.lane.b32.xlu1 %v5033_v12, %s6233_s15  ;;  %5000 = vrot.lane.b32.xlu0 %v4993_v52, %s6232_s9  ;;  %v5182_v12 = vrot.slane %v5162_v32, 4  ;;  %v5179_v52 = vrot.slane %v5161_v57, 4  ;;  %v5167_v25 = vmul.f32 %v5159_v35, %v9653_v44  ;;  %v5211_v4 = vmul.f32 %v5208_v58, %v9593_v40  ;;  %v11395_v35 = vld [vmem:[#allocation97_spill] sm:$0xff] }
 0x367   : > { %v5215_v38 = vmul.f32 %v5208_v58, %v9596_v62  ;;  %v5178_v9 = vsel %vm4585_vm8, %v5176_v22, %v5177_v54  ;;  %v5042_v39 = vsel %vm4585_vm8, %v5040_v29, %v5041_v41  ;;  %v5210_v32 = vmul.f32 %v5208_v58, %v9604_v15 }
 0x368   : > { %v10110_v51 = vpop.permute.xlu1 %4350  ;;  %v10112_v53 = vpop.permute.xlu0 %4307  ;;  %v5214_v46 = vmul.f32 %v5208_v58, %v9607_v23  ;;  %v10128_v57 = vadd.f32 %v2984_v63, %v2795_v0  ;;  %v5353_v54 = vstv %s10093_s5  ;;  %v5184_v29 = vsel %vm4585_vm8, %v5182_v12, %v5183_v30 }
 0x369   : > { %11390 = vst [vmem:[#allocation26_spill] sm:$0xff] %v10110_v51  ;;  %11391 = vst [vmem:[#allocation20_spill] sm:$0xff] %v10112_v53  ;;  %v5181_v41 = vsel %vm4585_vm8, %v5179_v52, %v5180_v26  ;;  %v5225_v51 = vrot.slane %v5209_v37, 4  ;;  %v5226_v36 = vrot.slane %v5213_v33, 4  ;;  %v5185_v0 = vrot.slane %v5163_v43, 4 }
 0x36a   : > { %5047 = vrot.lane.b32.xlu1 %v5039_v31, %s6233_s15  ;;  %5045 = vrot.lane.b32.xlu0 %v5036_v6, %s6233_s15  ;;  %11392 = vst [vmem:[#allocation28_spill] sm:$0xff] %v10128_v57  ;;  %v10131_v31 = vadd.f32 %v11393_v8, %v2798_v13  ;;  %v2985_v6 = vsel %vm2885_vm13, %v11388_v24, %v11395_v35  ;;  %v5186_v13 = vrot.slane %v5167_v25, 4  ;;  %v5231_v63 = vrot.slane %v5211_v4, 4 }
 0x36b   : > { %v5232_v16 = vrot.slane %v5215_v38, 4  ;;  %v5228_v24 = vrot.slane %v5210_v32, 4  ;;  %v5212_v26 = vmul.f32 %v5208_v58, %v9650_v61  ;;  %v5216_v30 = vmul.f32 %v5208_v58, %v9653_v44 }
 0x36c   : > { %11394 = vst [vmem:[#allocation33_spill] sm:$0xff] %v10131_v31  ;;  %v10136_v21 = vpop.permute.xlu1 %4354  ;;  %v10138_v22 = vpop.permute.xlu0 %4352  ;;  %v5229_v31 = vrot.slane %v5214_v46, 4  ;;  %v5356_v52 = vmul.f32 %v5353_v54, %v9593_v40  ;;  %v5360_v37 = vmul.f32 %v5353_v54, %v9596_v62  ;;  %v10156_v33 = vsel %vm2885_vm13, %v11395_v35, %v11393_v8 }
 0x36d   : > { %11396 = vst [vmem:[#allocation34_spill] sm:$0xff] %v10136_v21  ;;  %11397 = vst [vmem:[#allocation31_spill] sm:$0xff] %v10138_v22  ;;  %v5354_v21 = vmul.f32 %v5353_v54, %v9566_v20  ;;  %v5358_v22 = vmul.f32 %v5353_v54, %v9578_v45  ;;  %v10158_v20 = vadd.f32 %v2985_v6, %v2796_v59  ;;  %vm4408_vm5 = vcmask 384000   ;;  %v10184_v6 = vld [vmem:[%s6339_s29] sm:$0xf0] }
 0x36e   : > { %5188 = vrot.lane.b32.xlu1 %v5178_v9, %s6234_s19  ;;  %5049 = vrot.lane.b32.xlu0 %v5042_v39, %s6233_s15  ;;  %v5355_v45 = vmul.f32 %v5353_v54, %v9604_v15  ;;  %v5359_v43 = vmul.f32 %v5353_v54, %v9607_v23  ;;  %v5227_v40 = vsel %vm4585_vm8, %v5225_v51, %v5226_v36  ;;  %v10169_v38 = vstv %s10126_s22  ;;  %s10171_s15 = sld [smem:[#allocation2 + $0x79]] }
 0x36f   : > { %v5187_v62 = vsel %vm4585_vm8, %v5185_v0, %v5186_v13  ;;  %v5233_v58 = vsel %vm4585_vm8, %v5231_v63, %v5232_v16  ;;  %v5230_v25 = vsel %vm4585_vm8, %v5228_v24, %v5229_v31  ;;  %v5370_v4 = vrot.slane %v5354_v21, 4 }
 0x370   : > { %v4401_v57 = vpop.permute.xlu1 %4400  ;;  %v10147_v12 = vpop.permute.xlu0 %4356  ;;  %v5371_v59 = vrot.slane %v5358_v22, 4  ;;  %v5234_v9 = vrot.slane %v5212_v26, 4  ;;  %v5235_v39 = vrot.slane %v5216_v30, 4  ;;  %v5376_v32 = vrot.slane %v5356_v52, 4  ;;  %v10198_v22 = vld [vmem:[%s6339_s29 + $0x20] sm:$0xf] }
 0x371   : > { %v5377_v46 = vrot.slane %v5360_v37, 4  ;;  %v5373_v51 = vrot.slane %v5355_v45, 4  ;;  %v5374_v8 = vrot.slane %v5359_v43, 4  ;;  %v10188_v21 = vmul.f32 %v10184_v6, %v10169_v38 }
 0x372   : > { %5192 = vrot.lane.b32.xlu1 %v5184_v29, %s6234_s19  ;;  %5190 = vrot.lane.b32.xlu0 %v5181_v41, %s6234_s19  ;;  %v10202_v29 = vmul.f32 %v10198_v22, %v10169_v38  ;;  %v5236_v13 = vsel %vm4585_vm8, %v5234_v9, %v5235_v39  ;;  %v4260_v24 = vsel %vm4212_vm10, %v10018_v28, %v10044_v49  ;;  %v10252_v9 = vld [vmem:[%s6339_s29 + $0x28] sm:$0xf]  ;;  %vm11403_vm12 = vcmask 408576  }
 0x373   : > { %v5378_v63 = vsel %vm4585_vm8, %v5376_v32, %v5377_v46  ;;  %v4261_v26 = vsel %vm4212_vm10, %v10044_v49, %v10042_v3  ;;  %v5375_v52 = vsel %vm4585_vm8, %v5373_v51, %v5374_v8  ;;  %v4066_v28 = vsel %vm4016_vm14, %v9865_v14, %v9889_v34  ;;  %v10229_v49 = vld [vmem:[%s6339_s29 + $0x10] sm:$0xf0]  ;;  %vm11408_vm13 = vmmov %vm11403_vm12  ;;  %v11438_v34 = vld [vmem:[#allocation26_spill] sm:$0xff] }
 0x374   : > { %v4405_v15 = vpop.permute.xlu1 %4404  ;;  %v4403_v23 = vpop.permute.xlu0 %4402  ;;  %v5408_v39 = vmul.f32 %v10252_v9, %v10169_v38  ;;  %v4073_v32 = vadd.f32 %v4066_v28, %v9708_v5  ;;  %v10269_v5 = vadd.f32 %v10156_v33, %v10096_v27  ;;  %v4310_v27 = vsel %vm4212_vm10, %v10088_v1, %v10086_v10  ;;  %vm11410_vm3 = vmmov %vm11403_vm12 }
 0x375   : > { %v4409_v36 = vsel %vm4408_vm5, %v4401_v57, %v4403_v23  ;;  %v4410_v16 = vsel %vm4408_vm5, %v4403_v23, %v4405_v15  ;;  %v4064_v57 = vsel %vm4016_vm14, %v9844_v50, %v9867_v18  ;;  %v5357_v50 = vmul.f32 %v5353_v54, %v9650_v61 }
 0x376   : > { %v10176_v31 = vadd.f32 %v4409_v36, %v10003_v19  ;;  %v10179_v35 = vadd.f32 %v4410_v16, %v10006_v17  ;;  %5237 = vrot.lane.b32.xlu1 %v5227_v40, %s6234_s19  ;;  %5194 = vrot.lane.b32.xlu0 %v5187_v62, %s6234_s19  ;;  %v4065_v19 = vsel %vm4016_vm14, %v9867_v18, %v9865_v14 }
 0x377   : > { %v5372_v17 = vsel %vm4585_vm8, %v5370_v4, %v5371_v59  ;;  %v5361_v18 = vmul.f32 %v5353_v54, %v9653_v44  ;;  %v4071_v37 = vadd.f32 %v4064_v57, %v9687_v48  ;;  %v4072_v61 = vadd.f32 %v4065_v19, %v9690_v55 }
 0x378   : > { %v4449_v41 = vpop.permute.xlu1 %4448  ;;  %v4407_v0 = vpop.permute.xlu0 %4406  ;;  %v5419_v44 = vrot.slane %v10188_v21, 4  ;;  %v5420_v48 = vrot.slane %v10202_v29, 4  ;;  %v5405_v55 = vmul.f32 %v10229_v49, %v10169_v38  ;;  %v10244_v4 = vstv %s10171_s15 }
 0x379   : > { %v4411_v30 = vsel %vm4408_vm5, %v4405_v15, %v4407_v0  ;;  %v4267_v43 = vadd.f32 %v4260_v24, %v4071_v37  ;;  %v4268_v40 = vadd.f32 %v4261_v26, %v4072_v61  ;;  %v4262_v59 = vsel %vm4212_vm10, %v10042_v3, %v10067_v11  ;;  %v11401_v24 = vld [vmem:[#allocation103_spill] sm:$0xff]  ;;  %v11402_v26 = vld [vmem:[#allocation104_spill] sm:$0xff] }
 0x37a   : > { %v10219_v45 = vadd.f32 %v4411_v30, %v10030_v47  ;;  %5241 = vrot.lane.b32.xlu1 %v5233_v58, %s6234_s19  ;;  %5239 = vrot.lane.b32.xlu0 %v5230_v25, %s6234_s19  ;;  %v10234_v47 = vld [vmem:[%s6339_s29 + $0x30] sm:$0xf]  ;;  %v10239_v25 = vld [vmem:[%s6339_s29 + $0x8] sm:$0xf0]  ;;  %v5379_v3 = vrot.slane %v5357_v50, 4  ;;  %v5380_v16 = vrot.slane %v5361_v18, 4  ;;  %v5548_v21 = vmul.f32 %v10184_v6, %v10244_v4 }
 0x37b   : > { %v5409_v54 = vmul.f32 %v10234_v47, %v10169_v38  ;;  %v5404_v14 = vmul.f32 %v10239_v25, %v10169_v38  ;;  %v5425_v51 = vrot.slane %v5405_v55, 4  ;;  %v4269_v57 = vadd.f32 %v4262_v59, %v4073_v32  ;;  %v10289_v50 = vld [vmem:[%s6339_s29 + $0x38] sm:$0xf]  ;;  %v11437_v11 = vld [vmem:[#allocation31_spill] sm:$0xff] }
 0x37c   : > { %v4453_v62 = vpop.permute.xlu1 %4452  ;;  %v4451_v58 = vpop.permute.xlu0 %4450  ;;  %v5410_v18 = vmul.f32 %v10289_v50, %v10169_v38  ;;  %v3180_v30 = vsel %vm11403_vm12, %v11402_v26, %v11401_v24  ;;  %v5421_v61 = vsel %vm4585_vm8, %v5419_v44, %v5420_v48  ;;  %v5381_v28 = vsel %vm4585_vm8, %v5379_v3, %v5380_v16  ;;  %v11407_v3 = vld [vmem:[#allocation106_spill] sm:$0xff] }
 0x37d   : > { %v4456_v15 = vsel %vm4408_vm5, %v4449_v41, %v4451_v58  ;;  %v4457_v23 = vsel %vm4408_vm5, %v4451_v58, %v4453_v62  ;;  %v5426_v8 = vrot.slane %v5409_v54, 4  ;;  %v10276_v41 = vld [vmem:[%s6339_s29 + $0x18] sm:$0xf0]  ;;  %v5564_v54 = vrot.slane %v5548_v21, 4 }
 0x37e   : > { %v10257_v46 = vadd.f32 %v4456_v15, %v4267_v43  ;;  %v10259_v36 = vadd.f32 %v4457_v23, %v4268_v40  ;;  %5382 = vrot.lane.b32.xlu1 %v5372_v17, %s6236_s25  ;;  %5243 = vrot.lane.b32.xlu0 %v5236_v13, %s6234_s19  ;;  %v5552_v17 = vmul.f32 %v10198_v22, %v10244_v4 }
 0x37f   : > { %v5406_v0 = vmul.f32 %v10276_v41, %v10169_v38  ;;  %v4309_v13 = vsel %vm4212_vm10, %v10065_v7, %v10088_v1  ;;  %v5422_v7 = vrot.slane %v5404_v14, 4  ;;  %v5423_v1 = vrot.slane %v5408_v39, 4 }
 0x380   : > { %11398 = vst [vmem:[#allocation15_spill] sm:$0xff] %v10257_v46  ;;  %11399 = vst [vmem:[#allocation30_spill] sm:$0xff] %v10259_v36  ;;  %v4498_v19 = vpop.permute.xlu1 %4497  ;;  %v10271_v29 = vpop.permute.xlu0 %4454  ;;  %v5427_v55 = vsel %vm4585_vm8, %v5425_v51, %v5426_v8  ;;  %v4316_v38 = vadd.f32 %v4309_v13, %v9916_v56  ;;  %v4317_v43 = vadd.f32 %v4310_v27, %v9919_v60  ;;  %v5565_v58 = vrot.slane %v5552_v17, 4  ;;  %v11409_v51 = vld [vmem:[#allocation105_spill] sm:$0xff]  ;;  %v11431_v36 = vld [vmem:[#allocation18_spill] sm:$0xff] }
 0x381   : > { %11400 = vst [vmem:[#allocation44_spill] sm:$0xff] %v10271_v29  ;;  %v4458_v33 = vsel %vm4408_vm5, %v4453_v62, %v10271_v29  ;;  %v5429_v14 = vrot.slane %v5410_v18, 4  ;;  %v5424_v56 = vsel %vm4585_vm8, %v5422_v7, %v5423_v1  ;;  %v10318_v60 = vstv %s10263_s24 }
 0x382   : > { %v10296_v37 = vadd.f32 %v4458_v33, %v4269_v57  ;;  %5386 = vrot.lane.b32.xlu1 %v5378_v63, %s6236_s25  ;;  %5384 = vrot.lane.b32.xlu0 %v5375_v52, %s6236_s25  ;;  %v5428_v63 = vrot.slane %v5406_v0, 4  ;;  %v4311_v52 = vsel %vm4212_vm10, %v10086_v10, %v10112_v53  ;;  %v5550_v10 = vmul.f32 %v10229_v49, %v10244_v4 }
 0x383   : > { %v5554_v23 = vmul.f32 %v10234_v47, %v10244_v4  ;;  %v5549_v39 = vmul.f32 %v10239_v25, %v10244_v4  ;;  %v5553_v32 = vmul.f32 %v10252_v9, %v10244_v4  ;;  %v3181_v16 = vsel %vm11408_vm13, %v11401_v24, %v11407_v3 }
 0x384   : > { %11404 = vst [vmem:[#allocation42_spill] sm:$0xff] %v10296_v37  ;;  %v4502_v40 = vpop.permute.xlu1 %4501  ;;  %v4500_v62 = vpop.permute.xlu0 %4499  ;;  %v3182_v8 = vsel %vm11410_vm3, %v11407_v3, %v11409_v51  ;;  %v4318_v21 = vadd.f32 %v4311_v52, %v9944_v2  ;;  %v5566_v17 = vsel %vm4585_vm8, %v5564_v54, %v5565_v58  ;;  %v5430_v13 = vsel %vm4585_vm8, %v5428_v63, %v5429_v14  ;;  %v11416_v52 = vld [vmem:[#allocation7_spill] sm:$0xff]  ;;  %v11429_v37 = vld [vmem:[#allocation58_spill] sm:$0xff] }
 0x385   : > { %v4505_v44 = vsel %vm4408_vm5, %v4498_v19, %v4500_v62  ;;  %v4506_v48 = vsel %vm4408_vm5, %v4500_v62, %v4502_v40  ;;  %v5597_v27 = vmul.f32 %v10184_v6, %v10318_v60  ;;  %v5601_v2 = vmul.f32 %v10198_v22, %v10318_v60  ;;  %v11418_v3 = vld [vmem:[#allocation11_spill] sm:$0xff] }
 0x386   : > { %v10310_v59 = vadd.f32 %v4505_v44, %v4316_v38  ;;  %v10312_v15 = vadd.f32 %v4506_v48, %v4317_v43  ;;  %5431 = vrot.lane.b32.xlu1 %v5421_v61, %s6236_s25  ;;  %5388 = vrot.lane.b32.xlu0 %v5381_v28, %s6236_s25  ;;  %v5551_v18 = vmul.f32 %v10276_v41, %v10244_v4  ;;  %v5570_v26 = vrot.slane %v5550_v10, 4  ;;  %v11413_v28 = vld [vmem:[#allocation100_spill] sm:$0xff] }
 0x387   : > { %v5555_v24 = vmul.f32 %v10289_v50, %v10244_v4  ;;  %v5571_v7 = vrot.slane %v5554_v23, 4  ;;  %v5567_v1 = vrot.slane %v5549_v39, 4  ;;  %v5568_v61 = vrot.slane %v5553_v32, 4  ;;  %v11414_v38 = vld [vmem:[#allocation28_spill] sm:$0xff] }
 0x388   : > { %11405 = vst [vmem:[#allocation21_spill] sm:$0xff] %v10310_v59  ;;  %11406 = vst [vmem:[#allocation39_spill] sm:$0xff] %v10312_v15  ;;  %v10335_v57 = vpop.permute.xlu1 %4546  ;;  %v10337_v19 = vpop.permute.xlu0 %4503  ;;  %v3141_v54 = vadd.f32 %v11413_v28, %v10100_v42  ;;  %v3187_v43 = vadd.f32 %v3180_v30, %v11414_v38  ;;  %v3188_v62 = vadd.f32 %v3181_v16, %v10158_v20  ;;  %v11417_v44 = vld [vmem:[#allocation16_spill] sm:$0xff]  ;;  %v5613_v14 = vrot.slane %v5597_v27, 4 }
 0x389   : > { %11411 = vst [vmem:[#allocation22_spill] sm:$0xff] %v10337_v19  ;;  %v4507_v0 = vsel %vm4408_vm5, %v4502_v40, %v10337_v19  ;;  %v11415_v40 = vld [vmem:[#allocation33_spill] sm:$0xff]  ;;  %v3189_v4 = vadd.f32 %v3182_v8, %v10269_v5  ;;  %v3374_v48 = vsel %vm3373_vm1, %v11417_v44, %v11416_v52  ;;  %v5573_v42 = vrot.slane %v5551_v18, 4  ;;  %v11421_v18 = vld [vmem:[#allocation48_spill] sm:$0xff] }
 0x38a   : > { %v10351_v33 = vadd.f32 %v4507_v0, %v4318_v21  ;;  %5435 = vrot.lane.b32.xlu1 %v5427_v55, %s6236_s25  ;;  %5433 = vrot.lane.b32.xlu0 %v5424_v56, %s6236_s25  ;;  %v3190_v55 = vadd.f32 %v11409_v51, %v11415_v40  ;;  %v5614_v56 = vrot.slane %v5601_v2, 4  ;;  %v5574_v30 = vrot.slane %v5555_v24, 4  ;;  %v11419_v21 = vld [vmem:[#allocation17_spill] sm:$0xff]  ;;  %v11420_v2 = vld [vmem:[#allocation56_spill] sm:$0xff] }
 0x38b   : > { %v5599_v20 = vmul.f32 %v10229_v49, %v10318_v60  ;;  %v5603_v5 = vmul.f32 %v10234_v47, %v10318_v60  ;;  %v5572_v10 = vsel %vm4585_vm8, %v5570_v26, %v5571_v7  ;;  %v5569_v23 = vsel %vm4585_vm8, %v5567_v1, %v5568_v61  ;;  %v4565_v7 = vld [vmem:[%s6339_s29] sm:$0xf0]  ;;  %v4566_v1 = vld [vmem:[%s6339_s29 + $0x8] sm:$0xf0]  ;;  %v4568_v40 = vld [vmem:[%s6339_s29 + $0x20] sm:$0xf] }
 0x38c   : > { %11412 = vst [vmem:[#allocation37_spill] sm:$0xff] %v10351_v33  ;;  %v10365_v58 = vpop.permute.xlu1 %4550  ;;  %v10367_v63 = vpop.permute.xlu0 %4548  ;;  %v5598_v39 = vmul.f32 %v10239_v25, %v10318_v60  ;;  %v5602_v32 = vmul.f32 %v10252_v9, %v10318_v60  ;;  %v3336_v16 = vadd.f32 %v11418_v3, %v3141_v54  ;;  %v3380_v51 = vadd.f32 %v11417_v44, %v3187_v43  ;;  %v11439_v33 = vld [vmem:[#allocation34_spill] sm:$0xff] }
 0x38d   : > { %v3381_v8 = vadd.f32 %v3374_v48, %v3188_v62  ;;  %v3383_v27 = vadd.f32 %v11419_v21, %v3190_v55  ;;  %v3576_v24 = vsel %vm3430_vm7, %v11421_v18, %v11420_v2  ;;  %v10399_v26 = vstv %s10345_s27  ;;  %v4569_v55 = vld [vmem:[%s6339_s29 + $0x28] sm:$0xf] }
 0x38e   : > { %5576 = vrot.lane.b32.xlu1 %v5566_v17, %s6237_s6  ;;  %5437 = vrot.lane.b32.xlu0 %v5430_v13, %s6236_s25  ;;  %v3375_v17 = vsel %vm3373_vm1, %v11416_v52, %v11419_v21  ;;  %v10404_v61 = vstv %s10340_s26  ;;  %v5615_v28 = vsel %vm4585_vm8, %v5613_v14, %v5614_v56  ;;  %v5575_v54 = vsel %vm4585_vm8, %v5573_v42, %v5574_v30 }
 0x38f   : > { %v5619_v38 = vrot.slane %v5599_v20, 4  ;;  %v5620_v43 = vrot.slane %v5603_v5, 4  ;;  %v5616_v62 = vrot.slane %v5598_v39, 4  ;;  %v5617_v52 = vrot.slane %v5602_v32, 4 }
 0x390   : > { %v10390_v0 = vpop.permute.xlu1 %4898  ;;  %v10392_v13 = vpop.permute.xlu0 %4552  ;;  %v5600_v44 = vmul.f32 %v10276_v41, %v10318_v60  ;;  %v5604_v48 = vmul.f32 %v10289_v50, %v10318_v60  ;;  %v3382_v3 = vadd.f32 %v3375_v17, %v3189_v4  ;;  %v3583_v56 = vadd.f32 %v3576_v24, %v3380_v51  ;;  %v11424_v4 = vld [vmem:[#allocation57_spill] sm:$0xff] }
 0x391   : > { %v4573_v20 = vmul.f32 %v10404_v61, %v4565_v7  ;;  %v4574_v5 = vmul.f32 %v10404_v61, %v4566_v1  ;;  %v4576_v39 = vmul.f32 %v10404_v61, %v4568_v40  ;;  %v4577_v60 = vmul.f32 %v10404_v61, %v4569_v55 }
 0x392   : > { %5580 = vrot.lane.b32.xlu1 %v5572_v10, %s6237_s6  ;;  %5578 = vrot.lane.b32.xlu0 %v5569_v23, %s6237_s6  ;;  %v11422_v10 = vld [vmem:[#allocation49_spill] sm:$0xff]  ;;  %v11423_v23 = vld [vmem:[#allocation50_spill] sm:$0xff]  ;;  %v4691_v51 = vmul.f32 %v10198_v22, %v10399_v26  ;;  %v5621_v17 = vsel %vm4585_vm8, %v5619_v38, %v5620_v43  ;;  %v5622_v18 = vrot.slane %v5600_v44, 4  ;;  %v5623_v24 = vrot.slane %v5604_v48, 4  ;;  %v11427_v44 = vld [vmem:[#allocation27_spill] sm:$0xff] }
 0x393   : > { %v3537_v21 = vadd.f32 %v11422_v10, %v3336_v16  ;;  %v3577_v14 = vsel %vm3430_vm7, %v11420_v2, %v11423_v23  ;;  %v3578_v32 = vsel %vm3430_vm7, %v11423_v23, %v11424_v4  ;;  %v4687_v16 = vmul.f32 %v10184_v6, %v10399_v26 }
 0x394   : > { %v10420_v42 = vpop.permute.xlu1 %4902  ;;  %v10422_v30 = vpop.permute.xlu0 %4900  ;;  %v5618_v2 = vsel %vm4585_vm8, %v5616_v62, %v5617_v52  ;;  %v3584_v7 = vadd.f32 %v3577_v14, %v3381_v8  ;;  %v3586_v1 = vadd.f32 %v11424_v4, %v3383_v27  ;;  %v4688_v40 = vmul.f32 %v10239_v25, %v10399_v26  ;;  %v11425_v8 = vld [vmem:[#allocation24_spill] sm:$0xff]  ;;  %v11426_v52 = vld [vmem:[#allocation59_spill] sm:$0xff] }
 0x395   : > { %v4692_v55 = vmul.f32 %v10252_v9, %v10399_v26  ;;  %v4587_v23 = vrot.slane %v4576_v39, 4  ;;  %v4589_v38 = vrot.slane %v4574_v5, 4  ;;  %v4590_v43 = vrot.slane %v4577_v60, 4  ;;  %v11428_v14 = vld [vmem:[#allocation43_spill] sm:$0xff] }
 0x396   : > { %5625 = vrot.lane.b32.xlu1 %v5615_v28, %s6237_s6  ;;  %5582 = vrot.lane.b32.xlu0 %v5575_v54, %s6237_s6  ;;  %v4586_v54 = vrot.slane %v4573_v20, 4  ;;  %v3585_v62 = vadd.f32 %v3578_v32, %v3382_v3  ;;  %v3771_v27 = vsel %vm3625_vm6, %v11426_v52, %v11425_v8  ;;  %v3772_v48 = vsel %vm3625_vm6, %v11425_v8, %v11427_v44  ;;  %v4567_v52 = vld [vmem:[%s6339_s29 + $0x10] sm:$0xf0] }
 0x397   : > { %v3773_v20 = vsel %vm3625_vm6, %v11427_v44, %v11428_v14  ;;  %v4703_v5 = vrot.slane %v4687_v16, 4  ;;  %v4704_v3 = vrot.slane %v4691_v51, 4  ;;  %v5624_v39 = vsel %vm4585_vm8, %v5622_v18, %v5623_v24 }
 0x398   : > { %v10444_v10 = vpop.permute.xlu1 %5092  ;;  %v10446_v28 = vpop.permute.xlu0 %4904  ;;  %v4706_v60 = vrot.slane %v4688_v40, 4  ;;  %v4707_v4 = vrot.slane %v4692_v55, 4  ;;  %v4689_v32 = vmul.f32 %v10229_v49, %v10399_v26  ;;  %v4690_v8 = vmul.f32 %v10276_v41, %v10399_v26 }
 0x399   : > { %v3732_v44 = vadd.f32 %v11429_v37, %v3537_v21  ;;  %v4693_v16 = vmul.f32 %v10234_v47, %v10399_v26  ;;  %v10475_v51 = vsel %vm4585_vm8, %v4586_v54, %v4587_v23  ;;  %v10478_v18 = vsel %vm4585_vm8, %v4589_v38, %v4590_v43  ;;  %v11430_v21 = vld [vmem:[#allocation9_spill] sm:$0xff]  ;;  %v11432_v54 = vld [vmem:[#allocation8_spill] sm:$0xff]  ;;  %v4570_v38 = vld [vmem:[%s6339_s29 + $0x30] sm:$0xf] }
 0x39a   : > { %5629 = vrot.lane.b32.xlu1 %v5621_v17, %s6237_s6  ;;  %5627 = vrot.lane.b32.xlu0 %v5618_v2, %s6237_s6  ;;  %v3778_v24 = vadd.f32 %v3771_v27, %v3583_v56  ;;  %v3779_v40 = vadd.f32 %v3772_v48, %v3584_v7  ;;  %v3781_v55 = vadd.f32 %v11428_v14, %v3586_v1  ;;  %v4712_v43 = vrot.slane %v4690_v8, 4  ;;  %v11433_v48 = vld [vmem:[#allocation35_spill] sm:$0xff] }
 0x39b   : > { %v4694_v46 = vmul.f32 %v10289_v50, %v10399_v26  ;;  %v3780_v37 = vadd.f32 %v3773_v20, %v3585_v62  ;;  %v3967_v29 = vsel %vm3868_vm11, %v11431_v36, %v11430_v21  ;;  %v3968_v23 = vsel %vm3868_vm11, %v11430_v21, %v11432_v54  ;;  %v11434_v14 = vld [vmem:[#allocation99_spill] sm:$0xff]  ;;  %v11435_v20 = vld [vmem:[#allocation102_spill] sm:$0xff] }
 0x39c   : > { %v10466_v17 = vpop.permute.xlu1 %5096  ;;  %v10468_v2 = vpop.permute.xlu0 %5094  ;;  %v4575_v56 = vmul.f32 %v10404_v61, %v4567_v52  ;;  %v4705_v7 = vsel %vm4585_vm8, %v4703_v5, %v4704_v3  ;;  %v4708_v1 = vsel %vm4585_vm8, %v4706_v60, %v4707_v4  ;;  %v4709_v26 = vrot.slane %v4689_v32, 4  ;;  %v11436_v32 = vld [vmem:[#allocation10_spill] sm:$0xff] }
 0x39d   : > { %v4163_v36 = vsel %vm4113_vm15, %v11434_v14, %v11433_v48  ;;  %v4710_v21 = vrot.slane %v4693_v16, 4  ;;  %v10505_v52 = vstv %s10448_s4  ;;  %v3974_v5 = vadd.f32 %v3967_v29, %v3778_v24 }
 0x39e   : > { %5631 = vrot.lane.b32.xlu0 %v5624_v39, %s6237_s6  ;;  %v4164_v39 = vsel %vm4113_vm15, %v11433_v48, %v11435_v20  ;;  %v3975_v3 = vadd.f32 %v3968_v23, %v3779_v40  ;;  %v4713_v60 = vrot.slane %v4694_v46, 4  ;;  %v4578_v4 = vmul.f32 %v10404_v61, %v4570_v38  ;;  %v11440_v23 = vld [vmem:[#allocation47_spill] sm:$0xff] }
 0x39f   : > { %v3969_v8 = vsel %vm3868_vm11, %v11432_v54, %v11436_v32  ;;  %v4359_v14 = vsel %vm4358_vm9, %v11438_v34, %v11437_v11  ;;  %v4360_v48 = vsel %vm4358_vm9, %v11437_v11, %v11439_v33  ;;  %v4592_v16 = vrot.slane %v4575_v56, 4 }
 0x3a0   : > { %v10494_v27 = vpop.permute.xlu1 %5286  ;;  %v10496_v62 = vpop.permute.xlu0 %5098  ;;  %v4170_v29 = vadd.f32 %v4163_v36, %v3974_v5  ;;  %v4171_v24 = vadd.f32 %v4164_v39, %v3975_v3  ;;  %v4649_v40 = vmul.f32 %v10184_v6, %v10505_v52  ;;  %v4653_v54 = vmul.f32 %v10198_v22, %v10505_v52 }
 0x3a1   : > { %v3977_v34 = vadd.f32 %v11436_v32, %v3781_v55  ;;  %v4165_v11 = vsel %vm4113_vm15, %v11435_v20, %v11440_v23  ;;  %v4554_v38 = vsel %vm4408_vm5, %v10335_v57, %v10367_v63  ;;  %v4555_v56 = vsel %vm4408_vm5, %v10367_v63, %v10365_v58 }
 0x3a2   : > { %v3976_v36 = vadd.f32 %v3969_v8, %v3780_v37  ;;  %v4366_v39 = vadd.f32 %v4359_v14, %v4170_v29  ;;  %v4367_v5 = vadd.f32 %v4360_v48, %v4171_v24  ;;  %v4593_v3 = vrot.slane %v4578_v4, 4 }
 0x3a3   : > { %v4173_v59 = vadd.f32 %v11440_v23, %v3977_v34  ;;  %v4361_v55 = vsel %vm4358_vm9, %v11439_v33, %v10147_v12  ;;  %v4711_v20 = vsel %vm4585_vm8, %v4709_v26, %v4710_v21  ;;  %v4714_v32 = vsel %vm4585_vm8, %v4712_v43, %v4713_v60  ;;  %v11441_v21 = vld [vmem:[#allocation92_spill] sm:$0xff] }
 0x3a4   : > { %v10519_v46 = vpop.permute.xlu1 %5290  ;;  %v5289_v61 = vpop.permute.xlu0 %5288  ;;  %v4172_v15 = vadd.f32 %v4165_v11, %v3976_v36  ;;  %v4561_v57 = vadd.f32 %v4554_v38, %v4366_v39  ;;  %v4562_v19 = vadd.f32 %v4555_v56, %v4367_v5  ;;  %v10543_v37 = vmul.f32 %v10239_v25, %v10505_v52 }
 0x3a5   : > { %v4369_v4 = vadd.f32 %v10147_v12, %v4173_v59  ;;  %v4556_v33 = vsel %vm4408_vm5, %v10365_v58, %v10392_v13  ;;  %v4665_v8 = vrot.slane %v4649_v40, 4  ;;  %v4666_v26 = vrot.slane %v4653_v54, 4 }
 0x3a6   : > { %v10550_v43 = vadd.f32 %v11441_v21, %v3732_v44  ;;  %v4368_v60 = vadd.f32 %v4361_v55, %v4172_v15  ;;  %v10553_v14 = vsel %vm4585_vm8, %v4592_v16, %v4593_v3  ;;  %v10557_v48 = vmul.f32 %v10252_v9, %v10505_v52 }
 0x3a7   : > { %v4564_v29 = vadd.f32 %v10392_v13, %v4369_v4  ;;  %vm11442_vm6 = vcmask 891904   ;;  %v4918_v58 = vstv %s10517_s7  ;;  %v4720_v15 = vadd.f32 %v4708_v1, %v4562_v19 }
 0x3a8   : > { %v5481_v53 = vpop.permute.xlu1 %5480  ;;  %v5293_v63 = vpop.permute.xlu0 %5292  ;;  %v4906_v12 = vsel %vm11442_vm6, %v10390_v0, %v10422_v30  ;;  %vm11443_vm11 = vmmov %vm11442_vm6  ;;  %v4563_v44 = vadd.f32 %v4556_v33, %v4368_v60  ;;  %v4719_v24 = vadd.f32 %v4705_v7, %v4561_v57  ;;  %v4668_v54 = vrot.slane %v10543_v37, 4 }
 0x3a9   : > { %v4907_v59 = vsel %vm11443_vm11, %v10422_v30, %v10420_v42  ;;  %v5100_v13 = vsel %vm466_vm4, %v10444_v10, %v10468_v2  ;;  %v5101_v0 = vsel %vm466_vm4, %v10468_v2, %v10466_v17  ;;  %v10575_v34 = vsel %vm4585_vm8, %v4665_v8, %v4666_v26  ;;  %vm11444_vm14 = vmmov %vm11442_vm6 }
 0x3aa   : > { %v10579_v30 = vmul.f32 %v10229_v49, %v10505_v52  ;;  %v4913_v19 = vadd.f32 %v4906_v12, %v4719_v24  ;;  %v4914_v7 = vadd.f32 %v4907_v59, %v4720_v15  ;;  %v4920_v1 = vmul.f32 %v10239_v25, %v4918_v58  ;;  %vm11459_vm9 = vmmov %vm11442_vm6 }
 0x3ab   : > { %v4924_v23 = vmul.f32 %v10252_v9, %v4918_v58  ;;  %v4722_v11 = vadd.f32 %v4714_v32, %v4564_v29  ;;  %v4908_v10 = vsel %vm11444_vm14, %v10420_v42, %v10446_v28  ;;  %v5294_v2 = vsel %vm611_vm2, %v10494_v27, %v5289_v61  ;;  %vm11461_vm11 = vmmov %vm11442_vm6 }
 0x3ac   : > { %v5485_v16 = vpop.permute.xlu1 %5484  ;;  %v5483_v40 = vpop.permute.xlu0 %5482  ;;  %v5295_v38 = vsel %vm611_vm2, %v5289_v61, %v10519_v46  ;;  %v4721_v56 = vadd.f32 %v4711_v20, %v4563_v44  ;;  %v5107_v36 = vadd.f32 %v5100_v13, %v4913_v19  ;;  %v5108_v39 = vadd.f32 %v5101_v0, %v4914_v7 }
 0x3ad   : > { %v4919_v55 = vmul.f32 %v10184_v6, %v4918_v58  ;;  %v4916_v32 = vadd.f32 %v10446_v28, %v4722_v11  ;;  %v5102_v42 = vsel %vm466_vm4, %v10466_v17, %v10496_v62  ;;  %vm11445_vm15 = vcmask 547840  }
 0x3ae   : > { %v5488_v27 = vsel %vm11445_vm15, %v5481_v53, %v5483_v40  ;;  %vm11446_vm0 = vmmov %vm11445_vm15  ;;  %v4915_v61 = vadd.f32 %v4908_v10, %v4721_v56  ;;  %v5301_v4 = vadd.f32 %v5294_v2, %v5107_v36  ;;  %v5302_v33 = vadd.f32 %v5295_v38, %v5108_v39 }
 0x3af   : > { %v5489_v57 = vsel %vm11446_vm0, %v5483_v40, %v5485_v16  ;;  %v4923_v20 = vmul.f32 %v10198_v22, %v4918_v58  ;;  %v5110_v8 = vadd.f32 %v10496_v62, %v4916_v32  ;;  %v5296_v26 = vsel %vm611_vm2, %v10519_v46, %v5293_v63  ;;  %vm11447_vm10 = vmmov %vm11446_vm0 }
 0x3b0   : > { %v5675_v5 = vpop.permute.xlu1 %5674  ;;  %v5487_v3 = vpop.permute.xlu0 %5486  ;;  %v4938_v21 = vrot.slane %v4920_v1, 4  ;;  %v4939_v28 = vrot.slane %v4924_v23, 4  ;;  %v5109_v60 = vadd.f32 %v5102_v42, %v4915_v61  ;;  %v5495_v29 = vadd.f32 %v5488_v27, %v5301_v4 }
 0x3b1   : > { %v5496_v17 = vadd.f32 %v5489_v57, %v5302_v33  ;;  %v4922_v59 = vmul.f32 %v10276_v41, %v4918_v58  ;;  %v5304_v44 = vadd.f32 %v5293_v63, %v5110_v8  ;;  %v5490_v15 = vsel %vm11447_vm10, %v5485_v16, %v5487_v3 }
 0x3b2   : > { %vm11448_vm5 = vcmask 392192   ;;  %v5303_v40 = vadd.f32 %v5296_v26, %v5109_v60  ;;  %v4926_v0 = vmul.f32 %v10289_v50, %v4918_v58  ;;  %v4935_v7 = vrot.slane %v4919_v55, 4 }
 0x3b3   : > { %vm11449_vm12 = vmmov %vm11448_vm5  ;;  %v5498_v19 = vadd.f32 %v5487_v3, %v5304_v44  ;;  %v4936_v1 = vrot.slane %v4923_v20, 4  ;;  %v5112_v23 = vstv %s10590_s10  ;;  %v4921_v16 = vmul.f32 %v10229_v49, %v4918_v58 }
 0x3b4   : > { %v5679_v12 = vpop.permute.xlu1 %5678  ;;  %v5677_v53 = vpop.permute.xlu0 %5676  ;;  %v5497_v11 = vadd.f32 %v5490_v15, %v5303_v40  ;;  %v4925_v2 = vmul.f32 %v10234_v47, %v4918_v58  ;;  %v4669_v38 = vrot.slane %v10557_v48, 4  ;;  %vm11450_vm2 = vmmov %vm11448_vm5  ;;  %v10619_v39 = vmul.f32 %v10276_v41, %v10505_v52 }
 0x3b5   : > { %v5682_v24 = vsel %vm11448_vm5, %v5675_v5, %v5677_v53  ;;  %v5683_v62 = vsel %vm11449_vm12, %v5677_v53, %v5679_v12  ;;  %v10623_v5 = vmul.f32 %v10234_v47, %v10505_v52  ;;  %v4944_v55 = vrot.slane %v4922_v59, 4 }
 0x3b6   : > { %v5689_v13 = vadd.f32 %v5682_v24, %v5495_v29  ;;  %v5690_v46 = vadd.f32 %v5683_v62, %v5496_v17  ;;  %v4945_v32 = vrot.slane %v4926_v0, 4  ;;  %v5114_v58 = vmul.f32 %v10239_v25, %v5112_v23 }
 0x3b7   : > { %v4940_v48 = vsel %vm4585_vm8, %v4938_v21, %v4939_v28  ;;  %v4937_v42 = vsel %vm4585_vm8, %v4935_v7, %v4936_v1  ;;  %v5118_v27 = vmul.f32 %v10252_v9, %v5112_v23  ;;  %v10631_v57 = vmul.f32 %v10289_v50, %v10505_v52 }
 0x3b8   : > { %v4754_v10 = vpop.permute.xlu1 %4753  ;;  %5767 = vrot.lane.b32.xlu0 %v5690_v46, %s6260_s28  ;;  %v5681_v63 = vpop.permute.xlu0 %5680  ;;  %5765 = vrot.lane.b32.xlu1 %v5689_v13, %s6260_s28  ;;  %v4598_v33 = vadd.f32 %v10475_v51, %v10176_v31  ;;  %v4599_v20 = vadd.f32 %v10478_v18, %v10179_v35  ;;  %v4941_v8 = vrot.slane %v4921_v16, 4  ;;  %v4942_v26 = vrot.slane %v4925_v2, 4 }
 0x3b9   : > { %v5684_v56 = vsel %vm11450_vm2, %v5679_v12, %v5681_v63  ;;  %v5692_v36 = vadd.f32 %v5681_v63, %v5498_v19  ;;  %vm11451_vm13 = vcmask 1014784   ;;  %v5113_v52 = vmul.f32 %v10184_v6, %v5112_v23 }
 0x3ba   : > { %v5691_v3 = vadd.f32 %v5684_v56, %v5497_v11  ;;  %vm11452_vm3 = vmmov %vm11451_vm13  ;;  %v5117_v60 = vmul.f32 %v10198_v22, %v5112_v23  ;;  %v4946_v31 = vsel %vm4585_vm8, %v4944_v55, %v4945_v32  ;;  %v5132_v51 = vrot.slane %v5114_v58, 4 }
 0x3bb   : > { %v5133_v35 = vrot.slane %v5118_v27, 4  ;;  %v5116_v18 = vmul.f32 %v10276_v41, %v5112_v23  ;;  %v5120_v12 = vmul.f32 %v10289_v50, %v5112_v23  ;;  %v5115_v53 = vmul.f32 %v10229_v49, %v5112_v23  ;;  %vm11453_vm1 = vmmov %vm11452_vm3 }
 0x3bc   : > { %v4758_v61 = vpop.permute.xlu1 %4757  ;;  %5771 = vrot.lane.b32.xlu0 %v5692_v36, %s6260_s28  ;;  %v4756_v4 = vpop.permute.xlu0 %4755  ;;  %5769 = vrot.lane.b32.xlu1 %v5691_v3, %s6260_s28  ;;  %v4600_v15 = vadd.f32 %v10553_v14, %v10219_v45  ;;  %v4943_v24 = vsel %vm4585_vm8, %v4941_v8, %v4942_v26  ;;  %v5119_v62 = vmul.f32 %v10234_v47, %v5112_v23  ;;  %v5129_v13 = vrot.slane %v5113_v52, 4 }
 0x3bd   : > { %v4761_v21 = vsel %vm11451_vm13, %v4754_v10, %v4756_v4  ;;  %v4762_v28 = vsel %vm11452_vm3, %v4756_v4, %v4758_v61  ;;  %v5130_v46 = vrot.slane %v5117_v60, 4  ;;  %v5306_v0 = vstv %s10615_s11 }
 0x3be   : > { %v10643_v29 = vadd.f32 %v4761_v21, %v4598_v33  ;;  %v10645_v17 = vadd.f32 %v4762_v28, %v4599_v20  ;;  %v4670_v7 = vsel %vm4585_vm8, %v4668_v54, %v4669_v38  ;;  %v4671_v1 = vrot.slane %v10579_v30, 4 }
 0x3bf   : > { %v4672_v45 = vrot.slane %v10623_v5, 4  ;;  %v5134_v14 = vsel %vm4585_vm8, %v5132_v51, %v5133_v35  ;;  %v5138_v11 = vrot.slane %v5116_v18, 4  ;;  %v5139_v10 = vrot.slane %v5120_v12, 4  ;;  %v11456_v12 = vld [vmem:[#allocation22_spill] sm:$0xff] }
 0x3c0   : > { %v10653_v59 = vpop.permute.xlu1 %4800  ;;  %4949 = vrot.lane.b32.xlu0 %v4940_v48, %s6232_s9  ;;  %v4760_v44 = vpop.permute.xlu0 %4759  ;;  %4947 = vrot.lane.b32.xlu1 %v4937_v42, %s6232_s9  ;;  %v5135_v23 = vrot.slane %v5115_v53, 4  ;;  %v5136_v37 = vrot.slane %v5119_v62, 4  ;;  %v5308_v54 = vmul.f32 %v10239_v25, %v5306_v0  ;;  %v5312_v30 = vmul.f32 %v10252_v9, %v5306_v0  ;;  %v11454_v48 = vld [vmem:[#allocation101_spill] sm:$0xff] }
 0x3c1   : > { %v4763_v40 = vsel %vm11453_vm1, %v4758_v61, %v4760_v44  ;;  %v5307_v2 = vmul.f32 %v10184_v6, %v5306_v0  ;;  %v5131_v38 = vsel %vm4585_vm8, %v5129_v13, %v5130_v46  ;;  %v5311_v56 = vmul.f32 %v10198_v22, %v5306_v0 }
 0x3c2   : > { %v10663_v19 = vadd.f32 %v4763_v40, %v4600_v15  ;;  %v5310_v36 = vmul.f32 %v10276_v41, %v5306_v0  ;;  %v5314_v5 = vmul.f32 %v10289_v50, %v5306_v0  ;;  %v4674_v3 = vrot.slane %v10619_v39, 4  ;;  %v11457_v40 = vld [vmem:[#allocation39_spill] sm:$0xff] }
 0x3c3   : > { %v4675_v55 = vrot.slane %v10631_v57, 4  ;;  %v5309_v32 = vmul.f32 %v10229_v49, %v5306_v0  ;;  %v5313_v58 = vmul.f32 %v10234_v47, %v5306_v0  ;;  %v4124_v42 = vadd.f32 %v11454_v48, %v10550_v43  ;;  %v11455_v43 = vld [vmem:[#allocation20_spill] sm:$0xff]  ;;  %v11458_v0 = vld [vmem:[#allocation21_spill] sm:$0xff] }
 0x3c4   : > { %v10671_v63 = vpop.permute.xlu1 %4804  ;;  %4953 = vrot.lane.b32.xlu0 %v4946_v31, %s6232_s9  ;;  %v10674_v16 = vpop.permute.xlu0 %4802  ;;  %4951 = vrot.lane.b32.xlu1 %v4943_v24, %s6232_s9  ;;  %v5140_v27 = vsel %vm4585_vm8, %v5138_v11, %v5139_v10  ;;  %v4673_v61 = vsel %vm4585_vm8, %v4671_v1, %v4672_v45  ;;  %v5500_v4 = vstv %s10651_s23  ;;  %v5137_v39 = vsel %vm4585_vm8, %v5135_v23, %v5136_v37  ;;  %s10698_s9 = sld [smem:[#allocation2 + $0x7c]] }
 0x3c5   : > { %v5326_v57 = vrot.slane %v5308_v54, 4  ;;  %v5327_v8 = vrot.slane %v5312_v30, 4  ;;  %v5323_v26 = vrot.slane %v5307_v2, 4  ;;  %v4319_v21 = vadd.f32 %v11455_v43, %v4124_v42 }
 0x3c6   : > { %v5324_v28 = vrot.slane %v5311_v56, 4  ;;  %v5332_v52 = vrot.slane %v5310_v36, 4  ;;  %v5333_v60 = vrot.slane %v5314_v5, 4  ;;  %v4676_v31 = vsel %vm4585_vm8, %v4674_v3, %v4675_v55  ;;  %v11460_v5 = vld [vmem:[#allocation37_spill] sm:$0xff] }
 0x3c7   : > { %v5329_v51 = vrot.slane %v5309_v32, 4  ;;  %v5330_v35 = vrot.slane %v5313_v58, 4  ;;  %v5502_v18 = vmul.f32 %v10239_v25, %v5500_v4  ;;  %v4515_v53 = vadd.f32 %v11456_v12, %v4319_v21 }
 0x3c8   : > { %v4850_v33 = vpop.permute.xlu1 %4849  ;;  %5143 = vrot.lane.b32.xlu0 %v5134_v14, %s6234_s19  ;;  %v10694_v20 = vpop.permute.xlu0 %4806  ;;  %5141 = vrot.lane.b32.xlu1 %v5131_v38, %s6234_s19  ;;  %v5506_v44 = vmul.f32 %v10252_v9, %v5500_v4  ;;  %v5501_v15 = vmul.f32 %v10184_v6, %v5500_v4  ;;  %v5505_v24 = vmul.f32 %v10198_v22, %v5500_v4  ;;  %vm11484_vm15 = vcmask 859136  }
 0x3c9   : > { %v4682_v13 = vadd.f32 %v4670_v7, %v11457_v40  ;;  %v4681_v1 = vadd.f32 %v10575_v34, %v11458_v0  ;;  %v5328_v45 = vsel %vm4585_vm8, %v5326_v57, %v5327_v8  ;;  %v5325_v10 = vsel %vm4585_vm8, %v5323_v26, %v5324_v28  ;;  %v11462_v8 = vld [vmem:[#allocation40_spill] sm:$0xff]  ;;  %v11463_v26 = vld [vmem:[#allocation23_spill] sm:$0xff]  ;;  %vm11485_vm0 = vmmov %vm11484_vm15 }
 0x3ca   : > { %v5334_v23 = vsel %vm4585_vm8, %v5332_v52, %v5333_v60  ;;  %v5331_v54 = vsel %vm4585_vm8, %v5329_v51, %v5330_v35  ;;  %v5520_v34 = vrot.slane %v5502_v18, 4  ;;  %v4684_v30 = vadd.f32 %v4676_v31, %v4515_v53  ;;  %vm11490_vm12 = vmmov %vm11485_vm0 }
 0x3cb   : > { %v5521_v2 = vrot.slane %v5506_v44, 4  ;;  %v5517_v38 = vrot.slane %v5501_v15, 4  ;;  %v5518_v56 = vrot.slane %v5505_v24, 4  ;;  %v4683_v3 = vadd.f32 %v4673_v61, %v11460_v5  ;;  %v11464_v44 = vld [vmem:[#allocation38_spill] sm:$0xff] }
 0x3cc   : > { %v4854_v62 = vpop.permute.xlu1 %4853  ;;  %5147 = vrot.lane.b32.xlu0 %v5140_v27, %s6234_s19  ;;  %v4852_v46 = vpop.permute.xlu0 %4851  ;;  %5145 = vrot.lane.b32.xlu1 %v5137_v39, %s6234_s19  ;;  %v5504_v32 = vmul.f32 %v10276_v41, %v5500_v4  ;;  %v5508_v58 = vmul.f32 %v10289_v50, %v5500_v4  ;;  %v5694_v48 = vstv %s10698_s9  ;;  %v5507_v39 = vmul.f32 %v10234_v47, %v5500_v4  ;;  %s6039_s19 = sld [smem:[#allocation2 + $0x65]] }
 0x3cd   : > { %v4857_v14 = vsel %vm11459_vm9, %v4850_v33, %v4852_v46  ;;  %v4858_v11 = vsel %vm11442_vm6, %v4852_v46, %v4854_v62  ;;  %v5503_v33 = vmul.f32 %v10229_v49, %v5500_v4  ;;  %v1326_v43 = vadd.f32 %v11463_v26, %v11462_v8 }
 0x3ce   : > { %v10717_v37 = vadd.f32 %v4857_v14, %v4681_v1  ;;  %v10719_v7 = vadd.f32 %v4858_v11, %v4682_v13  ;;  %v5522_v61 = vsel %vm4585_vm8, %v5520_v34, %v5521_v2  ;;  %v5696_v21 = vmul.f32 %v10239_v25, %v5694_v48 }
 0x3cf   : > { %v5700_v28 = vmul.f32 %v10252_v9, %v5694_v48  ;;  %v5519_v4 = vsel %vm4585_vm8, %v5517_v38, %v5518_v56  ;;  %v5695_v31 = vmul.f32 %v10184_v6, %v5694_v48  ;;  %v5699_v51 = vmul.f32 %v10198_v22, %v5694_v48 }
 0x3d0   : > { %v10722_v36 = vpop.permute.xlu1 %4994  ;;  %5337 = vrot.lane.b32.xlu0 %v5328_v45, %s6236_s25  ;;  %v4856_v55 = vpop.permute.xlu0 %4855  ;;  %5335 = vrot.lane.b32.xlu1 %v5325_v10, %s6236_s25  ;;  %v5526_v35 = vrot.slane %v5504_v32, 4  ;;  %v5527_v18 = vrot.slane %v5508_v58, 4  ;;  %v5523_v12 = vrot.slane %v5503_v33, 4  ;;  %v5524_v53 = vrot.slane %v5507_v39, 4  ;;  %v11465_v10 = vld [vmem:[#allocation6_spill] sm:$0xff] }
 0x3d1   : > { %v4859_v42 = vsel %vm11461_vm11, %v4854_v62, %v4856_v55  ;;  %v4867_v27 = vadd.f32 %v4856_v55, %v4684_v30  ;;  %v1522_v15 = vadd.f32 %v11464_v44, %v1326_v43  ;;  %v5714_v24 = vrot.slane %v5696_v21, 4  ;;  %v11466_v55 = vld [vmem:[#allocation61_spill] sm:$0xff] }
 0x3d2   : > { %v4866_v57 = vadd.f32 %v4859_v42, %v4683_v3  ;;  %v5715_v62 = vrot.slane %v5700_v28, 4  ;;  %v5711_v46 = vrot.slane %v5695_v31, 4  ;;  %v5712_v0 = vrot.slane %v5699_v51, 4  ;;  %v11467_v42 = vld [vmem:[#allocation67_spill] sm:$0xff] }
 0x3d3   : > { %v5698_v6 = vmul.f32 %v10276_v41, %v5694_v48  ;;  %v5702_v22 = vmul.f32 %v10289_v50, %v5694_v48  ;;  %v5528_v1 = vsel %vm4585_vm8, %v5526_v35, %v5527_v18  ;;  %v5525_v45 = vsel %vm4585_vm8, %v5523_v12, %v5524_v53  ;;  %v11469_v51 = vld [vmem:[#allocation79_spill] sm:$0xff]  ;;  %v11470_v35 = vld [vmem:[#allocation85_spill] sm:$0xff] }
 0x3d4   : > { %v10738_v52 = vpop.permute.xlu1 %4998  ;;  %5341 = vrot.lane.b32.xlu0 %v5334_v23, %s6236_s25  ;;  %v10741_v60 = vpop.permute.xlu0 %4996  ;;  %5339 = vrot.lane.b32.xlu1 %v5331_v54, %s6236_s25  ;;  %v5697_v14 = vmul.f32 %v10229_v49, %v5694_v48  ;;  %v5701_v11 = vmul.f32 %v10234_v47, %v5694_v48  ;;  %v1717_v23 = vadd.f32 %v11465_v10, %v1522_v15  ;;  %v11471_v53 = vld [vmem:[#allocation91_spill] sm:$0xff]  ;;  %v11472_v15 = vld [vmem:[#allocation98_spill] sm:$0xff]  ;;  %vm11487_vm5 = vcmask 703488  }
 0x3d5   : > { %v5716_v30 = vsel %vm4585_vm8, %v5714_v24, %v5715_v62  ;;  %v5713_v2 = vsel %vm4585_vm8, %v5711_v46, %v5712_v0  ;;  %v5720_v38 = vrot.slane %v5698_v6, 4  ;;  %v5721_v56 = vrot.slane %v5702_v22, 4  ;;  %v11473_v46 = vld [vmem:[#allocation46_spill] sm:$0xff]  ;;  %v11474_v22 = vld [vmem:[#allocation32_spill] sm:$0xff]  ;;  %vm11493_vm3 = vmmov %vm11487_vm5 }
 0x3d6   : > { %v5717_v3 = vrot.slane %v5697_v14, 4  ;;  %v5718_v47 = vrot.slane %v5701_v11, 4  ;;  %v1913_v32 = vadd.f32 %v11466_v55, %v1717_v23  ;;  %v4610_v6 = vstv %s6039_s19  ;;  %v11475_v23 = vld [vmem:[#allocation55_spill] sm:$0xff] }
 0x3d7   : > { %v4614_v55 = vmul.f32 %v10276_v41, %v4610_v6  ;;  %vm11491_vm2 = vcmask 547840   ;;  %vm11495_vm9 = vcmask 392192  }
 0x3d8   : > { %v5044_v40 = vpop.permute.xlu1 %5043  ;;  %5531 = vrot.lane.b32.xlu0 %v5522_v61, %s6237_s6  ;;  %v10749_v13 = vpop.permute.xlu0 %5000  ;;  %5529 = vrot.lane.b32.xlu1 %v5519_v4, %s6237_s6  ;;  %v2108_v33 = vadd.f32 %v11467_v42, %v1913_v32  ;;  %v5722_v61 = vsel %vm4585_vm8, %v5720_v38, %v5721_v56  ;;  %v4616_v38 = vmul.f32 %v10252_v9, %v4610_v6  ;;  %v11476_v56 = vld [vmem:[#allocation19_spill] sm:$0xff]  ;;  %vm11492_vm13 = vmmov %vm11491_vm2 }
 0x3d9   : > { %v4618_v32 = vmul.f32 %v10289_v50, %v4610_v6  ;;  %v4636_v9 = vrot.slane %v4614_v55, 4  ;;  %vm11494_vm1 = vmmov %vm11491_vm2 }
 0x3dc   : > { %v5048_v54 = vpop.permute.xlu1 %5047  ;;  %5535 = vrot.lane.b32.xlu0 %v5528_v1, %s6237_s6  ;;  %v5046_v34 = vpop.permute.xlu0 %5045  ;;  %5533 = vrot.lane.b32.xlu1 %v5525_v45, %s6237_s6  ;;  %v6182_v45 = vld [vmem:[%s6339_s29] sm:$0xf0] }
 0x3dd   : > { %v5051_v5 = vsel %vm466_vm4, %v5044_v40, %v5046_v34  ;;  %v5052_v49 = vsel %vm466_vm4, %v5046_v34, %v5048_v54  ;;  %v4611_v14 = vmul.f32 %v6182_v45, %v4610_v6  ;;  %v4612_v34 = vmul.f32 %v10239_v25, %v4610_v6  ;;  %v11483_v45 = vld [vmem:[#allocation15_spill] sm:$0xff] }
 0x3de   : > { %v10767_v58 = vadd.f32 %v5051_v5, %v10717_v37  ;;  %v10770_v48 = vadd.f32 %v5052_v49, %v10719_v7  ;;  %v5719_v37 = vsel %vm4585_vm8, %v5717_v3, %v5718_v47  ;;  %v11468_v7 = vld [vmem:[#allocation73_spill] sm:$0xff]  ;;  %v6184_v3 = vld [vmem:[%s6339_s29 + $0x10] sm:$0xf0] }
 0x3df   : > { %v2309_v28 = vadd.f32 %v11468_v7, %v2108_v33  ;;  %v4627_v49 = vrot.slane %v4611_v14, 4  ;;  %v4613_v47 = vmul.f32 %v6184_v3, %v4610_v6  ;;  %v11477_v7 = vld [vmem:[#allocation13_spill] sm:$0xff] }
 0x3e0   : > { %v10773_v39 = vpop.permute.xlu1 %5188  ;;  %5725 = vrot.lane.b32.xlu0 %v5716_v30, %s6238_s20  ;;  %v5050_v8 = vpop.permute.xlu0 %5049  ;;  %5723 = vrot.lane.b32.xlu1 %v5713_v2, %s6238_s20  ;;  %v6183_v30 = vld [vmem:[%s6339_s29 + $0x20] sm:$0xf] }
 0x3e1   : > { %v5053_v26 = vsel %vm466_vm4, %v5048_v54, %v5050_v8  ;;  %v10778_v43 = vadd.f32 %v5050_v8, %v4867_v27  ;;  %v2505_v27 = vadd.f32 %v11469_v51, %v2309_v28  ;;  %v4615_v2 = vmul.f32 %v6183_v30, %v4610_v6  ;;  %vm11480_vm4 = vmmov %vm11442_vm6 }
 0x3e2   : > { %v10782_v21 = vadd.f32 %v5053_v26, %v4866_v57  ;;  %v4630_v26 = vrot.slane %v4612_v34, 4  ;;  %v4633_v51 = vrot.slane %v4613_v47, 4  ;;  %vm11481_vm14 = vmmov %vm11480_vm4 }
 0x3e3   : > { %v2700_v18 = vadd.f32 %v11470_v35, %v2505_v27  ;;  %v4628_v8 = vrot.slane %v4615_v2, 4  ;;  %v4637_v27 = vrot.slane %v4618_v32, 4  ;;  %v5002_v2 = vsel %vm11484_vm15, %v10722_v36, %v10741_v60  ;;  %vm11486_vm10 = vmmov %vm11480_vm4  ;;  %v11489_v36 = vld [vmem:[#allocation42_spill] sm:$0xff] }
 0x3e4   : > { %v10785_v4 = vpop.permute.xlu1 %5192  ;;  %5729 = vrot.lane.b32.xlu0 %v5722_v61, %s6238_s20  ;;  %v10788_v31 = vpop.permute.xlu0 %5190  ;;  %5727 = vrot.lane.b32.xlu1 %v5719_v37, %s6238_s20  ;;  %v4631_v61 = vrot.slane %v4616_v38, 4  ;;  %v6185_v37 = vld [vmem:[%s6339_s29 + $0x30] sm:$0xf]  ;;  %vm11496_vm6 = vmmov %vm11495_vm9  ;;  %s6066_s29 = smul.u32 24, %s11530_s12 }
 0x3e5   : > { %v2896_v44 = vadd.f32 %v11471_v53, %v2700_v18  ;;  %v4617_v25 = vmul.f32 %v6185_v37, %v4610_v6  ;;  %v11478_v53 = vld [vmem:[#allocation14_spill] sm:$0xff]  ;;  %v4629_v41 = vsel %vm4585_vm8, %v4627_v49, %v4628_v8  ;;  %v4809_v6 = vsel %vm11481_vm14, %v10674_v16, %v10671_v63  ;;  %vm11497_vm11 = vmmov %vm11496_vm6 }
 0x3e6   : > { %v4632_v50 = vsel %vm4585_vm8, %v4630_v26, %v4631_v61  ;;  %v4643_v14 = vadd.f32 %v4629_v41, %v11483_v45  ;;  %v5196_v49 = vsel %vm11487_vm5, %v10773_v39, %v10788_v31  ;;  %vm11499_vm14 = vmmov %vm11494_vm1  ;;  %s226_s20 = scalar_lea.vmem %s10941_s3, %s6066_s29 }
 0x3e7   : > { %v3091_v24 = vadd.f32 %v11472_v15, %v2896_v44  ;;  %v4634_v15 = vrot.slane %v4617_v25, 4  ;;  %vm11500_vm15 = vmmov %vm11493_vm3 }
 0x3e8   : > { %v10793_v12 = vpop.permute.xlu1 %5237  ;;  %v10795_v57 = vpop.permute.xlu0 %5194 }
 0x3e9   : > { %v3287_v0 = vadd.f32 %v11473_v46, %v3091_v24  ;;  %v11479_v24 = vld [vmem:[#allocation44_spill] sm:$0xff]  ;;  %v4635_v30 = vsel %vm4585_vm8, %v4633_v51, %v4634_v15 }
 0x3ea   : > { %v4645_v47 = vadd.f32 %v4635_v30, %v11489_v36 }
 0x3eb   : > { %v3488_v1 = vadd.f32 %v11474_v22, %v3287_v0  ;;  %v4808_v0 = vsel %vm11480_vm4, %v10653_v59, %v10674_v16  ;;  %v11482_v22 = vld [vmem:[#allocation30_spill] sm:$0xff]  ;;  %v5003_v59 = vsel %vm11485_vm0, %v10741_v60, %v10738_v52  ;;  %vm11498_vm4 = vmmov %vm11493_vm3 }
 0x3ec   : > { %v10799_v62 = vpop.permute.xlu1 %5241  ;;  %v10801_v40 = vpop.permute.xlu0 %5239  ;;  %v4815_v38 = vadd.f32 %v4808_v0, %v4643_v14  ;;  %vm11501_vm0 = vmmov %vm11493_vm3 }
 0x3ed   : > { %v3683_v54 = vadd.f32 %v11475_v23, %v3488_v1  ;;  %v4644_v1 = vadd.f32 %v4632_v50, %v11482_v22  ;;  %v4638_v23 = vsel %vm4585_vm8, %v4636_v9, %v4637_v27  ;;  %vm11488_vm8 = vmmov %vm11487_vm5 }
 0x3ee   : > { %v5197_v3 = vsel %vm11488_vm8, %v10788_v31, %v10785_v4  ;;  %v5009_v55 = vadd.f32 %v5002_v2, %v4815_v38  ;;  %vm11503_vm5 = vmmov %vm11494_vm1 }
 0x3ef   : > { %v3879_v5 = vadd.f32 %v11476_v56, %v3683_v54  ;;  %v4816_v16 = vadd.f32 %v4809_v6, %v4644_v1  ;;  %vm11504_vm8 = vmmov %vm11494_vm1 }
 0x3f0   : > { %v5383_v11 = vpop.permute.xlu1 %5382  ;;  %v10806_v10 = vpop.permute.xlu0 %5243  ;;  %v5203_v25 = vadd.f32 %v5196_v49, %v5009_v55 }
 0x3f1   : > { %v4074_v28 = vadd.f32 %v11477_v7, %v3879_v5  ;;  %v4810_v5 = vsel %vm11486_vm10, %v10671_v63, %v10694_v20  ;;  %v5010_v32 = vadd.f32 %v5003_v59, %v4816_v16  ;;  %v5004_v63 = vsel %vm11490_vm12, %v10738_v52, %v10749_v13  ;;  %vm11502_vm10 = vmmov %vm11496_vm6 }
 0x3f2   : > { %v4817_v37 = vadd.f32 %v4810_v5, %v4645_v47  ;;  %v5247_v30 = vsel %vm11501_vm0, %v10799_v62, %v10806_v10  ;;  %vm11505_vm12 = vmmov %vm11496_vm6 }
 0x3f3   : > { %v4270_v44 = vadd.f32 %v11478_v53, %v4074_v28  ;;  %v5204_v31 = vadd.f32 %v5197_v3, %v5010_v32  ;;  %v5198_v28 = vsel %vm11493_vm3, %v10785_v4, %v10795_v57  ;;  %v5254_v38 = vadd.f32 %v5247_v30, %v10782_v21 }
 0x3f4   : > { %v5387_v42 = vpop.permute.xlu1 %5386  ;;  %v5385_v33 = vpop.permute.xlu0 %5384  ;;  %v5011_v51 = vadd.f32 %v5004_v63, %v4817_v37 }
 0x3f5   : > { %v4466_v46 = vadd.f32 %v11479_v24, %v4270_v44  ;;  %v5390_v61 = vsel %vm11491_vm2, %v5383_v11, %v5385_v33  ;;  %v5391_v39 = vsel %vm11492_vm13, %v5385_v33, %v5387_v42  ;;  %vm11506_vm2 = vmmov %vm11496_vm6  ;;  %vm11507_vm13 = vcmask 859136  }
 0x3f6   : > { %v5397_v9 = vadd.f32 %v5390_v61, %v5203_v25  ;;  %v5205_v41 = vadd.f32 %v5198_v28, %v5011_v51  ;;  %vm11508_vm3 = vmmov %vm11507_vm13 }
 0x3f7   : > { %v4646_v56 = vadd.f32 %v4638_v23, %v4466_v46  ;;  %v5246_v23 = vsel %vm11500_vm15, %v10801_v40, %v10799_v62  ;;  %vm11515_vm15 = vmmov %vm11506_vm2 }
 0x3f8   : > { %v10818_v35 = vpop.permute.xlu1 %5431  ;;  %v5389_v18 = vpop.permute.xlu0 %5388 }
 0x3f9   : > { %v4818_v26 = vadd.f32 %v10694_v20, %v4646_v56  ;;  %v5398_v20 = vadd.f32 %v5391_v39, %v5204_v31  ;;  %v5392_v11 = vsel %vm11494_vm1, %v5387_v42, %v5389_v18  ;;  %vm11509_vm1 = vmmov %vm11501_vm0 }
 0x3fa   : > { %v5399_v24 = vadd.f32 %v5392_v11, %v5205_v41 }
 0x3fb   : > { %v5012_v7 = vadd.f32 %v10749_v13, %v4818_v26 }
 0x3fc   : > { %v5436_v54 = vpop.permute.xlu1 %5435  ;;  %v5434_v34 = vpop.permute.xlu0 %5433 }
 0x3fd   : > { %v5206_v52 = vadd.f32 %v10795_v57, %v5012_v7  ;;  %v5439_v22 = vsel %vm11499_vm14, %v10818_v35, %v5434_v34  ;;  %vm11514_vm14 = vmmov %vm11501_vm0 }
 0x3ff   : > { %v5400_v15 = vadd.f32 %v5389_v18, %v5206_v52  ;;  %v5245_v18 = vsel %vm11498_vm4, %v10793_v12, %v10801_v40  ;;  %v5440_v12 = vsel %vm11503_vm5, %v5434_v34, %v5436_v54  ;;  %v5255_v34 = vadd.f32 %v10806_v10, %v10778_v43  ;;  %vm11513_vm4 = vmmov %vm11503_vm5 }
 0x400   : > { %v5577_v60 = vpop.permute.xlu1 %5576  ;;  %v10850_v8 = vpop.permute.xlu0 %5437  ;;  %v5252_v1 = vadd.f32 %v5245_v18, %v10767_v58  ;;  %v5253_v58 = vadd.f32 %v5246_v23, %v10770_v48 }
 0x401   : > { %v5441_v35 = vsel %vm11504_vm8, %v5436_v54, %v10850_v8  ;;  %v5449_v26 = vadd.f32 %v10850_v8, %v5255_v34 }
 0x402   : > { %v5446_v59 = vadd.f32 %v5439_v22, %v5252_v1  ;;  %v5447_v3 = vadd.f32 %v5440_v12, %v5253_v58  ;;  %v5448_v36 = vadd.f32 %v5441_v35, %v5254_v38 }
 0x404   : > { %v5581_v27 = vpop.permute.xlu1 %5580  ;;  %v5579_v53 = vpop.permute.xlu0 %5578 }
 0x405   : > { %v5584_v33 = vsel %vm11495_vm9, %v5577_v60, %v5579_v53  ;;  %v5585_v44 = vsel %vm11496_vm6, %v5579_v53, %v5581_v27  ;;  %vm11510_vm9 = vmmov %vm11501_vm0 }
 0x406   : > { %v5591_v50 = vadd.f32 %v5584_v33, %v5397_v9  ;;  %v5592_v13 = vadd.f32 %v5585_v44, %v5398_v20  ;;  %vm11511_vm6 = vmmov %vm11508_vm3 }
 0x407   : > { %vm11516_vm0 = vmmov %vm11506_vm2 }
 0x408   : > { %5746 = vrot.lane.b32.xlu0 %v5592_v13, %s6260_s28  ;;  %v5583_v4 = vpop.permute.xlu0 %5582  ;;  %5744 = vrot.lane.b32.xlu1 %v5591_v50, %s6260_s28  ;;  %v5626_v42 = vpop.permute.xlu1 %5625 }
 0x409   : > { %v5586_v46 = vsel %vm11497_vm11, %v5581_v27, %v5583_v4  ;;  %v5594_v0 = vadd.f32 %v5583_v4, %v5400_v15  ;;  %vm11512_vm11 = vmmov %vm11503_vm5  ;;  %vm11518_vm5 = vcmask 359424  }
 0x40a   : > { %v5593_v57 = vadd.f32 %v5586_v46, %v5399_v24  ;;  %vm11519_vm8 = vmmov %vm11518_vm5 }
 0x40c   : > { %5750 = vrot.lane.b32.xlu0 %v5594_v0, %s6260_s28  ;;  %5748 = vrot.lane.b32.xlu1 %v5593_v57, %s6260_s28  ;;  %v5628_v6 = vpop.permute.xlu0 %5627  ;;  %v5630_v45 = vpop.permute.xlu1 %5629 }
 0x40d   : > { %v5633_v2 = vsel %vm11502_vm10, %v5626_v42, %v5628_v6  ;;  %v5634_v40 = vsel %vm11505_vm12, %v5628_v6, %v5630_v45  ;;  %vm11517_vm10 = vmmov %vm11513_vm4 }
 0x40e   : > { %v5640_v16 = vadd.f32 %v5633_v2, %v5446_v59  ;;  %v5641_v54 = vadd.f32 %v5634_v40, %v5447_v3  ;;  %vm11520_vm12 = vmmov %vm11516_vm0 }
 0x410   : > { %v5632_v14 = vpop.permute.xlu0 %5631 }
 0x411   : > { %v5635_v49 = vsel %vm11506_vm2, %v5630_v45, %v5632_v14  ;;  %v5643_v39 = vadd.f32 %v5632_v14, %v5449_v26  ;;  %vm11521_vm2 = vmmov %vm11518_vm5 }
 0x412   : > { %v5642_v55 = vadd.f32 %v5635_v49, %v5448_v36 }
 0x42a   : > { %v5768_v56 = vpop.permute.xlu0 %5767  ;;  %v5766_v5 = vpop.permute.xlu1 %5765 }
 0x42b   : > { %v5773_v62 = vsel %vm3430_vm7, %v5766_v5, %v5768_v56 }
 0x42c   : > { %v5780_v47 = vadd.f32 %v5773_v62, %v5640_v16 }
 0x42e   : > { %v5772_v48 = vpop.permute.xlu0 %5771  ;;  %v5770_v32 = vpop.permute.xlu1 %5769  ;;  %5788 = vrot.lane.b32.xlu1 %v5780_v47, %s6250_s8 }
 0x42f   : > { %v5774_v21 = vsel %vm3430_vm7, %v5768_v56, %v5770_v32  ;;  %v5775_v60 = vsel %vm3430_vm7, %v5770_v32, %v5772_v48  ;;  %v5783_v43 = vadd.f32 %v5772_v48, %v5643_v39 }
 0x430   : > { %v5781_v63 = vadd.f32 %v5774_v21, %v5641_v54  ;;  %v5782_v61 = vadd.f32 %v5775_v60, %v5642_v55 }
 0x432   : > { %5790 = vrot.lane.b32.xlu0 %v5781_v63, %s6250_s8  ;;  %5792 = vrot.lane.b32.xlu1 %v5782_v61, %s6250_s8  ;;  %v4948_v10 = vpop.permute.xlu1 %4947  ;;  %v4950_v37 = vpop.permute.xlu0 %4949 }
 0x433   : > { %v4955_v4 = vsel %vm11507_vm13, %v4948_v10, %v4950_v37  ;;  %vm11522_vm13 = vcmask 1031168  }
 0x434   : > { %v4961_v42 = vadd.f32 %v4955_v4, %v10643_v29 }
 0x436   : > { %5794 = vrot.lane.b32.xlu0 %v5783_v43, %s6250_s8  ;;  %v4952_v25 = vpop.permute.xlu1 %4951  ;;  %v4954_v31 = vpop.permute.xlu0 %4953 }
 0x437   : > { %v4956_v46 = vsel %vm11508_vm3, %v4950_v37, %v4952_v25  ;;  %v4957_v6 = vsel %vm11511_vm6, %v4952_v25, %v4954_v31  ;;  %vm11523_vm3 = vmmov %vm11522_vm13 }
 0x438   : > { %v4962_v18 = vadd.f32 %v4956_v46, %v10645_v17  ;;  %v4963_v59 = vadd.f32 %v4957_v6, %v10663_v19 }
 0x43a   : > { %v5142_v7 = vpop.permute.xlu1 %5141  ;;  %v5144_v28 = vpop.permute.xlu0 %5143 }
 0x43b   : > { %v5149_v0 = vsel %vm11509_vm1, %v5142_v7, %v5144_v28 }
 0x43c   : > { %v5155_v14 = vadd.f32 %v5149_v0, %v4961_v42 }
 0x43e   : > { %v5146_v51 = vpop.permute.xlu1 %5145  ;;  %v5148_v9 = vpop.permute.xlu0 %5147 }
 0x43f   : > { %v5150_v57 = vsel %vm11510_vm9, %v5144_v28, %v5146_v51  ;;  %v5151_v23 = vsel %vm11514_vm14, %v5146_v51, %v5148_v9 }
 0x440   : > { %v5156_v30 = vadd.f32 %v5150_v57, %v4962_v18  ;;  %v5157_v38 = vadd.f32 %v5151_v23, %v4963_v59 }
 0x442   : > { %v5336_v20 = vpop.permute.xlu1 %5335  ;;  %v5338_v8 = vpop.permute.xlu0 %5337 }
 0x443   : > { %v5343_v1 = vsel %vm11512_vm11, %v5336_v20, %v5338_v8 }
 0x444   : > { %v5349_v35 = vadd.f32 %v5343_v1, %v5155_v14 }
 0x446   : > { %v5340_v27 = vpop.permute.xlu1 %5339  ;;  %v5342_v53 = vpop.permute.xlu0 %5341 }
 0x447   : > { %v5344_v45 = vsel %vm11513_vm4, %v5338_v8, %v5340_v27  ;;  %v5345_v58 = vsel %vm11517_vm10, %v5340_v27, %v5342_v53 }
 0x448   : > { %v5350_v17 = vadd.f32 %v5344_v45, %v5156_v30  ;;  %v5351_v3 = vadd.f32 %v5345_v58, %v5157_v38 }
 0x44a   : > { %v5530_v52 = vpop.permute.xlu1 %5529  ;;  %v5532_v11 = vpop.permute.xlu0 %5531 }
 0x44b   : > { %v5537_v12 = vsel %vm11515_vm15, %v5530_v52, %v5532_v11 }
 0x44c   : > { %v5543_v5 = vadd.f32 %v5537_v12, %v5349_v35 }
 0x44e   : > { %v5534_v33 = vpop.permute.xlu1 %5533  ;;  %v5536_v44 = vpop.permute.xlu0 %5535 }
 0x44f   : > { %v5538_v29 = vsel %vm11516_vm0, %v5532_v11, %v5534_v33  ;;  %v5539_v40 = vsel %vm11520_vm12, %v5534_v33, %v5536_v44 }
 0x450   : > { %v5544_v49 = vadd.f32 %v5538_v29, %v5350_v17  ;;  %v5545_v48 = vadd.f32 %v5539_v40, %v5351_v3 }
 0x452   : > { %v5724_v41 = vpop.permute.xlu1 %5723  ;;  %v5726_v50 = vpop.permute.xlu0 %5725 }
 0x453   : > { %v5731_v16 = vsel %vm11518_vm5, %v5724_v41, %v5726_v50 }
 0x454   : > { %v5737_v34 = vadd.f32 %v5731_v16, %v5543_v5 }
 0x456   : > { %v5728_v13 = vpop.permute.xlu1 %5727  ;;  %v5730_v15 = vpop.permute.xlu0 %5729 }
 0x457   : > { %v5732_v56 = vsel %vm11519_vm8, %v5726_v50, %v5728_v13  ;;  %v5733_v54 = vsel %vm11521_vm2, %v5728_v13, %v5730_v15 }
 0x458   : > { %v5738_v55 = vadd.f32 %v5732_v56, %v5544_v49  ;;  %v5739_v61 = vadd.f32 %v5733_v54, %v5545_v48 }
 0x47a   : > { %v5745_v24 = vpop.permute.xlu1 %5744  ;;  %v5747_v22 = vpop.permute.xlu0 %5746 }
 0x47b   : > { %v5752_v36 = vsel %vm3430_vm7, %v5745_v24, %v5747_v22 }
 0x47c   : > { %v5758_v32 = vadd.f32 %v5752_v36, %v5737_v34 }
 0x47e   : > { %v5749_v2 = vpop.permute.xlu1 %5748  ;;  %v5751_v62 = vpop.permute.xlu0 %5750 }
 0x47f   : > { %v5753_v47 = vsel %vm3430_vm7, %v5747_v22, %v5749_v2  ;;  %v5754_v21 = vsel %vm3430_vm7, %v5749_v2, %v5751_v62  ;;  %vm11524_vm7 = vmmov %vm11523_vm3 }
 0x480   : > { %v5759_v60 = vadd.f32 %v5753_v47, %v5738_v55  ;;  %v5760_v25 = vadd.f32 %v5754_v21, %v5739_v61 }
 0x4a0   : > { %v5789_v19 = vpop.permute.xlu1 %5788 }
 0x4a4   : > { %v5791_v26 = vpop.permute.xlu0 %5790  ;;  %v5793_v63 = vpop.permute.xlu1 %5792 }
 0x4a5   : > { %v5796_v39 = vsel %vm11522_vm13, %v5789_v19, %v5791_v26  ;;  %v5797_v43 = vsel %vm11523_vm3, %v5791_v26, %v5793_v63 }
 0x4a6   : > { %v5802_v10 = vadd.f32 %v5796_v39, %v5758_v32  ;;  %v5803_v37 = vadd.f32 %v5797_v43, %v5759_v60 }
 0x4a8   : > { %vm5805_vm1 = vcmp.ge.f32.partialorder %v5802_v10, 0.0  ;;  %v5808_v31 = vmul.f32 0.01, %v5802_v10  ;;  %vm5806_vm9 = vcmp.ge.f32.partialorder %v5803_v37, 0.0  ;;  %v5809_v7 = vmul.f32 0.01, %v5803_v37  ;;  %v5795_v28 = vpop.permute.xlu0 %5794 }
 0x4a9   : > { %v5798_v51 = vsel %vm11524_vm7, %v5793_v63, %v5795_v28 }
 0x4aa   : > { %v5811_v9 = vsel %vm5805_vm1, %v5802_v10, %v5808_v31  ;;  %v5812_v20 = vsel %vm5806_vm9, %v5803_v37, %v5809_v7  ;;  %v5804_v8 = vadd.f32 %v5798_v51, %v5760_v25 }
 0x4ab   : > { %5814 = vst [vmem:[%s226_s20] sm:$0xff] %v5811_v9  ;;  %5815 = vst [vmem:[%s226_s20 + $0x8] sm:$0xff] %v5812_v20 }
 0x4ac   : > { %vm5807_vm6 = vcmp.ge.f32.partialorder %v5804_v8, 0.0  ;;  %v5810_v27 = vmul.f32 0.01, %v5804_v8 }
 0x4ae   : > { %v5813_v53 = vsel %vm5807_vm6, %v5804_v8, %v5810_v27 }
 0x4af   : > { %5816 = vst [vmem:[%s226_s20 + $0x10] sm:$0xff] %v5813_v53 }
 0x4b0 PF: > { %s14_s14 = sadd.s32 1, %s6227_s14   ;;  %s11525_s12 = smov %s6223_s13 }
 0x4b1   : > { %p11_p2 = scmp.ge.s32.totalorder %s14_s14, 4   ;;  %s11526_s13 = smov %s11528_s16 }
 0x4b3   :  { %13 = sbr.rel (!%p11_p2) target bundleno = 2 (0x2), region = 70 }
 0x4b8   :  { %5846 = vsyncpa [#allocation3], 1 }
 0x4b9   :  { %5848 = vsyncpa [#allocation3 + $0x1], 1 }

</bundles_post_ra>
